<compile_context>
chip_gen: v6e
topology: v6e:2x2x1
jax: 0.10.0
libtpu: 0.0.40
codegen_flags: <defaults>
</compile_context>

<pallas_src>
import math

import numpy as np
import jax
import jax.numpy as jnp
from jax.experimental import pallas as pl
from jax.experimental.pallas import tpu as pltpu

BN_EPS = 1e-5


# --------------------------------------------------------------------------
# Fused Conv(+bias) + BatchNorm(batch stats) + ReLU + (optional residual add)
# --------------------------------------------------------------------------

def _make_conv_bn_relu_kernel(num_taps, offsets, n_tok, inv_count, eps,
                              add_res):
    """Kernel factory.  Static config is closed over.

    Grid: (B,) "arbitrary".  Per step b: build the (num_taps*C, N) tap matrix
    in VMEM (rolls + boundary masks), one bf16 MXU matmul -> y_b (E, N), store
    it into the VMEM-resident output block and accumulate per-channel
    sum / sum-of-squares.  On the last step: finish BN, ReLU, add residual and
    overwrite the whole output block.
    """

    def kernel(*refs):
        i = 0
        x_ref = refs[i]; i += 1                       # (1, C, N) f32
        if num_taps > 1:
            m_ref = refs[i]; i += 1                   # (num_taps, N) f32 masks
        w_ref, b_ref, g_ref, bt_ref = refs[i:i + 4]   # (E,K) bf16, (E,1) f32 x3
        i += 4
        if add_res:
            r_ref = refs[i]; i += 1                   # (B, E, N) f32
        o_ref, sum_ref, ssq_ref = refs[i:i + 3]       # out + 2 VMEM scratches

        step = pl.program_id(0)
        last = pl.num_programs(0) - 1

        @pl.when(step == 0)
        def _init():
            sum_ref[...] = jnp.zeros_like(sum_ref)
            ssq_ref[...] = jnp.zeros_like(ssq_ref)

        x = x_ref[0]                                   # (C, N), tokens on lanes

        if num_taps == 1:                              # 1x1x1 conv
            xcat = x
        else:                                          # 3x3x3 conv: VMEM im2col
            parts = []
            for t, off in enumerate(offsets):
                if off == 0:                           # center tap, mask == 1
                    parts.append(x)
                else:
                    xr = pltpu.roll(x, (-off) % n_tok, axis=1)
                    parts.append(xr * m_ref[t:t + 1, :])
            xcat = jnp.concatenate(parts, axis=0)      # (num_taps*C, N)

        y = jnp.dot(w_ref[...], xcat.astype(jnp.bfloat16),
                    preferred_element_type=jnp.float32) + b_ref[...]  # (E, N)

        o_ref[step] = y                                # output block is resident
        sum_ref[...] += jnp.sum(y, axis=1, keepdims=True)
        ssq_ref[...] += jnp.sum(y * y, axis=1, keepdims=True)

        @pl.when(step == last)
        def _finalize():
            mean = sum_ref[...] * inv_count                    # (E, 1)
            var = ssq_ref[...] * inv_count - mean * mean       # biased var
            scale = g_ref[...] * jax.lax.rsqrt(var + eps)
            bn_shift = bt_ref[...] - mean * scale
            z = jnp.maximum(o_ref[...] * scale[None] + bn_shift[None], 0.0)
            if add_res:
                z = z + r_ref[...]
            o_ref[...] = z

    return kernel


def _conv_bn_relu_add(x_bcn, w_mat, bias, gamma, beta, *,
                      offsets=(0,), masks=None, res=None):
    """x_bcn: (B, C, N) f32 activations, tokens last (lane-dense).
    w_mat:  (E, num_taps*C) conv weight matrix (col index = tap*C + c).
    Returns (B, E, N) f32 = ReLU(BN(conv(x)+bias)) [+ res]."""
    B, Cin, N = x_bcn.shape
    E, K = w_mat.shape
    num_taps = len(offsets)
    assert K == num_taps * Cin
    add_res = res is not None

    kernel = _make_conv_bn_relu_kernel(
        num_taps, tuple(int(o) for o in offsets), N,
        1.0 / float(B * N), BN_EPS, add_res)

    in_specs = [pl.BlockSpec((1, Cin, N), lambda b: (b, 0, 0))]
    args = [x_bcn]
    if num_taps > 1:
        in_specs.append(pl.BlockSpec((num_taps, N), lambda b: (0, 0)))
        args.append(masks)
    in_specs += [pl.BlockSpec((E, K), lambda b: (0, 0)),
                 pl.BlockSpec((E, 1), lambda b: (0, 0)),
                 pl.BlockSpec((E, 1), lambda b: (0, 0)),
                 pl.BlockSpec((E, 1), lambda b: (0, 0))]
    args += [w_mat.astype(jnp.bfloat16),
             bias.reshape(E, 1).astype(jnp.float32),
             gamma.reshape(E, 1).astype(jnp.float32),
             beta.reshape(E, 1).astype(jnp.float32)]
    if add_res:
        in_specs.append(pl.BlockSpec((B, E, N), lambda b: (0, 0, 0)))
        args.append(res)

    return pl.pallas_call(
        kernel,
        out_shape=jax.ShapeDtypeStruct((B, E, N), jnp.float32),
        grid=(B,),
        in_specs=in_specs,
        # Constant index_map => output stays VMEM-resident across the batch
        # axis and is written back to HBM once, at the end.
        out_specs=pl.BlockSpec((B, E, N), lambda b: (0, 0, 0)),
        scratch_shapes=[pltpu.VMEM((E, 1), jnp.float32),   # sum(y)
                        pltpu.VMEM((E, 1), jnp.float32)],  # sum(y*y)
        compiler_params=pltpu.CompilerParams(
            dimension_semantics=("arbitrary",)),   # BN needs a global reduce
    )(*args)


# --------------------------------------------------------------------------
# Host-side glue (trace-time only; no per-element HBM traffic)
# --------------------------------------------------------------------------

def _tap_offsets_and_masks(D, H, W):
    """Flat-token offsets and boundary-validity masks for the 27 conv taps."""
    N = D * H * W
    idx = np.arange(N)
    d = idx // (H * W)
    h = (idx // W) % H
    w = idx % W
    offsets, masks = [], []
    for kd in range(3):
        for kh in range(3):
            for kw in range(3):
                dd, dh, dw = kd - 1, kh - 1, kw - 1
                offsets.append(dd * H * W + dh * W + dw)
                valid = ((d + dd >= 0) & (d + dd < D) &
                         (h + dh >= 0) & (h + dh < H) &
                         (w + dw >= 0) & (w + dw < W))
                masks.append(valid.astype(np.float32))
    return tuple(offsets), np.stack(masks, axis=0)        # (27, N)


def _conv3_weight_to_mat(w):
    """(E, C, 3, 3, 3) OIDHW weight -> (E, 27*C) with col = tap*C + c."""
    E, C = w.shape[0], w.shape[1]
    return jnp.transpose(w, (0, 2, 3, 4, 1)).reshape(E, 27 * C)


def residual_block_forward(x_ncdhw, params):
    """Residual_block.forward; x_ncdhw: (B, Cin, D, H, W) -> (B, E, D, H, W)."""
    B, Cin, D, H, W = x_ncdhw.shape
    N = D * H * W
    x3 = x_ncdhw.reshape(B, Cin, N).astype(jnp.float32)   # NCDHW is already
    offsets, masks_np = _tap_offsets_and_masks(D, H, W)   # channels-first.
    masks = jnp.asarray(masks_np)

    # Conv_res: 1x1x1 conv + BN + ReLU (no residual add).
    w, b, g, be = params['conv_res']
    E = w.shape[0]
    x_res = _conv_bn_relu_add(x3, w.reshape(E, -1), b, g, be)

    # Conv: first 3x3x3 conv + BN + ReLU, then add x_res.
    w, b, g, be = params['convs'][0]
    x_out = _conv_bn_relu_add(x3, _conv3_weight_to_mat(w), b, g, be,
                              offsets=offsets, masks=masks, res=x_res)

    # Remain_Conv: each adds its own output onto the running x_out.
    for (w, b, g, be) in params['convs'][1:]:
        x_out = _conv_bn_relu_add(x_out, _conv3_weight_to_mat(w), b, g, be,
                                  offsets=offsets, masks=masks, res=x_out)

    return x_out.reshape(B, E, D, H, W)


# --------------------------------------------------------------------------
# Pure-JAX reference (for a semantics check against the Pallas path)
# --------------------------------------------------------------------------

def _conv_block_ref(x, w, b, gamma, beta):
    y = jax.lax.conv_general_dilated(
        x, w, window_strides=(1, 1, 1), padding='SAME',
        dimension_numbers=('NCDHW', 'OIDHW', 'NCDHW'))
    y = y + b.reshape(1, -1, 1, 1, 1)
    mean = jnp.mean(y, axis=(0, 2, 3, 4), keepdims=True)
    var = jnp.mean(jnp.square(y - mean), axis=(0, 2, 3, 4), keepdims=True)
    yn = (y - mean) * jax.lax.rsqrt(var + BN_EPS)
    return jnp.maximum(gamma.reshape(1, -1, 1, 1, 1) * yn
                       + beta.reshape(1, -1, 1, 1, 1), 0.0)


def residual_block_ref(x, params):
    x_res = _conv_block_ref(x, *params['conv_res'])
    x_out = _conv_block_ref(x, *params['convs'][0]) + x_res
    for p in params['convs'][1:]:
        x_out = _conv_block_ref(x_out, *p) + x_out
    return x_out


# --------------------------------------------------------------------------
# Parameter init (matches nn.Conv3d / nn.BatchNorm3d defaults)
# --------------------------------------------------------------------------

def init_params(key, in_channels, out_channels, conv_num):
    n_convs = conv_num + 1
    keys = iter(jax.random.split(key, 2 * n_convs))

    def conv_block_params(cin, cout, k):
        fan_in = cin * k ** 3
        bound = 1.0 / math.sqrt(fan_in)
        w = jax.random.uniform(next(keys), (cout, cin, k, k, k),
                               jnp.float32, -bound, bound)
        b = jax.random.uniform(next(keys), (cout,), jnp.float32, -bound, bound)
        return (w, b, jnp.ones((cout,), jnp.float32),
                jnp.zeros((cout,), jnp.float32))

    return {
        'conv_res': conv_block_params(in_channels, out_channels, 1),
        'convs': ([conv_block_params(in_channels, out_channels, 3)]
                  + [conv_block_params(out_channels, out_channels, 3)
                     for _ in range(conv_num - 1)]),
    }


# --------------------------------------------------------------------------

if __name__ == "__main__":
    B, Cin, D, H, W = 2, 4, 8, 8, 8
    out_channels, conv_num = 32, 3

    key = jax.random.PRNGKey(0)
    kx, kp = jax.random.split(key)
    x = jax.random.normal(kx, (B, Cin, D, H, W), jnp.float32)
    params = init_params(kp, Cin, out_channels, conv_num)

    fwd = jax.jit(residual_block_forward)
    out = jax.block_until_ready(fwd(x, params))
    assert out.shape == (B, out_channels, D, H, W)
    assert bool(jnp.all(jnp.isfinite(out)))

    # Semantics check vs. plain-JAX f32 reference (Pallas path uses bf16 MXU
    # inputs, so tolerance is loose but far below any structural-error scale).
    ref = jax.block_until_ready(jax.jit(residual_block_ref)(x, params))
    np.testing.assert_allclose(np.asarray(out), np.asarray(ref),
                               rtol=1e-1, atol=1e-1)

    print("KERNEL_OK")
</pallas_src>

<mosaic_0001>
module attributes {stable_mosaic.version = 11 : i64} {
  func.func @kernel(%arg0: i32, %arg1: memref<1x4x512xf32, #tpu.memory_space<vmem>>, %arg2: memref<32x4xbf16, #tpu.memory_space<vmem>>, %arg3: memref<32x1xf32, #tpu.memory_space<vmem>>, %arg4: memref<32x1xf32, #tpu.memory_space<vmem>>, %arg5: memref<32x1xf32, #tpu.memory_space<vmem>>, %arg6: memref<2x32x512xf32, #tpu.memory_space<vmem>>, %arg7: memref<32x1xf32, #tpu.memory_space<vmem>>, %arg8: memref<32x1xf32, #tpu.memory_space<vmem>>) attributes {dimension_semantics = [#tpu.dimension_semantics<arbitrary>], iteration_bounds = array<i64: 2>, scalar_prefetch = 0 : i64, scratch_operands = 2 : i64, tpu.core_type = #tpu.core_type<tc>, window_params = [{transform_indices = @transform_0, window_bounds = array<i64: 1, 4, 512>}, {pipeline_mode = #tpu.pipeline_mode<synchronous>, transform_indices = @transform_1, window_bounds = array<i64: 32, 4>}, {pipeline_mode = #tpu.pipeline_mode<synchronous>, transform_indices = @transform_2, window_bounds = array<i64: 32, 1>}, {pipeline_mode = #tpu.pipeline_mode<synchronous>, transform_indices = @transform_3, window_bounds = array<i64: 32, 1>}, {pipeline_mode = #tpu.pipeline_mode<synchronous>, transform_indices = @transform_4, window_bounds = array<i64: 32, 1>}, {pipeline_mode = #tpu.pipeline_mode<synchronous>, transform_indices = @transform_5, window_bounds = array<i64: 2, 32, 512>}]} {
    %c0_i32 = arith.constant 0 : i32
    %0 = arith.cmpi eq, %arg0, %c0_i32 : i32
    %1 = arith.extui %0 : i1 to i32
    %c0_i32_0 = arith.constant 0 : i32
    %2 = arith.cmpi ne, %1, %c0_i32_0 : i32
    scf.if %2 {
      %cst_20 = arith.constant 0.000000e+00 : f32
      %29 = vector.broadcast %cst_20 : f32 to vector<32x1xf32>
      %c0_21 = arith.constant 0 : index
      %c0_22 = arith.constant 0 : index
      %30 = vector.load %arg7[%c0_21, %c0_22] : memref<32x1xf32, #tpu.memory_space<vmem>>, vector<32x1xf32>
      tpu.vector_store %arg7[%c0_21, %c0_22], %29 {strides = array<i32>} : memref<32x1xf32, #tpu.memory_space<vmem>>, vector<32x1xf32>,
      %cst_23 = arith.constant 0.000000e+00 : f32
      %31 = vector.broadcast %cst_23 : f32 to vector<32x1xf32>
      %c0_24 = arith.constant 0 : index
      %c0_25 = arith.constant 0 : index
      %32 = vector.load %arg8[%c0_24, %c0_25] : memref<32x1xf32, #tpu.memory_space<vmem>>, vector<32x1xf32>
      tpu.vector_store %arg8[%c0_24, %c0_25], %31 {strides = array<i32>} : memref<32x1xf32, #tpu.memory_space<vmem>>, vector<32x1xf32>,
    } else {
    }
    %c0 = arith.constant 0 : index
    %c0_1 = arith.constant 0 : index
    %c0_2 = arith.constant 0 : index
    %3 = vector.load %arg1[%c0, %c0_1, %c0_2] : memref<1x4x512xf32, #tpu.memory_space<vmem>>, vector<1x4x512xf32>
    %4 = vector.shape_cast %3 : vector<1x4x512xf32> to vector<4x512xf32>
    %c0_3 = arith.constant 0 : index
    %c0_4 = arith.constant 0 : index
    %5 = vector.load %arg2[%c0_3, %c0_4] : memref<32x4xbf16, #tpu.memory_space<vmem>>, vector<32x4xbf16>
    %6 = arith.truncf %4 : vector<4x512xf32> to vector<4x512xbf16>
    %cst = arith.constant dense<0.000000e+00> : vector<32x512xf32>
    %7 = tpu.matmul %5, %6, %cst {dimension_numbers = #tpu.dot_dimension_numbers<[1], [0], [0], [1], [0, 0, 1, 1], [], []>} : vector<32x4xbf16>, vector<4x512xbf16>, vector<32x512xf32> -> vector<32x512xf32>
    %c0_5 = arith.constant 0 : index
    %c0_6 = arith.constant 0 : index
    %8 = vector.load %arg3[%c0_5, %c0_6] : memref<32x1xf32, #tpu.memory_space<vmem>>, vector<32x1xf32>
    %9 = vector.broadcast %8 : vector<32x1xf32> to vector<32x512xf32>
    %10 = arith.addf %7, %9 : vector<32x512xf32>
    %11 = arith.index_cast %arg0 : i32 to index
    %c0_7 = arith.constant 0 : index
    %c0_8 = arith.constant 0 : index
    %12 = vector.load %arg6[%11, %c0_7, %c0_8] : memref<2x32x512xf32, #tpu.memory_space<vmem>>, vector<1x32x512xf32>
    %13 = vector.shape_cast %12 : vector<1x32x512xf32> to vector<32x512xf32>
    %14 = vector.shape_cast %10 : vector<32x512xf32> to vector<1x32x512xf32>
    tpu.vector_store %arg6[%11, %c0_7, %c0_8], %14 {strides = array<i32>} : memref<2x32x512xf32, #tpu.memory_space<vmem>>, vector<1x32x512xf32>,
    %c0_9 = arith.constant 0 : index
    %c0_10 = arith.constant 0 : index
    %15 = vector.load %arg7[%c0_9, %c0_10] : memref<32x1xf32, #tpu.memory_space<vmem>>, vector<32x1xf32>
    %cst_11 = arith.constant dense<0.000000e+00> : vector<32xf32>
    %16 = vector.multi_reduction <add>, %10, %cst_11 [1] : vector<32x512xf32> to vector<32xf32>
    %17 = vector.shape_cast %16 : vector<32xf32> to vector<32x1xf32>
    %18 = arith.addf %15, %17 : vector<32x1xf32>
    %c0_12 = arith.constant 0 : index
    %c0_13 = arith.constant 0 : index
    %19 = vector.load %arg7[%c0_12, %c0_13] : memref<32x1xf32, #tpu.memory_space<vmem>>, vector<32x1xf32>
    tpu.vector_store %arg7[%c0_12, %c0_13], %18 {strides = array<i32>} : memref<32x1xf32, #tpu.memory_space<vmem>>, vector<32x1xf32>,
    %c0_14 = arith.constant 0 : index
    %c0_15 = arith.constant 0 : index
    %20 = vector.load %arg8[%c0_14, %c0_15] : memref<32x1xf32, #tpu.memory_space<vmem>>, vector<32x1xf32>
    %21 = arith.mulf %10, %10 : vector<32x512xf32>
    %cst_16 = arith.constant dense<0.000000e+00> : vector<32xf32>
    %22 = vector.multi_reduction <add>, %21, %cst_16 [1] : vector<32x512xf32> to vector<32xf32>
    %23 = vector.shape_cast %22 : vector<32xf32> to vector<32x1xf32>
    %24 = arith.addf %20, %23 : vector<32x1xf32>
    %c0_17 = arith.constant 0 : index
    %c0_18 = arith.constant 0 : index
    %25 = vector.load %arg8[%c0_17, %c0_18] : memref<32x1xf32, #tpu.memory_space<vmem>>, vector<32x1xf32>
    tpu.vector_store %arg8[%c0_17, %c0_18], %24 {strides = array<i32>} : memref<32x1xf32, #tpu.memory_space<vmem>>, vector<32x1xf32>,
    %c1_i32 = arith.constant 1 : i32
    %26 = arith.cmpi eq, %arg0, %c1_i32 : i32
    %27 = arith.extui %26 : i1 to i32
    %c0_i32_19 = arith.constant 0 : i32
    %28 = arith.cmpi ne, %27, %c0_i32_19 : i32
    scf.if %28 {
      %c0_20 = arith.constant 0 : index
      %c0_21 = arith.constant 0 : index
      %29 = vector.load %arg7[%c0_20, %c0_21] : memref<32x1xf32, #tpu.memory_space<vmem>>, vector<32x1xf32>
      %cst_22 = arith.constant 9.765625E-4 : f32
      %30 = vector.broadcast %cst_22 : f32 to vector<32x1xf32>
      %31 = arith.mulf %29, %30 : vector<32x1xf32>
      %c0_23 = arith.constant 0 : index
      %c0_24 = arith.constant 0 : index
      %32 = vector.load %arg8[%c0_23, %c0_24] : memref<32x1xf32, #tpu.memory_space<vmem>>, vector<32x1xf32>
      %cst_25 = arith.constant 9.765625E-4 : f32
      %33 = vector.broadcast %cst_25 : f32 to vector<32x1xf32>
      %34 = arith.mulf %32, %33 : vector<32x1xf32>
      %35 = arith.mulf %31, %31 : vector<32x1xf32>
      %36 = arith.subf %34, %35 : vector<32x1xf32>
      %c0_26 = arith.constant 0 : index
      %c0_27 = arith.constant 0 : index
      %37 = vector.load %arg4[%c0_26, %c0_27] : memref<32x1xf32, #tpu.memory_space<vmem>>, vector<32x1xf32>
      %cst_28 = arith.constant 9.99999974E-6 : f32
      %38 = vector.broadcast %cst_28 : f32 to vector<32x1xf32>
      %39 = arith.addf %36, %38 : vector<32x1xf32>
      %40 = math.rsqrt %39 : vector<32x1xf32>
      %41 = arith.mulf %37, %40 : vector<32x1xf32>
      %c0_29 = arith.constant 0 : index
      %c0_30 = arith.constant 0 : index
      %42 = vector.load %arg5[%c0_29, %c0_30] : memref<32x1xf32, #tpu.memory_space<vmem>>, vector<32x1xf32>
      %43 = arith.mulf %31, %41 : vector<32x1xf32>
      %44 = arith.subf %42, %43 : vector<32x1xf32>
      %c0_31 = arith.constant 0 : index
      %c0_32 = arith.constant 0 : index
      %c0_33 = arith.constant 0 : index
      %45 = vector.load %arg6[%c0_31, %c0_32, %c0_33] : memref<2x32x512xf32, #tpu.memory_space<vmem>>, vector<2x32x512xf32>
      %46 = vector.shape_cast %41 : vector<32x1xf32> to vector<1x32x1xf32>
      %47 = vector.broadcast %46 : vector<1x32x1xf32> to vector<2x32x512xf32>
      %48 = arith.mulf %45, %47 : vector<2x32x512xf32>
      %49 = vector.shape_cast %44 : vector<32x1xf32> to vector<1x32x1xf32>
      %50 = vector.broadcast %49 : vector<1x32x1xf32> to vector<2x32x512xf32>
      %51 = arith.addf %48, %50 : vector<2x32x512xf32>
      %cst_34 = arith.constant 0.000000e+00 : f32
      %52 = vector.broadcast %cst_34 : f32 to vector<2x32x512xf32>
      %53 = arith.maximumf %51, %52 : vector<2x32x512xf32>
      %c0_35 = arith.constant 0 : index
      %c0_36 = arith.constant 0 : index
      %c0_37 = arith.constant 0 : index
      %54 = vector.load %arg6[%c0_35, %c0_36, %c0_37] : memref<2x32x512xf32, #tpu.memory_space<vmem>>, vector<2x32x512xf32>
      tpu.vector_store %arg6[%c0_35, %c0_36, %c0_37], %53 {strides = array<i32>} : memref<2x32x512xf32, #tpu.memory_space<vmem>>, vector<2x32x512xf32>,
    } else {
    }
    return
  }
  func.func @transform_0(%arg0: i32) -> (i32, i32, i32) {
    %c0_i32 = arith.constant 0 : i32
    %c0_i32_0 = arith.constant 0 : i32
    %c0_i32_1 = arith.constant 0 : i32
    return %arg0, %c0_i32, %c0_i32_0 : i32, i32, i32
  }
  func.func @transform_1(%arg0: i32) -> (i32, i32) {
    %c0_i32 = arith.constant 0 : i32
    %c0_i32_0 = arith.constant 0 : i32
    %c0_i32_1 = arith.constant 0 : i32
    return %c0_i32, %c0_i32_0 : i32, i32
  }
  func.func @transform_2(%arg0: i32) -> (i32, i32) {
    %c0_i32 = arith.constant 0 : i32
    %c0_i32_0 = arith.constant 0 : i32
    %c0_i32_1 = arith.constant 0 : i32
    return %c0_i32, %c0_i32_0 : i32, i32
  }
  func.func @transform_3(%arg0: i32) -> (i32, i32) {
    %c0_i32 = arith.constant 0 : i32
    %c0_i32_0 = arith.constant 0 : i32
    %c0_i32_1 = arith.constant 0 : i32
    return %c0_i32, %c0_i32_0 : i32, i32
  }
  func.func @transform_4(%arg0: i32) -> (i32, i32) {
    %c0_i32 = arith.constant 0 : i32
    %c0_i32_0 = arith.constant 0 : i32
    %c0_i32_1 = arith.constant 0 : i32
    return %c0_i32, %c0_i32_0 : i32, i32
  }
  func.func @transform_5(%arg0: i32) -> (i32, i32, i32) {
    %c0_i32 = arith.constant 0 : i32
    %c0_i32_0 = arith.constant 0 : i32
    %c0_i32_1 = arith.constant 0 : i32
    %c0_i32_2 = arith.constant 0 : i32
    return %c0_i32, %c0_i32_0, %c0_i32_1 : i32, i32, i32
  }
}

module attributes {stable_mosaic.version = 11 : i64} {
  func.func @kernel(%arg0: i32, %arg1: memref<1x4x512xf32, #tpu.memory_space<vmem>>, %arg2: memref<27x512xf32, #tpu.memory_space<vmem>>, %arg3: memref<32x108xbf16, #tpu.memory_space<vmem>>, %arg4: memref<32x1xf32, #tpu.memory_space<vmem>>, %arg5: memref<32x1xf32, #tpu.memory_space<vmem>>, %arg6: memref<32x1xf32, #tpu.memory_space<vmem>>, %arg7: memref<2x32x512xf32, #tpu.memory_space<vmem>>, %arg8: memref<2x32x512xf32, #tpu.memory_space<vmem>>, %arg9: memref<32x1xf32, #tpu.memory_space<vmem>>, %arg10: memref<32x1xf32, #tpu.memory_space<vmem>>) attributes {dimension_semantics = [#tpu.dimension_semantics<arbitrary>], iteration_bounds = array<i64: 2>, scalar_prefetch = 0 : i64, scratch_operands = 2 : i64, tpu.core_type = #tpu.core_type<tc>, window_params = [{transform_indices = @transform_0, window_bounds = array<i64: 1, 4, 512>}, {pipeline_mode = #tpu.pipeline_mode<synchronous>, transform_indices = @transform_1, window_bounds = array<i64: 27, 512>}, {pipeline_mode = #tpu.pipeline_mode<synchronous>, transform_indices = @transform_2, window_bounds = array<i64: 32, 108>}, {pipeline_mode = #tpu.pipeline_mode<synchronous>, transform_indices = @transform_3, window_bounds = array<i64: 32, 1>}, {pipeline_mode = #tpu.pipeline_mode<synchronous>, transform_indices = @transform_4, window_bounds = array<i64: 32, 1>}, {pipeline_mode = #tpu.pipeline_mode<synchronous>, transform_indices = @transform_5, window_bounds = array<i64: 32, 1>}, {pipeline_mode = #tpu.pipeline_mode<synchronous>, transform_indices = @transform_6, window_bounds = array<i64: 2, 32, 512>}, {pipeline_mode = #tpu.pipeline_mode<synchronous>, transform_indices = @transform_7, window_bounds = array<i64: 2, 32, 512>}]} {
    %c0_i32 = arith.constant 0 : i32
    %0 = arith.cmpi eq, %arg0, %c0_i32 : i32
    %1 = arith.extui %0 : i1 to i32
    %c0_i32_0 = arith.constant 0 : i32
    %2 = arith.cmpi ne, %1, %c0_i32_0 : i32
    scf.if %2 {
      %cst_48 = arith.constant 0.000000e+00 : f32
      %136 = vector.broadcast %cst_48 : f32 to vector<32x1xf32>
      %c0_49 = arith.constant 0 : index
      %c0_50 = arith.constant 0 : index
      %137 = vector.load %arg9[%c0_49, %c0_50] : memref<32x1xf32, #tpu.memory_space<vmem>>, vector<32x1xf32>
      tpu.vector_store %arg9[%c0_49, %c0_50], %136 {strides = array<i32>} : memref<32x1xf32, #tpu.memory_space<vmem>>, vector<32x1xf32>,
      %cst_51 = arith.constant 0.000000e+00 : f32
      %138 = vector.broadcast %cst_51 : f32 to vector<32x1xf32>
      %c0_52 = arith.constant 0 : index
      %c0_53 = arith.constant 0 : index
      %139 = vector.load %arg10[%c0_52, %c0_53] : memref<32x1xf32, #tpu.memory_space<vmem>>, vector<32x1xf32>
      tpu.vector_store %arg10[%c0_52, %c0_53], %138 {strides = array<i32>} : memref<32x1xf32, #tpu.memory_space<vmem>>, vector<32x1xf32>,
    } else {
    }
    %c0 = arith.constant 0 : index
    %c0_1 = arith.constant 0 : index
    %c0_2 = arith.constant 0 : index
    %3 = vector.load %arg1[%c0, %c0_1, %c0_2] : memref<1x4x512xf32, #tpu.memory_space<vmem>>, vector<1x4x512xf32>
    %4 = vector.shape_cast %3 : vector<1x4x512xf32> to vector<4x512xf32>
    %c73_i32 = arith.constant 73 : i32
    %5 = tpu.dynamic_rotate %4 by %c73_i32 dim 1 : vector<4x512xf32>, i32 -> vector<4x512xf32>
    %c0_3 = arith.constant 0 : index
    %c0_4 = arith.constant 0 : index
    %6 = vector.load %arg2[%c0_3, %c0_4] : memref<27x512xf32, #tpu.memory_space<vmem>>, vector<1x512xf32>
    %7 = vector.broadcast %6 : vector<1x512xf32> to vector<4x512xf32>
    %8 = arith.mulf %5, %7 : vector<4x512xf32>
    %c72_i32 = arith.constant 72 : i32
    %9 = tpu.dynamic_rotate %4 by %c72_i32 dim 1 : vector<4x512xf32>, i32 -> vector<4x512xf32>
    %c1 = arith.constant 1 : index
    %c0_5 = arith.constant 0 : index
    %10 = vector.load %arg2[%c1, %c0_5] : memref<27x512xf32, #tpu.memory_space<vmem>>, vector<1x512xf32>
    %11 = vector.broadcast %10 : vector<1x512xf32> to vector<4x512xf32>
    %12 = arith.mulf %9, %11 : vector<4x512xf32>
    %c71_i32 = arith.constant 71 : i32
    %13 = tpu.dynamic_rotate %4 by %c71_i32 dim 1 : vector<4x512xf32>, i32 -> vector<4x512xf32>
    %c2 = arith.constant 2 : index
    %c0_6 = arith.constant 0 : index
    %14 = vector.load %arg2[%c2, %c0_6] : memref<27x512xf32, #tpu.memory_space<vmem>>, vector<1x512xf32>
    %15 = vector.broadcast %14 : vector<1x512xf32> to vector<4x512xf32>
    %16 = arith.mulf %13, %15 : vector<4x512xf32>
    %c65_i32 = arith.constant 65 : i32
    %17 = tpu.dynamic_rotate %4 by %c65_i32 dim 1 : vector<4x512xf32>, i32 -> vector<4x512xf32>
    %c3 = arith.constant 3 : index
    %c0_7 = arith.constant 0 : index
    %18 = vector.load %arg2[%c3, %c0_7] : memref<27x512xf32, #tpu.memory_space<vmem>>, vector<1x512xf32>
    %19 = vector.broadcast %18 : vector<1x512xf32> to vector<4x512xf32>
    %20 = arith.mulf %17, %19 : vector<4x512xf32>
    %c64_i32 = arith.constant 64 : i32
    %21 = tpu.dynamic_rotate %4 by %c64_i32 dim 1 : vector<4x512xf32>, i32 -> vector<4x512xf32>
    %c4 = arith.constant 4 : index
    %c0_8 = arith.constant 0 : index
    %22 = vector.load %arg2[%c4, %c0_8] : memref<27x512xf32, #tpu.memory_space<vmem>>, vector<1x512xf32>
    %23 = vector.broadcast %22 : vector<1x512xf32> to vector<4x512xf32>
    %24 = arith.mulf %21, %23 : vector<4x512xf32>
    %c63_i32 = arith.constant 63 : i32
    %25 = tpu.dynamic_rotate %4 by %c63_i32 dim 1 : vector<4x512xf32>, i32 -> vector<4x512xf32>
    %c5 = arith.constant 5 : index
    %c0_9 = arith.constant 0 : index
    %26 = vector.load %arg2[%c5, %c0_9] : memref<27x512xf32, #tpu.memory_space<vmem>>, vector<1x512xf32>
    %27 = vector.broadcast %26 : vector<1x512xf32> to vector<4x512xf32>
    %28 = arith.mulf %25, %27 : vector<4x512xf32>
    %c57_i32 = arith.constant 57 : i32
    %29 = tpu.dynamic_rotate %4 by %c57_i32 dim 1 : vector<4x512xf32>, i32 -> vector<4x512xf32>
    %c6 = arith.constant 6 : index
    %c0_10 = arith.constant 0 : index
    %30 = vector.load %arg2[%c6, %c0_10] : memref<27x512xf32, #tpu.memory_space<vmem>>, vector<1x512xf32>
    %31 = vector.broadcast %30 : vector<1x512xf32> to vector<4x512xf32>
    %32 = arith.mulf %29, %31 : vector<4x512xf32>
    %c56_i32 = arith.constant 56 : i32
    %33 = tpu.dynamic_rotate %4 by %c56_i32 dim 1 : vector<4x512xf32>, i32 -> vector<4x512xf32>
    %c7 = arith.constant 7 : index
    %c0_11 = arith.constant 0 : index
    %34 = vector.load %arg2[%c7, %c0_11] : memref<27x512xf32, #tpu.memory_space<vmem>>, vector<1x512xf32>
    %35 = vector.broadcast %34 : vector<1x512xf32> to vector<4x512xf32>
    %36 = arith.mulf %33, %35 : vector<4x512xf32>
    %c55_i32 = arith.constant 55 : i32
    %37 = tpu.dynamic_rotate %4 by %c55_i32 dim 1 : vector<4x512xf32>, i32 -> vector<4x512xf32>
    %c8 = arith.constant 8 : index
    %c0_12 = arith.constant 0 : index
    %38 = vector.load %arg2[%c8, %c0_12] : memref<27x512xf32, #tpu.memory_space<vmem>>, vector<1x512xf32>
    %39 = vector.broadcast %38 : vector<1x512xf32> to vector<4x512xf32>
    %40 = arith.mulf %37, %39 : vector<4x512xf32>
    %c9_i32 = arith.constant 9 : i32
    %41 = tpu.dynamic_rotate %4 by %c9_i32 dim 1 : vector<4x512xf32>, i32 -> vector<4x512xf32>
    %c9 = arith.constant 9 : index
    %c0_13 = arith.constant 0 : index
    %42 = vector.load %arg2[%c9, %c0_13] : memref<27x512xf32, #tpu.memory_space<vmem>>, vector<1x512xf32>
    %43 = vector.broadcast %42 : vector<1x512xf32> to vector<4x512xf32>
    %44 = arith.mulf %41, %43 : vector<4x512xf32>
    %c8_i32 = arith.constant 8 : i32
    %45 = tpu.dynamic_rotate %4 by %c8_i32 dim 1 : vector<4x512xf32>, i32 -> vector<4x512xf32>
    %c10 = arith.constant 10 : index
    %c0_14 = arith.constant 0 : index
    %46 = vector.load %arg2[%c10, %c0_14] : memref<27x512xf32, #tpu.memory_space<vmem>>, vector<1x512xf32>
    %47 = vector.broadcast %46 : vector<1x512xf32> to vector<4x512xf32>
    %48 = arith.mulf %45, %47 : vector<4x512xf32>
    %c7_i32 = arith.constant 7 : i32
    %49 = tpu.dynamic_rotate %4 by %c7_i32 dim 1 : vector<4x512xf32>, i32 -> vector<4x512xf32>
    %c11 = arith.constant 11 : index
    %c0_15 = arith.constant 0 : index
    %50 = vector.load %arg2[%c11, %c0_15] : memref<27x512xf32, #tpu.memory_space<vmem>>, vector<1x512xf32>
    %51 = vector.broadcast %50 : vector<1x512xf32> to vector<4x512xf32>
    %52 = arith.mulf %49, %51 : vector<4x512xf32>
    %c1_i32 = arith.constant 1 : i32
    %53 = tpu.dynamic_rotate %4 by %c1_i32 dim 1 : vector<4x512xf32>, i32 -> vector<4x512xf32>
    %c12 = arith.constant 12 : index
    %c0_16 = arith.constant 0 : index
    %54 = vector.load %arg2[%c12, %c0_16] : memref<27x512xf32, #tpu.memory_space<vmem>>, vector<1x512xf32>
    %55 = vector.broadcast %54 : vector<1x512xf32> to vector<4x512xf32>
    %56 = arith.mulf %53, %55 : vector<4x512xf32>
    %c511_i32 = arith.constant 511 : i32
    %57 = tpu.dynamic_rotate %4 by %c511_i32 dim 1 : vector<4x512xf32>, i32 -> vector<4x512xf32>
    %c14 = arith.constant 14 : index
    %c0_17 = arith.constant 0 : index
    %58 = vector.load %arg2[%c14, %c0_17] : memref<27x512xf32, #tpu.memory_space<vmem>>, vector<1x512xf32>
    %59 = vector.broadcast %58 : vector<1x512xf32> to vector<4x512xf32>
    %60 = arith.mulf %57, %59 : vector<4x512xf32>
    %c505_i32 = arith.constant 505 : i32
    %61 = tpu.dynamic_rotate %4 by %c505_i32 dim 1 : vector<4x512xf32>, i32 -> vector<4x512xf32>
    %c15 = arith.constant 15 : index
    %c0_18 = arith.constant 0 : index
    %62 = vector.load %arg2[%c15, %c0_18] : memref<27x512xf32, #tpu.memory_space<vmem>>, vector<1x512xf32>
    %63 = vector.broadcast %62 : vector<1x512xf32> to vector<4x512xf32>
    %64 = arith.mulf %61, %63 : vector<4x512xf32>
    %c504_i32 = arith.constant 504 : i32
    %65 = tpu.dynamic_rotate %4 by %c504_i32 dim 1 : vector<4x512xf32>, i32 -> vector<4x512xf32>
    %c16 = arith.constant 16 : index
    %c0_19 = arith.constant 0 : index
    %66 = vector.load %arg2[%c16, %c0_19] : memref<27x512xf32, #tpu.memory_space<vmem>>, vector<1x512xf32>
    %67 = vector.broadcast %66 : vector<1x512xf32> to vector<4x512xf32>
    %68 = arith.mulf %65, %67 : vector<4x512xf32>
    %c503_i32 = arith.constant 503 : i32
    %69 = tpu.dynamic_rotate %4 by %c503_i32 dim 1 : vector<4x512xf32>, i32 -> vector<4x512xf32>
    %c17 = arith.constant 17 : index
    %c0_20 = arith.constant 0 : index
    %70 = vector.load %arg2[%c17, %c0_20] : memref<27x512xf32, #tpu.memory_space<vmem>>, vector<1x512xf32>
    %71 = vector.broadcast %70 : vector<1x512xf32> to vector<4x512xf32>
    %72 = arith.mulf %69, %71 : vector<4x512xf32>
    %c457_i32 = arith.constant 457 : i32
    %73 = tpu.dynamic_rotate %4 by %c457_i32 dim 1 : vector<4x512xf32>, i32 -> vector<4x512xf32>
    %c18 = arith.constant 18 : index
    %c0_21 = arith.constant 0 : index
    %74 = vector.load %arg2[%c18, %c0_21] : memref<27x512xf32, #tpu.memory_space<vmem>>, vector<1x512xf32>
    %75 = vector.broadcast %74 : vector<1x512xf32> to vector<4x512xf32>
    %76 = arith.mulf %73, %75 : vector<4x512xf32>
    %c456_i32 = arith.constant 456 : i32
    %77 = tpu.dynamic_rotate %4 by %c456_i32 dim 1 : vector<4x512xf32>, i32 -> vector<4x512xf32>
    %c19 = arith.constant 19 : index
    %c0_22 = arith.constant 0 : index
    %78 = vector.load %arg2[%c19, %c0_22] : memref<27x512xf32, #tpu.memory_space<vmem>>, vector<1x512xf32>
    %79 = vector.broadcast %78 : vector<1x512xf32> to vector<4x512xf32>
    %80 = arith.mulf %77, %79 : vector<4x512xf32>
    %c455_i32 = arith.constant 455 : i32
    %81 = tpu.dynamic_rotate %4 by %c455_i32 dim 1 : vector<4x512xf32>, i32 -> vector<4x512xf32>
    %c20 = arith.constant 20 : index
    %c0_23 = arith.constant 0 : index
    %82 = vector.load %arg2[%c20, %c0_23] : memref<27x512xf32, #tpu.memory_space<vmem>>, vector<1x512xf32>
    %83 = vector.broadcast %82 : vector<1x512xf32> to vector<4x512xf32>
    %84 = arith.mulf %81, %83 : vector<4x512xf32>
    %c449_i32 = arith.constant 449 : i32
    %85 = tpu.dynamic_rotate %4 by %c449_i32 dim 1 : vector<4x512xf32>, i32 -> vector<4x512xf32>
    %c21 = arith.constant 21 : index
    %c0_24 = arith.constant 0 : index
    %86 = vector.load %arg2[%c21, %c0_24] : memref<27x512xf32, #tpu.memory_space<vmem>>, vector<1x512xf32>
    %87 = vector.broadcast %86 : vector<1x512xf32> to vector<4x512xf32>
    %88 = arith.mulf %85, %87 : vector<4x512xf32>
    %c448_i32 = arith.constant 448 : i32
    %89 = tpu.dynamic_rotate %4 by %c448_i32 dim 1 : vector<4x512xf32>, i32 -> vector<4x512xf32>
    %c22 = arith.constant 22 : index
    %c0_25 = arith.constant 0 : index
    %90 = vector.load %arg2[%c22, %c0_25] : memref<27x512xf32, #tpu.memory_space<vmem>>, vector<1x512xf32>
    %91 = vector.broadcast %90 : vector<1x512xf32> to vector<4x512xf32>
    %92 = arith.mulf %89, %91 : vector<4x512xf32>
    %c447_i32 = arith.constant 447 : i32
    %93 = tpu.dynamic_rotate %4 by %c447_i32 dim 1 : vector<4x512xf32>, i32 -> vector<4x512xf32>
    %c23 = arith.constant 23 : index
    %c0_26 = arith.constant 0 : index
    %94 = vector.load %arg2[%c23, %c0_26] : memref<27x512xf32, #tpu.memory_space<vmem>>, vector<1x512xf32>
    %95 = vector.broadcast %94 : vector<1x512xf32> to vector<4x512xf32>
    %96 = arith.mulf %93, %95 : vector<4x512xf32>
    %c441_i32 = arith.constant 441 : i32
    %97 = tpu.dynamic_rotate %4 by %c441_i32 dim 1 : vector<4x512xf32>, i32 -> vector<4x512xf32>
    %c24 = arith.constant 24 : index
    %c0_27 = arith.constant 0 : index
    %98 = vector.load %arg2[%c24, %c0_27] : memref<27x512xf32, #tpu.memory_space<vmem>>, vector<1x512xf32>
    %99 = vector.broadcast %98 : vector<1x512xf32> to vector<4x512xf32>
    %100 = arith.mulf %97, %99 : vector<4x512xf32>
    %c440_i32 = arith.constant 440 : i32
    %101 = tpu.dynamic_rotate %4 by %c440_i32 dim 1 : vector<4x512xf32>, i32 -> vector<4x512xf32>
    %c25 = arith.constant 25 : index
    %c0_28 = arith.constant 0 : index
    %102 = vector.load %arg2[%c25, %c0_28] : memref<27x512xf32, #tpu.memory_space<vmem>>, vector<1x512xf32>
    %103 = vector.broadcast %102 : vector<1x512xf32> to vector<4x512xf32>
    %104 = arith.mulf %101, %103 : vector<4x512xf32>
    %c439_i32 = arith.constant 439 : i32
    %105 = tpu.dynamic_rotate %4 by %c439_i32 dim 1 : vector<4x512xf32>, i32 -> vector<4x512xf32>
    %c26 = arith.constant 26 : index
    %c0_29 = arith.constant 0 : index
    %106 = vector.load %arg2[%c26, %c0_29] : memref<27x512xf32, #tpu.memory_space<vmem>>, vector<1x512xf32>
    %107 = vector.broadcast %106 : vector<1x512xf32> to vector<4x512xf32>
    %108 = arith.mulf %105, %107 : vector<4x512xf32>
    %109 = tpu.concatenate %8, %12, %16, %20, %24, %28, %32, %36, %40, %44, %48, %52, %56, %4, %60, %64 in 0 : vector<4x512xf32>, vector<4x512xf32>, vector<4x512xf32>, vector<4x512xf32>, vector<4x512xf32>, vector<4x512xf32>, vector<4x512xf32>, vector<4x512xf32>, vector<4x512xf32>, vector<4x512xf32>, vector<4x512xf32>, vector<4x512xf32>, vector<4x512xf32>, vector<4x512xf32>, vector<4x512xf32>, vector<4x512xf32> -> vector<64x512xf32>
    %110 = tpu.concatenate %68, %72, %76, %80, %84, %88, %92, %96, %100, %104, %108 in 0 : vector<4x512xf32>, vector<4x512xf32>, vector<4x512xf32>, vector<4x512xf32>, vector<4x512xf32>, vector<4x512xf32>, vector<4x512xf32>, vector<4x512xf32>, vector<4x512xf32>, vector<4x512xf32>, vector<4x512xf32> -> vector<44x512xf32>
    %111 = tpu.concatenate %109, %110 in 0 : vector<64x512xf32>, vector<44x512xf32> -> vector<108x512xf32>
    %c0_30 = arith.constant 0 : index
    %c0_31 = arith.constant 0 : index
    %112 = vector.load %arg3[%c0_30, %c0_31] : memref<32x108xbf16, #tpu.memory_space<vmem>>, vector<32x108xbf16>
    %113 = arith.truncf %111 : vector<108x512xf32> to vector<108x512xbf16>
    %cst = arith.constant dense<0.000000e+00> : vector<32x512xf32>
    %114 = tpu.matmul %112, %113, %cst {dimension_numbers = #tpu.dot_dimension_numbers<[1], [0], [0], [1], [0, 0, 1, 1], [], []>} : vector<32x108xbf16>, vector<108x512xbf16>, vector<32x512xf32> -> vector<32x512xf32>
    %c0_32 = arith.constant 0 : index
    %c0_33 = arith.constant 0 : index
    %115 = vector.load %arg4[%c0_32, %c0_33] : memref<32x1xf32, #tpu.memory_space<vmem>>, vector<32x1xf32>
    %116 = vector.broadcast %115 : vector<32x1xf32> to vector<32x512xf32>
    %117 = arith.addf %114, %116 : vector<32x512xf32>
    %118 = arith.index_cast %arg0 : i32 to index
    %c0_34 = arith.constant 0 : index
    %c0_35 = arith.constant 0 : index
    %119 = vector.load %arg8[%118, %c0_34, %c0_35] : memref<2x32x512xf32, #tpu.memory_space<vmem>>, vector<1x32x512xf32>
    %120 = vector.shape_cast %119 : vector<1x32x512xf32> to vector<32x512xf32>
    %121 = vector.shape_cast %117 : vector<32x512xf32> to vector<1x32x512xf32>
    tpu.vector_store %arg8[%118, %c0_34, %c0_35], %121 {strides = array<i32>} : memref<2x32x512xf32, #tpu.memory_space<vmem>>, vector<1x32x512xf32>,
    %c0_36 = arith.constant 0 : index
    %c0_37 = arith.constant 0 : index
    %122 = vector.load %arg9[%c0_36, %c0_37] : memref<32x1xf32, #tpu.memory_space<vmem>>, vector<32x1xf32>
    %cst_38 = arith.constant dense<0.000000e+00> : vector<32xf32>
    %123 = vector.multi_reduction <add>, %117, %cst_38 [1] : vector<32x512xf32> to vector<32xf32>
    %124 = vector.shape_cast %123 : vector<32xf32> to vector<32x1xf32>
    %125 = arith.addf %122, %124 : vector<32x1xf32>
    %c0_39 = arith.constant 0 : index
    %c0_40 = arith.constant 0 : index
    %126 = vector.load %arg9[%c0_39, %c0_40] : memref<32x1xf32, #tpu.memory_space<vmem>>, vector<32x1xf32>
    tpu.vector_store %arg9[%c0_39, %c0_40], %125 {strides = array<i32>} : memref<32x1xf32, #tpu.memory_space<vmem>>, vector<32x1xf32>,
    %c0_41 = arith.constant 0 : index
    %c0_42 = arith.constant 0 : index
    %127 = vector.load %arg10[%c0_41, %c0_42] : memref<32x1xf32, #tpu.memory_space<vmem>>, vector<32x1xf32>
    %128 = arith.mulf %117, %117 : vector<32x512xf32>
    %cst_43 = arith.constant dense<0.000000e+00> : vector<32xf32>
    %129 = vector.multi_reduction <add>, %128, %cst_43 [1] : vector<32x512xf32> to vector<32xf32>
    %130 = vector.shape_cast %129 : vector<32xf32> to vector<32x1xf32>
    %131 = arith.addf %127, %130 : vector<32x1xf32>
    %c0_44 = arith.constant 0 : index
    %c0_45 = arith.constant 0 : index
    %132 = vector.load %arg10[%c0_44, %c0_45] : memref<32x1xf32, #tpu.memory_space<vmem>>, vector<32x1xf32>
    tpu.vector_store %arg10[%c0_44, %c0_45], %131 {strides = array<i32>} : memref<32x1xf32, #tpu.memory_space<vmem>>, vector<32x1xf32>,
    %c1_i32_46 = arith.constant 1 : i32
    %133 = arith.cmpi eq, %arg0, %c1_i32_46 : i32
    %134 = arith.extui %133 : i1 to i32
    %c0_i32_47 = arith.constant 0 : i32
    %135 = arith.cmpi ne, %134, %c0_i32_47 : i32
    scf.if %135 {
      %c0_48 = arith.constant 0 : index
      %c0_49 = arith.constant 0 : index
      %136 = vector.load %arg9[%c0_48, %c0_49] : memref<32x1xf32, #tpu.memory_space<vmem>>, vector<32x1xf32>
      %cst_50 = arith.constant 9.765625E-4 : f32
      %137 = vector.broadcast %cst_50 : f32 to vector<32x1xf32>
      %138 = arith.mulf %136, %137 : vector<32x1xf32>
      %c0_51 = arith.constant 0 : index
      %c0_52 = arith.constant 0 : index
      %139 = vector.load %arg10[%c0_51, %c0_52] : memref<32x1xf32, #tpu.memory_space<vmem>>, vector<32x1xf32>
      %cst_53 = arith.constant 9.765625E-4 : f32
      %140 = vector.broadcast %cst_53 : f32 to vector<32x1xf32>
      %141 = arith.mulf %139, %140 : vector<32x1xf32>
      %142 = arith.mulf %138, %138 : vector<32x1xf32>
      %143 = arith.subf %141, %142 : vector<32x1xf32>
      %c0_54 = arith.constant 0 : index
      %c0_55 = arith.constant 0 : index
      %144 = vector.load %arg5[%c0_54, %c0_55] : memref<32x1xf32, #tpu.memory_space<vmem>>, vector<32x1xf32>
      %cst_56 = arith.constant 9.99999974E-6 : f32
      %145 = vector.broadcast %cst_56 : f32 to vector<32x1xf32>
      %146 = arith.addf %143, %145 : vector<32x1xf32>
      %147 = math.rsqrt %146 : vector<32x1xf32>
      %148 = arith.mulf %144, %147 : vector<32x1xf32>
      %c0_57 = arith.constant 0 : index
      %c0_58 = arith.constant 0 : index
      %149 = vector.load %arg6[%c0_57, %c0_58] : memref<32x1xf32, #tpu.memory_space<vmem>>, vector<32x1xf32>
      %150 = arith.mulf %138, %148 : vector<32x1xf32>
      %151 = arith.subf %149, %150 : vector<32x1xf32>
      %c0_59 = arith.constant 0 : index
      %c0_60 = arith.constant 0 : index
      %c0_61 = arith.constant 0 : index
      %152 = vector.load %arg8[%c0_59, %c0_60, %c0_61] : memref<2x32x512xf32, #tpu.memory_space<vmem>>, vector<2x32x512xf32>
      %153 = vector.shape_cast %148 : vector<32x1xf32> to vector<1x32x1xf32>
      %154 = vector.broadcast %153 : vector<1x32x1xf32> to vector<2x32x512xf32>
      %155 = arith.mulf %152, %154 : vector<2x32x512xf32>
      %156 = vector.shape_cast %151 : vector<32x1xf32> to vector<1x32x1xf32>
      %157 = vector.broadcast %156 : vector<1x32x1xf32> to vector<2x32x512xf32>
      %158 = arith.addf %155, %157 : vector<2x32x512xf32>
      %cst_62 = arith.constant 0.000000e+00 : f32
      %159 = vector.broadcast %cst_62 : f32 to vector<2x32x512xf32>
      %160 = arith.maximumf %158, %159 : vector<2x32x512xf32>
      %c0_63 = arith.constant 0 : index
      %c0_64 = arith.constant 0 : index
      %c0_65 = arith.constant 0 : index
      %161 = vector.load %arg7[%c0_63, %c0_64, %c0_65] : memref<2x32x512xf32, #tpu.memory_space<vmem>>, vector<2x32x512xf32>
      %162 = arith.addf %160, %161 : vector<2x32x512xf32>
      %c0_66 = arith.constant 0 : index
      %c0_67 = arith.constant 0 : index
      %c0_68 = arith.constant 0 : index
      %163 = vector.load %arg8[%c0_66, %c0_67, %c0_68] : memref<2x32x512xf32, #tpu.memory_space<vmem>>, vector<2x32x512xf32>
      tpu.vector_store %arg8[%c0_66, %c0_67, %c0_68], %162 {strides = array<i32>} : memref<2x32x512xf32, #tpu.memory_space<vmem>>, vector<2x32x512xf32>,
    } else {
    }
    return
  }
  func.func @transform_0(%arg0: i32) -> (i32, i32, i32) {
    %c0_i32 = arith.constant 0 : i32
    %c0_i32_0 = arith.constant 0 : i32
    %c0_i32_1 = arith.constant 0 : i32
    return %arg0, %c0_i32, %c0_i32_0 : i32, i32, i32
  }
  func.func @transform_1(%arg0: i32) -> (i32, i32) {
    %c0_i32 = arith.constant 0 : i32
    %c0_i32_0 = arith.constant 0 : i32
    %c0_i32_1 = arith.constant 0 : i32
    return %c0_i32, %c0_i32_0 : i32, i32
  }
  func.func @transform_2(%arg0: i32) -> (i32, i32) {
    %c0_i32 = arith.constant 0 : i32
    %c0_i32_0 = arith.constant 0 : i32
    %c0_i32_1 = arith.constant 0 : i32
    return %c0_i32, %c0_i32_0 : i32, i32
  }
  func.func @transform_3(%arg0: i32) -> (i32, i32) {
    %c0_i32 = arith.constant 0 : i32
    %c0_i32_0 = arith.constant 0 : i32
    %c0_i32_1 = arith.constant 0 : i32
    return %c0_i32, %c0_i32_0 : i32, i32
  }
  func.func @transform_4(%arg0: i32) -> (i32, i32) {
    %c0_i32 = arith.constant 0 : i32
    %c0_i32_0 = arith.constant 0 : i32
    %c0_i32_1 = arith.constant 0 : i32
    return %c0_i32, %c0_i32_0 : i32, i32
  }
  func.func @transform_5(%arg0: i32) -> (i32, i32) {
    %c0_i32 = arith.constant 0 : i32
    %c0_i32_0 = arith.constant 0 : i32
    %c0_i32_1 = arith.constant 0 : i32
    return %c0_i32, %c0_i32_0 : i32, i32
  }
  func.func @transform_6(%arg0: i32) -> (i32, i32, i32) {
    %c0_i32 = arith.constant 0 : i32
    %c0_i32_0 = arith.constant 0 : i32
    %c0_i32_1 = arith.constant 0 : i32
    %c0_i32_2 = arith.constant 0 : i32
    return %c0_i32, %c0_i32_0, %c0_i32_1 : i32, i32, i32
  }
  func.func @transform_7(%arg0: i32) -> (i32, i32, i32) {
    %c0_i32 = arith.constant 0 : i32
    %c0_i32_0 = arith.constant 0 : i32
    %c0_i32_1 = arith.constant 0 : i32
    %c0_i32_2 = arith.constant 0 : i32
    return %c0_i32, %c0_i32_0, %c0_i32_1 : i32, i32, i32
  }
}

module attributes {stable_mosaic.version = 11 : i64} {
  func.func @kernel(%arg0: i32, %arg1: memref<1x32x512xf32, #tpu.memory_space<vmem>>, %arg2: memref<27x512xf32, #tpu.memory_space<vmem>>, %arg3: memref<32x864xbf16, #tpu.memory_space<vmem>>, %arg4: memref<32x1xf32, #tpu.memory_space<vmem>>, %arg5: memref<32x1xf32, #tpu.memory_space<vmem>>, %arg6: memref<32x1xf32, #tpu.memory_space<vmem>>, %arg7: memref<2x32x512xf32, #tpu.memory_space<vmem>>, %arg8: memref<2x32x512xf32, #tpu.memory_space<vmem>>, %arg9: memref<32x1xf32, #tpu.memory_space<vmem>>, %arg10: memref<32x1xf32, #tpu.memory_space<vmem>>) attributes {dimension_semantics = [#tpu.dimension_semantics<arbitrary>], iteration_bounds = array<i64: 2>, scalar_prefetch = 0 : i64, scratch_operands = 2 : i64, tpu.core_type = #tpu.core_type<tc>, window_params = [{transform_indices = @transform_0, window_bounds = array<i64: 1, 32, 512>}, {pipeline_mode = #tpu.pipeline_mode<synchronous>, transform_indices = @transform_1, window_bounds = array<i64: 27, 512>}, {pipeline_mode = #tpu.pipeline_mode<synchronous>, transform_indices = @transform_2, window_bounds = array<i64: 32, 864>}, {pipeline_mode = #tpu.pipeline_mode<synchronous>, transform_indices = @transform_3, window_bounds = array<i64: 32, 1>}, {pipeline_mode = #tpu.pipeline_mode<synchronous>, transform_indices = @transform_4, window_bounds = array<i64: 32, 1>}, {pipeline_mode = #tpu.pipeline_mode<synchronous>, transform_indices = @transform_5, window_bounds = array<i64: 32, 1>}, {pipeline_mode = #tpu.pipeline_mode<synchronous>, transform_indices = @transform_6, window_bounds = array<i64: 2, 32, 512>}, {pipeline_mode = #tpu.pipeline_mode<synchronous>, transform_indices = @transform_7, window_bounds = array<i64: 2, 32, 512>}]} {
    %c0_i32 = arith.constant 0 : i32
    %0 = arith.cmpi eq, %arg0, %c0_i32 : i32
    %1 = arith.extui %0 : i1 to i32
    %c0_i32_0 = arith.constant 0 : i32
    %2 = arith.cmpi ne, %1, %c0_i32_0 : i32
    scf.if %2 {
      %cst_48 = arith.constant 0.000000e+00 : f32
      %136 = vector.broadcast %cst_48 : f32 to vector<32x1xf32>
      %c0_49 = arith.constant 0 : index
      %c0_50 = arith.constant 0 : index
      %137 = vector.load %arg9[%c0_49, %c0_50] : memref<32x1xf32, #tpu.memory_space<vmem>>, vector<32x1xf32>
      tpu.vector_store %arg9[%c0_49, %c0_50], %136 {strides = array<i32>} : memref<32x1xf32, #tpu.memory_space<vmem>>, vector<32x1xf32>,
      %cst_51 = arith.constant 0.000000e+00 : f32
      %138 = vector.broadcast %cst_51 : f32 to vector<32x1xf32>
      %c0_52 = arith.constant 0 : index
      %c0_53 = arith.constant 0 : index
      %139 = vector.load %arg10[%c0_52, %c0_53] : memref<32x1xf32, #tpu.memory_space<vmem>>, vector<32x1xf32>
      tpu.vector_store %arg10[%c0_52, %c0_53], %138 {strides = array<i32>} : memref<32x1xf32, #tpu.memory_space<vmem>>, vector<32x1xf32>,
    } else {
    }
    %c0 = arith.constant 0 : index
    %c0_1 = arith.constant 0 : index
    %c0_2 = arith.constant 0 : index
    %3 = vector.load %arg1[%c0, %c0_1, %c0_2] : memref<1x32x512xf32, #tpu.memory_space<vmem>>, vector<1x32x512xf32>
    %4 = vector.shape_cast %3 : vector<1x32x512xf32> to vector<32x512xf32>
    %c73_i32 = arith.constant 73 : i32
    %5 = tpu.dynamic_rotate %4 by %c73_i32 dim 1 : vector<32x512xf32>, i32 -> vector<32x512xf32>
    %c0_3 = arith.constant 0 : index
    %c0_4 = arith.constant 0 : index
    %6 = vector.load %arg2[%c0_3, %c0_4] : memref<27x512xf32, #tpu.memory_space<vmem>>, vector<1x512xf32>
    %7 = vector.broadcast %6 : vector<1x512xf32> to vector<32x512xf32>
    %8 = arith.mulf %5, %7 : vector<32x512xf32>
    %c72_i32 = arith.constant 72 : i32
    %9 = tpu.dynamic_rotate %4 by %c72_i32 dim 1 : vector<32x512xf32>, i32 -> vector<32x512xf32>
    %c1 = arith.constant 1 : index
    %c0_5 = arith.constant 0 : index
    %10 = vector.load %arg2[%c1, %c0_5] : memref<27x512xf32, #tpu.memory_space<vmem>>, vector<1x512xf32>
    %11 = vector.broadcast %10 : vector<1x512xf32> to vector<32x512xf32>
    %12 = arith.mulf %9, %11 : vector<32x512xf32>
    %c71_i32 = arith.constant 71 : i32
    %13 = tpu.dynamic_rotate %4 by %c71_i32 dim 1 : vector<32x512xf32>, i32 -> vector<32x512xf32>
    %c2 = arith.constant 2 : index
    %c0_6 = arith.constant 0 : index
    %14 = vector.load %arg2[%c2, %c0_6] : memref<27x512xf32, #tpu.memory_space<vmem>>, vector<1x512xf32>
    %15 = vector.broadcast %14 : vector<1x512xf32> to vector<32x512xf32>
    %16 = arith.mulf %13, %15 : vector<32x512xf32>
    %c65_i32 = arith.constant 65 : i32
    %17 = tpu.dynamic_rotate %4 by %c65_i32 dim 1 : vector<32x512xf32>, i32 -> vector<32x512xf32>
    %c3 = arith.constant 3 : index
    %c0_7 = arith.constant 0 : index
    %18 = vector.load %arg2[%c3, %c0_7] : memref<27x512xf32, #tpu.memory_space<vmem>>, vector<1x512xf32>
    %19 = vector.broadcast %18 : vector<1x512xf32> to vector<32x512xf32>
    %20 = arith.mulf %17, %19 : vector<32x512xf32>
    %c64_i32 = arith.constant 64 : i32
    %21 = tpu.dynamic_rotate %4 by %c64_i32 dim 1 : vector<32x512xf32>, i32 -> vector<32x512xf32>
    %c4 = arith.constant 4 : index
    %c0_8 = arith.constant 0 : index
    %22 = vector.load %arg2[%c4, %c0_8] : memref<27x512xf32, #tpu.memory_space<vmem>>, vector<1x512xf32>
    %23 = vector.broadcast %22 : vector<1x512xf32> to vector<32x512xf32>
    %24 = arith.mulf %21, %23 : vector<32x512xf32>
    %c63_i32 = arith.constant 63 : i32
    %25 = tpu.dynamic_rotate %4 by %c63_i32 dim 1 : vector<32x512xf32>, i32 -> vector<32x512xf32>
    %c5 = arith.constant 5 : index
    %c0_9 = arith.constant 0 : index
    %26 = vector.load %arg2[%c5, %c0_9] : memref<27x512xf32, #tpu.memory_space<vmem>>, vector<1x512xf32>
    %27 = vector.broadcast %26 : vector<1x512xf32> to vector<32x512xf32>
    %28 = arith.mulf %25, %27 : vector<32x512xf32>
    %c57_i32 = arith.constant 57 : i32
    %29 = tpu.dynamic_rotate %4 by %c57_i32 dim 1 : vector<32x512xf32>, i32 -> vector<32x512xf32>
    %c6 = arith.constant 6 : index
    %c0_10 = arith.constant 0 : index
    %30 = vector.load %arg2[%c6, %c0_10] : memref<27x512xf32, #tpu.memory_space<vmem>>, vector<1x512xf32>
    %31 = vector.broadcast %30 : vector<1x512xf32> to vector<32x512xf32>
    %32 = arith.mulf %29, %31 : vector<32x512xf32>
    %c56_i32 = arith.constant 56 : i32
    %33 = tpu.dynamic_rotate %4 by %c56_i32 dim 1 : vector<32x512xf32>, i32 -> vector<32x512xf32>
    %c7 = arith.constant 7 : index
    %c0_11 = arith.constant 0 : index
    %34 = vector.load %arg2[%c7, %c0_11] : memref<27x512xf32, #tpu.memory_space<vmem>>, vector<1x512xf32>
    %35 = vector.broadcast %34 : vector<1x512xf32> to vector<32x512xf32>
    %36 = arith.mulf %33, %35 : vector<32x512xf32>
    %c55_i32 = arith.constant 55 : i32
    %37 = tpu.dynamic_rotate %4 by %c55_i32 dim 1 : vector<32x512xf32>, i32 -> vector<32x512xf32>
    %c8 = arith.constant 8 : index
    %c0_12 = arith.constant 0 : index
    %38 = vector.load %arg2[%c8, %c0_12] : memref<27x512xf32, #tpu.memory_space<vmem>>, vector<1x512xf32>
    %39 = vector.broadcast %38 : vector<1x512xf32> to vector<32x512xf32>
    %40 = arith.mulf %37, %39 : vector<32x512xf32>
    %c9_i32 = arith.constant 9 : i32
    %41 = tpu.dynamic_rotate %4 by %c9_i32 dim 1 : vector<32x512xf32>, i32 -> vector<32x512xf32>
    %c9 = arith.constant 9 : index
    %c0_13 = arith.constant 0 : index
    %42 = vector.load %arg2[%c9, %c0_13] : memref<27x512xf32, #tpu.memory_space<vmem>>, vector<1x512xf32>
    %43 = vector.broadcast %42 : vector<1x512xf32> to vector<32x512xf32>
    %44 = arith.mulf %41, %43 : vector<32x512xf32>
    %c8_i32 = arith.constant 8 : i32
    %45 = tpu.dynamic_rotate %4 by %c8_i32 dim 1 : vector<32x512xf32>, i32 -> vector<32x512xf32>
    %c10 = arith.constant 10 : index
    %c0_14 = arith.constant 0 : index
    %46 = vector.load %arg2[%c10, %c0_14] : memref<27x512xf32, #tpu.memory_space<vmem>>, vector<1x512xf32>
    %47 = vector.broadcast %46 : vector<1x512xf32> to vector<32x512xf32>
    %48 = arith.mulf %45, %47 : vector<32x512xf32>
    %c7_i32 = arith.constant 7 : i32
    %49 = tpu.dynamic_rotate %4 by %c7_i32 dim 1 : vector<32x512xf32>, i32 -> vector<32x512xf32>
    %c11 = arith.constant 11 : index
    %c0_15 = arith.constant 0 : index
    %50 = vector.load %arg2[%c11, %c0_15] : memref<27x512xf32, #tpu.memory_space<vmem>>, vector<1x512xf32>
    %51 = vector.broadcast %50 : vector<1x512xf32> to vector<32x512xf32>
    %52 = arith.mulf %49, %51 : vector<32x512xf32>
    %c1_i32 = arith.constant 1 : i32
    %53 = tpu.dynamic_rotate %4 by %c1_i32 dim 1 : vector<32x512xf32>, i32 -> vector<32x512xf32>
    %c12 = arith.constant 12 : index
    %c0_16 = arith.constant 0 : index
    %54 = vector.load %arg2[%c12, %c0_16] : memref<27x512xf32, #tpu.memory_space<vmem>>, vector<1x512xf32>
    %55 = vector.broadcast %54 : vector<1x512xf32> to vector<32x512xf32>
    %56 = arith.mulf %53, %55 : vector<32x512xf32>
    %c511_i32 = arith.constant 511 : i32
    %57 = tpu.dynamic_rotate %4 by %c511_i32 dim 1 : vector<32x512xf32>, i32 -> vector<32x512xf32>
    %c14 = arith.constant 14 : index
    %c0_17 = arith.constant 0 : index
    %58 = vector.load %arg2[%c14, %c0_17] : memref<27x512xf32, #tpu.memory_space<vmem>>, vector<1x512xf32>
    %59 = vector.broadcast %58 : vector<1x512xf32> to vector<32x512xf32>
    %60 = arith.mulf %57, %59 : vector<32x512xf32>
    %c505_i32 = arith.constant 505 : i32
    %61 = tpu.dynamic_rotate %4 by %c505_i32 dim 1 : vector<32x512xf32>, i32 -> vector<32x512xf32>
    %c15 = arith.constant 15 : index
    %c0_18 = arith.constant 0 : index
    %62 = vector.load %arg2[%c15, %c0_18] : memref<27x512xf32, #tpu.memory_space<vmem>>, vector<1x512xf32>
    %63 = vector.broadcast %62 : vector<1x512xf32> to vector<32x512xf32>
    %64 = arith.mulf %61, %63 : vector<32x512xf32>
    %c504_i32 = arith.constant 504 : i32
    %65 = tpu.dynamic_rotate %4 by %c504_i32 dim 1 : vector<32x512xf32>, i32 -> vector<32x512xf32>
    %c16 = arith.constant 16 : index
    %c0_19 = arith.constant 0 : index
    %66 = vector.load %arg2[%c16, %c0_19] : memref<27x512xf32, #tpu.memory_space<vmem>>, vector<1x512xf32>
    %67 = vector.broadcast %66 : vector<1x512xf32> to vector<32x512xf32>
    %68 = arith.mulf %65, %67 : vector<32x512xf32>
    %c503_i32 = arith.constant 503 : i32
    %69 = tpu.dynamic_rotate %4 by %c503_i32 dim 1 : vector<32x512xf32>, i32 -> vector<32x512xf32>
    %c17 = arith.constant 17 : index
    %c0_20 = arith.constant 0 : index
    %70 = vector.load %arg2[%c17, %c0_20] : memref<27x512xf32, #tpu.memory_space<vmem>>, vector<1x512xf32>
    %71 = vector.broadcast %70 : vector<1x512xf32> to vector<32x512xf32>
    %72 = arith.mulf %69, %71 : vector<32x512xf32>
    %c457_i32 = arith.constant 457 : i32
    %73 = tpu.dynamic_rotate %4 by %c457_i32 dim 1 : vector<32x512xf32>, i32 -> vector<32x512xf32>
    %c18 = arith.constant 18 : index
    %c0_21 = arith.constant 0 : index
    %74 = vector.load %arg2[%c18, %c0_21] : memref<27x512xf32, #tpu.memory_space<vmem>>, vector<1x512xf32>
    %75 = vector.broadcast %74 : vector<1x512xf32> to vector<32x512xf32>
    %76 = arith.mulf %73, %75 : vector<32x512xf32>
    %c456_i32 = arith.constant 456 : i32
    %77 = tpu.dynamic_rotate %4 by %c456_i32 dim 1 : vector<32x512xf32>, i32 -> vector<32x512xf32>
    %c19 = arith.constant 19 : index
    %c0_22 = arith.constant 0 : index
    %78 = vector.load %arg2[%c19, %c0_22] : memref<27x512xf32, #tpu.memory_space<vmem>>, vector<1x512xf32>
    %79 = vector.broadcast %78 : vector<1x512xf32> to vector<32x512xf32>
    %80 = arith.mulf %77, %79 : vector<32x512xf32>
    %c455_i32 = arith.constant 455 : i32
    %81 = tpu.dynamic_rotate %4 by %c455_i32 dim 1 : vector<32x512xf32>, i32 -> vector<32x512xf32>
    %c20 = arith.constant 20 : index
    %c0_23 = arith.constant 0 : index
    %82 = vector.load %arg2[%c20, %c0_23] : memref<27x512xf32, #tpu.memory_space<vmem>>, vector<1x512xf32>
    %83 = vector.broadcast %82 : vector<1x512xf32> to vector<32x512xf32>
    %84 = arith.mulf %81, %83 : vector<32x512xf32>
    %c449_i32 = arith.constant 449 : i32
    %85 = tpu.dynamic_rotate %4 by %c449_i32 dim 1 : vector<32x512xf32>, i32 -> vector<32x512xf32>
    %c21 = arith.constant 21 : index
    %c0_24 = arith.constant 0 : index
    %86 = vector.load %arg2[%c21, %c0_24] : memref<27x512xf32, #tpu.memory_space<vmem>>, vector<1x512xf32>
    %87 = vector.broadcast %86 : vector<1x512xf32> to vector<32x512xf32>
    %88 = arith.mulf %85, %87 : vector<32x512xf32>
    %c448_i32 = arith.constant 448 : i32
    %89 = tpu.dynamic_rotate %4 by %c448_i32 dim 1 : vector<32x512xf32>, i32 -> vector<32x512xf32>
    %c22 = arith.constant 22 : index
    %c0_25 = arith.constant 0 : index
    %90 = vector.load %arg2[%c22, %c0_25] : memref<27x512xf32, #tpu.memory_space<vmem>>, vector<1x512xf32>
    %91 = vector.broadcast %90 : vector<1x512xf32> to vector<32x512xf32>
    %92 = arith.mulf %89, %91 : vector<32x512xf32>
    %c447_i32 = arith.constant 447 : i32
    %93 = tpu.dynamic_rotate %4 by %c447_i32 dim 1 : vector<32x512xf32>, i32 -> vector<32x512xf32>
    %c23 = arith.constant 23 : index
    %c0_26 = arith.constant 0 : index
    %94 = vector.load %arg2[%c23, %c0_26] : memref<27x512xf32, #tpu.memory_space<vmem>>, vector<1x512xf32>
    %95 = vector.broadcast %94 : vector<1x512xf32> to vector<32x512xf32>
    %96 = arith.mulf %93, %95 : vector<32x512xf32>
    %c441_i32 = arith.constant 441 : i32
    %97 = tpu.dynamic_rotate %4 by %c441_i32 dim 1 : vector<32x512xf32>, i32 -> vector<32x512xf32>
    %c24 = arith.constant 24 : index
    %c0_27 = arith.constant 0 : index
    %98 = vector.load %arg2[%c24, %c0_27] : memref<27x512xf32, #tpu.memory_space<vmem>>, vector<1x512xf32>
    %99 = vector.broadcast %98 : vector<1x512xf32> to vector<32x512xf32>
    %100 = arith.mulf %97, %99 : vector<32x512xf32>
    %c440_i32 = arith.constant 440 : i32
    %101 = tpu.dynamic_rotate %4 by %c440_i32 dim 1 : vector<32x512xf32>, i32 -> vector<32x512xf32>
    %c25 = arith.constant 25 : index
    %c0_28 = arith.constant 0 : index
    %102 = vector.load %arg2[%c25, %c0_28] : memref<27x512xf32, #tpu.memory_space<vmem>>, vector<1x512xf32>
    %103 = vector.broadcast %102 : vector<1x512xf32> to vector<32x512xf32>
    %104 = arith.mulf %101, %103 : vector<32x512xf32>
    %c439_i32 = arith.constant 439 : i32
    %105 = tpu.dynamic_rotate %4 by %c439_i32 dim 1 : vector<32x512xf32>, i32 -> vector<32x512xf32>
    %c26 = arith.constant 26 : index
    %c0_29 = arith.constant 0 : index
    %106 = vector.load %arg2[%c26, %c0_29] : memref<27x512xf32, #tpu.memory_space<vmem>>, vector<1x512xf32>
    %107 = vector.broadcast %106 : vector<1x512xf32> to vector<32x512xf32>
    %108 = arith.mulf %105, %107 : vector<32x512xf32>
    %109 = tpu.concatenate %8, %12, %16, %20, %24, %28, %32, %36, %40, %44, %48, %52, %56, %4, %60, %64 in 0 : vector<32x512xf32>, vector<32x512xf32>, vector<32x512xf32>, vector<32x512xf32>, vector<32x512xf32>, vector<32x512xf32>, vector<32x512xf32>, vector<32x512xf32>, vector<32x512xf32>, vector<32x512xf32>, vector<32x512xf32>, vector<32x512xf32>, vector<32x512xf32>, vector<32x512xf32>, vector<32x512xf32>, vector<32x512xf32> -> vector<512x512xf32>
    %110 = tpu.concatenate %68, %72, %76, %80, %84, %88, %92, %96, %100, %104, %108 in 0 : vector<32x512xf32>, vector<32x512xf32>, vector<32x512xf32>, vector<32x512xf32>, vector<32x512xf32>, vector<32x512xf32>, vector<32x512xf32>, vector<32x512xf32>, vector<32x512xf32>, vector<32x512xf32>, vector<32x512xf32> -> vector<352x512xf32>
    %111 = tpu.concatenate %109, %110 in 0 : vector<512x512xf32>, vector<352x512xf32> -> vector<864x512xf32>
    %c0_30 = arith.constant 0 : index
    %c0_31 = arith.constant 0 : index
    %112 = vector.load %arg3[%c0_30, %c0_31] : memref<32x864xbf16, #tpu.memory_space<vmem>>, vector<32x864xbf16>
    %113 = arith.truncf %111 : vector<864x512xf32> to vector<864x512xbf16>
    %cst = arith.constant dense<0.000000e+00> : vector<32x512xf32>
    %114 = tpu.matmul %112, %113, %cst {dimension_numbers = #tpu.dot_dimension_numbers<[1], [0], [0], [1], [0, 0, 1, 1], [], []>} : vector<32x864xbf16>, vector<864x512xbf16>, vector<32x512xf32> -> vector<32x512xf32>
    %c0_32 = arith.constant 0 : index
    %c0_33 = arith.constant 0 : index
    %115 = vector.load %arg4[%c0_32, %c0_33] : memref<32x1xf32, #tpu.memory_space<vmem>>, vector<32x1xf32>
    %116 = vector.broadcast %115 : vector<32x1xf32> to vector<32x512xf32>
    %117 = arith.addf %114, %116 : vector<32x512xf32>
    %118 = arith.index_cast %arg0 : i32 to index
    %c0_34 = arith.constant 0 : index
    %c0_35 = arith.constant 0 : index
    %119 = vector.load %arg8[%118, %c0_34, %c0_35] : memref<2x32x512xf32, #tpu.memory_space<vmem>>, vector<1x32x512xf32>
    %120 = vector.shape_cast %119 : vector<1x32x512xf32> to vector<32x512xf32>
    %121 = vector.shape_cast %117 : vector<32x512xf32> to vector<1x32x512xf32>
    tpu.vector_store %arg8[%118, %c0_34, %c0_35], %121 {strides = array<i32>} : memref<2x32x512xf32, #tpu.memory_space<vmem>>, vector<1x32x512xf32>,
    %c0_36 = arith.constant 0 : index
    %c0_37 = arith.constant 0 : index
    %122 = vector.load %arg9[%c0_36, %c0_37] : memref<32x1xf32, #tpu.memory_space<vmem>>, vector<32x1xf32>
    %cst_38 = arith.constant dense<0.000000e+00> : vector<32xf32>
    %123 = vector.multi_reduction <add>, %117, %cst_38 [1] : vector<32x512xf32> to vector<32xf32>
    %124 = vector.shape_cast %123 : vector<32xf32> to vector<32x1xf32>
    %125 = arith.addf %122, %124 : vector<32x1xf32>
    %c0_39 = arith.constant 0 : index
    %c0_40 = arith.constant 0 : index
    %126 = vector.load %arg9[%c0_39, %c0_40] : memref<32x1xf32, #tpu.memory_space<vmem>>, vector<32x1xf32>
    tpu.vector_store %arg9[%c0_39, %c0_40], %125 {strides = array<i32>} : memref<32x1xf32, #tpu.memory_space<vmem>>, vector<32x1xf32>,
    %c0_41 = arith.constant 0 : index
    %c0_42 = arith.constant 0 : index
    %127 = vector.load %arg10[%c0_41, %c0_42] : memref<32x1xf32, #tpu.memory_space<vmem>>, vector<32x1xf32>
    %128 = arith.mulf %117, %117 : vector<32x512xf32>
    %cst_43 = arith.constant dense<0.000000e+00> : vector<32xf32>
    %129 = vector.multi_reduction <add>, %128, %cst_43 [1] : vector<32x512xf32> to vector<32xf32>
    %130 = vector.shape_cast %129 : vector<32xf32> to vector<32x1xf32>
    %131 = arith.addf %127, %130 : vector<32x1xf32>
    %c0_44 = arith.constant 0 : index
    %c0_45 = arith.constant 0 : index
    %132 = vector.load %arg10[%c0_44, %c0_45] : memref<32x1xf32, #tpu.memory_space<vmem>>, vector<32x1xf32>
    tpu.vector_store %arg10[%c0_44, %c0_45], %131 {strides = array<i32>} : memref<32x1xf32, #tpu.memory_space<vmem>>, vector<32x1xf32>,
    %c1_i32_46 = arith.constant 1 : i32
    %133 = arith.cmpi eq, %arg0, %c1_i32_46 : i32
    %134 = arith.extui %133 : i1 to i32
    %c0_i32_47 = arith.constant 0 : i32
    %135 = arith.cmpi ne, %134, %c0_i32_47 : i32
    scf.if %135 {
      %c0_48 = arith.constant 0 : index
      %c0_49 = arith.constant 0 : index
      %136 = vector.load %arg9[%c0_48, %c0_49] : memref<32x1xf32, #tpu.memory_space<vmem>>, vector<32x1xf32>
      %cst_50 = arith.constant 9.765625E-4 : f32
      %137 = vector.broadcast %cst_50 : f32 to vector<32x1xf32>
      %138 = arith.mulf %136, %137 : vector<32x1xf32>
      %c0_51 = arith.constant 0 : index
      %c0_52 = arith.constant 0 : index
      %139 = vector.load %arg10[%c0_51, %c0_52] : memref<32x1xf32, #tpu.memory_space<vmem>>, vector<32x1xf32>
      %cst_53 = arith.constant 9.765625E-4 : f32
      %140 = vector.broadcast %cst_53 : f32 to vector<32x1xf32>
      %141 = arith.mulf %139, %140 : vector<32x1xf32>
      %142 = arith.mulf %138, %138 : vector<32x1xf32>
      %143 = arith.subf %141, %142 : vector<32x1xf32>
      %c0_54 = arith.constant 0 : index
      %c0_55 = arith.constant 0 : index
      %144 = vector.load %arg5[%c0_54, %c0_55] : memref<32x1xf32, #tpu.memory_space<vmem>>, vector<32x1xf32>
      %cst_56 = arith.constant 9.99999974E-6 : f32
      %145 = vector.broadcast %cst_56 : f32 to vector<32x1xf32>
      %146 = arith.addf %143, %145 : vector<32x1xf32>
      %147 = math.rsqrt %146 : vector<32x1xf32>
      %148 = arith.mulf %144, %147 : vector<32x1xf32>
      %c0_57 = arith.constant 0 : index
      %c0_58 = arith.constant 0 : index
      %149 = vector.load %arg6[%c0_57, %c0_58] : memref<32x1xf32, #tpu.memory_space<vmem>>, vector<32x1xf32>
      %150 = arith.mulf %138, %148 : vector<32x1xf32>
      %151 = arith.subf %149, %150 : vector<32x1xf32>
      %c0_59 = arith.constant 0 : index
      %c0_60 = arith.constant 0 : index
      %c0_61 = arith.constant 0 : index
      %152 = vector.load %arg8[%c0_59, %c0_60, %c0_61] : memref<2x32x512xf32, #tpu.memory_space<vmem>>, vector<2x32x512xf32>
      %153 = vector.shape_cast %148 : vector<32x1xf32> to vector<1x32x1xf32>
      %154 = vector.broadcast %153 : vector<1x32x1xf32> to vector<2x32x512xf32>
      %155 = arith.mulf %152, %154 : vector<2x32x512xf32>
      %156 = vector.shape_cast %151 : vector<32x1xf32> to vector<1x32x1xf32>
      %157 = vector.broadcast %156 : vector<1x32x1xf32> to vector<2x32x512xf32>
      %158 = arith.addf %155, %157 : vector<2x32x512xf32>
      %cst_62 = arith.constant 0.000000e+00 : f32
      %159 = vector.broadcast %cst_62 : f32 to vector<2x32x512xf32>
      %160 = arith.maximumf %158, %159 : vector<2x32x512xf32>
      %c0_63 = arith.constant 0 : index
      %c0_64 = arith.constant 0 : index
      %c0_65 = arith.constant 0 : index
      %161 = vector.load %arg7[%c0_63, %c0_64, %c0_65] : memref<2x32x512xf32, #tpu.memory_space<vmem>>, vector<2x32x512xf32>
      %162 = arith.addf %160, %161 : vector<2x32x512xf32>
      %c0_66 = arith.constant 0 : index
      %c0_67 = arith.constant 0 : index
      %c0_68 = arith.constant 0 : index
      %163 = vector.load %arg8[%c0_66, %c0_67, %c0_68] : memref<2x32x512xf32, #tpu.memory_space<vmem>>, vector<2x32x512xf32>
      tpu.vector_store %arg8[%c0_66, %c0_67, %c0_68], %162 {strides = array<i32>} : memref<2x32x512xf32, #tpu.memory_space<vmem>>, vector<2x32x512xf32>,
    } else {
    }
    return
  }
  func.func @transform_0(%arg0: i32) -> (i32, i32, i32) {
    %c0_i32 = arith.constant 0 : i32
    %c0_i32_0 = arith.constant 0 : i32
    %c0_i32_1 = arith.constant 0 : i32
    return %arg0, %c0_i32, %c0_i32_0 : i32, i32, i32
  }
  func.func @transform_1(%arg0: i32) -> (i32, i32) {
    %c0_i32 = arith.constant 0 : i32
    %c0_i32_0 = arith.constant 0 : i32
    %c0_i32_1 = arith.constant 0 : i32
    return %c0_i32, %c0_i32_0 : i32, i32
  }
  func.func @transform_2(%arg0: i32) -> (i32, i32) {
    %c0_i32 = arith.constant 0 : i32
    %c0_i32_0 = arith.constant 0 : i32
    %c0_i32_1 = arith.constant 0 : i32
    return %c0_i32, %c0_i32_0 : i32, i32
  }
  func.func @transform_3(%arg0: i32) -> (i32, i32) {
    %c0_i32 = arith.constant 0 : i32
    %c0_i32_0 = arith.constant 0 : i32
    %c0_i32_1 = arith.constant 0 : i32
    return %c0_i32, %c0_i32_0 : i32, i32
  }
  func.func @transform_4(%arg0: i32) -> (i32, i32) {
    %c0_i32 = arith.constant 0 : i32
    %c0_i32_0 = arith.constant 0 : i32
    %c0_i32_1 = arith.constant 0 : i32
    return %c0_i32, %c0_i32_0 : i32, i32
  }
  func.func @transform_5(%arg0: i32) -> (i32, i32) {
    %c0_i32 = arith.constant 0 : i32
    %c0_i32_0 = arith.constant 0 : i32
    %c0_i32_1 = arith.constant 0 : i32
    return %c0_i32, %c0_i32_0 : i32, i32
  }
  func.func @transform_6(%arg0: i32) -> (i32, i32, i32) {
    %c0_i32 = arith.constant 0 : i32
    %c0_i32_0 = arith.constant 0 : i32
    %c0_i32_1 = arith.constant 0 : i32
    %c0_i32_2 = arith.constant 0 : i32
    return %c0_i32, %c0_i32_0, %c0_i32_1 : i32, i32, i32
  }
  func.func @transform_7(%arg0: i32) -> (i32, i32, i32) {
    %c0_i32 = arith.constant 0 : i32
    %c0_i32_0 = arith.constant 0 : i32
    %c0_i32_1 = arith.constant 0 : i32
    %c0_i32_2 = arith.constant 0 : i32
    return %c0_i32, %c0_i32_0, %c0_i32_1 : i32, i32, i32
  }
}

</mosaic_0001>

<bundles_post_ra>
// kernel: residual_block_forward.4
= control target key start
LH: loop header
LB: loop body
LE: loop exit
PB: predicated region body
PF: predicated region fallthrough
CT: control target
= control target key end

     0   :  { %s876_s18 = smov 0   ;;  %s1224_s0 = inlined_call_operand.vmem [shape: f32[2,4,512], index: 0, kind: input, shape index: {}]   ;;  %s1225_s1 = inlined_call_operand.vmem [shape: bf16[32,4], index: 1, kind: input, shape index: {}]   ;;  %s1226_s2 = inlined_call_operand.vmem [shape: f32[32,1], index: 2, kind: input, shape index: {}]   ;;  %s1227_s3 = inlined_call_operand.vmem [shape: f32[32,1], index: 3, kind: input, shape index: {}]   ;;  %s1228_s4 = inlined_call_operand.vmem [shape: f32[32,1], index: 4, kind: input, shape index: {}]   ;;  %s1229_s5 = inlined_call_operand.vmem [shape: f32[2,32,512], index: 5, kind: output, shape index: {}]  }
   0x1 LB: > { %s882_s19 = sadd.s32 4294967295, %s841_s18   ;;  %p789_p0 = scmp.ge.s32.totalorder %s841_s18, 1  ;;  %s841_s18 = sphi %s876_s18, %s15_s18  }
   0x2   : > { %p182_p1 = scmp.lt.s32.totalorder %s841_s18, 3 }
   0x4   : > { %p183_p2 = pnand %p789_p0, %p182_p1 }
   0x5   : > { %p205_p3 = scmp.lt.s32.totalorder (!%p183_p2), %s882_s19, 1  ;;  %p792_p4 = scmp.ne.s32.totalorder (!%p183_p2), %s882_s19, 0 }
   0x6   : > { %186 = sbr.rel (%p183_p2) target bundleno = 573 (0x23d), region = 40 }
   0xb   : > { %s206_s20 = scalar_select %p205_p3, %s882_s19, 1 }
   0xc   : > { %214 = sbr.rel (%p792_p4) target bundleno = 22 (0x16), region = 44 }
   0xd   : > { %s806_s21 = sshll.u32 %s206_s20, 4 }
   0xe   : > { %s209_s24 = scalar_lea.vmem %s1224_s0, %s806_s21 }
  0x11   : > { %vm215_vm0 = vcmask 7168   ;;  %v843_v0 = vmov 0.0  }
  0x12   : > { %216 = vst.msk [vmem:[#allocation2] sm:$0xff] %vm215_vm0, %v843_v0  ;;  %217 = vst.msk [vmem:[#allocation2 + $0x8] sm:$0xff] %vm215_vm0, %v843_v0 }
  0x13   : > { %218 = vst.msk [vmem:[#allocation2 + $0x10] sm:$0xff] %vm215_vm0, %v843_v0  ;;  %219 = vst.msk [vmem:[#allocation2 + $0x18] sm:$0xff] %vm215_vm0, %v843_v0 }
  0x14   : > { %220 = vst.msk [vmem:[#allocation3] sm:$0xff] %vm215_vm0, %v843_v0  ;;  %221 = vst.msk [vmem:[#allocation3 + $0x8] sm:$0xff] %vm215_vm0, %v843_v0 }
  0x15   : > { %222 = vst.msk [vmem:[#allocation3 + $0x10] sm:$0xff] %vm215_vm0, %v843_v0  ;;  %223 = vst.msk [vmem:[#allocation3 + $0x18] sm:$0xff] %vm215_vm0, %v843_v0 }
  0x16 PF: > { %v224_v1 = vld [vmem:[%s209_s24] sm:$0xff]  ;;  %vm281_vm1 = vcmask 1041408   ;;  %v225_v2 = vld [vmem:[%s209_s24 + $0x8] sm:$0xff]  ;;  %v844_v7 = vmov 0   ;;  %v242_v13 = vld [vmem:[%s1226_s2 + $0x10] sm:$0xff]  ;;  %vm274_vm2 = vcmask 31744  }
  0x17   : > { %v232_v3 = vcombine.high %v224_v1, %v224_v1  ;;  %v233_v4 = vcombine.high %v225_v2, %v225_v2  ;;  %v236_v5 = vpack.c.bf16 %v224_v1, %v224_v1  ;;  %v238_v6 = vpack.c.bf16 %v225_v2, %v225_v2  ;;  %326 = vmatprep.mubr.bf16.mxu0 %v844_v7  ;;  %v240_v8 = vld [vmem:[%s1226_s2] sm:$0xff]  ;;  %v241_v14 = vld [vmem:[%s1226_s2 + $0x8] sm:$0xff]  ;;  %v243_v16 = vld [vmem:[%s1226_s2 + $0x18] sm:$0xff]  ;;  %s807_s12 = sshll.u32 %s882_s19, 7  ;;  %p803_p5 = scmp.ne.s32.totalorder %s882_s19, 1 }
  0x18   : > { %379 = vmatprep.mubr.bf16.mxu1 %v844_v7  ;;  %819 = vset.pattern.permute.xlu0 %v844_v7  ;;  %v823_v15 = vld [vmem:[%s1225_s1] sm:$0xff]   ;;  %v824_v17 = vld [vmem:[%s1225_s1 + $0x8] sm:$0xff]   ;;  %s918_s15 = scalar_lea.vmem %s1229_s5, %s807_s12  ;;  %vm447_vm3 = vcmask 7168  }
  0x19   : > { %v237_v9 = vpack.c.bf16 %v232_v3, %v232_v3  ;;  %v239_v10 = vpack.c.bf16 %v233_v4, %v233_v4  ;;  %v283_v11 = vsel %vm281_vm1, %v236_v5, 0  ;;  %v289_v12 = vsel %vm281_vm1, %v238_v6, 0  ;;  %246 = vperm.xlu0 %819, %v240_v8   ;;  %820 = vset.pattern.permute.xlu1 %v844_v7 }
  0x1a   : > { %256 = vperm.xlu1 %820, %v242_v13  }
  0x1b   : > { %795 = vmatprep.subr.msk.bf16.mxu0 %vm281_vm1, %v237_v9  ;;  %798 = vmatprep.subr.msk.bf16.mxu1 %vm281_vm1, %v239_v10 }
  0x1c   : > { %309 = vmatpush1.bf16.msra.mxu0 %v283_v11  ;;  %362 = vmatpush1.bf16.msra.mxu1 %v289_v12 }
  0x1d   : > { %251 = vperm.xlu0 %819, %v241_v14  }
  0x1e   : > { %261 = vperm.xlu1 %820, %v243_v16  }
  0x1f   : > { %796 = vmatmul.mubr.msk.bf16.vlgmr.msra.gmra.mxu0 %vm274_vm2, %v823_v15  ;;  %799 = vmatmul.mubr.msk.bf16.vlgmr.msra.gmra.mxu1 %vm274_vm2, %v823_v15 }
  0x20   : > { %336 = vmatprep.mubr.bf16.mxu0 %v844_v7  ;;  %389 = vmatprep.mubr.bf16.mxu1 %v844_v7 }
  0x27   : > { %797 = vmatmul.mubr.msk.bf16.gmra.mxu0 %vm274_vm2, %v824_v17  ;;  %800 = vmatmul.mubr.msk.bf16.gmra.mxu1 %vm274_vm2, %v824_v17 }
  0x94   : > { %v247_v18 = vpop.permute.xlu0 %246 }
  0x95   : > { %v257_v28 = vpop.permute.xlu1 %256 }
  0x98   : > { %v252_v25 = vpop.permute.xlu0 %251 }
  0x99   : > { %v262_v49 = vpop.permute.xlu1 %261 }
  0xdf   : > { %v328_v19 = vpop.f32.mrf.mxu0  ;;  %v381_v20 = vpop.f32.mrf.mxu1 }
  0xe0   : > { %v329_v21 = vadd.f32 %v328_v19, %v247_v18  ;;  %v382_v22 = vadd.f32 %v381_v20, %v247_v18 }
  0xe1   : > { %v330_v23 = vpop.f32.mrf.mxu0  ;;  %v383_v24 = vpop.f32.mrf.mxu1 }
  0xe2   : > { %403 = vst [vmem:[%s918_s15] sm:$0xff] %v329_v21  ;;  %405 = vst [vmem:[%s918_s15 + $0x10] sm:$0xff] %v382_v22  ;;  %v331_v26 = vadd.f32 %v330_v23, %v247_v18  ;;  %v384_v27 = vadd.f32 %v383_v24, %v247_v18  ;;  %v456_v35 = vmul.f32 %v329_v21, %v329_v21 }
  0xe3   : > { %v332_v29 = vpop.f32.mrf.mxu0  ;;  %v385_v30 = vpop.f32.mrf.mxu1  ;;  %v458_v40 = vmul.f32 %v382_v22, %v382_v22 }
  0xe4   : > { %404 = vst [vmem:[%s918_s15 + $0x8] sm:$0xff] %v331_v26  ;;  %v423_v31 = vadd.f32 %v331_v26, %v329_v21  ;;  %v457_v32 = vmul.f32 %v331_v26, %v331_v26  ;;  %406 = vst [vmem:[%s918_s15 + $0x18] sm:$0xff] %v384_v27  ;;  %v333_v33 = vadd.f32 %v332_v29, %v252_v25 }
  0xe5   : > { %v386_v34 = vadd.f32 %v385_v30, %v252_v25  ;;  %v334_v36 = vpop.f32.mrf.mxu0  ;;  %v387_v37 = vpop.f32.mrf.mxu1  ;;  %v459_v54 = vmul.f32 %v384_v27, %v384_v27  ;;  %v419_v30 = vld [vmem:[#allocation2] sm:$0xff] }
  0xe6   : > { %407 = vst [vmem:[%s918_s15 + $0x20] sm:$0xff] %v333_v33  ;;  %v335_v38 = vadd.f32 %v334_v36, %v252_v25  ;;  %v388_v39 = vadd.f32 %v387_v37, %v252_v25  ;;  %v424_v43 = vadd.f32 %v423_v31, %v382_v22  ;;  %v472_v44 = vadd.f32 %v457_v32, %v456_v35  ;;  %v452_v32 = vld [vmem:[#allocation3] sm:$0xff]  ;;  %v420_v36 = vld [vmem:[#allocation2 + $0x8] sm:$0xff] }
  0xe7   : > { %409 = vst [vmem:[%s918_s15 + $0x30] sm:$0xff] %v386_v34  ;;  %v338_v41 = vpop.f32.mrf.mxu0  ;;  %v391_v42 = vpop.f32.mrf.mxu1  ;;  %v460_v50 = vmul.f32 %v333_v33, %v333_v33  ;;  %v462_v56 = vmul.f32 %v386_v34, %v386_v34  ;;  %v453_v37 = vld [vmem:[#allocation3 + $0x8] sm:$0xff] }
  0xe8   : > { %408 = vst [vmem:[%s918_s15 + $0x28] sm:$0xff] %v335_v38  ;;  %v428_v45 = vadd.f32 %v335_v38, %v333_v33  ;;  %v461_v46 = vmul.f32 %v335_v38, %v335_v38  ;;  %410 = vst [vmem:[%s918_s15 + $0x38] sm:$0xff] %v388_v39  ;;  %v339_v47 = vadd.f32 %v338_v41, %v257_v28 }
  0xe9   : > { %v392_v48 = vadd.f32 %v391_v42, %v257_v28  ;;  %v340_v51 = vpop.f32.mrf.mxu0  ;;  %v393_v52 = vpop.f32.mrf.mxu1  ;;  %v425_v53 = vadd.f32 %v424_v43, %v384_v27  ;;  %v473_v55 = vadd.f32 %v472_v44, %v458_v40  ;;  %v463_v8 = vmul.f32 %v388_v39, %v388_v39  ;;  %v454_v42 = vld [vmem:[#allocation3 + $0x10] sm:$0xff] }
  0xea   : > { %411 = vst [vmem:[%s918_s15 + $0x40] sm:$0xff] %v339_v47  ;;  %v341_v57 = vadd.f32 %v340_v51, %v257_v28  ;;  %v394_v58 = vadd.f32 %v393_v52, %v257_v28  ;;  %v464_v59 = vmul.f32 %v339_v47, %v339_v47  ;;  %v429_v63 = vadd.f32 %v428_v45, %v386_v34  ;;  %v421_v43 = vld [vmem:[#allocation2 + $0x10] sm:$0xff]  ;;  %v455_v51 = vld [vmem:[#allocation3 + $0x18] sm:$0xff] }
  0xeb   : > { %413 = vst [vmem:[%s918_s15 + $0x50] sm:$0xff] %v392_v48  ;;  %426 = vadd.xlane.f32.xlu0 %v425_v53  ;;  %v342_v60 = vpop.f32.mrf.mxu0  ;;  %v395_v61 = vpop.f32.mrf.mxu1  ;;  %v474_v62 = vadd.f32 %v473_v55, %v459_v54  ;;  %v477_v0 = vadd.f32 %v461_v46, %v460_v50  ;;  %v466_v5 = vmul.f32 %v392_v48, %v392_v48 }
  0xec   : > { %412 = vst [vmem:[%s918_s15 + $0x48] sm:$0xff] %v341_v57  ;;  %v433_v1 = vadd.f32 %v341_v57, %v339_v47  ;;  %v465_v2 = vmul.f32 %v341_v57, %v341_v57  ;;  %414 = vst [vmem:[%s918_s15 + $0x58] sm:$0xff] %v394_v58  ;;  %v343_v3 = vadd.f32 %v342_v60, %v262_v49 }
  0xed   : > { %v396_v4 = vadd.f32 %v395_v61, %v262_v49  ;;  %475 = vadd.xlane.f32.xlu1 %v474_v62  ;;  %v344_v6 = vpop.f32.mrf.mxu0  ;;  %v397_v7 = vpop.f32.mrf.mxu1  ;;  %v478_v9 = vadd.f32 %v477_v0, %v462_v56  ;;  %v430_v12 = vadd.f32 %v429_v63, %v388_v39  ;;  %v467_v19 = vmul.f32 %v394_v58, %v394_v58 }
  0xee   : > { %415 = vst [vmem:[%s918_s15 + $0x60] sm:$0xff] %v343_v3  ;;  %v345_v10 = vadd.f32 %v344_v6, %v262_v49  ;;  %v398_v11 = vadd.f32 %v397_v7, %v262_v49  ;;  %v482_v14 = vadd.f32 %v465_v2, %v464_v59  ;;  %v434_v15 = vadd.f32 %v433_v1, %v392_v48  ;;  %v422_v48 = vld [vmem:[#allocation2 + $0x18] sm:$0xff] }
  0xef   : > { %417 = vst [vmem:[%s918_s15 + $0x70] sm:$0xff] %v396_v4  ;;  %v479_v13 = vadd.f32 %v478_v9, %v463_v8  ;;  %v468_v18 = vmul.f32 %v343_v3, %v343_v3  ;;  %v470_v25 = vmul.f32 %v396_v4, %v396_v4 }
  0xf0   : > { %416 = vst [vmem:[%s918_s15 + $0x68] sm:$0xff] %v345_v10  ;;  %v438_v16 = vadd.f32 %v345_v10, %v343_v3  ;;  %v469_v17 = vmul.f32 %v345_v10, %v345_v10  ;;  %418 = vst [vmem:[%s918_s15 + $0x78] sm:$0xff] %v398_v11  ;;  %v483_v20 = vadd.f32 %v482_v14, %v466_v5 }
  0xf1   : > { %431 = vadd.xlane.f32.xlu1 %v430_v12  ;;  %480 = vadd.xlane.f32.xlu0 %v479_v13  ;;  %v435_v22 = vadd.f32 %v434_v15, %v394_v58  ;;  %v471_v28 = vmul.f32 %v398_v11, %v398_v11 }
  0xf2   : > { %v484_v21 = vadd.f32 %v483_v20, %v467_v19  ;;  %v439_v23 = vadd.f32 %v438_v16, %v396_v4  ;;  %v487_v24 = vadd.f32 %v469_v17, %v468_v18 }
  0xf4   : > { %v440_v26 = vadd.f32 %v439_v23, %v398_v11  ;;  %v488_v27 = vadd.f32 %v487_v24, %v470_v25 }
  0xf5   : > { %485 = vadd.xlane.f32.xlu1 %v484_v21  ;;  %436 = vadd.xlane.f32.xlu0 %v435_v22 }
  0xf6   : > { %v489_v29 = vadd.f32 %v488_v27, %v471_v28 }
  0xf9   : > { %441 = vadd.xlane.f32.xlu0 %v440_v26 }
  0xfd   : > { %490 = vadd.xlane.f32.xlu0 %v489_v29 }
 0x174   : > { %v427_v31 = vpop.xlane.xlu0 %426 }
 0x175   : > { %v443_v33 = vadd.f32 %v427_v31, %v419_v30 }
 0x176   : > { %v476_v34 = vpop.xlane.xlu1 %475 }
 0x177   : > { %448 = vst.msk [vmem:[#allocation2] sm:$0xff] %vm447_vm3, %v443_v33  ;;  %v492_v35 = vadd.f32 %v476_v34, %v452_v32 }
 0x179   : > { %496 = vst.msk [vmem:[#allocation3] sm:$0xff] %vm447_vm3, %v492_v35 }
 0x17a   : > { %v432_v38 = vpop.xlane.xlu1 %431  ;;  %v481_v39 = vpop.xlane.xlu0 %480 }
 0x17b   : > { %v444_v40 = vadd.f32 %v432_v38, %v420_v36  ;;  %v493_v41 = vadd.f32 %v481_v39, %v453_v37 }
 0x17d   : > { %449 = vst.msk [vmem:[#allocation2 + $0x8] sm:$0xff] %vm447_vm3, %v444_v40  ;;  %497 = vst.msk [vmem:[#allocation3 + $0x8] sm:$0xff] %vm447_vm3, %v493_v41 }
 0x17e   : > { %v486_v44 = vpop.xlane.xlu1 %485  ;;  %v437_v45 = vpop.xlane.xlu0 %436 }
 0x17f   : > { %v494_v46 = vadd.f32 %v486_v44, %v454_v42  ;;  %v445_v47 = vadd.f32 %v437_v45, %v421_v43 }
 0x181   : > { %498 = vst.msk [vmem:[#allocation3 + $0x10] sm:$0xff] %vm447_vm3, %v494_v46  ;;  %450 = vst.msk [vmem:[#allocation2 + $0x10] sm:$0xff] %vm447_vm3, %v445_v47 }
 0x182   : > { %v442_v49 = vpop.xlane.xlu0 %441 }
 0x183   : > { %v446_v50 = vadd.f32 %v442_v49, %v422_v48 }
 0x185   : > { %451 = vst.msk [vmem:[#allocation2 + $0x18] sm:$0xff] %vm447_vm3, %v446_v50  ;;  %503 = sbr.rel (%p803_p5) target bundleno = 573 (0x23d), region = 48 }
 0x186   : > { %v491_v52 = vpop.xlane.xlu0 %490 }
 0x187   : > { %v495_v53 = vadd.f32 %v491_v52, %v455_v51 }
 0x189   : > { %499 = vst.msk [vmem:[#allocation3 + $0x18] sm:$0xff] %vm447_vm3, %v495_v53 }
 0x18a   : > { %v506_v54 = vld [vmem:[#allocation2 + $0x10] sm:$0xff]  ;;  %v845_v56 = vmov 0   ;;  %v504_v59 = vld [vmem:[#allocation2] sm:$0xff]  ;;  %v505_v4 = vld [vmem:[#allocation2 + $0x8] sm:$0xff] }
 0x18b   : > { %v514_v55 = vld [vmem:[#allocation3 + $0x10] sm:$0xff]  ;;  %826 = vset.pattern.permute.xlu1 %v845_v56  ;;  %825 = vset.pattern.permute.xlu0 %v845_v56  ;;  %v510_v57 = vmul.f32 0.0009765625, %v506_v54  ;;  %v512_v60 = vld [vmem:[#allocation3] sm:$0xff]  ;;  %v508_v61 = vmul.f32 0.0009765625, %v504_v59  ;;  %v513_v5 = vld [vmem:[#allocation3 + $0x8] sm:$0xff]  ;;  %v509_v7 = vmul.f32 0.0009765625, %v505_v4 }
 0x18c   : > { %v518_v58 = vmul.f32 0.0009765625, %v514_v55  ;;  %v516_v62 = vmul.f32 0.0009765625, %v512_v60  ;;  %v507_v63 = vld [vmem:[#allocation2 + $0x18] sm:$0xff]  ;;  %v517_v8 = vmul.f32 0.0009765625, %v513_v5  ;;  %v530_v19 = vld [vmem:[%s1227_s3 + $0x10] sm:$0xff]  ;;  %v528_v20 = vld [vmem:[%s1227_s3] sm:$0xff] }
 0x18d   : > { %v522_v1 = vmul.f32 %v510_v57, %v510_v57  ;;  %v511_v2 = vmul.f32 0.0009765625, %v507_v63  ;;  %v520_v6 = vmul.f32 %v508_v61, %v508_v61  ;;  %v521_v12 = vmul.f32 %v509_v7, %v509_v7  ;;  %v531_v22 = vld [vmem:[%s1227_s3 + $0x18] sm:$0xff]  ;;  %v529_v25 = vld [vmem:[%s1227_s3 + $0x8] sm:$0xff]  ;;  %v544_v33 = vld [vmem:[%s1228_s4] sm:$0xff] }
 0x18e   : > { %v545_v32 = vld [vmem:[%s1228_s4 + $0x8] sm:$0xff]  ;;  %v547_v39 = vld [vmem:[%s1228_s4 + $0x18] sm:$0xff]  ;;  %v546_v40 = vld [vmem:[%s1228_s4 + $0x10] sm:$0xff] }
 0x18f   : > { %v526_v9 = vsub.f32 %v518_v58, %v522_v1  ;;  %v523_v10 = vmul.f32 %v511_v2, %v511_v2  ;;  %v524_v11 = vsub.f32 %v516_v62, %v520_v6  ;;  %v525_v16 = vsub.f32 %v517_v8, %v521_v12  ;;  %v556_v43 = vld [vmem:[%s1229_s5] sm:$0xff]  ;;  %v557_v44 = vld [vmem:[%s1229_s5 + $0x8] sm:$0xff]  ;;  %v558_v45 = vld [vmem:[%s1229_s5 + $0x10] sm:$0xff] }
 0x190   : > { %v515_v0 = vld [vmem:[#allocation3 + $0x18] sm:$0xff]  ;;  %v564_v47 = vld [vmem:[%s1229_s5 + $0x40] sm:$0xff]  ;;  %v565_v48 = vld [vmem:[%s1229_s5 + $0x48] sm:$0xff] }
 0x191   : > { %v519_v3 = vmul.f32 0.0009765625, %v515_v0  ;;  %v534_v13 = vadd.f32 1e-05, %v526_v9  ;;  %v532_v15 = vadd.f32 1e-05, %v524_v11  ;;  %v559_v46 = vld [vmem:[%s1229_s5 + $0x18] sm:$0xff] }
 0x192   : > { %v533_v18 = vadd.f32 1e-05, %v525_v16  ;;  %v566_v49 = vld [vmem:[%s1229_s5 + $0x50] sm:$0xff]  ;;  %v567_v50 = vld [vmem:[%s1229_s5 + $0x58] sm:$0xff]  ;;  %v572_v51 = vld [vmem:[%s1229_s5 + $0x80] sm:$0xff] }
 0x193   : > { %v527_v14 = vsub.f32 %v519_v3, %v523_v10  ;;  %827 = vrsqrt.f32 %v534_v13  ;;  %v573_v52 = vld [vmem:[%s1229_s5 + $0x88] sm:$0xff]  ;;  %v574_v53 = vld [vmem:[%s1229_s5 + $0x90] sm:$0xff]  ;;  %v575_v55 = vld [vmem:[%s1229_s5 + $0x98] sm:$0xff] }
 0x194   : > { %829 = vrsqrt.f32 %v532_v15  ;;  %v580_v56 = vld [vmem:[%s1229_s5 + $0xc0] sm:$0xff]  ;;  %v561_v60 = vld [vmem:[%s1229_s5 + $0x28] sm:$0xff]  ;;  %v582_v63 = vld [vmem:[%s1229_s5 + $0xd0] sm:$0xff] }
 0x195   : > { %v535_v17 = vadd.f32 1e-05, %v527_v14  ;;  %v560_v59 = vld [vmem:[%s1229_s5 + $0x20] sm:$0xff]  ;;  %v583_v0 = vld [vmem:[%s1229_s5 + $0xd8] sm:$0xff]  ;;  %v569_v9 = vld [vmem:[%s1229_s5 + $0x68] sm:$0xff] }
 0x196   : > { %v568_v62 = vld [vmem:[%s1229_s5 + $0x60] sm:$0xff]  ;;  %v570_v10 = vld [vmem:[%s1229_s5 + $0x70] sm:$0xff]  ;;  %v571_v11 = vld [vmem:[%s1229_s5 + $0x78] sm:$0xff] }
 0x197   : > { %831 = vrsqrt.f32 %v535_v17  ;;  %v563_v16 = vld [vmem:[%s1229_s5 + $0x38] sm:$0xff]  ;;  %v576_v17 = vld [vmem:[%s1229_s5 + $0xa0] sm:$0xff] }
 0x198   : > { %833 = vrsqrt.f32 %v533_v18  ;;  %v577_v18 = vld [vmem:[%s1229_s5 + $0xa8] sm:$0xff] }
 0x1a0   : > { %v828_v21 = vpop.eup %827 }
 0x1a1   : > { %v830_v23 = vpop.eup %829  ;;  %v542_v24 = vmul.f32 %v828_v21, %v530_v19  ;;  %v579_v21 = vld [vmem:[%s1229_s5 + $0xb8] sm:$0xff] }
 0x1a2   : > { %v540_v27 = vmul.f32 %v830_v23, %v528_v20  ;;  %v578_v20 = vld [vmem:[%s1229_s5 + $0xb0] sm:$0xff] }
 0x1a3   : > { %600 = vperm.xlu1 %826, %v542_v24   ;;  %v550_v36 = vmul.f32 %v542_v24, %v510_v57  ;;  %v581_v57 = vld [vmem:[%s1229_s5 + $0xc8] sm:$0xff] }
 0x1a4   : > { %v832_v26 = vpop.eup %831  ;;  %590 = vperm.xlu0 %825, %v540_v27   ;;  %v548_v30 = vmul.f32 %v540_v27, %v508_v61  ;;  %v562_v61 = vld [vmem:[%s1229_s5 + $0x30] sm:$0xff] }
 0x1a5   : > { %v834_v28 = vpop.eup %833  ;;  %v543_v29 = vmul.f32 %v832_v26, %v531_v22  ;;  %v554_v42 = vsub.f32 %v546_v40, %v550_v36  ;;  %v584_v22 = vld [vmem:[%s1229_s5 + $0xe0] sm:$0xff] }
 0x1a6   : > { %v541_v31 = vmul.f32 %v834_v28, %v529_v25  ;;  %v552_v38 = vsub.f32 %v544_v33, %v548_v30  ;;  %v585_v28 = vld [vmem:[%s1229_s5 + $0xe8] sm:$0xff]  ;;  %v587_v30 = vld [vmem:[%s1229_s5 + $0xf8] sm:$0xff] }
 0x1a7   : > { %605 = vperm.xlu1 %826, %v543_v29   ;;  %v551_v35 = vmul.f32 %v543_v29, %v511_v2  ;;  %v586_v29 = vld [vmem:[%s1229_s5 + $0xf0] sm:$0xff] }
 0x1a8   : > { %v549_v34 = vmul.f32 %v541_v31, %v509_v7  ;;  %595 = vperm.xlu0 %825, %v541_v31  }
 0x1a9   : > { %v555_v41 = vsub.f32 %v547_v39, %v551_v35 }
 0x1aa   : > { %v553_v37 = vsub.f32 %v545_v32, %v549_v34 }
 0x1ac   : > { %647 = vperm.xlu1 %826, %v553_v37   ;;  %642 = vperm.xlu0 %825, %v552_v38  }
 0x1b0   : > { %657 = vperm.xlu1 %826, %v555_v41   ;;  %652 = vperm.xlu0 %825, %v554_v42  }
 0x21e   : > { %v601_v54 = vpop.permute.xlu1 %600 }
 0x21f   : > { %v591_v58 = vpop.permute.xlu0 %590  ;;  %v1029_v1 = vmul.f32 %v601_v54, %v564_v47  ;;  %v1031_v2 = vmul.f32 %v601_v54, %v565_v48  ;;  %v1033_v3 = vmul.f32 %v601_v54, %v566_v49  ;;  %v1035_v4 = vmul.f32 %v601_v54, %v567_v50 }
 0x220   : > { %v1037_v5 = vmul.f32 %v591_v58, %v556_v43  ;;  %v1039_v6 = vmul.f32 %v591_v58, %v557_v44  ;;  %v1041_v7 = vmul.f32 %v591_v58, %v558_v45  ;;  %v1043_v8 = vmul.f32 %v591_v58, %v559_v46 }
 0x221   : > { %v1054_v12 = vmul.f32 %v591_v58, %v572_v51  ;;  %v1056_v13 = vmul.f32 %v591_v58, %v573_v52  ;;  %v1058_v14 = vmul.f32 %v591_v58, %v574_v53  ;;  %v1060_v15 = vmul.f32 %v591_v58, %v575_v55 }
 0x222   : > { %v606_v19 = vpop.permute.xlu1 %605  ;;  %v1080_v23 = vmul.f32 %v601_v54, %v580_v56  ;;  %v1082_v24 = vmul.f32 %v601_v54, %v581_v57  ;;  %v1084_v25 = vmul.f32 %v601_v54, %v582_v63  ;;  %v1086_v26 = vmul.f32 %v601_v54, %v583_v0 }
 0x223   : > { %v596_v27 = vpop.permute.xlu0 %595  ;;  %v1097_v31 = vmul.f32 %v606_v19, %v568_v62  ;;  %v1099_v32 = vmul.f32 %v606_v19, %v569_v9  ;;  %v1101_v33 = vmul.f32 %v606_v19, %v570_v10  ;;  %v1103_v34 = vmul.f32 %v606_v19, %v571_v11 }
 0x224   : > { %v612_v35 = vmul.f32 %v596_v27, %v560_v59  ;;  %v613_v36 = vmul.f32 %v596_v27, %v561_v60  ;;  %v614_v37 = vmul.f32 %v596_v27, %v562_v61  ;;  %v615_v38 = vmul.f32 %v596_v27, %v563_v16 }
 0x225   : > { %v628_v39 = vmul.f32 %v596_v27, %v576_v17  ;;  %v629_v40 = vmul.f32 %v596_v27, %v577_v18  ;;  %v630_v41 = vmul.f32 %v596_v27, %v578_v20  ;;  %v631_v42 = vmul.f32 %v596_v27, %v579_v21 }
 0x226   : > { %v636_v44 = vmul.f32 %v606_v19, %v584_v22  ;;  %v637_v45 = vmul.f32 %v606_v19, %v585_v28  ;;  %v638_v46 = vmul.f32 %v606_v19, %v586_v29  ;;  %v639_v47 = vmul.f32 %v606_v19, %v587_v30 }
 0x227   : > { %v648_v43 = vpop.permute.xlu1 %647  ;;  %v643_v56 = vpop.permute.xlu0 %642 }
 0x228   : > { %v664_v48 = vadd.f32 %v648_v43, %v612_v35  ;;  %v665_v49 = vadd.f32 %v648_v43, %v613_v36  ;;  %v666_v50 = vadd.f32 %v648_v43, %v614_v37  ;;  %v667_v51 = vadd.f32 %v648_v43, %v615_v38 }
 0x229   : > { %v680_v52 = vadd.f32 %v648_v43, %v628_v39  ;;  %v681_v53 = vadd.f32 %v648_v43, %v629_v40  ;;  %v682_v54 = vadd.f32 %v648_v43, %v630_v41  ;;  %v683_v55 = vadd.f32 %v648_v43, %v631_v42 }
 0x22a   : > { %v696_v57 = vmax.f32 %v664_v48, 0.0  ;;  %v697_v58 = vmax.f32 %v665_v49, 0.0  ;;  %v698_v59 = vmax.f32 %v666_v50, 0.0  ;;  %v699_v60 = vmax.f32 %v667_v51, 0.0 }
 0x22b   : > { %v712_v61 = vmax.f32 %v680_v52, 0.0  ;;  %v713_v62 = vmax.f32 %v681_v53, 0.0  ;;  %v714_v63 = vmax.f32 %v682_v54, 0.0  ;;  %v715_v0 = vmax.f32 %v683_v55, 0.0  ;;  %v658_v17 = vpop.permute.xlu1 %657 }
 0x22c   : > { %728 = vst [vmem:[%s1229_s5 + $0x20] sm:$0xff] %v696_v57  ;;  %729 = vst [vmem:[%s1229_s5 + $0x28] sm:$0xff] %v697_v58  ;;  %v660_v9 = vadd.f32 %v643_v56, %v1037_v5  ;;  %v661_v10 = vadd.f32 %v643_v56, %v1039_v6  ;;  %v662_v11 = vadd.f32 %v643_v56, %v1041_v7 }
 0x22d   : > { %730 = vst [vmem:[%s1229_s5 + $0x30] sm:$0xff] %v698_v59  ;;  %731 = vst [vmem:[%s1229_s5 + $0x38] sm:$0xff] %v699_v60  ;;  %v663_v16 = vadd.f32 %v643_v56, %v1043_v8  ;;  %v676_v5 = vadd.f32 %v643_v56, %v1054_v12  ;;  %v677_v6 = vadd.f32 %v643_v56, %v1056_v13 }
 0x22e   : > { %744 = vst [vmem:[%s1229_s5 + $0xa0] sm:$0xff] %v712_v61  ;;  %745 = vst [vmem:[%s1229_s5 + $0xa8] sm:$0xff] %v713_v62  ;;  %v678_v7 = vadd.f32 %v643_v56, %v1058_v14  ;;  %v679_v8 = vadd.f32 %v643_v56, %v1060_v15  ;;  %v692_v18 = vmax.f32 %v660_v9, 0.0  ;;  %v693_v19 = vmax.f32 %v661_v10, 0.0 }
 0x22f   : > { %746 = vst [vmem:[%s1229_s5 + $0xb0] sm:$0xff] %v714_v63  ;;  %747 = vst [vmem:[%s1229_s5 + $0xb8] sm:$0xff] %v715_v0  ;;  %v694_v20 = vmax.f32 %v662_v11, 0.0  ;;  %v695_v21 = vmax.f32 %v663_v16, 0.0  ;;  %v708_v22 = vmax.f32 %v676_v5, 0.0  ;;  %v709_v27 = vmax.f32 %v677_v6, 0.0 }
 0x230   : > { %v710_v28 = vmax.f32 %v678_v7, 0.0  ;;  %v711_v29 = vmax.f32 %v679_v8, 0.0  ;;  %724 = vst [vmem:[%s1229_s5] sm:$0xff] %v692_v18  ;;  %725 = vst [vmem:[%s1229_s5 + $0x8] sm:$0xff] %v693_v19  ;;  %v672_v12 = vadd.f32 %v658_v17, %v1097_v31  ;;  %v673_v13 = vadd.f32 %v658_v17, %v1099_v32 }
 0x231   : > { %726 = vst [vmem:[%s1229_s5 + $0x10] sm:$0xff] %v694_v20  ;;  %727 = vst [vmem:[%s1229_s5 + $0x18] sm:$0xff] %v695_v21  ;;  %v674_v14 = vadd.f32 %v658_v17, %v1101_v33  ;;  %v675_v15 = vadd.f32 %v658_v17, %v1103_v34  ;;  %v688_v30 = vadd.f32 %v658_v17, %v636_v44  ;;  %v653_v34 = vpop.permute.xlu0 %652 }
 0x232   : > { %740 = vst [vmem:[%s1229_s5 + $0x80] sm:$0xff] %v708_v22  ;;  %741 = vst [vmem:[%s1229_s5 + $0x88] sm:$0xff] %v709_v27  ;;  %v689_v31 = vadd.f32 %v658_v17, %v637_v45  ;;  %v690_v32 = vadd.f32 %v658_v17, %v638_v46  ;;  %v691_v33 = vadd.f32 %v658_v17, %v639_v47  ;;  %v704_v35 = vmax.f32 %v672_v12, 0.0 }
 0x233   : > { %742 = vst [vmem:[%s1229_s5 + $0x90] sm:$0xff] %v710_v28  ;;  %743 = vst [vmem:[%s1229_s5 + $0x98] sm:$0xff] %v711_v29  ;;  %v705_v36 = vmax.f32 %v673_v13, 0.0  ;;  %v706_v37 = vmax.f32 %v674_v14, 0.0  ;;  %v707_v38 = vmax.f32 %v675_v15, 0.0  ;;  %v720_v39 = vmax.f32 %v688_v30, 0.0 }
 0x234   : > { %v721_v40 = vmax.f32 %v689_v31, 0.0  ;;  %v722_v41 = vmax.f32 %v690_v32, 0.0  ;;  %v723_v42 = vmax.f32 %v691_v33, 0.0  ;;  %736 = vst [vmem:[%s1229_s5 + $0x60] sm:$0xff] %v704_v35  ;;  %v668_v43 = vadd.f32 %v653_v34, %v1029_v1 }
 0x235   : > { %737 = vst [vmem:[%s1229_s5 + $0x68] sm:$0xff] %v705_v36  ;;  %738 = vst [vmem:[%s1229_s5 + $0x70] sm:$0xff] %v706_v37  ;;  %v669_v44 = vadd.f32 %v653_v34, %v1031_v2  ;;  %v670_v45 = vadd.f32 %v653_v34, %v1033_v3  ;;  %v671_v46 = vadd.f32 %v653_v34, %v1035_v4 }
 0x236   : > { %739 = vst [vmem:[%s1229_s5 + $0x78] sm:$0xff] %v707_v38  ;;  %752 = vst [vmem:[%s1229_s5 + $0xe0] sm:$0xff] %v720_v39  ;;  %v684_v1 = vadd.f32 %v653_v34, %v1080_v23  ;;  %v685_v2 = vadd.f32 %v653_v34, %v1082_v24  ;;  %v686_v3 = vadd.f32 %v653_v34, %v1084_v25  ;;  %v700_v47 = vmax.f32 %v668_v43, 0.0 }
 0x237   : > { %753 = vst [vmem:[%s1229_s5 + $0xe8] sm:$0xff] %v721_v40  ;;  %754 = vst [vmem:[%s1229_s5 + $0xf0] sm:$0xff] %v722_v41  ;;  %v687_v4 = vadd.f32 %v653_v34, %v1086_v26  ;;  %v701_v48 = vmax.f32 %v669_v44, 0.0  ;;  %v702_v49 = vmax.f32 %v670_v45, 0.0  ;;  %v703_v50 = vmax.f32 %v671_v46, 0.0 }
 0x238   : > { %755 = vst [vmem:[%s1229_s5 + $0xf8] sm:$0xff] %v723_v42  ;;  %v716_v51 = vmax.f32 %v684_v1, 0.0  ;;  %v717_v52 = vmax.f32 %v685_v2, 0.0  ;;  %v718_v53 = vmax.f32 %v686_v3, 0.0  ;;  %732 = vst [vmem:[%s1229_s5 + $0x40] sm:$0xff] %v700_v47 }
 0x239   : > { %v719_v54 = vmax.f32 %v687_v4, 0.0  ;;  %733 = vst [vmem:[%s1229_s5 + $0x48] sm:$0xff] %v701_v48  ;;  %734 = vst [vmem:[%s1229_s5 + $0x50] sm:$0xff] %v702_v49 }
 0x23a   : > { %735 = vst [vmem:[%s1229_s5 + $0x58] sm:$0xff] %v703_v50  ;;  %748 = vst [vmem:[%s1229_s5 + $0xc0] sm:$0xff] %v716_v51 }
 0x23b   : > { %749 = vst [vmem:[%s1229_s5 + $0xc8] sm:$0xff] %v717_v52  ;;  %750 = vst [vmem:[%s1229_s5 + $0xd0] sm:$0xff] %v718_v53 }
 0x23c   : > { %751 = vst [vmem:[%s1229_s5 + $0xd8] sm:$0xff] %v719_v54 }
 0x23d PF: > { %s15_s18 = sadd.s32 1, %s841_s18  }
 0x23e   : > { %p12_p6 = scmp.ge.s32.totalorder %s15_s18, 4  }
 0x240   :  { %14 = sbr.rel (!%p12_p6) target bundleno = 1 (0x1), region = 75 }

// kernel: residual_block_forward.5
= control target key start
LH: loop header
LB: loop body
LE: loop exit
PB: predicated region body
PF: predicated region fallthrough
CT: control target
= control target key end

     0   :  { %s2215_s24 = smov 0   ;;  %s3632_s0 = inlined_call_operand.vmem [shape: f32[2,4,512], index: 0, kind: input, shape index: {}]   ;;  %s3633_s1 = inlined_call_operand.vmem [shape: f32[27,512], index: 1, kind: input, shape index: {}]   ;;  %s3634_s2 = inlined_call_operand.vmem [shape: bf16[32,108], index: 2, kind: input, shape index: {}]   ;;  %s3635_s3 = inlined_call_operand.vmem [shape: f32[32,1], index: 3, kind: input, shape index: {}]   ;;  %s3636_s4 = inlined_call_operand.vmem [shape: f32[32,1], index: 4, kind: input, shape index: {}]   ;;  %s3637_s5 = inlined_call_operand.vmem [shape: f32[32,1], index: 5, kind: input, shape index: {}]   ;;  %s3638_s6 = inlined_call_operand.vmem [shape: f32[2,32,512], index: 6, kind: input, shape index: {}]   ;;  %s3639_s7 = inlined_call_operand.vmem [shape: f32[2,32,512], index: 7, kind: output, shape index: {}]  }
   0x1 LB: > { %s2221_s25 = sadd.s32 4294967295, %s2153_s24   ;;  %p2056_p0 = scmp.ge.s32.totalorder %s2153_s24, 1  ;;  %s2153_s24 = sphi %s2215_s24, %s17_s24  }
   0x2   : > { %p232_p1 = scmp.lt.s32.totalorder %s2153_s24, 3 }
   0x4   : > { %p233_p2 = pnand %p2056_p0, %p232_p1 }
   0x6   : > { %236 = sbr.rel (%p233_p2) target bundleno = 839 (0x347), region = 48 }
   0xb   : > { %p259_p3 = scmp.lt.s32.totalorder %s2221_s25, 1  ;;  %p2059_p4 = scmp.ne.s32.totalorder %s2221_s25, 0 }
   0xd   : > { %s260_s26 = scalar_select %p259_p3, %s2221_s25, 1 }
   0xe   : > { %268 = sbr.rel (%p2059_p4) target bundleno = 24 (0x18), region = 52 }
   0xf   : > { %s2098_s27 = sshll.u32 %s260_s26, 4 }
  0x10   : > { %s2230_s30 = scalar_lea.vmem %s3632_s0, %s2098_s27 }
  0x13   : > { %vm269_vm0 = vcmask 7168   ;;  %v2155_v0 = vmov 0.0  }
  0x14   : > { %270 = vst.msk [vmem:[#allocation2] sm:$0xff] %vm269_vm0, %v2155_v0  ;;  %271 = vst.msk [vmem:[#allocation2 + $0x8] sm:$0xff] %vm269_vm0, %v2155_v0 }
  0x15   : > { %272 = vst.msk [vmem:[#allocation2 + $0x10] sm:$0xff] %vm269_vm0, %v2155_v0  ;;  %273 = vst.msk [vmem:[#allocation2 + $0x18] sm:$0xff] %vm269_vm0, %v2155_v0 }
  0x16   : > { %274 = vst.msk [vmem:[#allocation3] sm:$0xff] %vm269_vm0, %v2155_v0  ;;  %275 = vst.msk [vmem:[#allocation3 + $0x8] sm:$0xff] %vm269_vm0, %v2155_v0 }
  0x17   : > { %276 = vst.msk [vmem:[#allocation3 + $0x10] sm:$0xff] %vm269_vm0, %v2155_v0  ;;  %277 = vst.msk [vmem:[#allocation3 + $0x18] sm:$0xff] %vm269_vm0, %v2155_v0 }
  0x18 PF: > { %v2234_v1 = vld [vmem:[%s2230_s30 + $0x8] sm:$0xff]  ;;  %v2237_v2 = vld [vmem:[%s2230_s30] sm:$0xff]  ;;  %s2156_s8 = smov 56   ;;  %s2157_s9 = smov 57   ;;  %v294_v5 = vlaneseq  ;;  %vm1298_vm3 = vcmask 1043456   ;;  %v3640_v60 = vmov 0  }
  0x19   : > { %3655 = vst [vmem:[#allocation4_spill] sm:$0xff] %v2237_v2  ;;  %571 = vrot.lane.b32.xlu1 %v2234_v1, %s2156_s8  ;;  %567 = vrot.lane.b32.xlu0 %v2237_v2, %s2156_s8  ;;  %v2243_v3 = vcombine.high %v2237_v2, %v2237_v2  ;;  %s2158_s10 = smov 55   ;;  %s2159_s11 = smov 65   ;;  %v2257_v4 = vcombine.high %v2234_v1, %v2234_v1  ;;  %v2328_v10 = vld [vmem:[%s3633_s1 + $0x7] ss:$8 sm:$0xf] }
  0x1a   : > { %s2160_s12 = smov 63   ;;  %s2161_s13 = smov 71   ;;  %v2312_v6 = vshrl.u32 %v294_v5, 7  ;;  %v2317_v7 = vand.u32 127, %v294_v5  ;;  %1529 = vmatprep.mubr.bf16.mxu0 %v3640_v60  ;;  %vm1484_vm5 = vcmask 1045504   ;;  %1582 = vmatprep.mubr.bf16.mxu1 %v3640_v60 }
  0x1b   : > { %s2162_s14 = smov 64   ;;  %s2163_s15 = smov 72   ;;  %v2349_v16 = vld [vmem:[%s3633_s1 + $0x6] ss:$8 sm:$0xf]  ;;  %2128 = vset.pattern.permute.xlu0 %v3640_v60  ;;  %2129 = vset.pattern.permute.xlu1 %v3640_v60 }
  0x1c   : > { %s2164_s16 = smov 119   ;;  %s2165_s17 = smov 73   ;;  %v2320_v8 = vsub.s32 1, %v2312_v6  ;;  %v2323_v9 = vsub.s32 2, %v2312_v6  ;;  %vm575_vm1 = vcmp.lt.s32.totalorder %v2317_v7, 56  ;;  %v2344_v15 = vsub.s32 0, %v2312_v6 }
  0x1d   : > { %527 = vrot.lane.b32.xlu1 %v2237_v2, %s2157_s9  ;;  %569 = vrot.lane.b32.xlu0 %v2243_v3, %s2156_s8  ;;  %s2166_s18 = smov 120   ;;  %s2167_s19 = smov 121   ;;  %v2356_v18 = vld [vmem:[%s3633_s1 + $0x61] ss:$8 sm:$0xf]  ;;  %vm535_vm2 = vcmp.lt.s32.totalorder %v2317_v7, 57 }
  0x1e   : > { %s2168_s20 = smov 1   ;;  %s2169_s21 = smov 127   ;;  %v590_v13 = vrot.slane %v2328_v10, %v2320_v8  ;;  %v594_v14 = vrot.slane %v2328_v10, %v2323_v9  ;;  %v2368_v22 = vld [vmem:[%s3633_s1 + $0x60] ss:$8 sm:$0xf]  ;;  %v550_v25 = vrot.slane %v2349_v16, %v2320_v8  ;;  %v554_v26 = vrot.slane %v2349_v16, %v2323_v9 }
  0x1f   : > { %s2170_s22 = smov 9   ;;  %s2171_s23 = smov 7   ;;  %v2379_v27 = vld [vmem:[%s3633_s1 + $0x62] ss:$8 sm:$0xf]  ;;  %v1162_v28 = vrot.slane %v2356_v18, %v2344_v15  ;;  %v1166_v29 = vrot.slane %v2356_v18, %v2320_v8  ;;  %v1135_v31 = vrot.slane %v2368_v22, %v2344_v15  ;;  %vm615_vm4 = vcmp.lt.s32.totalorder %v2317_v7, 55 }
  0x20   : > { %v1189_v35 = vrot.slane %v2379_v27, %v2344_v15  ;;  %v1139_v41 = vrot.slane %v2368_v22, %v2320_v8  ;;  %v1193_v50 = vrot.slane %v2379_v27, %v2320_v8  ;;  %v2463_v5 = vsub.s32 3, %v2312_v6  ;;  %p2095_p5 = scmp.ne.s32.totalorder %s2221_s25, 1 }
  0x21   : > { %531 = vrot.lane.b32.xlu1 %v2234_v1, %s2157_s9  ;;  %529 = vrot.lane.b32.xlu0 %v2243_v3, %s2157_s9  ;;  %vm415_vm6 = vcmp.lt.s32.totalorder %v2317_v7, 65  ;;  %vm495_vm7 = vcmp.lt.s32.totalorder %v2317_v7, 63  ;;  %vm375_vm8 = vcmp.lt.s32.totalorder %v2317_v7, 71  ;;  %vm455_vm9 = vcmp.lt.s32.totalorder %v2317_v7, 64 }
  0x22   : > { %vm335_vm10 = vcmp.lt.s32.totalorder %v2317_v7, 72  ;;  %vm935_vm11 = vcmp.lt.s32.totalorder %v2317_v7, 119  ;;  %vm296_vm12 = vcmp.lt.s32.totalorder %v2317_v7, 73  ;;  %vm895_vm13 = vcmp.lt.s32.totalorder %v2317_v7, 120 }
  0x23   : > { %vm855_vm14 = vcmp.lt.s32.totalorder %v2317_v7, 121  ;;  %vm775_vm15 = vcmp.lt.s32.totalorder %v2317_v7, 1  ;;  %vm815_vm0 = vcmp.lt.s32.totalorder %v2317_v7, 127 }
  0x25   : > { %609 = vrot.lane.b32.xlu1 %v2243_v3, %s2158_s10  ;;  %607 = vrot.lane.b32.xlu0 %v2237_v2, %s2158_s10 }
  0x29   : > { %409 = vrot.lane.b32.xlu1 %v2243_v3, %s2159_s11  ;;  %611 = vrot.lane.b32.xlu0 %v2234_v1, %s2158_s10 }
  0x2d   : > { %489 = vrot.lane.b32.xlu1 %v2243_v3, %s2160_s12  ;;  %411 = vrot.lane.b32.xlu0 %v2234_v1, %s2159_s11 }
  0x31   : > { %573 = vrot.lane.b32.xlu1 %v2257_v4, %s2156_s8  ;;  %491 = vrot.lane.b32.xlu0 %v2234_v1, %s2160_s12  ;;  %s2099_s8 = sshll.u32 %s2221_s25, 7 }
  0x35   : > { %487 = vrot.lane.b32.xlu1 %v2237_v2, %s2160_s12  ;;  %407 = vrot.lane.b32.xlu0 %v2237_v2, %s2159_s11 }
  0x39   : > { %371 = vrot.lane.b32.xlu1 %v2234_v1, %s2161_s13  ;;  %369 = vrot.lane.b32.xlu0 %v2243_v3, %s2161_s13 }
  0x3d   : > { %451 = vrot.lane.b32.xlu1 %v2234_v1, %s2162_s14  ;;  %449 = vrot.lane.b32.xlu0 %v2243_v3, %s2162_s14 }
  0x41   : > { %367 = vrot.lane.b32.xlu1 %v2237_v2, %s2161_s13  ;;  %533 = vrot.lane.b32.xlu0 %v2257_v4, %s2157_s9 }
  0x45   : > { %613 = vrot.lane.b32.xlu1 %v2257_v4, %s2158_s10  ;;  %447 = vrot.lane.b32.xlu0 %v2237_v2, %s2162_s14 }
  0x49   : > { %331 = vrot.lane.b32.xlu1 %v2234_v1, %s2163_s15  ;;  %329 = vrot.lane.b32.xlu0 %v2243_v3, %s2163_s15 }
  0x4d   : > { %493 = vrot.lane.b32.xlu1 %v2257_v4, %s2160_s12  ;;  %413 = vrot.lane.b32.xlu0 %v2257_v4, %s2159_s11  ;;  %s2172_s12 = smov 8   ;;  %s3218_s11 = scalar_lea.vmem %s3639_s7, %s2099_s8 }
  0x51   : > { %931 = vrot.lane.b32.xlu1 %v2234_v1, %s2164_s16  ;;  %929 = vrot.lane.b32.xlu0 %v2243_v3, %s2164_s16 }
  0x55   : > { %927 = vrot.lane.b32.xlu1 %v2237_v2, %s2164_s16  ;;  %327 = vrot.lane.b32.xlu0 %v2237_v2, %s2163_s15 }
  0x59   : > { %290 = vrot.lane.b32.xlu1 %v2234_v1, %s2165_s17  ;;  %288 = vrot.lane.b32.xlu0 %v2243_v3, %s2165_s17 }
  0x5d   : > { %453 = vrot.lane.b32.xlu1 %v2257_v4, %s2162_s14  ;;  %373 = vrot.lane.b32.xlu0 %v2257_v4, %s2161_s13 }
  0x61   : > { %891 = vrot.lane.b32.xlu1 %v2234_v1, %s2166_s18  ;;  %889 = vrot.lane.b32.xlu0 %v2243_v3, %s2166_s18 }
  0x65   : > { %887 = vrot.lane.b32.xlu1 %v2237_v2, %s2166_s18  ;;  %286 = vrot.lane.b32.xlu0 %v2237_v2, %s2165_s17 }
  0x69   : > { %849 = vrot.lane.b32.xlu1 %v2243_v3, %s2167_s19  ;;  %333 = vrot.lane.b32.xlu0 %v2257_v4, %s2163_s15 }
  0x6d   : > { %933 = vrot.lane.b32.xlu1 %v2257_v4, %s2164_s16  ;;  %851 = vrot.lane.b32.xlu0 %v2234_v1, %s2167_s19 }
  0x71   : > { %292 = vrot.lane.b32.xlu1 %v2257_v4, %s2165_s17  ;;  %847 = vrot.lane.b32.xlu0 %v2237_v2, %s2167_s19 }
  0x75   : > { %769 = vrot.lane.b32.xlu1 %v2243_v3, %s2168_s20  ;;  %767 = vrot.lane.b32.xlu0 %v2237_v2, %s2168_s20 }
  0x79   : > { %811 = vrot.lane.b32.xlu1 %v2234_v1, %s2169_s21  ;;  %809 = vrot.lane.b32.xlu0 %v2243_v3, %s2169_s21 }
  0x7d   : > { %773 = vrot.lane.b32.xlu1 %v2257_v4, %s2168_s20  ;;  %893 = vrot.lane.b32.xlu0 %v2257_v4, %s2166_s18 }
  0x81   : > { %647 = vrot.lane.b32.xlu1 %v2237_v2, %s2170_s22  ;;  %807 = vrot.lane.b32.xlu0 %v2237_v2, %s2169_s21 }
  0x85   : > { %727 = vrot.lane.b32.xlu1 %v2237_v2, %s2171_s23  ;;  %649 = vrot.lane.b32.xlu0 %v2243_v3, %s2170_s22 }
  0x89   : > { %853 = vrot.lane.b32.xlu1 %v2257_v4, %s2167_s19  ;;  %729 = vrot.lane.b32.xlu0 %v2243_v3, %s2171_s23 }
  0x8b   : > { %v2330_v11 = vpop.permute.xlu1 %571  ;;  %v2332_v12 = vpop.permute.xlu0 %567 }
  0x8d   : > { %733 = vrot.lane.b32.xlu1 %v2257_v4, %s2171_s23  ;;  %653 = vrot.lane.b32.xlu0 %v2257_v4, %s2170_s22 }
  0x8f   : > { %v2351_v17 = vpop.permute.xlu1 %527  ;;  %v570_v19 = vpop.permute.xlu0 %569 }
  0x90   : > { %v577_v20 = vsel %vm575_vm1, %v570_v19, %v2330_v11  ;;  %v578_v21 = vsel %vm575_vm1, %v2332_v12, %v570_v19 }
  0x91   : > { %v604_v23 = vmul.f32 %v590_v13, %v578_v21  ;;  %v605_v24 = vmul.f32 %v594_v14, %v577_v20  ;;  %689 = vrot.lane.b32.xlu1 %v2243_v3, %s2172_s12  ;;  %687 = vrot.lane.b32.xlu0 %v2237_v2, %s2172_s12  ;;  %v1179_v40 = vmul.f32 %v1162_v28, %v578_v21  ;;  %v2453_v3 = vld [vmem:[%s3633_s1 + $0x3] ss:$8 sm:$0xf]  ;;  %v2468_v13 = vld [vmem:[%s3633_s1 + $0x5] ss:$8 sm:$0xf] }
  0x92   : > { %v1180_v46 = vmul.f32 %v1166_v29, %v577_v20  ;;  %v2473_v14 = vld [vmem:[%s3633_s1 + $0x47] ss:$8 sm:$0xf]  ;;  %v434_v6 = vrot.slane %v2453_v3, %v2323_v9  ;;  %v598_v28 = vrot.slane %v2328_v10, %v2463_v5  ;;  %v1174_v29 = vrot.slane %v2356_v18, %v2463_v5 }
  0x93   : > { %v2387_v30 = vpop.permute.xlu1 %531  ;;  %v530_v32 = vpop.permute.xlu0 %529  ;;  %v1251_v36 = vrot.slane %v604_v23, 4  ;;  %v1252_v37 = vrot.slane %v605_v24, 4  ;;  %v1383_v51 = vrot.slane %v1179_v40, 4  ;;  %v586_v23 = vrot.slane %v2328_v10, %v2344_v15 }
  0x94   : > { %v537_v33 = vsel %vm535_vm2, %v530_v32, %v2387_v30  ;;  %v538_v34 = vsel %vm535_vm2, %v2351_v17, %v530_v32  ;;  %v1384_v55 = vrot.slane %v1180_v46, 4  ;;  %v1170_v24 = vrot.slane %v2356_v18, %v2323_v9 }
  0x95   : > { %v564_v38 = vmul.f32 %v550_v25, %v538_v34  ;;  %v565_v39 = vmul.f32 %v554_v26, %v537_v33  ;;  %813 = vrot.lane.b32.xlu1 %v2257_v4, %s2169_s21  ;;  %771 = vrot.lane.b32.xlu0 %v2234_v1, %s2168_s20  ;;  %v1152_v47 = vmul.f32 %v1135_v31, %v538_v34  ;;  %v2490_v25 = vld [vmem:[%s3633_s1 + $0x2] ss:$8 sm:$0xf]  ;;  %v2495_v26 = vld [vmem:[%s3633_s1 + $0x44] ss:$8 sm:$0xf] }
  0x96   : > { %v1153_v52 = vmul.f32 %v1139_v41, %v537_v33  ;;  %v514_v31 = vrot.slane %v2468_v13, %v2323_v9  ;;  %v1112_v32 = vrot.slane %v2473_v14, %v2320_v8  ;;  %v2508_v33 = vld [vmem:[%s3633_s1 + $0x4] ss:$8 sm:$0xf]  ;;  %v2513_v34 = vld [vmem:[%s3633_s1 + $0x46] ss:$8 sm:$0xf]  ;;  %v510_v18 = vrot.slane %v2468_v13, %v2320_v8 }
  0x97   : > { %v610_v42 = vpop.permute.xlu1 %609  ;;  %v2406_v43 = vpop.permute.xlu0 %607  ;;  %v2409_v44 = vsel %vm1298_vm3, %v564_v38, %v1251_v36  ;;  %v2412_v45 = vsel %vm1298_vm3, %v565_v39, %v1252_v37  ;;  %v1407_v57 = vsel %vm1298_vm3, %v1152_v47, %v1383_v51  ;;  %v430_v36 = vrot.slane %v2453_v3, %v2320_v8 }
  0x98   : > { %3656 = vst [vmem:[#allocation5_spill] sm:$0xff] %v2409_v44  ;;  %3657 = vst [vmem:[#allocation6_spill] sm:$0xff] %v2412_v45  ;;  %v2417_v48 = vsel %vm615_vm4, %v2406_v43, %v610_v42  ;;  %v1408_v61 = vsel %vm1298_vm3, %v1153_v52, %v1384_v55  ;;  %v394_v40 = vrot.slane %v2490_v25, %v2323_v9 }
  0x99   : > { %3658 = vst [vmem:[#allocation7_spill] sm:$0xff] %v2417_v48  ;;  %v1206_v49 = vmul.f32 %v1189_v35, %v2417_v48  ;;  %651 = vrot.lane.b32.xlu1 %v2234_v1, %s2170_s22  ;;  %693 = vrot.lane.b32.xlu0 %v2257_v4, %s2172_s12  ;;  %v1108_v35 = vrot.slane %v2473_v14, %v2344_v15 }
  0x9a   : > { %v1031_v41 = vrot.slane %v2495_v26, %v2320_v8  ;;  %v1085_v46 = vrot.slane %v2513_v34, %v2320_v8  ;;  %v546_v55 = vrot.slane %v2349_v16, %v2344_v15 }
  0x9b   : > { %v2426_v53 = vpop.permute.xlu1 %409  ;;  %v2428_v54 = vpop.permute.xlu0 %611  ;;  %v1439_v59 = vpack.c.bf16 %v1206_v49, %v1407_v57  ;;  %v558_v57 = vrot.slane %v2349_v16, %v2463_v5 }
  0x9c   : > { %v2433_v56 = vsel %vm615_vm4, %v610_v42, %v2428_v54  ;;  %v474_v42 = vrot.slane %v2508_v33, %v2323_v9 }
  0x9d   : > { %3659 = vst [vmem:[#allocation8_spill] sm:$0xff] %v2433_v56  ;;  %v1207_v58 = vmul.f32 %v1193_v50, %v2433_v56  ;;  %691 = vrot.lane.b32.xlu1 %v2234_v1, %s2172_s12  ;;  %731 = vrot.lane.b32.xlu0 %v2234_v1, %s2171_s23  ;;  %v2458_v1 = vld [vmem:[%s3633_s1 + $0x45] ss:$8 sm:$0xf]  ;;  %v1486_v4 = vsel %vm1484_vm5, %v1439_v59, 0 }
  0x9e   : > { %v1058_v21 = vrot.slane %v2458_v1, %v2320_v8  ;;  %v1054_v38 = vrot.slane %v2458_v1, %v2344_v15 }
  0x9f   : > { %v2444_v62 = vpop.permute.xlu1 %489  ;;  %v2446_v63 = vpop.permute.xlu0 %411  ;;  %v1440_v0 = vpack.c.bf16 %v1207_v58, %v1408_v61  ;;  %v1143_v58 = vrot.slane %v2368_v22, %v2323_v9 }
  0xa0   : > { %v417_v10 = vsel %vm415_vm6, %v2426_v53, %v2446_v63 }
  0xa1   : > { %2087 = vmatprep.subr.msk.bf16.mxu0 %vm1484_vm5, %v1440_v0  ;;  %v445_v49 = vmul.f32 %v434_v6, %v417_v10  ;;  %v1072_v59 = vmul.f32 %v1058_v21, %v417_v10  ;;  %v1443_v6 = vld [vmem:[%s3635_s3] sm:$0xff] }
  0xa2   : > { %1500 = vmatpush1.bf16.msra.mxu0 %v1486_v4  ;;  %1449 = vperm.xlu0 %2128, %v1443_v6  }
  0xa3   : > { %v574_v19 = vpop.permute.xlu1 %573  ;;  %v2477_v20 = vpop.permute.xlu0 %491  ;;  %v1228_v10 = vrot.slane %v445_v49, 4 }
  0xa4   : > { %v579_v50 = vsel %vm575_vm1, %v574_v19, %v2332_v12  ;;  %v497_v51 = vsel %vm495_vm7, %v2444_v62, %v2477_v20  ;;  %v1147_v12 = vrot.slane %v2368_v22, %v2463_v5  ;;  %v576_v61 = vsel %vm575_vm1, %v2330_v11, %v574_v19 }
  0xa5   : > { %v603_v60 = vmul.f32 %v586_v23, %v579_v50  ;;  %v525_v52 = vmul.f32 %v514_v31, %v497_v51  ;;  %v1126_v11 = vmul.f32 %v1112_v32, %v497_v51  ;;  %v1444_v23 = vld [vmem:[%s3635_s3 + $0x8] sm:$0xff]  ;;  %v606_v31 = vmul.f32 %v598_v28, %v576_v61  ;;  %v1446_v28 = vld [vmem:[%s3635_s3 + $0x18] sm:$0xff] }
  0xa6   : > { %v2582_v16 = vmul.f32 %v1170_v24, %v576_v61  ;;  %1454 = vperm.xlu1 %2129, %v1444_v23   ;;  %1464 = vperm.xlu0 %2128, %v1446_v28   ;;  %vm655_vm1 = vcmp.lt.s32.totalorder %v2317_v7, 9 }
  0xa7   : > { %v2525_v37 = vpop.permute.xlu1 %487  ;;  %v2529_v39 = vpop.permute.xlu0 %407  ;;  %v1250_v61 = vrot.slane %v603_v60, 4  ;;  %v1240_v6 = vrot.slane %v525_v52, 4 }
  0xa8   : > { %v418_v32 = vsel %vm415_vm6, %v2529_v39, %v2426_v53  ;;  %v498_v49 = vsel %vm495_vm7, %v2525_v37, %v2444_v62  ;;  %v1445_v53 = vld [vmem:[%s3635_s3 + $0x10] sm:$0xff]  ;;  %v1385_v56 = vrot.slane %v2582_v16, 4 }
  0xa9   : > { %v524_v48 = vmul.f32 %v510_v18, %v498_v49  ;;  %v1125_v2 = vmul.f32 %v1108_v35, %v498_v49 }
  0xaa   : > { %1459 = vperm.xlu1 %2129, %v1445_v53  }
  0xab   : > { %v2563_v0 = vpop.permute.xlu1 %371  ;;  %v370_v4 = vpop.permute.xlu0 %369 }
  0xac   : > { %3660 = vst [vmem:[#allocation9_spill] sm:$0xff] %v2563_v0  ;;  %v377_v22 = vsel %vm375_vm8, %v370_v4, %v2563_v0 }
  0xad   : > { %v405_v19 = vmul.f32 %v394_v40, %v377_v22  ;;  %v1360_v40 = vrot.slane %v1072_v59, 4  ;;  %v1045_v51 = vmul.f32 %v1031_v41, %v377_v22  ;;  %v1182_v59 = vmul.f32 %v1174_v29, %v579_v50 }
  0xae   : > { %v1372_v41 = vrot.slane %v1126_v11, 4  ;;  %v444_v22 = vmul.f32 %v430_v36, %v418_v32 }
  0xaf   : > { %v2592_v47 = vpop.permute.xlu1 %451  ;;  %v450_v21 = vpop.permute.xlu0 %449  ;;  %v2595_v24 = vsel %vm1298_vm3, %v405_v19, %v1228_v10  ;;  %v1253_v19 = vrot.slane %v606_v31, 4  ;;  %v1400_v29 = vsel %vm1298_vm3, %v1045_v51, %v1360_v40 }
  0xb0   : > { %3661 = vst [vmem:[#allocation10_spill] sm:$0xff] %v2595_v24  ;;  %v457_v62 = vsel %vm455_vm9, %v450_v21, %v2592_v47  ;;  %v1071_v24 = vmul.f32 %v1054_v38, %v418_v32  ;;  %v1386_v32 = vrot.slane %v1182_v59, 4 }
  0xb1   : > { %v485_v23 = vmul.f32 %v474_v42, %v457_v62  ;;  %v1099_v10 = vmul.f32 %v1085_v46, %v457_v62  ;;  %v1227_v42 = vrot.slane %v444_v22, 4  ;;  %v3663_v46 = vrot.slane %v2490_v25, %v2320_v8 }
  0xb2   : > { %v3668_v62 = vrot.slane %v2379_v27, %v2323_v9 }
  0xb3   : > { %v2607_v0 = vpop.permute.xlu1 %367  ;;  %v534_v60 = vpop.permute.xlu0 %533  ;;  %v1404_v50 = vsel %vm1298_vm3, %v1099_v10, %v1372_v41  ;;  %v2612_v52 = vsel %vm1298_vm3, %v485_v23, %v1240_v6  ;;  %v1359_v6 = vrot.slane %v1071_v24, 4  ;;  %v3671_v10 = vrot.slane %v2513_v34, %v2344_v15 }
  0xb4   : > { %3662 = vst [vmem:[#allocation11_spill] sm:$0xff] %v2612_v52  ;;  %v378_v36 = vsel %vm375_vm8, %v2607_v0, %v370_v4  ;;  %v536_v18 = vsel %vm535_vm2, %v2387_v30, %v534_v60  ;;  %v539_v35 = vsel %vm535_vm2, %v534_v60, %v2351_v17  ;;  %v1436_v38 = vpack.c.bf16 %v1404_v50, %v1400_v29 }
  0xb5   : > { %v404_v16 = vmul.f32 %v3663_v46, %v378_v36  ;;  %v563_v11 = vmul.f32 %v546_v55, %v539_v35  ;;  %v566_v31 = vmul.f32 %v558_v57, %v536_v18  ;;  %v1154_v40 = vmul.f32 %v1143_v58, %v536_v18 }
  0xb6   : > { %v1155_v49 = vmul.f32 %v1147_v12, %v539_v35  ;;  %1501 = vmatprep.subr.bf16.mxu0 %v1436_v38  ;;  %v1239_v30 = vrot.slane %v524_v48, 4  ;;  %v3665_v57 = vrot.slane %v2495_v26, %v2344_v15  ;;  %v1035_v46 = vrot.slane %v2495_v26, %v2323_v9 }
  0xb7   : > { %v614_v51 = vpop.permute.xlu1 %613  ;;  %v2628_v28 = vpop.permute.xlu0 %447  ;;  %v2631_v17 = vsel %vm1298_vm3, %v563_v11, %v1250_v61  ;;  %v2634_v53 = vsel %vm1298_vm3, %v404_v16, %v1227_v42  ;;  %v2637_v55 = vsel %vm1298_vm3, %v566_v31, %v1253_v19  ;;  %v1371_v61 = vrot.slane %v1125_v2, 4  ;;  %v2698_v31 = vld [vmem:[%s3633_s1 + $0x41] ss:$8 sm:$0xf] }
  0xb8   : > { %3664 = vst [vmem:[#allocation12_spill] sm:$0xff] %v2634_v53  ;;  %v1044_v58 = vmul.f32 %v3665_v57, %v378_v36  ;;  %v2645_v48 = vsel %vm615_vm4, %v2428_v54, %v614_v51  ;;  %v2650_v12 = vsel %vm615_vm4, %v614_v51, %v2406_v43  ;;  %v458_v59 = vsel %vm455_vm9, %v2628_v28, %v450_v21 }
  0xb9   : > { %3666 = vst [vmem:[#allocation13_spill] sm:$0xff] %v2645_v48  ;;  %3667 = vst [vmem:[#allocation14_spill] sm:$0xff] %v2650_v12  ;;  %v1208_v41 = vmul.f32 %v3668_v62, %v2645_v48  ;;  %v3669_v54 = vrot.slane %v2379_v27, %v2463_v5  ;;  %v3670_v43 = vrot.slane %v2508_v33, %v2320_v8  ;;  %v2678_v27 = vld [vmem:[%s3633_s1 + $0x1] ss:$8 sm:$0xf]  ;;  %vm735_vm2 = vcmp.lt.s32.totalorder %v2317_v7, 7 }
  0xba   : > { %v1098_v21 = vmul.f32 %v3671_v10, %v458_v59  ;;  %v1410_v2 = vsel %vm1298_vm3, %v1155_v49, %v1386_v32  ;;  %v1409_v24 = vsel %vm1298_vm3, %v1154_v40, %v1385_v56  ;;  %v1399_v36 = vsel %vm1298_vm3, %v1044_v58, %v1359_v6  ;;  %v2688_v56 = vld [vmem:[%s3633_s1 + $0x43] ss:$8 sm:$0xf] }
  0xbb   : > { %v1209_v22 = vmul.f32 %v3669_v54, %v2650_v12  ;;  %v484_v23 = vmul.f32 %v3670_v43, %v458_v59  ;;  %v2671_v19 = vpop.permute.xlu1 %331  ;;  %v2673_v60 = vpop.permute.xlu0 %329  ;;  %v1441_v50 = vpack.c.bf16 %v1208_v41, %v1409_v24  ;;  %v354_v32 = vrot.slane %v2678_v27, %v2323_v9 }
  0xbc   : > { %v1403_v18 = vsel %vm1298_vm3, %v1098_v21, %v1371_v61  ;;  %v1004_v40 = vrot.slane %v2688_v56, %v2320_v8  ;;  %v506_v49 = vrot.slane %v2468_v13, %v2344_v15  ;;  %v1116_v51 = vrot.slane %v2473_v14, %v2323_v9  ;;  %v2719_v61 = vld [vmem:[%s3633_s1] ss:$8 sm:$0xf] }
  0xbd   : > { %v1442_v29 = vpack.c.bf16 %v1209_v22, %v1410_v2  ;;  %v2683_v35 = vsel %vm1298_vm3, %v484_v23, %v1239_v30  ;;  %v1435_v38 = vpack.c.bf16 %v1403_v18, %v1399_v36  ;;  %v1492_v42 = vsel %vm1484_vm5, %v1441_v50, 0  ;;  %v2765_v50 = vld [vmem:[%s3633_s1 + $0x40] ss:$8 sm:$0xf] }
  0xbe   : > { %3672 = vst [vmem:[#allocation15_spill] sm:$0xff] %v2683_v35  ;;  %v518_v30 = vrot.slane %v2468_v13, %v2463_v5  ;;  %v1120_v57 = vrot.slane %v2473_v14, %v2463_v5  ;;  %v426_v58 = vrot.slane %v2453_v3, %v2344_v15  ;;  %v438_v59 = vrot.slane %v2453_v3, %v2463_v5  ;;  %v2724_v13 = vld [vmem:[%s3633_s1 + $0x42] ss:$8 sm:$0xf] }
  0xbf   : > { %2090 = vmatprep.subr.msk.bf16.mxu1 %vm1484_vm5, %v1442_v29  ;;  %1502 = vmatpush1.bf16.msra.mxu0 %v1435_v38  ;;  %v494_v16 = vpop.permute.xlu1 %493  ;;  %v414_v11 = vpop.permute.xlu0 %413  ;;  %v1062_v6 = vrot.slane %v2458_v1, %v2323_v9  ;;  %v1066_v14 = vrot.slane %v2458_v1, %v2463_v5  ;;  %v950_v3 = vrot.slane %v2698_v31, %v2320_v8  ;;  %vm695_vm4 = vcmp.lt.s32.totalorder %v2317_v7, 8 }
  0xc0   : > { %1553 = vmatpush1.bf16.msra.mxu1 %v1492_v42  ;;  %v337_v62 = vsel %vm335_vm10, %v2673_v60, %v2671_v19  ;;  %v946_v22 = vrot.slane %v2698_v31, %v2344_v15  ;;  %v1000_v43 = vrot.slane %v2688_v56, %v2344_v15  ;;  %v499_v1 = vsel %vm495_vm7, %v494_v16, %v2525_v37 }
  0xc1   : > { %v314_v23 = vrot.slane %v2719_v61, %v2323_v9  ;;  %v977_v10 = vrot.slane %v2724_v13, %v2320_v8  ;;  %v466_v21 = vrot.slane %v2508_v33, %v2344_v15  ;;  %v496_v2 = vsel %vm495_vm7, %v2477_v20, %v494_v16 }
  0xc2   : > { %v478_v24 = vrot.slane %v2508_v33, %v2463_v5  ;;  %v1089_v29 = vrot.slane %v2513_v34, %v2323_v9  ;;  %v1093_v37 = vrot.slane %v2513_v34, %v2463_v5  ;;  %v365_v36 = vmul.f32 %v354_v32, %v337_v62 }
  0xc3   : > { %v2737_v41 = vpop.permute.xlu1 %931  ;;  %v930_v54 = vpop.permute.xlu0 %929  ;;  %v419_v18 = vsel %vm415_vm6, %v414_v11, %v2529_v39  ;;  %v386_v20 = vrot.slane %v2490_v25, %v2344_v15  ;;  %v398_v33 = vrot.slane %v2490_v25, %v2463_v5  ;;  %v2774_v38 = vmul.f32 %v1004_v40, %v337_v62 }
  0xc4   : > { %v523_v42 = vmul.f32 %v506_v49, %v499_v1  ;;  %v416_v34 = vsel %vm415_vm6, %v2446_v63, %v414_v11  ;;  %v937_v16 = vsel %vm935_vm11, %v930_v54, %v2737_v41  ;;  %v526_v4 = vmul.f32 %v518_v30, %v496_v2 }
  0xc5   : > { %v1039_v25 = vrot.slane %v2495_v26, %v2463_v5  ;;  %v910_v40 = vrot.slane %v2765_v50, %v2320_v8  ;;  %v1127_v49 = vmul.f32 %v1116_v51, %v496_v2  ;;  %v1128_v63 = vmul.f32 %v1120_v57, %v499_v1 }
  0xc6   : > { %v443_v11 = vmul.f32 %v426_v58, %v419_v18  ;;  %v446_v52 = vmul.f32 %v438_v59, %v416_v34  ;;  %v1073_v45 = vmul.f32 %v1062_v6, %v416_v34  ;;  %v1074_v30 = vmul.f32 %v1066_v14, %v419_v18 }
  0xc7   : > { %v2782_v32 = vpop.permute.xlu1 %927  ;;  %v2784_v39 = vpop.permute.xlu0 %327  ;;  %v964_v53 = vmul.f32 %v950_v3, %v937_v16  ;;  %v1216_v35 = vrot.slane %v365_v36, 4  ;;  %v1348_v44 = vrot.slane %v2774_v38, 4  ;;  %v1238_v48 = vrot.slane %v523_v42, 4 }
  0xc8   : > { %v973_v51 = vrot.slane %v2724_v13, %v2344_v15  ;;  %v1241_v57 = vrot.slane %v526_v4, 4  ;;  %v938_v58 = vsel %vm935_vm11, %v2782_v32, %v930_v54  ;;  %v2807_v59 = vsel %vm335_vm10, %v2784_v39, %v2673_v60 }
  0xc9   : > { %v1373_v14 = vrot.slane %v1127_v49, 4  ;;  %v1374_v3 = vrot.slane %v1128_v63, 4  ;;  %v1226_v1 = vrot.slane %v443_v11, 4  ;;  %v1229_v36 = vrot.slane %v446_v52, 4 }
  0xca   : > { %v1361_v4 = vrot.slane %v1073_v45, 4  ;;  %v1362_v18 = vrot.slane %v1074_v30, 4  ;;  %v1336_v38 = vrot.slane %v964_v53, 4  ;;  %v963_v42 = vmul.f32 %v946_v22, %v938_v58  ;;  %v3674_v45 = vld [vmem:[#allocation9_spill] sm:$0xff] }
  0xcb   : > { %v2796_v26 = vpop.permute.xlu1 %290  ;;  %v289_v12 = vpop.permute.xlu0 %288  ;;  %v1017_v54 = vmul.f32 %v1000_v43, %v2807_v59  ;;  %vm1477_vm5 = vcmask 883712  }
  0xcc   : > { %v298_v6 = vsel %vm296_vm12, %v289_v12, %v2796_v26 }
  0xcd   : > { %v325_v2 = vmul.f32 %v314_v23, %v298_v6  ;;  %v991_v34 = vmul.f32 %v977_v10, %v298_v6 }
  0xcf   : > { %v454_v16 = vpop.permute.xlu1 %453  ;;  %v374_v62 = vpop.permute.xlu0 %373  ;;  %v2814_v60 = vsel %vm1298_vm3, %v325_v2, %v1216_v35 }
  0xd0   : > { %3673 = vst [vmem:[#allocation16_spill] sm:$0xff] %v2814_v60  ;;  %v456_v49 = vsel %vm455_vm9, %v2592_v47, %v454_v16  ;;  %v459_v52 = vsel %vm455_vm9, %v454_v16, %v2628_v28  ;;  %v376_v53 = vsel %vm375_vm8, %v3674_v45, %v374_v62  ;;  %v379_v22 = vsel %vm375_vm8, %v374_v62, %v2607_v0 }
  0xd1   : > { %v483_v43 = vmul.f32 %v466_v21, %v459_v52  ;;  %v486_v23 = vmul.f32 %v478_v24, %v456_v49  ;;  %v1100_v35 = vmul.f32 %v1089_v29, %v456_v49  ;;  %v1101_v10 = vmul.f32 %v1093_v37, %v459_v52 }
  0xd2   : > { %v403_v63 = vmul.f32 %v386_v20, %v379_v22  ;;  %v406_v11 = vmul.f32 %v398_v33, %v376_v53  ;;  %v1046_v30 = vmul.f32 %v1035_v46, %v376_v53  ;;  %v1047_v47 = vmul.f32 %v1039_v25, %v379_v22 }
  0xd3   : > { %v2828_v58 = vpop.permute.xlu1 %891  ;;  %v890_v6 = vpop.permute.xlu0 %889  ;;  %v1406_v28 = vsel %vm1298_vm3, %v1101_v10, %v1374_v3  ;;  %v1405_v2 = vsel %vm1298_vm3, %v1100_v35, %v1373_v14  ;;  %v2833_v16 = vsel %vm1298_vm3, %v483_v43, %v1238_v48  ;;  %v2836_v0 = vsel %vm1298_vm3, %v486_v23, %v1241_v57 }
  0xd4   : > { %v897_v21 = vsel %vm895_vm13, %v890_v6, %v2828_v58  ;;  %v1402_v46 = vsel %vm1298_vm3, %v1047_v47, %v1362_v18  ;;  %v1401_v24 = vsel %vm1298_vm3, %v1046_v30, %v1361_v4  ;;  %v2846_v48 = vsel %vm1298_vm3, %v403_v63, %v1226_v1  ;;  %v2885_v63 = vld [vmem:[%s3633_s1 + $0x24] ss:$8 sm:$0xf] }
  0xd5   : > { %v924_v37 = vmul.f32 %v910_v40, %v897_v21  ;;  %v1438_v20 = vpack.c.bf16 %v1406_v28, %v1402_v46  ;;  %v1437_v33 = vpack.c.bf16 %v1405_v2, %v1401_v24  ;;  %v2851_v62 = vsel %vm1298_vm3, %v406_v11, %v1229_v36  ;;  %v2900_v28 = vld [vmem:[%s3633_s1 + $0x26] ss:$8 sm:$0xf] }
  0xd6   : > { %v1396_v18 = vsel %vm1298_vm3, %v991_v34, %v1348_v44  ;;  %v1335_v52 = vrot.slane %v963_v42, 4  ;;  %v1347_v45 = vrot.slane %v1017_v54, 4  ;;  %v3676_v53 = vrot.slane %v2765_v50, %v2344_v15  ;;  %v2877_v42 = vld [vmem:[%s3633_s1 + $0x27] ss:$8 sm:$0xf] }
  0xd7   : > { %1554 = vmatprep.subr.bf16.mxu1 %v1438_v20  ;;  %v2855_v3 = vpop.permute.xlu1 %887  ;;  %v287_v4 = vpop.permute.xlu0 %286  ;;  %v1392_v40 = vsel %vm1298_vm3, %v924_v37, %v1336_v38  ;;  %v870_v11 = vrot.slane %v2877_v42, %v2320_v8  ;;  %v1008_v30 = vrot.slane %v2688_v56, %v2323_v9  ;;  %v1012_v47 = vrot.slane %v2688_v56, %v2463_v5 }
  0xd8   : > { %v898_v1 = vsel %vm895_vm13, %v2855_v3, %v890_v6  ;;  %1555 = vmatpush1.bf16.msra.mxu1 %v1437_v33  ;;  %v2864_v36 = vsel %vm296_vm12, %v287_v4, %v289_v12  ;;  %v1432_v49 = vpack.c.bf16 %v1396_v18, %v1392_v40  ;;  %v954_v56 = vrot.slane %v2698_v31, %v2323_v9 }
  0xd9   : > { %v923_v22 = vmul.f32 %v3676_v53, %v898_v1  ;;  %v990_v38 = vmul.f32 %v973_v51, %v2864_v36  ;;  %v790_v24 = vrot.slane %v2885_v63, %v2320_v8  ;;  %v958_v20 = vrot.slane %v2698_v31, %v2463_v5 }
  0xda   : > { %1503 = vmatprep.subr.bf16.mxu0 %v1432_v49  ;;  %v985_v18 = vrot.slane %v2724_v13, %v2463_v5  ;;  %v830_v31 = vrot.slane %v2900_v28, %v2320_v8  ;;  %v794_v25 = vrot.slane %v2885_v63, %v2323_v9 }
  0xdb   : > { %v850_v44 = vpop.permute.xlu1 %849  ;;  %v334_v34 = vpop.permute.xlu0 %333  ;;  %v1391_v43 = vsel %vm1298_vm3, %v923_v22, %v1335_v52  ;;  %v1395_v23 = vsel %vm1298_vm3, %v990_v38, %v1347_v45  ;;  %v866_v52 = vrot.slane %v2877_v42, %v2344_v15 }
  0xdc   : > { %v1431_v35 = vpack.c.bf16 %v1395_v23, %v1391_v43  ;;  %v2905_v2 = vsel %vm335_vm10, %v2671_v19, %v334_v34  ;;  %v2910_v21 = vsel %vm335_vm10, %v334_v34, %v2784_v39  ;;  %v981_v39 = vrot.slane %v2724_v13, %v2323_v9 }
  0xdd   : > { %v1019_v1 = vmul.f32 %v1008_v30, %v2905_v2  ;;  %v786_v34 = vrot.slane %v2885_v63, %v2344_v15  ;;  %v918_v23 = vrot.slane %v2765_v50, %v2463_v5  ;;  %v826_v30 = vrot.slane %v2900_v28, %v2344_v15 }
  0xde   : > { %1504 = vmatpush1.bf16.msra.mxu0 %v1431_v35 }
  0xdf   : > { %v934_v12 = vpop.permute.xlu1 %933  ;;  %v2872_v10 = vpop.permute.xlu0 %851 }
  0xe0   : > { %v857_v6 = vsel %vm855_vm14, %v850_v44, %v2872_v10  ;;  %v936_v19 = vsel %vm935_vm11, %v2737_v41, %v934_v12  ;;  %v1020_v41 = vmul.f32 %v1012_v47, %v2910_v21  ;;  %v939_v49 = vsel %vm935_vm11, %v934_v12, %v2782_v32 }
  0xe1   : > { %v884_v40 = vmul.f32 %v870_v11, %v857_v6  ;;  %v965_v45 = vmul.f32 %v954_v56, %v936_v19  ;;  %v966_v35 = vmul.f32 %v958_v20, %v939_v49  ;;  %v1349_v47 = vrot.slane %v1019_v1, 4  ;;  %v3677_v20 = vld [vmem:[#allocation4_spill] sm:$0xff] }
  0xe2   : > { %v1350_v6 = vrot.slane %v1020_v41, 4 }
  0xe3   : > { %v293_v51 = vpop.permute.xlu1 %292  ;;  %v2880_v54 = vpop.permute.xlu0 %847  ;;  %v1291_v12 = vrot.slane %v884_v40, 4  ;;  %v1337_v56 = vrot.slane %v965_v45, 4  ;;  %v1338_v1 = vrot.slane %v966_v35, 4 }
  0xe4   : > { %v2942_v13 = vsel %vm296_vm12, %v293_v51, %v287_v4  ;;  %v2951_v43 = vsel %vm296_vm12, %v2796_v26, %v293_v51  ;;  %v914_v4 = vrot.slane %v2765_v50, %v2323_v9  ;;  %v858_v51 = vsel %vm855_vm14, %v2880_v54, %v850_v44 }
  0xe5   : > { %v993_v26 = vmul.f32 %v985_v18, %v2942_v13  ;;  %v883_v41 = vmul.f32 %v866_v52, %v858_v51 }
  0xe7   : > { %v2914_v46 = vpop.permute.xlu1 %769  ;;  %v768_v37 = vpop.permute.xlu0 %767  ;;  %v1290_v35 = vrot.slane %v883_v41, 4 }
  0xe8   : > { %v778_v33 = vsel %vm775_vm15, %v768_v37, %v2914_v46 }
  0xe9   : > { %v804_v53 = vmul.f32 %v790_v24, %v778_v33  ;;  %v992_v24 = vmul.f32 %v981_v39, %v2951_v43 }
  0xeb   : > { %v2944_v22 = vpop.permute.xlu1 %811  ;;  %v810_v38 = vpop.permute.xlu0 %809  ;;  %v1324_v33 = vsel %vm1298_vm3, %v804_v53, %v3677_v20  ;;  %v1398_v53 = vsel %vm1298_vm3, %v993_v26, %v1350_v6 }
  0xec   : > { %v817_v32 = vsel %vm815_vm0, %v810_v38, %v2944_v22 }
  0xed   : > { %v844_v11 = vmul.f32 %v830_v31, %v817_v32  ;;  %v1282_v32 = vcombine.low %v3677_v20, %v3677_v20 }
  0xef   : > { %v2967_v19 = vpop.permute.xlu1 %773  ;;  %v894_v50 = vpop.permute.xlu0 %893  ;;  %v1328_v40 = vsel %vm1298_vm3, %v844_v11, %v1291_v12 }
  0xf0   : > { %v779_v31 = vsel %vm775_vm15, %v2967_v19, %v768_v37  ;;  %v896_v18 = vsel %vm895_vm13, %v2828_v58, %v894_v50  ;;  %v899_v44 = vsel %vm895_vm13, %v894_v50, %v2855_v3  ;;  %v1428_v39 = vpack.c.bf16 %v1328_v40, %v1324_v33  ;;  %v3014_v50 = vld [vmem:[%s3633_s1 + $0x23] ss:$8 sm:$0xf] }
  0xf1   : > { %v925_v49 = vmul.f32 %v914_v4, %v896_v18  ;;  %v926_v45 = vmul.f32 %v918_v23, %v899_v44  ;;  %v803_v37 = vmul.f32 %v786_v34, %v779_v31  ;;  %v1397_v3 = vsel %vm1298_vm3, %v992_v24, %v1349_v47  ;;  %v3001_v47 = vld [vmem:[%s3633_s1 + $0x21] ss:$8 sm:$0xf] }
  0xf2   : > { %1505 = vmatprep.subr.bf16.mxu0 %v1428_v39  ;;  %v350_v39 = vrot.slane %v2678_v27, %v2320_v8  ;;  %v2136_v44 = vld [vmem:[%s2230_s30 + $0x8] sm:$0xff] }
  0xf3   : > { %v648_v12 = vpop.permute.xlu1 %647  ;;  %v2984_v11 = vpop.permute.xlu0 %807  ;;  %v1394_v58 = vsel %vm1298_vm3, %v926_v45, %v1338_v1  ;;  %v1393_v14 = vsel %vm1298_vm3, %v925_v49, %v1337_v56  ;;  %v1323_v51 = vsel %vm1298_vm3, %v803_v37, %v1282_v32  ;;  %v750_v45 = vrot.slane %v3014_v50, %v2320_v8 }
  0xf4   : > { %v818_v52 = vsel %vm815_vm0, %v2984_v11, %v810_v38  ;;  %v1434_v4 = vpack.c.bf16 %v1398_v53, %v1394_v58  ;;  %v1433_v23 = vpack.c.bf16 %v1397_v3, %v1393_v14  ;;  %v3006_v14 = vld [vmem:[%s3633_s1 + $0x20] ss:$8 sm:$0xf]  ;;  %v3043_v53 = vld [vmem:[%s3633_s1 + $0x22] ss:$8 sm:$0xf]  ;;  %v874_v58 = vrot.slane %v2877_v42, %v2323_v9 }
  0xf5   : > { %v843_v6 = vmul.f32 %v826_v30, %v818_v52  ;;  %v670_v30 = vrot.slane %v3001_v47, %v2320_v8  ;;  %v630_v33 = vrot.slane %v3006_v14, %v2320_v8  ;;  %v674_v32 = vrot.slane %v3001_v47, %v2323_v9 }
  0xf6   : > { %1556 = vmatprep.subr.bf16.mxu1 %v1434_v4  ;;  %v1283_v41 = vcombine.low %v2136_v44, %v2136_v44  ;;  %v754_v1 = vrot.slane %v3014_v50, %v2323_v9 }
  0xf7   : > { %v2992_v26 = vpop.permute.xlu1 %727  ;;  %1557 = vmatpush1.bf16.msra.mxu1 %v1433_v23  ;;  %v2994_v34 = vpop.permute.xlu0 %649  ;;  %v1327_v56 = vsel %vm1298_vm3, %v843_v6, %v1290_v35  ;;  %v878_v35 = vrot.slane %v2877_v42, %v2463_v5  ;;  %v710_v42 = vrot.slane %v3043_v53, %v2320_v8  ;;  %v798_v23 = vrot.slane %v2885_v63, %v2463_v5 }
  0xf8   : > { %v1427_v38 = vpack.c.bf16 %v1327_v56, %v1323_v51  ;;  %v658_v40 = vsel %vm655_vm1, %v648_v12, %v2994_v34  ;;  %v746_v51 = vrot.slane %v3014_v50, %v2344_v15  ;;  %v706_v63 = vrot.slane %v3043_v53, %v2344_v15 }
  0xf9   : > { %v684_v37 = vmul.f32 %v670_v30, %v658_v40  ;;  %v838_v40 = vrot.slane %v2900_v28, %v2463_v5 }
  0xfa   : > { %1506 = vmatpush1.bf16.msra.mxu0 %v1427_v38  ;;  %v666_v38 = vrot.slane %v3001_v47, %v2344_v15 }
  0xfb   : > { %v854_v24 = vpop.permute.xlu1 %853  ;;  %v3016_v20 = vpop.permute.xlu0 %729 }
  0xfc   : > { %v738_v3 = vsel %vm735_vm2, %v2992_v26, %v3016_v20  ;;  %v856_v6 = vsel %vm855_vm14, %v2872_v10, %v854_v24  ;;  %v859_v56 = vsel %vm855_vm14, %v854_v24, %v2880_v54  ;;  %v834_v10 = vrot.slane %v2900_v28, %v2323_v9 }
  0xfd   : > { %v764_v30 = vmul.f32 %v750_v45, %v738_v3  ;;  %v1263_v54 = vrot.slane %v684_v37, 4  ;;  %v885_v24 = vmul.f32 %v874_v58, %v856_v6  ;;  %v886_v45 = vmul.f32 %v878_v35, %v859_v56  ;;  %v3678_v37 = vld [vmem:[#allocation7_spill] sm:$0xff] }
  0xfe   : > { %v678_v28 = vrot.slane %v3001_v47, %v2463_v5  ;;  %v644_v58 = vmul.f32 %v630_v33, %v3678_v37  ;;  %v758_v47 = vrot.slane %v3014_v50, %v2463_v5 }
  0xff   : > { %v3053_v52 = vpop.permute.xlu1 %733  ;;  %v654_v4 = vpop.permute.xlu0 %653  ;;  %v1275_v56 = vrot.slane %v764_v30, 4  ;;  %v1292_v31 = vrot.slane %v885_v24, 4  ;;  %v1293_v57 = vrot.slane %v886_v45, 4 }
 0x100   : > { %v659_v3 = vsel %vm655_vm1, %v654_v4, %v648_v12  ;;  %v739_v33 = vsel %vm735_vm2, %v3053_v52, %v2992_v26  ;;  %v1316_v60 = vsel %vm1298_vm3, %v644_v58, %v1263_v54  ;;  %v364_v58 = vmul.f32 %v350_v39, %v2807_v59  ;;  %v3679_v59 = vld [vmem:[#allocation14_spill] sm:$0xff] }
 0x101   : > { %v683_v37 = vmul.f32 %v666_v38, %v659_v3  ;;  %v763_v54 = vmul.f32 %v746_v51, %v739_v33  ;;  %v3680_v39 = vrot.slane %v3006_v14, %v2344_v15 }
 0x103   : > { %v3078_v29 = vpop.permute.xlu1 %689  ;;  %v688_v49 = vpop.permute.xlu0 %687 }
 0x104   : > { %v698_v6 = vsel %vm695_vm4, %v688_v49, %v3078_v29 }
 0x105   : > { %v724_v12 = vmul.f32 %v710_v42, %v698_v6 }
 0x107   : > { %v814_v18 = vpop.permute.xlu1 %813  ;;  %v772_v50 = vpop.permute.xlu0 %771  ;;  %v1320_v24 = vsel %vm1298_vm3, %v724_v12, %v1275_v56 }
 0x108   : > { %v816_v42 = vsel %vm815_vm0, %v2944_v22, %v814_v18  ;;  %v819_v30 = vsel %vm815_vm0, %v814_v18, %v2984_v11  ;;  %v776_v26 = vsel %vm775_vm15, %v772_v50, %v2967_v19  ;;  %v777_v38 = vsel %vm775_vm15, %v2914_v46, %v772_v50 }
 0x109   : > { %v845_v6 = vmul.f32 %v834_v10, %v816_v42  ;;  %v846_v35 = vmul.f32 %v838_v40, %v819_v30  ;;  %v805_v45 = vmul.f32 %v794_v25, %v777_v38  ;;  %v806_v22 = vmul.f32 %v798_v23, %v776_v26 }
 0x10a   : > { %v1424_v3 = vpack.c.bf16 %v1320_v24, %v1316_v60  ;;  %v1262_v11 = vrot.slane %v683_v37, 4  ;;  %v3683_v42 = vrot.slane %v2719_v61, %v2320_v8 }
 0x10b   : > { %v652_v18 = vpop.permute.xlu1 %651  ;;  %v1330_v56 = vsel %vm1298_vm3, %v846_v35, %v1293_v57  ;;  %v1329_v10 = vsel %vm1298_vm3, %v845_v6, %v1292_v31  ;;  %v694_v51 = vpop.permute.xlu0 %693  ;;  %v1326_v25 = vsel %vm1298_vm3, %v806_v22, %v2136_v44  ;;  %v1325_v60 = vsel %vm1298_vm3, %v805_v45, %v1283_v41 }
 0x10c   : > { %1507 = vmatprep.subr.bf16.mxu0 %v1424_v3  ;;  %v656_v19 = vsel %vm655_vm1, %v652_v18, %v654_v4  ;;  %v657_v46 = vsel %vm655_vm1, %v2994_v34, %v652_v18  ;;  %v643_v57 = vmul.f32 %v3680_v39, %v3679_v59  ;;  %v699_v31 = vsel %vm695_vm4, %v694_v51, %v688_v49  ;;  %v3681_v34 = vld [vmem:[#allocation8_spill] sm:$0xff] }
 0x10d   : > { %v685_v23 = vmul.f32 %v674_v32, %v657_v46  ;;  %v1430_v40 = vpack.c.bf16 %v1330_v56, %v1326_v25  ;;  %v1274_v4 = vrot.slane %v763_v54, 4  ;;  %v686_v35 = vmul.f32 %v678_v28, %v656_v19  ;;  %v3692_v25 = vld [vmem:[#allocation15_spill] sm:$0xff]  ;;  %v3694_v59 = vld [vmem:[#allocation12_spill] sm:$0xff] }
 0x10e   : > { %v723_v12 = vmul.f32 %v706_v63, %v699_v31  ;;  %v1429_v33 = vpack.c.bf16 %v1329_v10, %v1325_v60  ;;  %v3682_v44 = vrot.slane %v3006_v14, %v2323_v9  ;;  %v1215_v41 = vrot.slane %v364_v58, 4  ;;  %v3685_v58 = vld [vmem:[#allocation13_spill] sm:$0xff] }
 0x10f   : > { %v324_v30 = vmul.f32 %v3683_v42, %v2864_v36  ;;  %1558 = vmatprep.subr.bf16.mxu1 %v1430_v40  ;;  %v718_v49 = vrot.slane %v3043_v53, %v2463_v5  ;;  %v692_v32 = vpop.permute.xlu1 %691  ;;  %v3684_v28 = vrot.slane %v2678_v27, %v2344_v15  ;;  %v1264_v50 = vrot.slane %v685_v23, 4  ;;  %v732_v24 = vpop.permute.xlu0 %731 }
 0x110   : > { %v645_v37 = vmul.f32 %v3682_v44, %v3681_v34  ;;  %1559 = vmatpush1.bf16.msra.mxu1 %v1429_v33  ;;  %v1315_v6 = vsel %vm1298_vm3, %v643_v57, %v1262_v11  ;;  %v1319_v26 = vsel %vm1298_vm3, %v723_v12, %v1274_v4  ;;  %v696_v8 = vsel %vm695_vm4, %v692_v32, %v694_v51  ;;  %v3691_v51 = vld [vmem:[#allocation5_spill] sm:$0xff]  ;;  %v3698_v12 = vld [vmem:[#allocation11_spill] sm:$0xff]  ;;  %v3701_v34 = vld [vmem:[#allocation10_spill] sm:$0xff] }
 0x111   : > { %v363_v63 = vmul.f32 %v3684_v28, %v2910_v21  ;;  %v697_v36 = vsel %vm695_vm4, %v3078_v29, %v692_v32  ;;  %v736_v38 = vsel %vm735_vm2, %v732_v24, %v3053_v52  ;;  %v737_v21 = vsel %vm735_vm2, %v3016_v20, %v732_v24  ;;  %v2135_v44 = vld [vmem:[%s3634_s2 + $0x8] sm:$0xff]  }
 0x112   : > { %v1265_v54 = vrot.slane %v686_v35, 4  ;;  %v765_v45 = vmul.f32 %v754_v1, %v737_v21  ;;  %v766_v22 = vmul.f32 %v758_v47, %v736_v38  ;;  %v1423_v3 = vpack.c.bf16 %v1319_v26, %v1315_v6  ;;  %v2134_v35 = vld [vmem:[%s3634_s2] sm:$0xff]  }
 0x113   : > { %v3686_v11 = vrot.slane %v3006_v14, %v2463_v5  ;;  %v3687_v29 = vrot.slane %v2678_v27, %v2463_v5  ;;  %v3688_v52 = vrot.slane %v2719_v61, %v2344_v15  ;;  %v1300_v20 = vsel %vm1298_vm3, %v324_v30, %v1215_v41 }
 0x114   : > { %v3689_v1 = vrot.slane %v3043_v53, %v2323_v9  ;;  %v726_v10 = vmul.f32 %v718_v49, %v696_v8  ;;  %v1276_v19 = vrot.slane %v765_v45, 4  ;;  %v1277_v14 = vrot.slane %v766_v22, 4  ;;  %1508 = vmatpush1.bf16.msra.mxu0 %v1423_v3 }
 0x115   : > { %v646_v18 = vmul.f32 %v3686_v11, %v3685_v58  ;;  %v366_v56 = vmul.f32 %v3687_v29, %v2905_v2  ;;  %v323_v7 = vmul.f32 %v3688_v52, %v2942_v13  ;;  %v1214_v46 = vrot.slane %v363_v63, 4 }
 0x116   : > { %v725_v47 = vmul.f32 %v3689_v1, %v697_v36  ;;  %v3690_v27 = vrot.slane %v2719_v61, %v2463_v5  ;;  %v3693_v15 = vpack.c.bf16 %v3691_v51, %v3692_v25  ;;  %v1322_v60 = vsel %vm1298_vm3, %v726_v10, %v1277_v14 }
 0x117   : > { %v1318_v13 = vsel %vm1298_vm3, %v646_v18, %v1265_v54  ;;  %v1317_v9 = vsel %vm1298_vm3, %v645_v37, %v1264_v50  ;;  %v1416_v39 = vpack.c.bf16 %v3694_v59, %v1300_v20  ;;  %v1299_v31 = vsel %vm1298_vm3, %v323_v7, %v1214_v46 }
 0x118   : > { %v326_v2 = vmul.f32 %v3690_v27, %v2951_v43  ;;  %1509 = vmatprep.subr.bf16.mxu0 %v3693_v15  ;;  %v1321_v53 = vsel %vm1298_vm3, %v725_v47, %v1276_v19  ;;  %v1426_v57 = vpack.c.bf16 %v1322_v60, %v1318_v13  ;;  %v1217_v5 = vrot.slane %v366_v56, 4 }
 0x119   : > { %v1425_v23 = vpack.c.bf16 %v1321_v53, %v1317_v9  ;;  %v3695_v61 = vpack.c.bf16 %v2631_v17, %v2833_v16  ;;  %v1415_v43 = vpack.c.bf16 %v2846_v48, %v1299_v31  ;;  %v3696_v4 = vpack.c.bf16 %v2637_v55, %v2836_v0  ;;  %v3697_v16 = vld [vmem:[#allocation6_spill] sm:$0xff]  ;;  %v3702_v55 = vld [vmem:[#allocation16_spill] sm:$0xff] }
 0x11a   : > { %1560 = vmatprep.subr.bf16.mxu1 %v1426_v57  ;;  %v1302_v40 = vsel %vm1298_vm3, %v326_v2, %v1217_v5  ;;  %v3699_v33 = vpack.c.bf16 %v3697_v16, %v3698_v12  ;;  %v3700_v48 = vmov 0   ;;  %v3703_v0 = vpack.c.bf16 %v3701_v34, %v3702_v55 }
 0x11b   : > { %1510 = vmatpush1.bf16.msra.mxu0 %v3695_v61  ;;  %1561 = vmatpush1.bf16.msra.mxu1 %v1425_v23  ;;  %v1418_v17 = vpack.c.bf16 %v2851_v62, %v1302_v40  ;;  %vm1650_vm3 = vcmask 7168  }
 0x11c   : > { %1511 = vmatprep.subr.bf16.mxu0 %v1416_v39  ;;  %1562 = vmatprep.subr.bf16.mxu1 %v3696_v4 }
 0x11d   : > { %v1450_v62 = vpop.permute.xlu0 %1449 }
 0x11f   : > { %1512 = vmatpush1.bf16.msra.mxu0 %v1415_v43  ;;  %1563 = vmatpush1.bf16.msra.mxu1 %v3699_v33 }
 0x120   : > { %1564 = vmatprep.subr.bf16.mxu1 %v1418_v17 }
 0x121   : > { %v1455_v30 = vpop.permute.xlu1 %1454  ;;  %v1465_v52 = vpop.permute.xlu0 %1464 }
 0x122   : > { %2088 = vmatmul.mubr.msk.bf16.vlgmr.msra.gmra.mxu0 %vm1477_vm5, %v2134_v35 }
 0x123   : > { %1539 = vmatprep.mubr.bf16.mxu0 %v3700_v48  ;;  %1565 = vmatpush1.bf16.msra.mxu1 %v3703_v0 }
 0x125   : > { %v1460_v36 = vpop.permute.xlu1 %1459 }
 0x126   : > { %2091 = vmatmul.mubr.msk.bf16.vlgmr.msra.gmra.mxu1 %vm1477_vm5, %v2134_v35 }
 0x127   : > { %1592 = vmatprep.mubr.bf16.mxu1 %v3700_v48 }
 0x12a   : > { %2089 = vmatmul.mubr.msk.bf16.gmra.mxu0 %vm1477_vm5, %v2135_v44 }
 0x12e   : > { %2092 = vmatmul.mubr.msk.bf16.gmra.mxu1 %vm1477_vm5, %v2135_v44 }
 0x1e2   : > { %v1531_v37 = vpop.f32.mrf.mxu0 }
 0x1e3   : > { %v1532_v41 = vadd.f32 %v1531_v37, %v1450_v62 }
 0x1e4   : > { %v1533_v42 = vpop.f32.mrf.mxu0 }
 0x1e5   : > { %v1534_v49 = vadd.f32 %v1533_v42, %v1450_v62  ;;  %1606 = vst [vmem:[%s3218_s11] sm:$0xff] %v1532_v41  ;;  %v1659_v63 = vmul.f32 %v1532_v41, %v1532_v41 }
 0x1e6   : > { %v1535_v32 = vpop.f32.mrf.mxu0  ;;  %v1584_v6 = vpop.f32.mrf.mxu1 }
 0x1e7   : > { %1607 = vst [vmem:[%s3218_s11 + $0x8] sm:$0xff] %v1534_v49  ;;  %v1536_v28 = vadd.f32 %v1535_v32, %v1455_v30  ;;  %v1660_v50 = vmul.f32 %v1534_v49, %v1534_v49  ;;  %v1585_v8 = vadd.f32 %v1584_v6, %v1450_v62  ;;  %v1626_v54 = vadd.f32 %v1534_v49, %v1532_v41 }
 0x1e8   : > { %v1537_v24 = vpop.f32.mrf.mxu0  ;;  %v1586_v21 = vpop.f32.mrf.mxu1 }
 0x1e9   : > { %1610 = vst [vmem:[%s3218_s11 + $0x20] sm:$0xff] %v1536_v28  ;;  %v1538_v26 = vadd.f32 %v1537_v24, %v1455_v30  ;;  %1608 = vst [vmem:[%s3218_s11 + $0x10] sm:$0xff] %v1585_v8  ;;  %v1661_v45 = vmul.f32 %v1585_v8, %v1585_v8  ;;  %v1587_v22 = vadd.f32 %v1586_v21, %v1450_v62 }
 0x1ea   : > { %v1541_v38 = vpop.f32.mrf.mxu0  ;;  %v1675_v3 = vadd.f32 %v1660_v50, %v1659_v63  ;;  %v1588_v29 = vpop.f32.mrf.mxu1  ;;  %v1627_v56 = vadd.f32 %v1626_v54, %v1585_v8  ;;  %v1663_v10 = vmul.f32 %v1536_v28, %v1536_v28  ;;  %v1655_v8 = vld [vmem:[#allocation3] sm:$0xff] }
 0x1eb   : > { %1611 = vst [vmem:[%s3218_s11 + $0x28] sm:$0xff] %v1538_v26  ;;  %v1664_v58 = vmul.f32 %v1538_v26, %v1538_v26  ;;  %v1542_v18 = vadd.f32 %v1541_v38, %v1460_v36  ;;  %1609 = vst [vmem:[%s3218_s11 + $0x18] sm:$0xff] %v1587_v22  ;;  %v1589_v20 = vadd.f32 %v1588_v29, %v1455_v30  ;;  %v1624_v29 = vld [vmem:[#allocation2 + $0x10] sm:$0xff] }
 0x1ec   : > { %v1543_v11 = vpop.f32.mrf.mxu0  ;;  %v1662_v1 = vmul.f32 %v1587_v22, %v1587_v22  ;;  %v1676_v47 = vadd.f32 %v1675_v3, %v1661_v45  ;;  %v1631_v19 = vadd.f32 %v1538_v26, %v1536_v28  ;;  %v1590_v46 = vpop.f32.mrf.mxu1  ;;  %v1628_v27 = vadd.f32 %v1627_v56, %v1587_v22  ;;  %v1622_v26 = vld [vmem:[#allocation2] sm:$0xff]  ;;  %v1623_v45 = vld [vmem:[#allocation2 + $0x8] sm:$0xff] }
 0x1ed   : > { %v1544_v7 = vadd.f32 %v1543_v11, %v1460_v36  ;;  %1614 = vst [vmem:[%s3218_s11 + $0x40] sm:$0xff] %v1542_v18  ;;  %1612 = vst [vmem:[%s3218_s11 + $0x30] sm:$0xff] %v1589_v20  ;;  %v1665_v2 = vmul.f32 %v1589_v20, %v1589_v20  ;;  %v1591_v25 = vadd.f32 %v1590_v46, %v1455_v30  ;;  %v1656_v22 = vld [vmem:[#allocation3 + $0x8] sm:$0xff] }
 0x1ee   : > { %v1545_v14 = vpop.f32.mrf.mxu0  ;;  %v1677_v15 = vadd.f32 %v1676_v47, %v1662_v1  ;;  %1629 = vadd.xlane.f32.xlu1 %v1628_v27  ;;  %v1594_v60 = vpop.f32.mrf.mxu1  ;;  %v1632_v9 = vadd.f32 %v1631_v19, %v1589_v20  ;;  %v1680_v53 = vadd.f32 %v1664_v58, %v1663_v10  ;;  %v1667_v59 = vmul.f32 %v1542_v18, %v1542_v18  ;;  %v1657_v1 = vld [vmem:[#allocation3 + $0x10] sm:$0xff]  ;;  %v1658_v19 = vld [vmem:[#allocation3 + $0x18] sm:$0xff] }
 0x1ef   : > { %1615 = vst [vmem:[%s3218_s11 + $0x48] sm:$0xff] %v1544_v7  ;;  %v1546_v51 = vadd.f32 %v1545_v14, %v1465_v52  ;;  %v1668_v39 = vmul.f32 %v1544_v7, %v1544_v7  ;;  %1613 = vst [vmem:[%s3218_s11 + $0x38] sm:$0xff] %v1591_v25  ;;  %v1595_v23 = vadd.f32 %v1594_v60, %v1460_v36 }
 0x1f0   : > { %v1547_v13 = vpop.f32.mrf.mxu0  ;;  %1678 = vadd.xlane.f32.xlu0 %v1677_v15  ;;  %v1666_v31 = vmul.f32 %v1591_v25, %v1591_v25  ;;  %v1596_v5 = vpop.f32.mrf.mxu1  ;;  %v1681_v61 = vadd.f32 %v1680_v53, %v1665_v2  ;;  %v1636_v43 = vadd.f32 %v1544_v7, %v1542_v18  ;;  %v1633_v17 = vadd.f32 %v1632_v9, %v1591_v25 }
 0x1f1   : > { %1618 = vst [vmem:[%s3218_s11 + $0x60] sm:$0xff] %v1546_v51  ;;  %v1548_v57 = vadd.f32 %v1547_v13, %v1465_v52  ;;  %1616 = vst [vmem:[%s3218_s11 + $0x50] sm:$0xff] %v1595_v23  ;;  %v1669_v4 = vmul.f32 %v1595_v23, %v1595_v23  ;;  %v1597_v35 = vadd.f32 %v1596_v5, %v1460_v36 }
 0x1f2   : > { %v1671_v16 = vmul.f32 %v1546_v51, %v1546_v51  ;;  %v1598_v12 = vpop.f32.mrf.mxu1  ;;  %v1682_v33 = vadd.f32 %v1681_v61, %v1666_v31  ;;  %v1637_v48 = vadd.f32 %v1636_v43, %v1595_v23  ;;  %v1685_v34 = vadd.f32 %v1668_v39, %v1667_v59 }
 0x1f3   : > { %1619 = vst [vmem:[%s3218_s11 + $0x68] sm:$0xff] %v1548_v57  ;;  %v1672_v40 = vmul.f32 %v1548_v57, %v1548_v57  ;;  %v1641_v55 = vadd.f32 %v1548_v57, %v1546_v51  ;;  %1617 = vst [vmem:[%s3218_s11 + $0x58] sm:$0xff] %v1597_v35  ;;  %v1599_v0 = vadd.f32 %v1598_v12, %v1465_v52 }
 0x1f4   : > { %1634 = vadd.xlane.f32.xlu0 %v1633_v17  ;;  %1683 = vadd.xlane.f32.xlu1 %v1682_v33  ;;  %v1600_v44 = vpop.f32.mrf.mxu1  ;;  %v1670_v62 = vmul.f32 %v1597_v35, %v1597_v35  ;;  %v1686_v37 = vadd.f32 %v1685_v34, %v1669_v4  ;;  %v1638_v49 = vadd.f32 %v1637_v48, %v1597_v35 }
 0x1f5   : > { %v1690_v41 = vadd.f32 %v1672_v40, %v1671_v16  ;;  %1620 = vst [vmem:[%s3218_s11 + $0x70] sm:$0xff] %v1599_v0  ;;  %v1673_v42 = vmul.f32 %v1599_v0, %v1599_v0  ;;  %v1601_v30 = vadd.f32 %v1600_v44, %v1465_v52  ;;  %v1642_v32 = vadd.f32 %v1641_v55, %v1599_v0  ;;  %v1625_v52 = vld [vmem:[#allocation2 + $0x18] sm:$0xff] }
 0x1f6   : > { %v1687_v24 = vadd.f32 %v1686_v37, %v1670_v62 }
 0x1f7   : > { %1621 = vst [vmem:[%s3218_s11 + $0x78] sm:$0xff] %v1601_v30  ;;  %v1643_v28 = vadd.f32 %v1642_v32, %v1601_v30  ;;  %v1674_v63 = vmul.f32 %v1601_v30, %v1601_v30  ;;  %v1691_v50 = vadd.f32 %v1690_v41, %v1673_v42 }
 0x1f8   : > { %1639 = vadd.xlane.f32.xlu0 %v1638_v49 }
 0x1f9   : > { %1644 = vadd.xlane.f32.xlu1 %v1643_v28  ;;  %v1692_v6 = vadd.f32 %v1691_v50, %v1674_v63 }
 0x1fc   : > { %1688 = vadd.xlane.f32.xlu0 %v1687_v24 }
 0x1fd   : > { %1693 = vadd.xlane.f32.xlu1 %v1692_v6 }
 0x277   : > { %v1630_v36 = vpop.xlane.xlu1 %1629 }
 0x278   : > { %v1646_v38 = vadd.f32 %v1630_v36, %v1622_v26 }
 0x279   : > { %v1679_v21 = vpop.xlane.xlu0 %1678 }
 0x27a   : > { %v1695_v54 = vadd.f32 %v1679_v21, %v1655_v8  ;;  %1651 = vst.msk [vmem:[#allocation2] sm:$0xff] %vm1650_vm3, %v1646_v38 }
 0x27c   : > { %1699 = vst.msk [vmem:[#allocation3] sm:$0xff] %vm1650_vm3, %v1695_v54 }
 0x27d   : > { %v1635_v3 = vpop.xlane.xlu0 %1634  ;;  %v1684_v58 = vpop.xlane.xlu1 %1683 }
 0x27e   : > { %v1647_v11 = vadd.f32 %v1635_v3, %v1623_v45  ;;  %v1696_v18 = vadd.f32 %v1684_v58, %v1656_v22 }
 0x280   : > { %1652 = vst.msk [vmem:[#allocation2 + $0x8] sm:$0xff] %vm1650_vm3, %v1647_v11  ;;  %1700 = vst.msk [vmem:[#allocation3 + $0x8] sm:$0xff] %vm1650_vm3, %v1696_v18 }
 0x281   : > { %v1640_v56 = vpop.xlane.xlu0 %1639 }
 0x282   : > { %v1648_v7 = vadd.f32 %v1640_v56, %v1624_v29  ;;  %v1645_v20 = vpop.xlane.xlu1 %1644 }
 0x283   : > { %v1649_v47 = vadd.f32 %v1645_v20, %v1625_v52 }
 0x284   : > { %1653 = vst.msk [vmem:[#allocation2 + $0x10] sm:$0xff] %vm1650_vm3, %v1648_v7 }
 0x285   : > { %v1689_v10 = vpop.xlane.xlu0 %1688  ;;  %1654 = vst.msk [vmem:[#allocation2 + $0x18] sm:$0xff] %vm1650_vm3, %v1649_v47  ;;  %1706 = sbr.rel (%p2095_p5) target bundleno = 839 (0x347), region = 56 }
 0x286   : > { %v1697_v14 = vadd.f32 %v1689_v10, %v1657_v1  ;;  %v1694_v46 = vpop.xlane.xlu1 %1693 }
 0x287   : > { %v1698_v27 = vadd.f32 %v1694_v46, %v1658_v19 }
 0x288   : > { %1701 = vst.msk [vmem:[#allocation3 + $0x10] sm:$0xff] %vm1650_vm3, %v1697_v14 }
 0x289   : > { %1702 = vst.msk [vmem:[#allocation3 + $0x18] sm:$0xff] %vm1650_vm3, %v1698_v27 }
 0x28a   : > { %v2174_v25 = vmov 0   ;;  %v1707_v60 = vld [vmem:[#allocation2] sm:$0xff]  ;;  %v1708_v61 = vld [vmem:[#allocation2 + $0x8] sm:$0xff]  ;;  %v1733_v37 = vld [vmem:[%s3636_s4 + $0x10] sm:$0xff] }
 0x28b   : > { %v1709_v2 = vld [vmem:[#allocation2 + $0x10] sm:$0xff]  ;;  %2138 = vset.pattern.permute.xlu1 %v2174_v25  ;;  %2137 = vset.pattern.permute.xlu0 %v2174_v25  ;;  %v1715_v9 = vld [vmem:[#allocation3] sm:$0xff]  ;;  %v1711_v53 = vmul.f32 0.0009765625, %v1707_v60  ;;  %v1716_v43 = vld [vmem:[#allocation3 + $0x8] sm:$0xff]  ;;  %v1712_v4 = vmul.f32 0.0009765625, %v1708_v61 }
 0x28c   : > { %v1713_v15 = vmul.f32 0.0009765625, %v1709_v2  ;;  %v1719_v59 = vmul.f32 0.0009765625, %v1715_v9  ;;  %v1710_v39 = vld [vmem:[#allocation2 + $0x18] sm:$0xff]  ;;  %v1720_v35 = vmul.f32 0.0009765625, %v1716_v43  ;;  %v1731_v41 = vld [vmem:[%s3636_s4] sm:$0xff]  ;;  %v1732_v28 = vld [vmem:[%s3636_s4 + $0x8] sm:$0xff] }
 0x28d   : > { %v1714_v31 = vmul.f32 0.0009765625, %v1710_v39  ;;  %v1723_v40 = vmul.f32 %v1711_v53, %v1711_v53  ;;  %v1724_v33 = vmul.f32 %v1712_v4, %v1712_v4  ;;  %v1734_v30 = vld [vmem:[%s3636_s4 + $0x18] sm:$0xff]  ;;  %v1748_v36 = vld [vmem:[%s3637_s5 + $0x8] sm:$0xff]  ;;  %v1747_v38 = vld [vmem:[%s3637_s5] sm:$0xff] }
 0x28e   : > { %v1725_v23 = vmul.f32 %v1713_v15, %v1713_v15  ;;  %v1750_v58 = vld [vmem:[%s3637_s5 + $0x18] sm:$0xff]  ;;  %v1749_v11 = vld [vmem:[%s3637_s5 + $0x10] sm:$0xff]  ;;  %v1759_v56 = vld [vmem:[%s3639_s7] sm:$0xff] }
 0x28f   : > { %v1717_v51 = vld [vmem:[#allocation3 + $0x10] sm:$0xff]  ;;  %v1726_v16 = vmul.f32 %v1714_v31, %v1714_v31  ;;  %v1727_v12 = vsub.f32 %v1719_v59, %v1723_v40  ;;  %v1728_v0 = vsub.f32 %v1720_v35, %v1724_v33  ;;  %v1760_v52 = vld [vmem:[%s3639_s7 + $0x8] sm:$0xff]  ;;  %v1762_v20 = vld [vmem:[%s3639_s7 + $0x18] sm:$0xff] }
 0x290   : > { %v1721_v13 = vmul.f32 0.0009765625, %v1717_v51  ;;  %v1718_v57 = vld [vmem:[#allocation3 + $0x18] sm:$0xff]  ;;  %v1761_v7 = vld [vmem:[%s3639_s7 + $0x10] sm:$0xff]  ;;  %v1767_v1 = vld [vmem:[%s3639_s7 + $0x40] sm:$0xff] }
 0x291   : > { %v1722_v5 = vmul.f32 0.0009765625, %v1718_v57  ;;  %v1735_v55 = vadd.f32 1e-05, %v1727_v12  ;;  %v1736_v62 = vadd.f32 1e-05, %v1728_v0  ;;  %v1768_v47 = vld [vmem:[%s3639_s7 + $0x48] sm:$0xff] }
 0x292   : > { %v1729_v17 = vsub.f32 %v1721_v13, %v1725_v23  ;;  %v1769_v10 = vld [vmem:[%s3639_s7 + $0x50] sm:$0xff]  ;;  %v1770_v19 = vld [vmem:[%s3639_s7 + $0x58] sm:$0xff]  ;;  %v1775_v14 = vld [vmem:[%s3639_s7 + $0x80] sm:$0xff] }
 0x293   : > { %v1730_v34 = vsub.f32 %v1722_v5, %v1726_v16  ;;  %v1776_v46 = vld [vmem:[%s3639_s7 + $0x88] sm:$0xff]  ;;  %v1777_v27 = vld [vmem:[%s3639_s7 + $0x90] sm:$0xff]  ;;  %v1778_v51 = vld [vmem:[%s3639_s7 + $0x98] sm:$0xff] }
 0x294   : > { %v1737_v48 = vadd.f32 1e-05, %v1729_v17  ;;  %v1771_v25 = vld [vmem:[%s3639_s7 + $0x60] sm:$0xff]  ;;  %v1764_v9 = vld [vmem:[%s3639_s7 + $0x28] sm:$0xff]  ;;  %v1785_v39 = vld [vmem:[%s3639_s7 + $0xd0] sm:$0xff] }
 0x295   : > { %v1738_v44 = vadd.f32 1e-05, %v1730_v34  ;;  %v1763_v60 = vld [vmem:[%s3639_s7 + $0x20] sm:$0xff]  ;;  %v1784_v59 = vld [vmem:[%s3639_s7 + $0xc8] sm:$0xff]  ;;  %v1786_v57 = vld [vmem:[%s3639_s7 + $0xd8] sm:$0xff] }
 0x296   : > { %2139 = vrsqrt.f32 %v1737_v48  ;;  %v1772_v17 = vld [vmem:[%s3639_s7 + $0x68] sm:$0xff]  ;;  %v1773_v16 = vld [vmem:[%s3639_s7 + $0x70] sm:$0xff]  ;;  %v1774_v12 = vld [vmem:[%s3639_s7 + $0x78] sm:$0xff] }
 0x297   : > { %2141 = vrsqrt.f32 %v1735_v55  ;;  %v1766_v0 = vld [vmem:[%s3639_s7 + $0x38] sm:$0xff] }
 0x298   : > { %2143 = vrsqrt.f32 %v1738_v44  ;;  %v1779_v44 = vld [vmem:[%s3639_s7 + $0xa0] sm:$0xff] }
 0x299   : > { %2145 = vrsqrt.f32 %v1736_v62  ;;  %v1780_v62 = vld [vmem:[%s3639_s7 + $0xa8] sm:$0xff] }
 0x2a3   : > { %v2140_v42 = vpop.eup %2139 }
 0x2a4   : > { %v2142_v49 = vpop.eup %2141  ;;  %v1745_v32 = vmul.f32 %v2140_v42, %v1733_v37  ;;  %v1782_v42 = vld [vmem:[%s3639_s7 + $0xb8] sm:$0xff] }
 0x2a5   : > { %v2144_v63 = vpop.eup %2143  ;;  %v1743_v50 = vmul.f32 %v2142_v49, %v1731_v41  ;;  %v1781_v41 = vld [vmem:[%s3639_s7 + $0xb0] sm:$0xff] }
 0x2a6   : > { %v2146_v24 = vpop.eup %2145  ;;  %1803 = vperm.xlu1 %2138, %v1745_v32   ;;  %v1746_v6 = vmul.f32 %v2144_v63, %v1734_v30  ;;  %v1753_v45 = vmul.f32 %v1745_v32, %v1713_v15  ;;  %v1783_v15 = vld [vmem:[%s3639_s7 + $0xc0] sm:$0xff] }
 0x2a7   : > { %1793 = vperm.xlu0 %2137, %v1743_v50   ;;  %v1751_v26 = vmul.f32 %v1743_v50, %v1711_v53  ;;  %v1744_v8 = vmul.f32 %v2146_v24, %v1732_v28  ;;  %v1765_v53 = vld [vmem:[%s3639_s7 + $0x30] sm:$0xff]  ;;  %v1787_v30 = vld [vmem:[%s3639_s7 + $0xe0] sm:$0xff]  ;;  %v1788_v24 = vld [vmem:[%s3639_s7 + $0xe8] sm:$0xff] }
 0x2a8   : > { %v1754_v54 = vmul.f32 %v1746_v6, %v1714_v31  ;;  %v1757_v29 = vsub.f32 %v1749_v11, %v1753_v45 }
 0x2a9   : > { %v1752_v21 = vmul.f32 %v1744_v8, %v1712_v4  ;;  %v1755_v3 = vsub.f32 %v1747_v38, %v1751_v26  ;;  %v1790_v26 = vld [vmem:[%s3639_s7 + $0xf8] sm:$0xff] }
 0x2aa   : > { %1808 = vperm.xlu1 %2138, %v1746_v6   ;;  %v1758_v18 = vsub.f32 %v1750_v58, %v1754_v54  ;;  %v1789_v6 = vld [vmem:[%s3639_s7 + $0xf0] sm:$0xff] }
 0x2ab   : > { %1798 = vperm.xlu0 %2137, %v1744_v8   ;;  %v1756_v22 = vsub.f32 %v1748_v36, %v1752_v21 }
 0x2ae   : > { %1850 = vperm.xlu1 %2138, %v1756_v22  }
 0x2af   : > { %1845 = vperm.xlu0 %2137, %v1755_v3  }
 0x2b2   : > { %1860 = vperm.xlu1 %2138, %v1758_v18  }
 0x2b3   : > { %1855 = vperm.xlu0 %2137, %v1757_v29  }
 0x321   : > { %v1804_v2 = vpop.permute.xlu1 %1803 }
 0x322   : > { %v1794_v13 = vpop.permute.xlu0 %1793  ;;  %v3329_v23 = vmul.f32 %v1804_v2, %v1767_v1  ;;  %v3331_v31 = vmul.f32 %v1804_v2, %v1768_v47  ;;  %v3333_v5 = vmul.f32 %v1804_v2, %v1769_v10  ;;  %v3335_v61 = vmul.f32 %v1804_v2, %v1770_v19  ;;  %v1931_v47 = vld [vmem:[%s3638_s6 + $0x20] sm:$0xff]  ;;  %v1932_v10 = vld [vmem:[%s3638_s6 + $0x28] sm:$0xff]  ;;  %v1933_v19 = vld [vmem:[%s3638_s6 + $0x30] sm:$0xff] }
 0x323   : > { %v3337_v43 = vmul.f32 %v1794_v13, %v1759_v56  ;;  %v3339_v40 = vmul.f32 %v1794_v13, %v1760_v52  ;;  %v3341_v4 = vmul.f32 %v1794_v13, %v1761_v7  ;;  %v3343_v35 = vmul.f32 %v1794_v13, %v1762_v20 }
 0x324   : > { %v3354_v33 = vmul.f32 %v1794_v13, %v1775_v14  ;;  %v3356_v48 = vmul.f32 %v1794_v13, %v1776_v46  ;;  %v3358_v34 = vmul.f32 %v1794_v13, %v1777_v27  ;;  %v3360_v55 = vmul.f32 %v1794_v13, %v1778_v51  ;;  %v1934_v51 = vld [vmem:[%s3638_s6 + $0x38] sm:$0xff] }
 0x325   : > { %v1809_v37 = vpop.permute.xlu1 %1808  ;;  %v3380_v49 = vmul.f32 %v1804_v2, %v1783_v15  ;;  %v3382_v32 = vmul.f32 %v1804_v2, %v1784_v59  ;;  %v3384_v28 = vmul.f32 %v1804_v2, %v1785_v39  ;;  %v3386_v63 = vmul.f32 %v1804_v2, %v1786_v57  ;;  %v1948_v15 = vld [vmem:[%s3638_s6 + $0xa8] sm:$0xff]  ;;  %v1949_v59 = vld [vmem:[%s3638_s6 + $0xb0] sm:$0xff]  ;;  %v1950_v39 = vld [vmem:[%s3638_s6 + $0xb8] sm:$0xff] }
 0x326   : > { %v1799_v50 = vpop.permute.xlu0 %1798  ;;  %v3397_v8 = vmul.f32 %v1809_v37, %v1771_v25  ;;  %v3399_v36 = vmul.f32 %v1809_v37, %v1772_v17  ;;  %v3401_v38 = vmul.f32 %v1809_v37, %v1773_v16  ;;  %v3403_v21 = vmul.f32 %v1809_v37, %v1774_v12  ;;  %v1947_v25 = vld [vmem:[%s3638_s6 + $0xa0] sm:$0xff] }
 0x327   : > { %v1815_v54 = vmul.f32 %v1799_v50, %v1763_v60  ;;  %v1816_v45 = vmul.f32 %v1799_v50, %v1764_v9  ;;  %v1817_v22 = vmul.f32 %v1799_v50, %v1765_v53  ;;  %v1818_v3 = vmul.f32 %v1799_v50, %v1766_v0 }
 0x328   : > { %v1831_v58 = vmul.f32 %v1799_v50, %v1779_v44  ;;  %v1832_v11 = vmul.f32 %v1799_v50, %v1780_v62  ;;  %v1833_v18 = vmul.f32 %v1799_v50, %v1781_v41  ;;  %v1834_v29 = vmul.f32 %v1799_v50, %v1782_v42 }
 0x329   : > { %v1851_v56 = vpop.permute.xlu1 %1850  ;;  %v3405_v52 = vmul.f32 %v1809_v37, %v1787_v30  ;;  %v3407_v7 = vmul.f32 %v1809_v37, %v1788_v24  ;;  %v3409_v20 = vmul.f32 %v1809_v37, %v1789_v6  ;;  %v3411_v1 = vmul.f32 %v1809_v37, %v1790_v26 }
 0x32a   : > { %v1867_v14 = vadd.f32 %v1851_v56, %v1815_v54  ;;  %v1868_v46 = vadd.f32 %v1851_v56, %v1816_v45  ;;  %v1869_v27 = vadd.f32 %v1851_v56, %v1817_v22  ;;  %v1870_v2 = vadd.f32 %v1851_v56, %v1818_v3  ;;  %v1846_v41 = vpop.permute.xlu0 %1845  ;;  %v1927_v22 = vld [vmem:[%s3638_s6] sm:$0xff]  ;;  %v1928_v3 = vld [vmem:[%s3638_s6 + $0x8] sm:$0xff] }
 0x32b   : > { %v1883_v13 = vadd.f32 %v1851_v56, %v1831_v58  ;;  %v1884_v60 = vadd.f32 %v1851_v56, %v1832_v11  ;;  %v1885_v9 = vadd.f32 %v1851_v56, %v1833_v18  ;;  %v1886_v53 = vadd.f32 %v1851_v56, %v1834_v29  ;;  %v1929_v58 = vld [vmem:[%s3638_s6 + $0x10] sm:$0xff] }
 0x32c   : > { %v1899_v57 = vmax.f32 %v1867_v14, 0.0  ;;  %v1900_v17 = vmax.f32 %v1868_v46, 0.0  ;;  %v1901_v16 = vmax.f32 %v1869_v27, 0.0  ;;  %v1902_v12 = vmax.f32 %v1870_v2, 0.0  ;;  %v1945_v14 = vld [vmem:[%s3638_s6 + $0x90] sm:$0xff]  ;;  %v1946_v46 = vld [vmem:[%s3638_s6 + $0x98] sm:$0xff] }
 0x32d   : > { %v1915_v0 = vmax.f32 %v1883_v13, 0.0  ;;  %v1916_v44 = vmax.f32 %v1884_v60, 0.0  ;;  %v1917_v62 = vmax.f32 %v1885_v9, 0.0  ;;  %v1918_v37 = vmax.f32 %v1886_v53, 0.0  ;;  %v1861_v60 = vpop.permute.xlu1 %1860 }
 0x32e   : > { %v1963_v42 = vadd.f32 %v1931_v47, %v1899_v57  ;;  %v1964_v30 = vadd.f32 %v1932_v10, %v1900_v17  ;;  %v1965_v50 = vadd.f32 %v1933_v19, %v1901_v16  ;;  %v1966_v24 = vadd.f32 %v1934_v51, %v1902_v12  ;;  %v1939_v16 = vld [vmem:[%s3638_s6 + $0x60] sm:$0xff]  ;;  %v1940_v12 = vld [vmem:[%s3638_s6 + $0x68] sm:$0xff] }
 0x32f   : > { %v1979_v6 = vadd.f32 %v1947_v25, %v1915_v0  ;;  %v1980_v26 = vadd.f32 %v1948_v15, %v1916_v44  ;;  %v1981_v54 = vadd.f32 %v1949_v59, %v1917_v62  ;;  %v1982_v45 = vadd.f32 %v1950_v39, %v1918_v37  ;;  %v1941_v0 = vld [vmem:[%s3638_s6 + $0x70] sm:$0xff] }
 0x330   : > { %1995 = vst [vmem:[%s3639_s7 + $0x20] sm:$0xff] %v1963_v42  ;;  %1996 = vst [vmem:[%s3639_s7 + $0x28] sm:$0xff] %v1964_v30  ;;  %v1863_v11 = vadd.f32 %v1846_v41, %v3337_v43  ;;  %v1864_v18 = vadd.f32 %v1846_v41, %v3339_v40  ;;  %v1865_v29 = vadd.f32 %v1846_v41, %v3341_v4  ;;  %v1930_v43 = vld [vmem:[%s3638_s6 + $0x18] sm:$0xff]  ;;  %v1943_v40 = vld [vmem:[%s3638_s6 + $0x80] sm:$0xff] }
 0x331   : > { %1997 = vst [vmem:[%s3639_s7 + $0x30] sm:$0xff] %v1965_v50  ;;  %1998 = vst [vmem:[%s3639_s7 + $0x38] sm:$0xff] %v1966_v24  ;;  %v1866_v56 = vadd.f32 %v1846_v41, %v3343_v35  ;;  %v1944_v4 = vld [vmem:[%s3638_s6 + $0x88] sm:$0xff]  ;;  %v1879_v35 = vadd.f32 %v1846_v41, %v3354_v33  ;;  %v1880_v47 = vadd.f32 %v1846_v41, %v3356_v48  ;;  %v1957_v24 = vld [vmem:[%s3638_s6 + $0xf0] sm:$0xff] }
 0x332   : > { %2011 = vst [vmem:[%s3639_s7 + $0xa0] sm:$0xff] %v1979_v6  ;;  %2012 = vst [vmem:[%s3639_s7 + $0xa8] sm:$0xff] %v1980_v26  ;;  %v1881_v10 = vadd.f32 %v1846_v41, %v3358_v34  ;;  %v1882_v19 = vadd.f32 %v1846_v41, %v3360_v55  ;;  %v1895_v27 = vmax.f32 %v1863_v11, 0.0  ;;  %v1896_v2 = vmax.f32 %v1864_v18, 0.0  ;;  %v1958_v6 = vld [vmem:[%s3638_s6 + $0xf8] sm:$0xff]  ;;  %v1856_v11 = vpop.permute.xlu0 %1855 }
 0x333   : > { %2013 = vst [vmem:[%s3639_s7 + $0xb0] sm:$0xff] %v1981_v54  ;;  %2014 = vst [vmem:[%s3639_s7 + $0xb8] sm:$0xff] %v1982_v45  ;;  %v1897_v51 = vmax.f32 %v1865_v29, 0.0  ;;  %v1898_v25 = vmax.f32 %v1866_v56, 0.0  ;;  %v1911_v15 = vmax.f32 %v1879_v35, 0.0  ;;  %v1912_v33 = vmax.f32 %v1880_v47, 0.0 }
 0x334   : > { %v1913_v13 = vmax.f32 %v1881_v10, 0.0  ;;  %v1914_v48 = vmax.f32 %v1882_v19, 0.0  ;;  %v1959_v34 = vadd.f32 %v1927_v22, %v1895_v27  ;;  %v1960_v9 = vadd.f32 %v1928_v3, %v1896_v2  ;;  %v1935_v35 = vld [vmem:[%s3638_s6 + $0x40] sm:$0xff]  ;;  %v1936_v47 = vld [vmem:[%s3638_s6 + $0x48] sm:$0xff]  ;;  %v1937_v10 = vld [vmem:[%s3638_s6 + $0x50] sm:$0xff] }
 0x335   : > { %v1961_v55 = vadd.f32 %v1929_v58, %v1897_v51  ;;  %v1962_v53 = vadd.f32 %v1930_v43, %v1898_v25  ;;  %v1975_v59 = vadd.f32 %v1943_v40, %v1911_v15  ;;  %v1976_v39 = vadd.f32 %v1944_v4, %v1912_v33  ;;  %v1953_v15 = vld [vmem:[%s3638_s6 + $0xd0] sm:$0xff]  ;;  %v1954_v33 = vld [vmem:[%s3638_s6 + $0xd8] sm:$0xff] }
 0x336   : > { %v1977_v57 = vadd.f32 %v1945_v14, %v1913_v13  ;;  %v1978_v17 = vadd.f32 %v1946_v46, %v1914_v48  ;;  %1991 = vst [vmem:[%s3639_s7] sm:$0xff] %v1959_v34  ;;  %1992 = vst [vmem:[%s3639_s7 + $0x8] sm:$0xff] %v1960_v9  ;;  %v1875_v44 = vadd.f32 %v1861_v60, %v3397_v8  ;;  %v1942_v8 = vld [vmem:[%s3638_s6 + $0x78] sm:$0xff] }
 0x337   : > { %1993 = vst [vmem:[%s3639_s7 + $0x10] sm:$0xff] %v1961_v55  ;;  %1994 = vst [vmem:[%s3639_s7 + $0x18] sm:$0xff] %v1962_v53  ;;  %v1876_v62 = vadd.f32 %v1861_v60, %v3399_v36  ;;  %v1877_v37 = vadd.f32 %v1861_v60, %v3401_v38  ;;  %v1878_v41 = vadd.f32 %v1861_v60, %v3403_v21  ;;  %v1955_v36 = vld [vmem:[%s3638_s6 + $0xe0] sm:$0xff]  ;;  %v1956_v38 = vld [vmem:[%s3638_s6 + $0xe8] sm:$0xff] }
 0x338   : > { %2007 = vst [vmem:[%s3639_s7 + $0x80] sm:$0xff] %v1975_v59  ;;  %2008 = vst [vmem:[%s3639_s7 + $0x88] sm:$0xff] %v1976_v39  ;;  %v1891_v21 = vadd.f32 %v1861_v60, %v3405_v52  ;;  %v1892_v42 = vadd.f32 %v1861_v60, %v3407_v7  ;;  %v1893_v30 = vadd.f32 %v1861_v60, %v3409_v20  ;;  %v1907_v26 = vmax.f32 %v1875_v44, 0.0 }
 0x339   : > { %2009 = vst [vmem:[%s3639_s7 + $0x90] sm:$0xff] %v1977_v57  ;;  %2010 = vst [vmem:[%s3639_s7 + $0x98] sm:$0xff] %v1978_v17  ;;  %v1894_v50 = vadd.f32 %v1861_v60, %v3411_v1  ;;  %v1908_v54 = vmax.f32 %v1876_v62, 0.0  ;;  %v1909_v45 = vmax.f32 %v1877_v37, 0.0  ;;  %v1910_v22 = vmax.f32 %v1878_v41, 0.0 }
 0x33a   : > { %v1923_v3 = vmax.f32 %v1891_v21, 0.0  ;;  %v1924_v52 = vmax.f32 %v1892_v42, 0.0  ;;  %v1925_v58 = vmax.f32 %v1893_v30, 0.0  ;;  %v1971_v20 = vadd.f32 %v1939_v16, %v1907_v26 }
 0x33b   : > { %v1926_v7 = vmax.f32 %v1894_v50, 0.0  ;;  %v1972_v18 = vadd.f32 %v1940_v12, %v1908_v54  ;;  %v1973_v1 = vadd.f32 %v1941_v0, %v1909_v45  ;;  %v1974_v29 = vadd.f32 %v1942_v8, %v1910_v22 }
 0x33c   : > { %v1987_v56 = vadd.f32 %v1955_v36, %v1923_v3  ;;  %v1988_v43 = vadd.f32 %v1956_v38, %v1924_v52  ;;  %v1989_v40 = vadd.f32 %v1957_v24, %v1925_v58  ;;  %2003 = vst [vmem:[%s3639_s7 + $0x60] sm:$0xff] %v1971_v20  ;;  %v1871_v19 = vadd.f32 %v1856_v11, %v3329_v23  ;;  %v1938_v23 = vld [vmem:[%s3638_s6 + $0x58] sm:$0xff] }
 0x33d   : > { %v1990_v4 = vadd.f32 %v1958_v6, %v1926_v7  ;;  %2004 = vst [vmem:[%s3639_s7 + $0x68] sm:$0xff] %v1972_v18  ;;  %2005 = vst [vmem:[%s3639_s7 + $0x70] sm:$0xff] %v1973_v1  ;;  %v1872_v14 = vadd.f32 %v1856_v11, %v3331_v31  ;;  %v1873_v46 = vadd.f32 %v1856_v11, %v3333_v5  ;;  %v1951_v31 = vld [vmem:[%s3638_s6 + $0xc0] sm:$0xff]  ;;  %v1952_v5 = vld [vmem:[%s3638_s6 + $0xc8] sm:$0xff] }
 0x33e   : > { %2006 = vst [vmem:[%s3639_s7 + $0x78] sm:$0xff] %v1974_v29  ;;  %v1874_v27 = vadd.f32 %v1856_v11, %v3335_v61  ;;  %2019 = vst [vmem:[%s3639_s7 + $0xe0] sm:$0xff] %v1987_v56  ;;  %v1887_v61 = vadd.f32 %v1856_v11, %v3380_v49  ;;  %v1888_v2 = vadd.f32 %v1856_v11, %v3382_v32  ;;  %v1903_v13 = vmax.f32 %v1871_v19, 0.0 }
 0x33f   : > { %2020 = vst [vmem:[%s3639_s7 + $0xe8] sm:$0xff] %v1988_v43  ;;  %2021 = vst [vmem:[%s3639_s7 + $0xf0] sm:$0xff] %v1989_v40  ;;  %v1889_v51 = vadd.f32 %v1856_v11, %v3384_v28  ;;  %v1890_v25 = vadd.f32 %v1856_v11, %v3386_v63  ;;  %v1904_v48 = vmax.f32 %v1872_v14, 0.0  ;;  %v1905_v60 = vmax.f32 %v1873_v46, 0.0 }
 0x340   : > { %2022 = vst [vmem:[%s3639_s7 + $0xf8] sm:$0xff] %v1990_v4  ;;  %v1906_v34 = vmax.f32 %v1874_v27, 0.0  ;;  %v1919_v9 = vmax.f32 %v1887_v61, 0.0  ;;  %v1920_v49 = vmax.f32 %v1888_v2, 0.0  ;;  %v1967_v53 = vadd.f32 %v1935_v35, %v1903_v13 }
 0x341   : > { %v1921_v55 = vmax.f32 %v1889_v51, 0.0  ;;  %v1922_v32 = vmax.f32 %v1890_v25, 0.0  ;;  %v1968_v28 = vadd.f32 %v1936_v47, %v1904_v48  ;;  %v1969_v59 = vadd.f32 %v1937_v10, %v1905_v60 }
 0x342   : > { %v1970_v63 = vadd.f32 %v1938_v23, %v1906_v34  ;;  %v1983_v39 = vadd.f32 %v1951_v31, %v1919_v9  ;;  %v1984_v57 = vadd.f32 %v1952_v5, %v1920_v49  ;;  %1999 = vst [vmem:[%s3639_s7 + $0x40] sm:$0xff] %v1967_v53 }
 0x343   : > { %v1985_v17 = vadd.f32 %v1953_v15, %v1921_v55  ;;  %v1986_v16 = vadd.f32 %v1954_v33, %v1922_v32  ;;  %2000 = vst [vmem:[%s3639_s7 + $0x48] sm:$0xff] %v1968_v28  ;;  %2001 = vst [vmem:[%s3639_s7 + $0x50] sm:$0xff] %v1969_v59 }
 0x344   : > { %2002 = vst [vmem:[%s3639_s7 + $0x58] sm:$0xff] %v1970_v63  ;;  %2015 = vst [vmem:[%s3639_s7 + $0xc0] sm:$0xff] %v1983_v39 }
 0x345   : > { %2016 = vst [vmem:[%s3639_s7 + $0xc8] sm:$0xff] %v1984_v57  ;;  %2017 = vst [vmem:[%s3639_s7 + $0xd0] sm:$0xff] %v1985_v17 }
 0x346   : > { %2018 = vst [vmem:[%s3639_s7 + $0xd8] sm:$0xff] %v1986_v16 }
 0x347 PF: > { %s17_s24 = sadd.s32 1, %s2153_s24  }
 0x348   : > { %p14_p6 = scmp.ge.s32.totalorder %s17_s24, 4  }
 0x34a   :  { %16 = sbr.rel (!%p14_p6) target bundleno = 1 (0x1), region = 108 }

// kernel: residual_block_forward.6
= control target key start
LH: loop header
LB: loop body
LE: loop exit
PB: predicated region body
PF: predicated region fallthrough
CT: control target
= control target key end

     0   :  { %s3596_s24 = smov 0   ;;  %s7717_s0 = inlined_call_operand.vmem [shape: f32[2,32,512], index: 0, kind: input, shape index: {}, may-alias: {0,6}]   ;;  %s7718_s1 = inlined_call_operand.vmem [shape: f32[27,512], index: 1, kind: input, shape index: {}]   ;;  %s7719_s2 = inlined_call_operand.vmem [shape: bf16[32,864], index: 2, kind: input, shape index: {}]   ;;  %s7720_s3 = inlined_call_operand.vmem [shape: f32[32,1], index: 3, kind: input, shape index: {}]   ;;  %s7721_s4 = inlined_call_operand.vmem [shape: f32[32,1], index: 4, kind: input, shape index: {}]   ;;  %s7722_s5 = inlined_call_operand.vmem [shape: f32[32,1], index: 5, kind: input, shape index: {}]   ;;  %s7723_s6 = inlined_call_operand.vmem [shape: f32[2,32,512], index: 6, kind: input, shape index: {}, may-alias: {0,6}]   ;;  %s7724_s7 = inlined_call_operand.vmem [shape: f32[2,32,512], index: 7, kind: output, shape index: {}]  }
   0x1 LB: > { %s3602_s25 = sadd.s32 4294967295, %s3534_s24   ;;  %p3352_p0 = scmp.ge.s32.totalorder %s3534_s24, 1  ;;  %s3534_s24 = sphi %s3596_s24, %s17_s24  }
   0x2   : > { %p232_p1 = scmp.lt.s32.totalorder %s3534_s24, 3 }
   0x4   : > { %p233_p2 = pnand %p3352_p0, %p232_p1 }
   0x6   : > { %236 = sbr.rel (%p233_p2) target bundleno = 1285 (0x505), region = 48 }
   0xb   : > { %p259_p3 = scmp.lt.s32.totalorder %s3602_s25, 1  ;;  %p3355_p4 = scmp.ne.s32.totalorder %s3602_s25, 0 }
   0xd   : > { %s260_s26 = scalar_select %p259_p3, %s3602_s25, 1 }
   0xe   : > { %268 = sbr.rel (%p3355_p4) target bundleno = 24 (0x18), region = 52 }
   0xf   : > { %s3404_s27 = sshll.u32 %s260_s26, 7 }
  0x10   : > { %s3611_s30 = scalar_lea.vmem %s7717_s0, %s3404_s27 }
  0x13   : > { %vm269_vm0 = vcmask 7168   ;;  %v3536_v0 = vmov 0.0  }
  0x14   : > { %270 = vst.msk [vmem:[#allocation2] sm:$0xff] %vm269_vm0, %v3536_v0  ;;  %271 = vst.msk [vmem:[#allocation2 + $0x8] sm:$0xff] %vm269_vm0, %v3536_v0 }
  0x15   : > { %272 = vst.msk [vmem:[#allocation2 + $0x10] sm:$0xff] %vm269_vm0, %v3536_v0  ;;  %273 = vst.msk [vmem:[#allocation2 + $0x18] sm:$0xff] %vm269_vm0, %v3536_v0 }
  0x16   : > { %274 = vst.msk [vmem:[#allocation3] sm:$0xff] %vm269_vm0, %v3536_v0  ;;  %275 = vst.msk [vmem:[#allocation3 + $0x8] sm:$0xff] %vm269_vm0, %v3536_v0 }
  0x17   : > { %276 = vst.msk [vmem:[#allocation3 + $0x10] sm:$0xff] %vm269_vm0, %v3536_v0  ;;  %277 = vst.msk [vmem:[#allocation3 + $0x18] sm:$0xff] %vm269_vm0, %v3536_v0 }
  0x18 PF: > { %v3615_v1 = vld [vmem:[%s3611_s30 + $0x40] sm:$0xff]  ;;  %s3537_s8 = smov 73   ;;  %v3635_v5 = vld [vmem:[%s3611_s30 + $0x28] sm:$0xff]  ;;  %v3655_v9 = vld [vmem:[%s3611_s30 + $0x30] sm:$0xff]  ;;  %s3538_s9 = smov 7   ;;  %v326_v17 = vlaneseq }
  0x19   : > { %v3618_v2 = vld [vmem:[%s3611_s30] sm:$0xff]  ;;  %298 = vrot.lane.b32.xlu1 %v3615_v1, %s3537_s8  ;;  %v3638_v6 = vld [vmem:[%s3611_s30 + $0x8] sm:$0xff]  ;;  %v3658_v10 = vld [vmem:[%s3611_s30 + $0x10] sm:$0xff]  ;;  %s3539_s10 = smov 65   ;;  %s3540_s11 = smov 8  }
  0x1a   : > { %294 = vrot.lane.b32.xlu0 %v3618_v2, %s3537_s8  ;;  %v3625_v3 = vld [vmem:[%s3611_s30 + $0x60] sm:$0xff]  ;;  %v3641_v7 = vld [vmem:[%s3611_s30 + $0x68] sm:$0xff]  ;;  %v3665_v11 = vld [vmem:[%s3611_s30 + $0x70] sm:$0xff]  ;;  %s3541_s12 = smov 71   ;;  %v3778_v18 = vshrl.u32 %v326_v17, 7  ;;  %v3788_v21 = vand.u32 127, %v326_v17 }
  0x1b   : > { %v3628_v4 = vld [vmem:[%s3611_s30 + $0x20] sm:$0xff]  ;;  %v3644_v8 = vld [vmem:[%s3611_s30 + $0x48] sm:$0xff]  ;;  %v3668_v12 = vld [vmem:[%s3611_s30 + $0x50] sm:$0xff]  ;;  %s3542_s15 = smov 9   ;;  %s3543_s18 = smov 72  }
  0x1c   : > { %v3683_v13 = vld [vmem:[%s3611_s30 + $0x78] sm:$0xff]  ;;  %v3791_v22 = vsub.s32 0, %v3778_v18  ;;  %vm328_vm1 = vcmp.lt.s32.totalorder %v3788_v21, 73  ;;  %v3828_v33 = vsub.s32 2, %v3778_v18  ;;  %v3917_v58 = vsub.s32 1, %v3778_v18  ;;  %s3544_s27 = smov 55  }
  0x1d   : > { %300 = vrot.lane.b32.xlu1 %v3625_v3, %s3537_s8  ;;  %v3686_v14 = vld [vmem:[%s3611_s30 + $0x58] sm:$0xff]  ;;  %vm1295_vm2 = vcmp.lt.s32.totalorder %v3788_v21, 7  ;;  %vm591_vm3 = vcmp.lt.s32.totalorder %v3788_v21, 65  ;;  %vm1207_vm4 = vcmp.lt.s32.totalorder %v3788_v21, 8  ;;  %s3545_s19 = smov 121   ;;  %vm503_vm5 = vcmp.lt.s32.totalorder %v3788_v21, 71 }
  0x1e   : > { %296 = vrot.lane.b32.xlu0 %v3628_v4, %s3537_s8  ;;  %v3713_v15 = vld [vmem:[%s3611_s30 + $0x38] sm:$0xff]  ;;  %7986 = vst [vmem:[#allocation16_spill] sm:$0xff] %v3917_v58  ;;  %vm1119_vm6 = vcmp.lt.s32.totalorder %v3788_v21, 9  ;;  %s3547_s29 = smov 127   ;;  %vm415_vm7 = vcmp.lt.s32.totalorder %v3788_v21, 72  ;;  %s3548_s13 = smov 57  }
  0x1f   : > { %v3716_v16 = vld [vmem:[%s3611_s30 + $0x18] sm:$0xff]  ;;  %vm1031_vm8 = vcmp.lt.s32.totalorder %v3788_v21, 55  ;;  %s3549_s21 = smov 63   ;;  %vm1559_vm9 = vcmp.lt.s32.totalorder %v3788_v21, 121  ;;  %s3550_s26 = smov 1   ;;  %vm943_vm10 = vcmp.lt.s32.totalorder %v3788_v21, 56 }
  0x20   : > { %v3796_v23 = vld [vmem:[%s7718_s1 + $0x42] ss:$8 sm:$0xf]  ;;  %v3837_v37 = vld [vmem:[%s7718_s1] ss:$8 sm:$0xf] }
  0x21   : > { %304 = vrot.lane.b32.xlu1 %v3635_v5, %s3537_s8  ;;  %v1797_v26 = vrot.slane %v3796_v23, %v3791_v22  ;;  %v358_v42 = vrot.slane %v3837_v37, %v3828_v33  ;;  %v3366_v57 = vld [vmem:[%s7718_s1 + $0x23] ss:$8 sm:$0xf]  ;;  %s3551_s20 = smov 64   ;;  %vm1471_vm11 = vcmp.lt.s32.totalorder %v3788_v21, 127  ;;  %vm855_vm12 = vcmp.lt.s32.totalorder %v3788_v21, 57 }
  0x22   : > { %302 = vrot.lane.b32.xlu0 %v3638_v6, %s3537_s8  ;;  %v3925_v62 = vrot.slane %v3366_v57, %v3917_v58  ;;  %vm767_vm13 = vcmp.lt.s32.totalorder %v3788_v21, 63  ;;  %vm1383_vm14 = vcmp.lt.s32.totalorder %v3788_v21, 1  ;;  %vm679_vm15 = vcmp.lt.s32.totalorder %v3788_v21, 64  ;;  %s3405_s23 = sshll.u32 %s3602_s25, 7  ;;  %p3401_p5 = scmp.ne.s32.totalorder %s3602_s25, 1 }
  0x23   : > { %vm1735_vm0 = vcmp.lt.s32.totalorder %v3788_v21, 119 }
  0x25   : > { %308 = vrot.lane.b32.xlu1 %v3641_v7, %s3537_s8 }
  0x26   : > { %306 = vrot.lane.b32.xlu0 %v3644_v8, %s3537_s8 }
  0x29   : > { %312 = vrot.lane.b32.xlu1 %v3655_v9, %s3537_s8 }
  0x2a   : > { %310 = vrot.lane.b32.xlu0 %v3658_v10, %s3537_s8 }
  0x2d   : > { %316 = vrot.lane.b32.xlu1 %v3665_v11, %s3537_s8 }
  0x2e   : > { %314 = vrot.lane.b32.xlu0 %v3668_v12, %s3537_s8 }
  0x31   : > { %1269 = vrot.lane.b32.xlu1 %v3625_v3, %s3538_s9 }
  0x32   : > { %1267 = vrot.lane.b32.xlu0 %v3615_v1, %s3538_s9 }
  0x35   : > { %1277 = vrot.lane.b32.xlu1 %v3641_v7, %s3538_s9 }
  0x36   : > { %1275 = vrot.lane.b32.xlu0 %v3644_v8, %s3538_s9 }
  0x39   : > { %1293 = vrot.lane.b32.xlu1 %v3683_v13, %s3538_s9 }
  0x3a   : > { %1291 = vrot.lane.b32.xlu0 %v3686_v14, %s3538_s9 }
  0x3d   : > { %565 = vrot.lane.b32.xlu1 %v3625_v3, %s3539_s10 }
  0x3e   : > { %563 = vrot.lane.b32.xlu0 %v3615_v1, %s3539_s10 }
  0x41   : > { %573 = vrot.lane.b32.xlu1 %v3641_v7, %s3539_s10 }
  0x42   : > { %571 = vrot.lane.b32.xlu0 %v3644_v8, %s3539_s10 }
  0x45   : > { %589 = vrot.lane.b32.xlu1 %v3683_v13, %s3539_s10 }
  0x46   : > { %587 = vrot.lane.b32.xlu0 %v3686_v14, %s3539_s10 }
  0x49   : > { %1265 = vrot.lane.b32.xlu1 %v3628_v4, %s3538_s9 }
  0x4a   : > { %1263 = vrot.lane.b32.xlu0 %v3618_v2, %s3538_s9 }
  0x4d   : > { %1273 = vrot.lane.b32.xlu1 %v3635_v5, %s3538_s9 }
  0x4e   : > { %1271 = vrot.lane.b32.xlu0 %v3638_v6, %s3538_s9 }
  0x51   : > { %1289 = vrot.lane.b32.xlu1 %v3713_v15, %s3538_s9 }
  0x52   : > { %1287 = vrot.lane.b32.xlu0 %v3716_v16, %s3538_s9 }
  0x55   : > { %561 = vrot.lane.b32.xlu1 %v3628_v4, %s3539_s10 }
  0x56   : > { %559 = vrot.lane.b32.xlu0 %v3618_v2, %s3539_s10 }
  0x59   : > { %569 = vrot.lane.b32.xlu1 %v3635_v5, %s3539_s10 }
  0x5a   : > { %567 = vrot.lane.b32.xlu0 %v3638_v6, %s3539_s10 }
  0x5d   : > { %585 = vrot.lane.b32.xlu1 %v3713_v15, %s3539_s10 }
  0x5e   : > { %583 = vrot.lane.b32.xlu0 %v3716_v16, %s3539_s10 }
  0x61   : > { %1181 = vrot.lane.b32.xlu1 %v3625_v3, %s3540_s11 }
  0x62   : > { %1179 = vrot.lane.b32.xlu0 %v3615_v1, %s3540_s11 }
  0x65   : > { %1189 = vrot.lane.b32.xlu1 %v3641_v7, %s3540_s11 }
  0x66   : > { %1187 = vrot.lane.b32.xlu0 %v3644_v8, %s3540_s11 }
  0x69   : > { %1205 = vrot.lane.b32.xlu1 %v3683_v13, %s3540_s11 }
  0x6a   : > { %1203 = vrot.lane.b32.xlu0 %v3686_v14, %s3540_s11 }
  0x6d   : > { %477 = vrot.lane.b32.xlu1 %v3625_v3, %s3541_s12 }
  0x6e   : > { %475 = vrot.lane.b32.xlu0 %v3615_v1, %s3541_s12 }
  0x71   : > { %485 = vrot.lane.b32.xlu1 %v3641_v7, %s3541_s12 }
  0x72   : > { %483 = vrot.lane.b32.xlu0 %v3644_v8, %s3541_s12 }
  0x75   : > { %501 = vrot.lane.b32.xlu1 %v3683_v13, %s3541_s12 }
  0x76   : > { %499 = vrot.lane.b32.xlu0 %v3686_v14, %s3541_s12 }
  0x79   : > { %1177 = vrot.lane.b32.xlu1 %v3628_v4, %s3540_s11 }
  0x7a   : > { %1175 = vrot.lane.b32.xlu0 %v3618_v2, %s3540_s11 }
  0x7d   : > { %1185 = vrot.lane.b32.xlu1 %v3635_v5, %s3540_s11 }
  0x7e   : > { %1183 = vrot.lane.b32.xlu0 %v3638_v6, %s3540_s11 }
  0x81   : > { %1201 = vrot.lane.b32.xlu1 %v3713_v15, %s3540_s11 }
  0x82   : > { %1199 = vrot.lane.b32.xlu0 %v3716_v16, %s3540_s11 }
  0x85   : > { %473 = vrot.lane.b32.xlu1 %v3628_v4, %s3541_s12 }
  0x86   : > { %471 = vrot.lane.b32.xlu0 %v3618_v2, %s3541_s12 }
  0x89   : > { %481 = vrot.lane.b32.xlu1 %v3635_v5, %s3541_s12 }
  0x8a   : > { %479 = vrot.lane.b32.xlu0 %v3638_v6, %s3541_s12 }
  0x8b   : > { %v3780_v19 = vpop.permute.xlu1 %298 }
  0x8c   : > { %v3782_v20 = vpop.permute.xlu0 %294 }
  0x8d   : > { %497 = vrot.lane.b32.xlu1 %v3713_v15, %s3541_s12 }
  0x8e   : > { %495 = vrot.lane.b32.xlu0 %v3716_v16, %s3541_s12 }
  0x8f   : > { %v3798_v24 = vpop.permute.xlu1 %300 }
  0x90   : > { %v3800_v25 = vpop.permute.xlu0 %296 }
  0x91   : > { %1093 = vrot.lane.b32.xlu1 %v3625_v3, %s3542_s15 }
  0x92   : > { %1091 = vrot.lane.b32.xlu0 %v3615_v1, %s3542_s15 }
  0x93   : > { %v305_v27 = vpop.permute.xlu1 %304 }
  0x94   : > { %v303_v28 = vpop.permute.xlu0 %302  ;;  %v3812_v29 = vsel %vm328_vm1, %v3800_v25, %v305_v27 }
  0x95   : > { %v3817_v30 = vsel %vm328_vm1, %v3782_v20, %v303_v28  ;;  %v3820_v31 = vmul.f32 %v1797_v26, %v3812_v29  ;;  %1101 = vrot.lane.b32.xlu1 %v3641_v7, %s3542_s15 }
  0x96   : > { %v3823_v32 = vmul.f32 %v1797_v26, %v3817_v30  ;;  %1099 = vrot.lane.b32.xlu0 %v3644_v8, %s3542_s15 }
  0x97   : > { %7974 = vst [vmem:[#allocation4_spill] sm:$0xff] %v3820_v31  ;;  %v309_v35 = vpop.permute.xlu1 %308 }
  0x98   : > { %7975 = vst [vmem:[#allocation5_spill] sm:$0xff] %v3823_v32  ;;  %v307_v36 = vpop.permute.xlu0 %306  ;;  %v3842_v38 = vsel %vm328_vm1, %v3798_v24, %v309_v35 }
  0x99   : > { %v3847_v39 = vsel %vm328_vm1, %v3780_v19, %v307_v36  ;;  %v3850_v40 = vmul.f32 %v1797_v26, %v3842_v38  ;;  %1117 = vrot.lane.b32.xlu1 %v3683_v13, %s3542_s15 }
  0x9a   : > { %v3853_v41 = vmul.f32 %v1797_v26, %v3847_v39  ;;  %1115 = vrot.lane.b32.xlu0 %v3686_v14, %s3542_s15 }
  0x9b   : > { %7976 = vst [vmem:[#allocation6_spill] sm:$0xff] %v3850_v40  ;;  %v3863_v44 = vpop.permute.xlu1 %312 }
  0x9c   : > { %7977 = vst [vmem:[#allocation7_spill] sm:$0xff] %v3853_v41  ;;  %7978 = vst [vmem:[#allocation8_spill] sm:$0xff] %v3863_v44  ;;  %v3865_v45 = vpop.permute.xlu0 %310  ;;  %v3870_v46 = vsel %vm328_vm1, %v305_v27, %v3863_v44 }
  0x9d   : > { %7979 = vst [vmem:[#allocation9_spill] sm:$0xff] %v3865_v45  ;;  %v3875_v47 = vsel %vm328_vm1, %v303_v28, %v3865_v45  ;;  %v3878_v48 = vmul.f32 %v358_v42, %v3870_v46  ;;  %389 = vrot.lane.b32.xlu1 %v3625_v3, %s3543_s18 }
  0x9e   : > { %v3881_v49 = vmul.f32 %v358_v42, %v3875_v47  ;;  %387 = vrot.lane.b32.xlu0 %v3615_v1, %s3543_s18 }
  0x9f   : > { %7980 = vst [vmem:[#allocation10_spill] sm:$0xff] %v3878_v48  ;;  %v3889_v51 = vpop.permute.xlu1 %316 }
  0xa0   : > { %7981 = vst [vmem:[#allocation11_spill] sm:$0xff] %v3881_v49  ;;  %7982 = vst [vmem:[#allocation12_spill] sm:$0xff] %v3889_v51  ;;  %v3891_v52 = vpop.permute.xlu0 %314  ;;  %v3896_v53 = vsel %vm328_vm1, %v309_v35, %v3889_v51  ;;  %v3944_v35 = vrot.slane %v3366_v57, %v3791_v22 }
  0xa1   : > { %7983 = vst [vmem:[#allocation13_spill] sm:$0xff] %v3891_v52  ;;  %v3901_v54 = vsel %vm328_vm1, %v307_v36, %v3891_v52  ;;  %v3904_v55 = vmul.f32 %v358_v42, %v3896_v53  ;;  %397 = vrot.lane.b32.xlu1 %v3641_v7, %s3543_s18 }
  0xa2   : > { %v3907_v56 = vmul.f32 %v358_v42, %v3901_v54  ;;  %395 = vrot.lane.b32.xlu0 %v3644_v8, %s3543_s18 }
  0xa3   : > { %7984 = vst [vmem:[#allocation14_spill] sm:$0xff] %v3904_v55  ;;  %v1270_v60 = vpop.permute.xlu1 %1269 }
  0xa4   : > { %7985 = vst [vmem:[#allocation15_spill] sm:$0xff] %v3907_v56  ;;  %v1268_v61 = vpop.permute.xlu0 %1267 }
  0xa5   : > { %413 = vrot.lane.b32.xlu1 %v3683_v13, %s3543_s18 }
  0xa6   : > { %411 = vrot.lane.b32.xlu0 %v3686_v14, %s3543_s18 }
  0xa7   : > { %v3929_v63 = vpop.permute.xlu1 %1277 }
  0xa8   : > { %7987 = vst [vmem:[#allocation17_spill] sm:$0xff] %v3929_v63  ;;  %v3931_v0 = vpop.permute.xlu0 %1275  ;;  %v1307_v26 = vsel %vm1295_vm2, %v1270_v60, %v3929_v63 }
  0xa9   : > { %7988 = vst [vmem:[#allocation18_spill] sm:$0xff] %v3931_v0  ;;  %v1306_v17 = vsel %vm1295_vm2, %v1268_v61, %v3931_v0  ;;  %1089 = vrot.lane.b32.xlu1 %v3628_v4, %s3542_s15  ;;  %v1348_v28 = vmul.f32 %v3925_v62, %v1307_v26 }
  0xaa   : > { %v1344_v27 = vmul.f32 %v3925_v62, %v1306_v17  ;;  %1087 = vrot.lane.b32.xlu0 %v3618_v2, %s3542_s15 }
  0xab   : > { %v3948_v36 = vpop.permute.xlu1 %1293 }
  0xac   : > { %7989 = vst [vmem:[#allocation19_spill] sm:$0xff] %v3948_v36  ;;  %v3950_v42 = vpop.permute.xlu0 %1291  ;;  %v2251_v50 = vpack.c.bf16 %v1348_v28, %v1344_v27  ;;  %v1311_v59 = vsel %vm1295_vm2, %v3948_v36, %v1270_v60  ;;  %v3375_v27 = vld [vmem:[%s7718_s1 + $0x45] ss:$8 sm:$0xf] }
  0xad   : > { %7990 = vst [vmem:[#allocation20_spill] sm:$0xff] %v3950_v42  ;;  %v1310_v17 = vsel %vm1295_vm2, %v3950_v42, %v1268_v61  ;;  %1097 = vrot.lane.b32.xlu1 %v3635_v5, %s3542_s15  ;;  %v1347_v26 = vmul.f32 %v3944_v35, %v1311_v59  ;;  %v3358_v60 = vld [vmem:[%s7718_s1 + $0x3] ss:$8 sm:$0xf] }
  0xae   : > { %2528 = vmatprep.subr.bf16.mxu1 %v2251_v50  ;;  %v1343_v57 = vmul.f32 %v3944_v35, %v1310_v17  ;;  %1095 = vrot.lane.b32.xlu0 %v3638_v6, %s3542_s15  ;;  %v3971_v50 = vsub.s32 3, %v3778_v18  ;;  %v3977_v59 = vrot.slane %v3358_v60, %v3917_v58  ;;  %v3980_v17 = vrot.slane %v3375_v27, %v3791_v22 }
  0xaf   : > { %v566_v61 = vpop.permute.xlu1 %565  ;;  %v3998_v0 = vrot.slane %v3358_v60, %v3791_v22 }
  0xb0   : > { %v564_v28 = vpop.permute.xlu0 %563  ;;  %v2250_v34 = vpack.c.bf16 %v1347_v26, %v1343_v57  ;;  %v3989_v18 = vrot.slane %v3375_v27, %v3971_v50 }
  0xb1   : > { %1113 = vrot.lane.b32.xlu1 %v3713_v15, %s3542_s15 }
  0xb2   : > { %2529 = vmatpush1.bf16.msra.mxu1 %v2250_v34  ;;  %1111 = vrot.lane.b32.xlu0 %v3716_v16, %s3542_s15 }
  0xb3   : > { %v3984_v43 = vpop.permute.xlu1 %573 }
  0xb4   : > { %7991 = vst [vmem:[#allocation21_spill] sm:$0xff] %v3984_v43  ;;  %v3986_v57 = vpop.permute.xlu0 %571  ;;  %v603_v26 = vsel %vm591_vm3, %v566_v61, %v3984_v43 }
  0xb5   : > { %7992 = vst [vmem:[#allocation22_spill] sm:$0xff] %v3986_v57  ;;  %v602_v34 = vsel %vm591_vm3, %v564_v28, %v3986_v57  ;;  %385 = vrot.lane.b32.xlu1 %v3628_v4, %s3543_s18  ;;  %v644_v42 = vmul.f32 %v3977_v59, %v603_v26  ;;  %v4008_v36 = vmul.f32 %v3980_v17, %v603_v26 }
  0xb6   : > { %v640_v63 = vmul.f32 %v3977_v59, %v602_v34  ;;  %v4005_v27 = vmul.f32 %v3980_v17, %v602_v34  ;;  %383 = vrot.lane.b32.xlu0 %v3618_v2, %s3543_s18 }
  0xb7   : > { %7994 = vst [vmem:[#allocation24_spill] sm:$0xff] %v4008_v36  ;;  %v4012_v49 = vpop.permute.xlu1 %589 }
  0xb8   : > { %7993 = vst [vmem:[#allocation23_spill] sm:$0xff] %v4005_v27  ;;  %7995 = vst [vmem:[#allocation25_spill] sm:$0xff] %v4012_v49  ;;  %v4014_v60 = vpop.permute.xlu0 %587  ;;  %v2187_v48 = vpack.c.bf16 %v644_v42, %v640_v63  ;;  %v607_v55 = vsel %vm591_vm3, %v4012_v49, %v566_v61 }
  0xb9   : > { %7996 = vst [vmem:[#allocation26_spill] sm:$0xff] %v4014_v60  ;;  %v606_v34 = vsel %vm591_vm3, %v4014_v60, %v564_v28  ;;  %v4025_v26 = vmul.f32 %v3989_v18, %v607_v55  ;;  %393 = vrot.lane.b32.xlu1 %v3635_v5, %s3543_s18  ;;  %v643_v42 = vmul.f32 %v3998_v0, %v607_v55 }
  0xba   : > { %v4028_v45 = vmul.f32 %v3989_v18, %v606_v34  ;;  %2475 = vmatprep.subr.bf16.mxu0 %v2187_v48  ;;  %v639_v63 = vmul.f32 %v3998_v0, %v606_v34  ;;  %391 = vrot.lane.b32.xlu0 %v3638_v6, %s3543_s18 }
  0xbb   : > { %7997 = vst [vmem:[#allocation27_spill] sm:$0xff] %v4025_v26  ;;  %v1266_v61 = vpop.permute.xlu1 %1265 }
  0xbc   : > { %7998 = vst [vmem:[#allocation28_spill] sm:$0xff] %v4028_v45  ;;  %v1264_v56 = vpop.permute.xlu0 %1263  ;;  %v2186_v27 = vpack.c.bf16 %v643_v42, %v639_v63 }
  0xbd   : > { %409 = vrot.lane.b32.xlu1 %v3713_v15, %s3543_s18 }
  0xbe   : > { %407 = vrot.lane.b32.xlu0 %v3716_v16, %s3543_s18  ;;  %2476 = vmatpush1.bf16.msra.mxu0 %v2186_v27 }
  0xbf   : > { %v4042_v48 = vpop.permute.xlu1 %1273 }
  0xc0   : > { %7999 = vst [vmem:[#allocation29_spill] sm:$0xff] %v4042_v48  ;;  %v4044_v34 = vpop.permute.xlu0 %1271  ;;  %v1305_v55 = vsel %vm1295_vm2, %v1266_v61, %v4042_v48 }
  0xc1   : > { %8000 = vst [vmem:[#allocation30_spill] sm:$0xff] %v4044_v34  ;;  %v1304_v28 = vsel %vm1295_vm2, %v1264_v56, %v4044_v34  ;;  %v1340_v63 = vmul.f32 %v3925_v62, %v1305_v55  ;;  %1005 = vrot.lane.b32.xlu1 %v3625_v3, %s3544_s27 }
  0xc2   : > { %v1336_v42 = vmul.f32 %v3925_v62, %v1304_v28  ;;  %1003 = vrot.lane.b32.xlu0 %v3615_v1, %s3544_s27 }
  0xc3   : > { %v4058_v27 = vpop.permute.xlu1 %1289 }
  0xc4   : > { %8001 = vst [vmem:[#allocation31_spill] sm:$0xff] %v4058_v27  ;;  %v4060_v45 = vpop.permute.xlu0 %1287  ;;  %v2247_v26 = vpack.c.bf16 %v1340_v63, %v1336_v42  ;;  %v1309_v34 = vsel %vm1295_vm2, %v4058_v27, %v1266_v61 }
  0xc5   : > { %8002 = vst [vmem:[#allocation32_spill] sm:$0xff] %v4060_v45  ;;  %v1308_v62 = vsel %vm1295_vm2, %v4060_v45, %v1264_v56  ;;  %v1339_v28 = vmul.f32 %v3944_v35, %v1309_v34  ;;  %1013 = vrot.lane.b32.xlu1 %v3641_v7, %s3544_s27 }
  0xc6   : > { %v1335_v55 = vmul.f32 %v3944_v35, %v1308_v62  ;;  %2530 = vmatprep.subr.bf16.mxu1 %v2247_v26  ;;  %1011 = vrot.lane.b32.xlu0 %v3644_v8, %s3544_s27 }
  0xc7   : > { %v562_v63 = vpop.permute.xlu1 %561 }
  0xc8   : > { %v560_v42 = vpop.permute.xlu0 %559  ;;  %v2246_v48 = vpack.c.bf16 %v1339_v28, %v1335_v55 }
  0xc9   : > { %1029 = vrot.lane.b32.xlu1 %v3683_v13, %s3544_s27 }
  0xca   : > { %2531 = vmatpush1.bf16.msra.mxu1 %v2246_v48  ;;  %1027 = vrot.lane.b32.xlu0 %v3686_v14, %s3544_s27 }
  0xcb   : > { %v4078_v56 = vpop.permute.xlu1 %569 }
  0xcc   : > { %8003 = vst [vmem:[#allocation33_spill] sm:$0xff] %v4078_v56  ;;  %v4080_v35 = vpop.permute.xlu0 %567  ;;  %v601_v26 = vsel %vm591_vm3, %v562_v63, %v4078_v56 }
  0xcd   : > { %8004 = vst [vmem:[#allocation34_spill] sm:$0xff] %v4080_v35  ;;  %v600_v61 = vsel %vm591_vm3, %v560_v42, %v4080_v35  ;;  %v636_v34 = vmul.f32 %v3977_v59, %v601_v26  ;;  %v4090_v62 = vmul.f32 %v3980_v17, %v601_v26  ;;  %324 = vrot.lane.b32.xlu1 %v3683_v13, %s3537_s8 }
  0xce   : > { %v632_v48 = vmul.f32 %v3977_v59, %v600_v61  ;;  %v4094_v28 = vmul.f32 %v3980_v17, %v600_v61  ;;  %322 = vrot.lane.b32.xlu0 %v3686_v14, %s3537_s8 }
  0xcf   : > { %8005 = vst [vmem:[#allocation35_spill] sm:$0xff] %v4090_v62  ;;  %v4102_v45 = vpop.permute.xlu1 %585 }
  0xd0   : > { %8006 = vst [vmem:[#allocation36_spill] sm:$0xff] %v4094_v28  ;;  %8007 = vst [vmem:[#allocation37_spill] sm:$0xff] %v4102_v45  ;;  %v4104_v27 = vpop.permute.xlu0 %583  ;;  %v2183_v26 = vpack.c.bf16 %v636_v34, %v632_v48  ;;  %v605_v59 = vsel %vm591_vm3, %v4102_v45, %v562_v63  ;;  %v3365_v63 = vld [vmem:[%s7718_s1 + $0x22] ss:$8 sm:$0xf] }
  0xd1   : > { %8008 = vst [vmem:[#allocation38_spill] sm:$0xff] %v4104_v27  ;;  %v604_v17 = vsel %vm591_vm3, %v4104_v27, %v560_v42  ;;  %v635_v61 = vmul.f32 %v3998_v0, %v605_v59  ;;  %v4114_v36 = vmul.f32 %v3989_v18, %v605_v59  ;;  %1001 = vrot.lane.b32.xlu1 %v3628_v4, %s3544_s27 }
  0xd2   : > { %v631_v55 = vmul.f32 %v3998_v0, %v604_v17  ;;  %v4118_v28 = vmul.f32 %v3989_v18, %v604_v17  ;;  %999 = vrot.lane.b32.xlu0 %v3618_v2, %s3544_s27  ;;  %2477 = vmatprep.subr.bf16.mxu0 %v2183_v26  ;;  %v4133_v18 = vrot.slane %v3365_v63, %v3917_v58 }
  0xd3   : > { %8009 = vst [vmem:[#allocation39_spill] sm:$0xff] %v4114_v36  ;;  %v1182_v42 = vpop.permute.xlu1 %1181  ;;  %v4152_v0 = vrot.slane %v3365_v63, %v3791_v22 }
  0xd4   : > { %8010 = vst [vmem:[#allocation40_spill] sm:$0xff] %v4118_v28  ;;  %v1180_v34 = vpop.permute.xlu0 %1179  ;;  %v2182_v48 = vpack.c.bf16 %v635_v61, %v631_v55 }
  0xd5   : > { %1009 = vrot.lane.b32.xlu1 %v3635_v5, %s3544_s27 }
  0xd6   : > { %2478 = vmatpush1.bf16.msra.mxu0 %v2182_v48  ;;  %1007 = vrot.lane.b32.xlu0 %v3638_v6, %s3544_s27 }
  0xd7   : > { %v4137_v26 = vpop.permute.xlu1 %1189 }
  0xd8   : > { %8011 = vst [vmem:[#allocation41_spill] sm:$0xff] %v4137_v26  ;;  %v4139_v59 = vpop.permute.xlu0 %1187  ;;  %v1219_v55 = vsel %vm1207_vm4, %v1182_v42, %v4137_v26 }
  0xd9   : > { %8012 = vst [vmem:[#allocation42_spill] sm:$0xff] %v4139_v59  ;;  %v1218_v17 = vsel %vm1207_vm4, %v1180_v34, %v4139_v59  ;;  %v1260_v61 = vmul.f32 %v4133_v18, %v1219_v55  ;;  %1025 = vrot.lane.b32.xlu1 %v3713_v15, %s3544_s27 }
  0xda   : > { %v1256_v48 = vmul.f32 %v4133_v18, %v1218_v17  ;;  %1023 = vrot.lane.b32.xlu0 %v3716_v16, %s3544_s27 }
  0xdb   : > { %v4156_v28 = vpop.permute.xlu1 %1205 }
  0xdc   : > { %8013 = vst [vmem:[#allocation43_spill] sm:$0xff] %v4156_v28  ;;  %v4158_v36 = vpop.permute.xlu0 %1203  ;;  %v2243_v26 = vpack.c.bf16 %v1260_v61, %v1256_v48  ;;  %v1223_v55 = vsel %vm1207_vm4, %v4156_v28, %v1182_v42  ;;  %v3357_v61 = vld [vmem:[%s7718_s1 + $0x2] ss:$8 sm:$0xf] }
  0xdd   : > { %8014 = vst [vmem:[#allocation44_spill] sm:$0xff] %v4158_v36  ;;  %v1222_v17 = vsel %vm1207_vm4, %v4158_v36, %v1180_v34  ;;  %v1259_v59 = vmul.f32 %v4152_v0, %v1223_v55  ;;  %320 = vrot.lane.b32.xlu1 %v3713_v15, %s3537_s8  ;;  %v3374_v42 = vld [vmem:[%s7718_s1 + $0x44] ss:$8 sm:$0xf] }
  0xde   : > { %v1255_v63 = vmul.f32 %v4152_v0, %v1222_v17  ;;  %2532 = vmatprep.subr.bf16.mxu1 %v2243_v26  ;;  %318 = vrot.lane.b32.xlu0 %v3716_v16, %s3537_s8  ;;  %v4182_v26 = vrot.slane %v3357_v61, %v3917_v58  ;;  %v4185_v17 = vrot.slane %v3374_v42, %v3791_v22  ;;  %s3546_s8 = smov 56  }
  0xdf   : > { %v478_v34 = vpop.permute.xlu1 %477  ;;  %v4203_v62 = vrot.slane %v3374_v42, %v3971_v50 }
  0xe0   : > { %v476_v48 = vpop.permute.xlu0 %475  ;;  %v2242_v55 = vpack.c.bf16 %v1259_v59, %v1255_v63 }
  0xe1   : > { %1541 = vrot.lane.b32.xlu1 %v3641_v7, %s3545_s19 }
  0xe2   : > { %2533 = vmatpush1.bf16.msra.mxu1 %v2242_v55  ;;  %1539 = vrot.lane.b32.xlu0 %v3644_v8, %s3545_s19  ;;  %v4200_v55 = vrot.slane %v3357_v61, %v3791_v22 }
  0xe3   : > { %v4189_v36 = vpop.permute.xlu1 %485 }
  0xe4   : > { %8015 = vst [vmem:[#allocation45_spill] sm:$0xff] %v4189_v36  ;;  %v4191_v28 = vpop.permute.xlu0 %483  ;;  %v515_v59 = vsel %vm503_vm5, %v478_v34, %v4189_v36 }
  0xe5   : > { %8016 = vst [vmem:[#allocation46_spill] sm:$0xff] %v4191_v28  ;;  %v514_v63 = vsel %vm503_vm5, %v476_v48, %v4191_v28  ;;  %v556_v44 = vmul.f32 %v4182_v26, %v515_v59  ;;  %v4207_v52 = vmul.f32 %v4185_v17, %v515_v59  ;;  %1549 = vrot.lane.b32.xlu1 %v3665_v11, %s3545_s19 }
  0xe6   : > { %v552_v51 = vmul.f32 %v4182_v26, %v514_v63  ;;  %v4211_v35 = vmul.f32 %v4185_v17, %v514_v63  ;;  %1547 = vrot.lane.b32.xlu0 %v3668_v12, %s3545_s19 }
  0xe7   : > { %8017 = vst [vmem:[#allocation47_spill] sm:$0xff] %v4207_v52  ;;  %v4219_v42 = vpop.permute.xlu1 %501 }
  0xe8   : > { %8018 = vst [vmem:[#allocation48_spill] sm:$0xff] %v4211_v35  ;;  %8019 = vst [vmem:[#allocation49_spill] sm:$0xff] %v4219_v42  ;;  %v4221_v28 = vpop.permute.xlu0 %499  ;;  %v2179_v59 = vpack.c.bf16 %v556_v44, %v552_v51  ;;  %v519_v36 = vsel %vm503_vm5, %v4219_v42, %v478_v34 }
  0xe9   : > { %8020 = vst [vmem:[#allocation50_spill] sm:$0xff] %v4221_v28  ;;  %v518_v63 = vsel %vm503_vm5, %v4221_v28, %v476_v48  ;;  %v555_v27 = vmul.f32 %v4200_v55, %v519_v36  ;;  %v4231_v56 = vmul.f32 %v4203_v62, %v519_v36  ;;  %1533 = vrot.lane.b32.xlu1 %v3625_v3, %s3545_s19 }
  0xea   : > { %v551_v61 = vmul.f32 %v4200_v55, %v518_v63  ;;  %v4235_v35 = vmul.f32 %v4203_v62, %v518_v63  ;;  %1531 = vrot.lane.b32.xlu0 %v3615_v1, %s3545_s19  ;;  %2479 = vmatprep.subr.bf16.mxu0 %v2179_v59 }
  0xeb   : > { %8021 = vst [vmem:[#allocation51_spill] sm:$0xff] %v4231_v56  ;;  %v1178_v44 = vpop.permute.xlu1 %1177 }
  0xec   : > { %8022 = vst [vmem:[#allocation52_spill] sm:$0xff] %v4235_v35  ;;  %v1176_v51 = vpop.permute.xlu0 %1175  ;;  %v2178_v34 = vpack.c.bf16 %v555_v27, %v551_v61 }
  0xed   : > { %917 = vrot.lane.b32.xlu1 %v3625_v3, %s3546_s8 }
  0xee   : > { %2480 = vmatpush1.bf16.msra.mxu0 %v2178_v34  ;;  %915 = vrot.lane.b32.xlu0 %v3615_v1, %s3546_s8 }
  0xef   : > { %v4247_v36 = vpop.permute.xlu1 %1185 }
  0xf0   : > { %8023 = vst [vmem:[#allocation53_spill] sm:$0xff] %v4247_v36  ;;  %v4249_v63 = vpop.permute.xlu0 %1183  ;;  %v1217_v59 = vsel %vm1207_vm4, %v1178_v44, %v4247_v36 }
  0xf1   : > { %8024 = vst [vmem:[#allocation54_spill] sm:$0xff] %v4249_v63  ;;  %v1216_v27 = vsel %vm1207_vm4, %v1176_v51, %v4249_v63  ;;  %v1252_v61 = vmul.f32 %v4133_v18, %v1217_v59  ;;  %925 = vrot.lane.b32.xlu1 %v3641_v7, %s3546_s8 }
  0xf2   : > { %v1248_v48 = vmul.f32 %v4133_v18, %v1216_v27  ;;  %923 = vrot.lane.b32.xlu0 %v3644_v8, %s3546_s8 }
  0xf3   : > { %v4263_v34 = vpop.permute.xlu1 %1201 }
  0xf4   : > { %8025 = vst [vmem:[#allocation55_spill] sm:$0xff] %v4263_v34  ;;  %v4265_v35 = vpop.permute.xlu0 %1199  ;;  %v2239_v56 = vpack.c.bf16 %v1252_v61, %v1248_v48  ;;  %v1221_v36 = vsel %vm1207_vm4, %v4263_v34, %v1178_v44 }
  0xf5   : > { %8026 = vst [vmem:[#allocation56_spill] sm:$0xff] %v4265_v35  ;;  %v1220_v59 = vsel %vm1207_vm4, %v4265_v35, %v1176_v51  ;;  %v1251_v18 = vmul.f32 %v4152_v0, %v1221_v36  ;;  %941 = vrot.lane.b32.xlu1 %v3683_v13, %s3546_s8 }
  0xf6   : > { %v1247_v27 = vmul.f32 %v4152_v0, %v1220_v59  ;;  %2534 = vmatprep.subr.bf16.mxu1 %v2239_v56  ;;  %939 = vrot.lane.b32.xlu0 %v3686_v14, %s3546_s8 }
  0xf7   : > { %v474_v48 = vpop.permute.xlu1 %473 }
  0xf8   : > { %v472_v61 = vpop.permute.xlu0 %471  ;;  %v2238_v63 = vpack.c.bf16 %v1251_v18, %v1247_v27 }
  0xf9   : > { %1537 = vrot.lane.b32.xlu1 %v3635_v5, %s3545_s19 }
  0xfa   : > { %2535 = vmatpush1.bf16.msra.mxu1 %v2238_v63  ;;  %1535 = vrot.lane.b32.xlu0 %v3638_v6, %s3545_s19 }
  0xfb   : > { %v4283_v44 = vpop.permute.xlu1 %481 }
  0xfc   : > { %8027 = vst [vmem:[#allocation57_spill] sm:$0xff] %v4283_v44  ;;  %v4285_v0 = vpop.permute.xlu0 %479  ;;  %v513_v56 = vsel %vm503_vm5, %v474_v48, %v4283_v44 }
  0xfd   : > { %8028 = vst [vmem:[#allocation58_spill] sm:$0xff] %v4285_v0  ;;  %v512_v51 = vsel %vm503_vm5, %v472_v61, %v4285_v0  ;;  %v548_v36 = vmul.f32 %v4182_v26, %v513_v56  ;;  %v4295_v59 = vmul.f32 %v4185_v17, %v513_v56  ;;  %1545 = vrot.lane.b32.xlu1 %v3655_v9, %s3545_s19 }
  0xfe   : > { %v544_v63 = vmul.f32 %v4182_v26, %v512_v51  ;;  %v4299_v18 = vmul.f32 %v4185_v17, %v512_v51  ;;  %1543 = vrot.lane.b32.xlu0 %v3658_v10, %s3545_s19 }
  0xff   : > { %8029 = vst [vmem:[#allocation59_spill] sm:$0xff] %v4295_v59  ;;  %v4307_v35 = vpop.permute.xlu1 %497 }
 0x100   : > { %8030 = vst [vmem:[#allocation60_spill] sm:$0xff] %v4299_v18  ;;  %8031 = vst [vmem:[#allocation61_spill] sm:$0xff] %v4307_v35  ;;  %v4309_v34 = vpop.permute.xlu0 %495  ;;  %v2175_v56 = vpack.c.bf16 %v548_v36, %v544_v63  ;;  %v517_v26 = vsel %vm503_vm5, %v4307_v35, %v474_v48  ;;  %v3364_v48 = vld [vmem:[%s7718_s1 + $0x21] ss:$8 sm:$0xf] }
 0x101   : > { %8032 = vst [vmem:[#allocation62_spill] sm:$0xff] %v4309_v34  ;;  %v516_v17 = vsel %vm503_vm5, %v4309_v34, %v472_v61  ;;  %v547_v51 = vmul.f32 %v4200_v55, %v517_v26  ;;  %v4319_v52 = vmul.f32 %v4203_v62, %v517_v26  ;;  %1529 = vrot.lane.b32.xlu1 %v3628_v4, %s3545_s19 }
 0x102   : > { %v543_v27 = vmul.f32 %v4200_v55, %v516_v17  ;;  %v4323_v18 = vmul.f32 %v4203_v62, %v516_v17  ;;  %1527 = vrot.lane.b32.xlu0 %v3618_v2, %s3545_s19  ;;  %2481 = vmatprep.subr.bf16.mxu0 %v2175_v56  ;;  %v4338_v62 = vrot.slane %v3364_v48, %v3917_v58 }
 0x103   : > { %8033 = vst [vmem:[#allocation63_spill] sm:$0xff] %v4319_v52  ;;  %v1094_v61 = vpop.permute.xlu1 %1093 }
 0x104   : > { %8034 = vst [vmem:[#allocation64_spill] sm:$0xff] %v4323_v18  ;;  %v1092_v36 = vpop.permute.xlu0 %1091  ;;  %v2174_v63 = vpack.c.bf16 %v547_v51, %v543_v27 }
 0x105   : > { %913 = vrot.lane.b32.xlu1 %v3628_v4, %s3546_s8 }
 0x106   : > { %2482 = vmatpush1.bf16.msra.mxu0 %v2174_v63  ;;  %911 = vrot.lane.b32.xlu0 %v3618_v2, %s3546_s8  ;;  %v4356_v63 = vrot.slane %v3364_v48, %v3791_v22 }
 0x107   : > { %v4342_v56 = vpop.permute.xlu1 %1101 }
 0x108   : > { %8035 = vst [vmem:[#allocation65_spill] sm:$0xff] %v4342_v56  ;;  %v1131_v27 = vsel %vm1119_vm6, %v1094_v61, %v4342_v56  ;;  %v4347_v26 = vpop.permute.xlu0 %1099 }
 0x109   : > { %8036 = vst [vmem:[#allocation66_spill] sm:$0xff] %v4347_v26  ;;  %v1172_v17 = vmul.f32 %v4338_v62, %v1131_v27  ;;  %v1130_v51 = vsel %vm1119_vm6, %v1092_v36, %v4347_v26  ;;  %921 = vrot.lane.b32.xlu1 %v3635_v5, %s3546_s8 }
 0x10a   : > { %v1168_v55 = vmul.f32 %v4338_v62, %v1130_v51  ;;  %919 = vrot.lane.b32.xlu0 %v3638_v6, %s3546_s8 }
 0x10b   : > { %v4361_v18 = vpop.permute.xlu1 %1117 }
 0x10c   : > { %8037 = vst [vmem:[#allocation67_spill] sm:$0xff] %v4361_v18  ;;  %v1135_v27 = vsel %vm1119_vm6, %v4361_v18, %v1094_v61  ;;  %v4366_v52 = vpop.permute.xlu0 %1115  ;;  %v2235_v26 = vpack.c.bf16 %v1172_v17, %v1168_v55  ;;  %v3356_v61 = vld [vmem:[%s7718_s1 + $0x1] ss:$8 sm:$0xf] }
 0x10d   : > { %8038 = vst [vmem:[#allocation68_spill] sm:$0xff] %v4366_v52  ;;  %v1171_v56 = vmul.f32 %v4356_v63, %v1135_v27  ;;  %v1134_v48 = vsel %vm1119_vm6, %v4366_v52, %v1092_v36  ;;  %937 = vrot.lane.b32.xlu1 %v3713_v15, %s3546_s8  ;;  %v3373_v55 = vld [vmem:[%s7718_s1 + $0x43] ss:$8 sm:$0xf]  ;;  %v4402_v18 = vrot.slane %v3356_v61, %v3791_v22 }
 0x10e   : > { %v1167_v51 = vmul.f32 %v4356_v63, %v1134_v48  ;;  %935 = vrot.lane.b32.xlu0 %v3716_v16, %s3546_s8  ;;  %2536 = vmatprep.subr.bf16.mxu1 %v2235_v26  ;;  %v4387_v48 = vrot.slane %v3356_v61, %v3917_v58  ;;  %v4390_v26 = vrot.slane %v3373_v55, %v3791_v22 }
 0x10f   : > { %v390_v17 = vpop.permute.xlu1 %389  ;;  %v4414_v34 = vrot.slane %v3373_v55, %v3971_v50 }
 0x110   : > { %v388_v27 = vpop.permute.xlu0 %387  ;;  %v2234_v36 = vpack.c.bf16 %v1171_v56, %v1167_v51 }
 0x111   : > { %1453 = vrot.lane.b32.xlu1 %v3641_v7, %s3547_s29 }
 0x112   : > { %1451 = vrot.lane.b32.xlu0 %v3644_v8, %s3547_s29  ;;  %2537 = vmatpush1.bf16.msra.mxu1 %v2234_v36 }
 0x113   : > { %v4394_v52 = vpop.permute.xlu1 %397 }
 0x114   : > { %v427_v56 = vsel %vm415_vm7, %v390_v17, %v4394_v52  ;;  %v4399_v51 = vpop.permute.xlu0 %395 }
 0x115   : > { %v468_v59 = vmul.f32 %v4387_v48, %v427_v56  ;;  %v4406_v0 = vmul.f32 %v4390_v26, %v427_v56  ;;  %v426_v36 = vsel %vm415_vm7, %v388_v27, %v4399_v51  ;;  %1461 = vrot.lane.b32.xlu1 %v3665_v11, %s3547_s29 }
 0x116   : > { %v464_v44 = vmul.f32 %v4387_v48, %v426_v36  ;;  %v4418_v61 = vmul.f32 %v4390_v26, %v426_v36  ;;  %1459 = vrot.lane.b32.xlu0 %v3668_v12, %s3547_s29 }
 0x117   : > { %v4422_v56 = vpop.permute.xlu1 %413 }
 0x118   : > { %v431_v11 = vsel %vm415_vm7, %v4422_v56, %v390_v17  ;;  %v4429_v28 = vpop.permute.xlu0 %411  ;;  %v2171_v55 = vpack.c.bf16 %v468_v59, %v464_v44 }
 0x119   : > { %v467_v42 = vmul.f32 %v4402_v18, %v431_v11  ;;  %v4433_v36 = vmul.f32 %v4414_v34, %v431_v11  ;;  %v430_v12 = vsel %vm415_vm7, %v4429_v28, %v388_v27  ;;  %1445 = vrot.lane.b32.xlu1 %v3625_v3, %s3547_s29 }
 0x11a   : > { %v463_v35 = vmul.f32 %v4402_v18, %v430_v12  ;;  %v4442_v45 = vmul.f32 %v4414_v34, %v430_v12  ;;  %1443 = vrot.lane.b32.xlu0 %v3615_v1, %s3547_s29  ;;  %2483 = vmatprep.subr.bf16.mxu0 %v2171_v55 }
 0x11b   : > { %8039 = vst [vmem:[#allocation69_spill] sm:$0xff] %v4433_v36  ;;  %v1090_v44 = vpop.permute.xlu1 %1089 }
 0x11c   : > { %8040 = vst [vmem:[#allocation70_spill] sm:$0xff] %v4442_v45  ;;  %v1088_v59 = vpop.permute.xlu0 %1087  ;;  %v2170_v17 = vpack.c.bf16 %v467_v42, %v463_v35 }
 0x11d   : > { %829 = vrot.lane.b32.xlu1 %v3625_v3, %s3548_s13 }
 0x11e   : > { %827 = vrot.lane.b32.xlu0 %v3615_v1, %s3548_s13  ;;  %2484 = vmatpush1.bf16.msra.mxu0 %v2170_v17 }
 0x11f   : > { %v4452_v27 = vpop.permute.xlu1 %1097 }
 0x120   : > { %8041 = vst [vmem:[#allocation71_spill] sm:$0xff] %v4452_v27  ;;  %v1129_v55 = vsel %vm1119_vm6, %v1090_v44, %v4452_v27  ;;  %v4457_v12 = vpop.permute.xlu0 %1095 }
 0x121   : > { %8042 = vst [vmem:[#allocation72_spill] sm:$0xff] %v4457_v12  ;;  %v1164_v35 = vmul.f32 %v4338_v62, %v1129_v55  ;;  %v1128_v42 = vsel %vm1119_vm6, %v1088_v59, %v4457_v12  ;;  %837 = vrot.lane.b32.xlu1 %v3641_v7, %s3548_s13 }
 0x122   : > { %v1160_v1 = vmul.f32 %v4338_v62, %v1128_v42  ;;  %835 = vrot.lane.b32.xlu0 %v3644_v8, %s3548_s13 }
 0x123   : > { %v4468_v3 = vpop.permute.xlu1 %1113 }
 0x124   : > { %8043 = vst [vmem:[#allocation73_spill] sm:$0xff] %v4468_v3  ;;  %v1133_v17 = vsel %vm1119_vm6, %v4468_v3, %v1090_v44  ;;  %v4473_v11 = vpop.permute.xlu0 %1111  ;;  %v2231_v55 = vpack.c.bf16 %v1164_v35, %v1160_v1 }
 0x125   : > { %8044 = vst [vmem:[#allocation74_spill] sm:$0xff] %v4473_v11  ;;  %v1163_v45 = vmul.f32 %v4356_v63, %v1133_v17  ;;  %v1132_v7 = vsel %vm1119_vm6, %v4473_v11, %v1088_v59  ;;  %853 = vrot.lane.b32.xlu1 %v3683_v13, %s3548_s13 }
 0x126   : > { %v1159_v8 = vmul.f32 %v4356_v63, %v1132_v7  ;;  %851 = vrot.lane.b32.xlu0 %v3686_v14, %s3548_s13  ;;  %2538 = vmatprep.subr.bf16.mxu1 %v2231_v55 }
 0x127   : > { %v386_v62 = vpop.permute.xlu1 %385 }
 0x128   : > { %v384_v44 = vpop.permute.xlu0 %383  ;;  %v2230_v42 = vpack.c.bf16 %v1163_v45, %v1159_v8 }
 0x129   : > { %1449 = vrot.lane.b32.xlu1 %v3635_v5, %s3547_s29 }
 0x12a   : > { %1447 = vrot.lane.b32.xlu0 %v3638_v6, %s3547_s29  ;;  %2539 = vmatpush1.bf16.msra.mxu1 %v2230_v42  ;;  %v4506_v6 = vrot.slane %v3837_v37, %v3917_v58 }
 0x12b   : > { %v4488_v59 = vpop.permute.xlu1 %393 }
 0x12c   : > { %v425_v13 = vsel %vm415_vm7, %v386_v62, %v4488_v59  ;;  %v4493_v63 = vpop.permute.xlu0 %391  ;;  %v380_v55 = vmul.f32 %v4506_v6, %v3842_v38 }
 0x12d   : > { %v460_v14 = vmul.f32 %v4387_v48, %v425_v13  ;;  %v4497_v35 = vmul.f32 %v4390_v26, %v425_v13  ;;  %v424_v5 = vsel %vm415_vm7, %v384_v44, %v4493_v63  ;;  %1457 = vrot.lane.b32.xlu1 %v3655_v9, %s3547_s29 }
 0x12e   : > { %v456_v45 = vmul.f32 %v4387_v48, %v424_v5  ;;  %v4510_v1 = vmul.f32 %v4390_v26, %v424_v5  ;;  %1455 = vrot.lane.b32.xlu0 %v3658_v10, %s3547_s29  ;;  %v376_v26 = vmul.f32 %v4506_v6, %v3847_v39  ;;  %v3363_v39 = vld [vmem:[%s7718_s1 + $0x20] ss:$8 sm:$0xf] }
 0x12f   : > { %8045 = vst [vmem:[#allocation75_spill] sm:$0xff] %v4497_v35  ;;  %v4514_v17 = vpop.permute.xlu1 %409 }
 0x130   : > { %8046 = vst [vmem:[#allocation76_spill] sm:$0xff] %v4510_v1  ;;  %v429_v7 = vsel %vm415_vm7, %v4514_v17, %v386_v62  ;;  %v4523_v8 = vpop.permute.xlu0 %407  ;;  %v2167_v48 = vpack.c.bf16 %v460_v14, %v456_v45  ;;  %v4557_v45 = vrot.slane %v3363_v39, %v3917_v58 }
 0x131   : > { %v459_v10 = vmul.f32 %v4402_v18, %v429_v7  ;;  %v4529_v42 = vmul.f32 %v4414_v34, %v429_v7  ;;  %v428_v38 = vsel %vm415_vm7, %v4523_v8, %v384_v44  ;;  %1441 = vrot.lane.b32.xlu1 %v3628_v4, %s3547_s29  ;;  %v3380_v44 = vld [vmem:[%s7718_s1 + $0x62] ss:$8 sm:$0xf] }
 0x132   : > { %v455_v62 = vmul.f32 %v4402_v18, %v428_v38  ;;  %v4538_v13 = vmul.f32 %v4414_v34, %v428_v38  ;;  %1439 = vrot.lane.b32.xlu0 %v3618_v2, %s3547_s29  ;;  %2485 = vmatprep.subr.bf16.mxu0 %v2167_v48  ;;  %v4551_v34 = vld [vmem:[%s3611_s30 + $0x20] sm:$0xff]  ;;  %v2163_v2 = vpack.c.bf16 %v380_v55, %v376_v26 }
 0x133   : > { %8047 = vst [vmem:[#allocation77_spill] sm:$0xff] %v4529_v42  ;;  %v1006_v14 = vpop.permute.xlu1 %1005  ;;  %v4560_v7 = vrot.slane %v3380_v44, %v3791_v22  ;;  %v4563_v48 = vld [vmem:[%s3611_s30] sm:$0xff]  ;;  %v4575_v38 = vrot.slane %v3363_v39, %v3791_v22  ;;  %v4590_v9 = vrot.slane %v3380_v44, %v3971_v50  ;;  %v4597_v42 = vld [vmem:[%s3611_s30 + $0x8] sm:$0xff] }
 0x134   : > { %8048 = vst [vmem:[#allocation78_spill] sm:$0xff] %v4538_v13  ;;  %v1004_v4 = vpop.permute.xlu0 %1003  ;;  %v2166_v5 = vpack.c.bf16 %v459_v10, %v455_v62 }
 0x135   : > { %825 = vrot.lane.b32.xlu1 %v4551_v34, %s3548_s13 }
 0x136   : > { %823 = vrot.lane.b32.xlu0 %v4563_v48, %s3548_s13  ;;  %2486 = vmatpush1.bf16.msra.mxu0 %v2166_v5 }
 0x137   : > { %2487 = vmatprep.subr.bf16.mxu0 %v2163_v2  ;;  %v4567_v10 = vpop.permute.xlu1 %1013  ;;  %v4585_v2 = vld [vmem:[%s3611_s30 + $0x28] sm:$0xff] }
 0x138   : > { %v1043_v55 = vsel %vm1031_vm8, %v1006_v14, %v4567_v10  ;;  %v4572_v26 = vpop.permute.xlu0 %1011 }
 0x139   : > { %v1084_v62 = vmul.f32 %v4557_v45, %v1043_v55  ;;  %v4579_v18 = vmul.f32 %v4560_v7, %v1043_v55  ;;  %v1042_v5 = vsel %vm1031_vm8, %v1004_v4, %v4572_v26  ;;  %833 = vrot.lane.b32.xlu1 %v4585_v2, %s3548_s13 }
 0x13a   : > { %v1080_v39 = vmul.f32 %v4557_v45, %v1042_v5  ;;  %v4594_v13 = vmul.f32 %v4560_v7, %v1042_v5  ;;  %831 = vrot.lane.b32.xlu0 %v4597_v42, %s3548_s13  ;;  %v4612_v5 = vrot.slane %v3837_v37, %v3791_v22 }
 0x13b   : > { %v4601_v55 = vpop.permute.xlu1 %1029 }
 0x13c   : > { %8049 = vst [vmem:[#allocation79_spill] sm:$0xff] %v4601_v55  ;;  %v1047_v44 = vsel %vm1031_vm8, %v4601_v55, %v1006_v14  ;;  %v4608_v12 = vpop.permute.xlu0 %1027  ;;  %v2227_v27 = vpack.c.bf16 %v1084_v62, %v1080_v39  ;;  %v4625_v14 = vrot.slane %v3796_v23, %v3971_v50 }
 0x13d   : > { %8050 = vst [vmem:[#allocation80_spill] sm:$0xff] %v4608_v12  ;;  %v1083_v11 = vmul.f32 %v4575_v38, %v1047_v44  ;;  %v4616_v3 = vmul.f32 %v4590_v9, %v1047_v44  ;;  %v1046_v36 = vsel %vm1031_vm8, %v4608_v12, %v1004_v4  ;;  %849 = vrot.lane.b32.xlu1 %v3713_v15, %s3548_s13 }
 0x13e   : > { %v1079_v37 = vmul.f32 %v4575_v38, %v1046_v36  ;;  %v4629_v62 = vmul.f32 %v4590_v9, %v1046_v36  ;;  %847 = vrot.lane.b32.xlu0 %v3716_v16, %s3548_s13  ;;  %2540 = vmatprep.subr.bf16.mxu1 %v2227_v27  ;;  %v4648_v16 = vld [vmem:[%s3611_s30 + $0x60] sm:$0xff] }
 0x13f   : > { %8051 = vst [vmem:[#allocation81_spill] sm:$0xff] %v4616_v3  ;;  %v4633_v39 = vpop.permute.xlu1 %324  ;;  %v4677_v3 = vld [vmem:[%s3611_s30 + $0x48] sm:$0xff] }
 0x140   : > { %8052 = vst [vmem:[#allocation82_spill] sm:$0xff] %v4629_v62  ;;  %8053 = vst [vmem:[#allocation83_spill] sm:$0xff] %v4633_v39  ;;  %v344_v15 = vsel %vm328_vm1, %v4633_v39, %v3798_v24  ;;  %v4639_v4 = vpop.permute.xlu0 %322  ;;  %v2226_v23 = vpack.c.bf16 %v1083_v11, %v1079_v37  ;;  %v372_v24 = vmul.f32 %v4506_v6, %v3812_v29  ;;  %v4661_v37 = vld [vmem:[%s3611_s30 + $0x40] sm:$0xff] }
 0x141   : > { %8054 = vst [vmem:[#allocation84_spill] sm:$0xff] %v4639_v4  ;;  %v379_v36 = vmul.f32 %v4612_v5, %v344_v15  ;;  %v4645_v12 = vmul.f32 %v4625_v14, %v344_v15  ;;  %741 = vrot.lane.b32.xlu1 %v4648_v16, %s3549_s21  ;;  %v368_v11 = vmul.f32 %v4506_v6, %v3817_v30  ;;  %v4670_v30 = vld [vmem:[%s3611_s30 + $0x68] sm:$0xff] }
 0x142   : > { %v343_v27 = vsel %vm328_vm1, %v4639_v4, %v3780_v19  ;;  %739 = vrot.lane.b32.xlu0 %v4661_v37, %s3549_s21  ;;  %2541 = vmatpush1.bf16.msra.mxu1 %v2226_v23 }
 0x143   : > { %8055 = vst [vmem:[#allocation85_spill] sm:$0xff] %v4645_v12  ;;  %v375_v15 = vmul.f32 %v4612_v5, %v343_v27  ;;  %v4667_v44 = vmul.f32 %v4625_v14, %v343_v27  ;;  %v1002_v29 = vpop.permute.xlu1 %1001  ;;  %v2159_v23 = vpack.c.bf16 %v372_v24, %v368_v11  ;;  %v4696_v24 = vld [vmem:[%s3611_s30 + $0x78] sm:$0xff] }
 0x144   : > { %v1000_v62 = vpop.permute.xlu0 %999 }
 0x145   : > { %8056 = vst [vmem:[#allocation86_spill] sm:$0xff] %v4667_v44  ;;  %749 = vrot.lane.b32.xlu1 %v4670_v30, %s3549_s21  ;;  %v2162_v19 = vpack.c.bf16 %v379_v36, %v375_v15 }
 0x146   : > { %747 = vrot.lane.b32.xlu0 %v4677_v3, %s3549_s21 }
 0x147   : > { %2488 = vmatpush1.bf16.msra.mxu0 %v2162_v19  ;;  %v4681_v27 = vpop.permute.xlu1 %1009 }
 0x148   : > { %2489 = vmatprep.subr.bf16.mxu0 %v2159_v23  ;;  %v1041_v55 = vsel %vm1031_vm8, %v1002_v29, %v4681_v27  ;;  %v4686_v4 = vpop.permute.xlu0 %1007  ;;  %v4705_v23 = vld [vmem:[%s3611_s30 + $0x58] sm:$0xff] }
 0x149   : > { %v1076_v36 = vmul.f32 %v4557_v45, %v1041_v55  ;;  %v4690_v15 = vmul.f32 %v4560_v7, %v1041_v55  ;;  %v1040_v6 = vsel %vm1031_vm8, %v1000_v62, %v4686_v4  ;;  %765 = vrot.lane.b32.xlu1 %v4696_v24, %s3549_s21 }
 0x14a   : > { %v1072_v11 = vmul.f32 %v4557_v45, %v1040_v6  ;;  %v4702_v19 = vmul.f32 %v4560_v7, %v1040_v6  ;;  %763 = vrot.lane.b32.xlu0 %v4705_v23, %s3549_s21 }
 0x14b   : > { %8057 = vst [vmem:[#allocation87_spill] sm:$0xff] %v4690_v15  ;;  %v4709_v55 = vpop.permute.xlu1 %1025 }
 0x14c   : > { %8058 = vst [vmem:[#allocation88_spill] sm:$0xff] %v4702_v19  ;;  %v1045_v12 = vsel %vm1031_vm8, %v4709_v55, %v1002_v29  ;;  %v4716_v39 = vpop.permute.xlu0 %1023  ;;  %v2223_v45 = vpack.c.bf16 %v1076_v36, %v1072_v11 }
 0x14d   : > { %v1075_v7 = vmul.f32 %v4575_v38, %v1045_v12  ;;  %v1044_v6 = vsel %vm1031_vm8, %v4716_v39, %v1000_v62  ;;  %737 = vrot.lane.b32.xlu1 %v4551_v34, %s3549_s21  ;;  %v4730_v29 = vmul.f32 %v4590_v9, %v1045_v12 }
 0x14e   : > { %v1071_v57 = vmul.f32 %v4575_v38, %v1044_v6  ;;  %735 = vrot.lane.b32.xlu0 %v4563_v48, %s3549_s21  ;;  %2542 = vmatprep.subr.bf16.mxu1 %v2223_v45  ;;  %v4733_v36 = vmul.f32 %v4590_v9, %v1044_v6 }
 0x14f   : > { %v4727_v44 = vpop.permute.xlu1 %320  ;;  %8060 = vst [vmem:[#allocation90_spill] sm:$0xff] %v4730_v29 }
 0x150   : > { %8059 = vst [vmem:[#allocation89_spill] sm:$0xff] %v4727_v44  ;;  %8061 = vst [vmem:[#allocation91_spill] sm:$0xff] %v4733_v36  ;;  %v342_v62 = vsel %vm328_vm1, %v4727_v44, %v3800_v25  ;;  %v4739_v11 = vpop.permute.xlu0 %318  ;;  %v2222_v38 = vpack.c.bf16 %v1075_v7, %v1071_v57  ;;  %v3369_v25 = vld [vmem:[%s7718_s1 + $0x27] ss:$8 sm:$0xf] }
 0x151   : > { %8062 = vst [vmem:[#allocation92_spill] sm:$0xff] %v4739_v11  ;;  %v371_v60 = vmul.f32 %v4612_v5, %v342_v62  ;;  %v4743_v45 = vmul.f32 %v4625_v14, %v342_v62  ;;  %745 = vrot.lane.b32.xlu1 %v4585_v2, %s3549_s21  ;;  %v341_v12 = vsel %vm328_vm1, %v4739_v11, %v3782_v20  ;;  %v4763_v44 = vld [vmem:[%s3611_s30 + $0x38] sm:$0xff] }
 0x152   : > { %743 = vrot.lane.b32.xlu0 %v4597_v42, %s3549_s21  ;;  %2543 = vmatpush1.bf16.msra.mxu1 %v2222_v38  ;;  %v367_v57 = vmul.f32 %v4612_v5, %v341_v12  ;;  %v4758_v9 = vmul.f32 %v4625_v14, %v341_v12  ;;  %v4769_v38 = vrot.slane %v3369_v25, %v3917_v58  ;;  %v4774_v14 = vld [vmem:[%s3611_s30 + $0x18] sm:$0xff] }
 0x153   : > { %8063 = vst [vmem:[#allocation93_spill] sm:$0xff] %v4743_v45  ;;  %v1542_v7 = vpop.permute.xlu1 %1541 }
 0x154   : > { %8064 = vst [vmem:[#allocation94_spill] sm:$0xff] %v4758_v9  ;;  %v1540_v6 = vpop.permute.xlu0 %1539  ;;  %v2158_v20 = vpack.c.bf16 %v371_v60, %v367_v57 }
 0x155   : > { %761 = vrot.lane.b32.xlu1 %v4763_v44, %s3549_s21 }
 0x156   : > { %759 = vrot.lane.b32.xlu0 %v4774_v14, %s3549_s21  ;;  %2490 = vmatpush1.bf16.msra.mxu0 %v2158_v20  ;;  %v4792_v20 = vrot.slane %v3369_v25, %v3791_v22 }
 0x157   : > { %v4778_v12 = vpop.permute.xlu1 %1549 }
 0x158   : > { %8065 = vst [vmem:[#allocation95_spill] sm:$0xff] %v4778_v12  ;;  %v1567_v60 = vsel %vm1559_vm9, %v1542_v7, %v4778_v12  ;;  %v4783_v57 = vpop.permute.xlu0 %1547 }
 0x159   : > { %8066 = vst [vmem:[#allocation96_spill] sm:$0xff] %v4783_v57  ;;  %v1612_v62 = vmul.f32 %v4769_v38, %v1567_v60  ;;  %v1566_v5 = vsel %vm1559_vm9, %v1540_v6, %v4783_v57  ;;  %1357 = vrot.lane.b32.xlu1 %v4648_v16, %s3550_s26 }
 0x15a   : > { %v1608_v36 = vmul.f32 %v4769_v38, %v1566_v5  ;;  %1355 = vrot.lane.b32.xlu0 %v4661_v37, %s3550_s26 }
 0x15b   : > { %v4797_v29 = vpop.permute.xlu1 %1533 }
 0x15c   : > { %8067 = vst [vmem:[#allocation97_spill] sm:$0xff] %v4797_v29  ;;  %v1571_v60 = vsel %vm1559_vm9, %v4797_v29, %v1542_v7  ;;  %v4802_v9 = vpop.permute.xlu0 %1531  ;;  %v2283_v45 = vpack.c.bf16 %v1612_v62, %v1608_v36  ;;  %v4816_v7 = vld [vmem:[%s7718_s1 + $0x7] ss:$8 sm:$0xf] }
 0x15d   : > { %8068 = vst [vmem:[#allocation98_spill] sm:$0xff] %v4802_v9  ;;  %v1611_v57 = vmul.f32 %v4792_v20, %v1571_v60  ;;  %v1570_v25 = vsel %vm1559_vm9, %v4802_v9, %v1540_v6  ;;  %1365 = vrot.lane.b32.xlu1 %v4670_v30, %s3550_s26  ;;  %v4821_v36 = vld [vmem:[%s7718_s1 + $0x61] ss:$8 sm:$0xf]  ;;  %v4845_v29 = vrot.slane %v4816_v7, %v3791_v22 }
 0x15e   : > { %v1607_v5 = vmul.f32 %v4792_v20, %v1570_v25  ;;  %1363 = vrot.lane.b32.xlu0 %v4677_v3, %s3550_s26  ;;  %2544 = vmatprep.subr.bf16.mxu1 %v2283_v45  ;;  %v4828_v45 = vrot.slane %v4816_v7, %v3917_v58  ;;  %v4832_v25 = vrot.slane %v4821_v36, %v3791_v22 }
 0x15f   : > { %v918_v6 = vpop.permute.xlu1 %917  ;;  %v4858_v43 = vrot.slane %v4821_v36, %v3971_v50 }
 0x160   : > { %v916_v62 = vpop.permute.xlu0 %915  ;;  %v2282_v60 = vpack.c.bf16 %v1611_v57, %v1607_v5 }
 0x161   : > { %1381 = vrot.lane.b32.xlu1 %v4696_v24, %s3550_s26 }
 0x162   : > { %1379 = vrot.lane.b32.xlu0 %v4705_v23, %s3550_s26  ;;  %2545 = vmatpush2.bf16.msra.mxu1 %v2282_v60 }
 0x163   : > { %v4836_v9 = vpop.permute.xlu1 %925 }
 0x164   : > { %8069 = vst [vmem:[#allocation99_spill] sm:$0xff] %v4836_v9  ;;  %v955_v57 = vsel %vm943_vm10, %v918_v6, %v4836_v9  ;;  %v4841_v5 = vpop.permute.xlu0 %923 }
 0x165   : > { %8070 = vst [vmem:[#allocation100_spill] sm:$0xff] %v4841_v5  ;;  %v996_v12 = vmul.f32 %v4828_v45, %v955_v57  ;;  %v4849_v11 = vmul.f32 %v4832_v25, %v955_v57  ;;  %v954_v60 = vsel %vm943_vm10, %v916_v62, %v4841_v5  ;;  %653 = vrot.lane.b32.xlu1 %v4648_v16, %s3551_s20 }
 0x166   : > { %v992_v49 = vmul.f32 %v4828_v45, %v954_v60  ;;  %v4862_v32 = vmul.f32 %v4832_v25, %v954_v60  ;;  %651 = vrot.lane.b32.xlu0 %v4661_v37, %s3551_s20 }
 0x167   : > { %8071 = vst [vmem:[#allocation101_spill] sm:$0xff] %v4849_v11  ;;  %v4866_v57 = vpop.permute.xlu1 %941 }
 0x168   : > { %8072 = vst [vmem:[#allocation102_spill] sm:$0xff] %v4862_v32  ;;  %v959_v41 = vsel %vm943_vm10, %v4866_v57, %v918_v6  ;;  %v4873_v40 = vpop.permute.xlu0 %939  ;;  %v2219_v1 = vpack.c.bf16 %v996_v12, %v992_v49 }
 0x169   : > { %8073 = vst [vmem:[#allocation103_spill] sm:$0xff] %v4873_v40  ;;  %v995_v35 = vmul.f32 %v4845_v29, %v959_v41  ;;  %v4877_v60 = vmul.f32 %v4858_v43, %v959_v41  ;;  %v958_v19 = vsel %vm943_vm10, %v4873_v40, %v916_v62  ;;  %661 = vrot.lane.b32.xlu1 %v4670_v30, %s3551_s20 }
 0x16a   : > { %v991_v31 = vmul.f32 %v4845_v29, %v958_v19  ;;  %v4886_v32 = vmul.f32 %v4858_v43, %v958_v19  ;;  %659 = vrot.lane.b32.xlu0 %v4677_v3, %s3551_s20  ;;  %2491 = vmatprep.subr.bf16.mxu0 %v2219_v1 }
 0x16b   : > { %8074 = vst [vmem:[#allocation104_spill] sm:$0xff] %v4877_v60  ;;  %v1538_v49 = vpop.permute.xlu1 %1537 }
 0x16c   : > { %8075 = vst [vmem:[#allocation105_spill] sm:$0xff] %v4886_v32  ;;  %v1536_v12 = vpop.permute.xlu0 %1535  ;;  %v2218_v41 = vpack.c.bf16 %v995_v35, %v991_v31 }
 0x16d   : > { %677 = vrot.lane.b32.xlu1 %v4696_v24, %s3551_s20 }
 0x16e   : > { %675 = vrot.lane.b32.xlu0 %v4705_v23, %s3551_s20  ;;  %2492 = vmatpush2.bf16.msra.mxu0 %v2218_v41 }
 0x16f   : > { %v4896_v62 = vpop.permute.xlu1 %1545 }
 0x170   : > { %8076 = vst [vmem:[#allocation106_spill] sm:$0xff] %v4896_v62  ;;  %v1565_v19 = vsel %vm1559_vm9, %v1538_v49, %v4896_v62  ;;  %v4901_v1 = vpop.permute.xlu0 %1543 }
 0x171   : > { %8077 = vst [vmem:[#allocation107_spill] sm:$0xff] %v4901_v1  ;;  %v1604_v31 = vmul.f32 %v4769_v38, %v1565_v19  ;;  %v1564_v35 = vsel %vm1559_vm9, %v1536_v12, %v4901_v1  ;;  %1353 = vrot.lane.b32.xlu1 %v4551_v34, %s3550_s26 }
 0x172   : > { %v1600_v24 = vmul.f32 %v4769_v38, %v1564_v35  ;;  %1351 = vrot.lane.b32.xlu0 %v4563_v48, %s3550_s26 }
 0x173   : > { %v4912_v23 = vpop.permute.xlu1 %1529 }
 0x174   : > { %8078 = vst [vmem:[#allocation108_spill] sm:$0xff] %v4912_v23  ;;  %v1569_v41 = vsel %vm1559_vm9, %v4912_v23, %v1538_v49  ;;  %v4917_v6 = vpop.permute.xlu0 %1527  ;;  %v2279_v19 = vpack.c.bf16 %v1604_v31, %v1600_v24 }
 0x175   : > { %8079 = vst [vmem:[#allocation109_spill] sm:$0xff] %v4917_v6  ;;  %v1603_v32 = vmul.f32 %v4792_v20, %v1569_v41  ;;  %v1568_v60 = vsel %vm1559_vm9, %v4917_v6, %v1536_v12  ;;  %1361 = vrot.lane.b32.xlu1 %v4585_v2, %s3550_s26 }
 0x176   : > { %v1599_v38 = vmul.f32 %v4792_v20, %v1568_v60  ;;  %1359 = vrot.lane.b32.xlu0 %v4597_v42, %s3550_s26  ;;  %2546 = vmatprep.subr.bf16.mxu1 %v2279_v19 }
 0x177   : > { %v914_v35 = vpop.permute.xlu1 %913 }
 0x178   : > { %v912_v49 = vpop.permute.xlu0 %911  ;;  %v2278_v23 = vpack.c.bf16 %v1603_v32, %v1599_v38  ;;  %v3438_v38 = vld [vmem:[%s7719_s2 + $0xc] ss:$28 sps:$4 sm:$0xff]  }
 0x179   : > { %1377 = vrot.lane.b32.xlu1 %v4763_v44, %s3550_s26  ;;  %2560 = vmatprep.mubr.bf16.mxu1 %v3438_v38 }
 0x17a   : > { %1375 = vrot.lane.b32.xlu0 %v4774_v14, %s3550_s26  ;;  %2547 = vmatpush2.bf16.msra.mxu1 %v2278_v23 }
 0x17b   : > { %v4932_v12 = vpop.permute.xlu1 %921 }
 0x17c   : > { %8080 = vst [vmem:[#allocation110_spill] sm:$0xff] %v4932_v12  ;;  %v953_v20 = vsel %vm943_vm10, %v914_v35, %v4932_v12  ;;  %v4937_v60 = vpop.permute.xlu0 %919 }
 0x17d   : > { %8081 = vst [vmem:[#allocation111_spill] sm:$0xff] %v4937_v60  ;;  %v988_v31 = vmul.f32 %v4828_v45, %v953_v20  ;;  %v4941_v24 = vmul.f32 %v4832_v25, %v953_v20  ;;  %v952_v32 = vsel %vm943_vm10, %v912_v49, %v4937_v60  ;;  %649 = vrot.lane.b32.xlu1 %v4551_v34, %s3551_s20 }
 0x17e   : > { %v984_v23 = vmul.f32 %v4828_v45, %v952_v32  ;;  %v4950_v41 = vmul.f32 %v4832_v25, %v952_v32  ;;  %647 = vrot.lane.b32.xlu0 %v4563_v48, %s3551_s20 }
 0x17f   : > { %8082 = vst [vmem:[#allocation112_spill] sm:$0xff] %v4941_v24  ;;  %v4954_v19 = vpop.permute.xlu1 %937 }
 0x180   : > { %8083 = vst [vmem:[#allocation113_spill] sm:$0xff] %v4950_v41  ;;  %8084 = vst [vmem:[#allocation114_spill] sm:$0xff] %v4954_v19  ;;  %v957_v20 = vsel %vm943_vm10, %v4954_v19, %v914_v35  ;;  %v4961_v6 = vpop.permute.xlu0 %935  ;;  %v2215_v1 = vpack.c.bf16 %v988_v31, %v984_v23  ;;  %v5018_v41 = vld [vmem:[%s3611_s30 + $0x50] sm:$0xff] }
 0x181   : > { %8085 = vst [vmem:[#allocation115_spill] sm:$0xff] %v4961_v6  ;;  %v987_v45 = vmul.f32 %v4845_v29, %v957_v20  ;;  %v4965_v25 = vmul.f32 %v4858_v43, %v957_v20  ;;  %v956_v32 = vsel %vm943_vm10, %v4961_v6, %v912_v49  ;;  %657 = vrot.lane.b32.xlu1 %v4585_v2, %s3551_s20  ;;  %v3368_v49 = vld [vmem:[%s7718_s1 + $0x26] ss:$8 sm:$0xf] }
 0x182   : > { %v983_v35 = vmul.f32 %v4845_v29, %v956_v32  ;;  %v4977_v31 = vmul.f32 %v4858_v43, %v956_v32  ;;  %655 = vrot.lane.b32.xlu0 %v4597_v42, %s3551_s20  ;;  %2493 = vmatprep.subr.bf16.mxu0 %v2215_v1  ;;  %v4990_v43 = vrot.slane %v3368_v49, %v3917_v58 }
 0x183   : > { %8086 = vst [vmem:[#allocation116_spill] sm:$0xff] %v4965_v25  ;;  %v1454_v23 = vpop.permute.xlu1 %1453 }
 0x184   : > { %8087 = vst [vmem:[#allocation117_spill] sm:$0xff] %v4977_v31  ;;  %v1452_v20 = vpop.permute.xlu0 %1451  ;;  %v2214_v62 = vpack.c.bf16 %v987_v45, %v983_v35 }
 0x185   : > { %673 = vrot.lane.b32.xlu1 %v4763_v44, %s3551_s20  ;;  %v3441_v44 = vld [vmem:[%s7719_s2 + $0x4] ss:$28 sps:$4 sm:$0xff]  }
 0x186   : > { %671 = vrot.lane.b32.xlu0 %v4774_v14, %s3551_s20  ;;  %2494 = vmatpush2.bf16.msra.mxu0 %v2214_v62  ;;  %v5009_v14 = vld [vmem:[%s3611_s30 + $0x70] sm:$0xff]  ;;  %v5014_v62 = vrot.slane %v3368_v49, %v3791_v22 }
 0x187   : > { %v4994_v29 = vpop.permute.xlu1 %1461  ;;  %2507 = vmatprep.mubr.bf16.mxu0 %v3441_v44 }
 0x188   : > { %8088 = vst [vmem:[#allocation118_spill] sm:$0xff] %v4994_v29  ;;  %v1479_v1 = vsel %vm1471_vm11, %v1454_v23, %v4994_v29  ;;  %v4999_v38 = vpop.permute.xlu0 %1459 }
 0x189   : > { %8089 = vst [vmem:[#allocation119_spill] sm:$0xff] %v4999_v38  ;;  %v1524_v45 = vmul.f32 %v4990_v43, %v1479_v1  ;;  %v1478_v32 = vsel %vm1471_vm11, %v1452_v20, %v4999_v38  ;;  %1021 = vrot.lane.b32.xlu1 %v5009_v14, %s3544_s27 }
 0x18a   : > { %v1520_v35 = vmul.f32 %v4990_v43, %v1478_v32  ;;  %1019 = vrot.lane.b32.xlu0 %v5018_v41, %s3544_s27 }
 0x18b   : > { %v5022_v1 = vpop.permute.xlu1 %1445 }
 0x18c   : > { %8090 = vst [vmem:[#allocation120_spill] sm:$0xff] %v5022_v1  ;;  %v1483_v31 = vsel %vm1471_vm11, %v5022_v1, %v1454_v23  ;;  %v5027_v25 = vpop.permute.xlu0 %1443  ;;  %v2275_v38 = vpack.c.bf16 %v1524_v45, %v1520_v35  ;;  %v5041_v23 = vld [vmem:[%s7718_s1 + $0x6] ss:$8 sm:$0xf] }
 0x18d   : > { %8091 = vst [vmem:[#allocation121_spill] sm:$0xff] %v5027_v25  ;;  %v1523_v49 = vmul.f32 %v5014_v62, %v1483_v31  ;;  %v1482_v32 = vsel %vm1471_vm11, %v5027_v25, %v1452_v20  ;;  %405 = vrot.lane.b32.xlu1 %v5009_v14, %s3543_s18  ;;  %v5046_v31 = vld [vmem:[%s7718_s1 + $0x60] ss:$8 sm:$0xf]  ;;  %v5076_v24 = vrot.slane %v5041_v23, %v3791_v22 }
 0x18e   : > { %v1519_v44 = vmul.f32 %v5014_v62, %v1482_v32  ;;  %403 = vrot.lane.b32.xlu0 %v5018_v41, %s3543_s18  ;;  %2548 = vmatprep.subr.bf16.mxu1 %v2275_v38  ;;  %v5049_v25 = vld [vmem:[%s3611_s30 + $0x30] sm:$0xff]  ;;  %v5056_v38 = vrot.slane %v5041_v23, %v3917_v58  ;;  %v5060_v32 = vrot.slane %v5046_v31, %v3791_v22 }
 0x18f   : > { %v830_v20 = vpop.permute.xlu1 %829  ;;  %v5063_v1 = vld [vmem:[%s3611_s30 + $0x10] sm:$0xff] }
 0x190   : > { %v828_v45 = vpop.permute.xlu0 %827  ;;  %v2274_v35 = vpack.c.bf16 %v1523_v49, %v1519_v44 }
 0x191   : > { %1017 = vrot.lane.b32.xlu1 %v5049_v25, %s3544_s27 }
 0x192   : > { %1015 = vrot.lane.b32.xlu0 %v5063_v1, %s3544_s27  ;;  %2549 = vmatpush2.bf16.msra.mxu1 %v2274_v35 }
 0x193   : > { %v5067_v49 = vpop.permute.xlu1 %837 }
 0x194   : > { %8092 = vst [vmem:[#allocation122_spill] sm:$0xff] %v5067_v49  ;;  %v867_v44 = vsel %vm855_vm12, %v830_v20, %v5067_v49  ;;  %v5072_v29 = vpop.permute.xlu0 %835  ;;  %v5089_v49 = vrot.slane %v5046_v31, %v3971_v50 }
 0x195   : > { %8093 = vst [vmem:[#allocation123_spill] sm:$0xff] %v5072_v29  ;;  %v908_v11 = vmul.f32 %v5056_v38, %v867_v44  ;;  %v5080_v60 = vmul.f32 %v5060_v32, %v867_v44  ;;  %v866_v35 = vsel %vm855_vm12, %v828_v45, %v5072_v29  ;;  %401 = vrot.lane.b32.xlu1 %v5049_v25, %s3543_s18 }
 0x196   : > { %v904_v6 = vmul.f32 %v5056_v38, %v866_v35  ;;  %v5093_v12 = vmul.f32 %v5060_v32, %v866_v35  ;;  %399 = vrot.lane.b32.xlu0 %v5063_v1, %s3543_s18  ;;  %s3552_s18 = smov 119  }
 0x197   : > { %8094 = vst [vmem:[#allocation124_spill] sm:$0xff] %v5080_v60  ;;  %v5097_v44 = vpop.permute.xlu1 %853 }
 0x198   : > { %8095 = vst [vmem:[#allocation125_spill] sm:$0xff] %v5093_v12  ;;  %8096 = vst [vmem:[#allocation126_spill] sm:$0xff] %v5097_v44  ;;  %v871_v19 = vsel %vm855_vm12, %v5097_v44, %v830_v20  ;;  %v5104_v15 = vpop.permute.xlu0 %851  ;;  %v2211_v5 = vpack.c.bf16 %v908_v11, %v904_v6 }
 0x199   : > { %8097 = vst [vmem:[#allocation127_spill] sm:$0xff] %v5104_v15  ;;  %v907_v40 = vmul.f32 %v5076_v24, %v871_v19  ;;  %v5108_v35 = vmul.f32 %v5089_v49, %v871_v19  ;;  %v870_v9 = vsel %vm855_vm12, %v5104_v15, %v828_v45  ;;  %933 = vrot.lane.b32.xlu1 %v5009_v14, %s3546_s8 }
 0x19a   : > { %v903_v29 = vmul.f32 %v5076_v24, %v870_v9  ;;  %v5117_v12 = vmul.f32 %v5089_v49, %v870_v9  ;;  %931 = vrot.lane.b32.xlu0 %v5018_v41, %s3546_s8  ;;  %2495 = vmatprep.subr.bf16.mxu0 %v2211_v5 }
 0x19b   : > { %8098 = vst [vmem:[#allocation128_spill] sm:$0xff] %v5108_v35  ;;  %v1450_v11 = vpop.permute.xlu1 %1449 }
 0x19c   : > { %8099 = vst [vmem:[#allocation129_spill] sm:$0xff] %v5117_v12  ;;  %v1448_v6 = vpop.permute.xlu0 %1447  ;;  %v2210_v19 = vpack.c.bf16 %v907_v40, %v903_v29 }
 0x19d   : > { %929 = vrot.lane.b32.xlu1 %v5049_v25, %s3546_s8 }
 0x19e   : > { %927 = vrot.lane.b32.xlu0 %v5063_v1, %s3546_s8  ;;  %2496 = vmatpush2.bf16.msra.mxu0 %v2210_v19 }
 0x19f   : > { %v5127_v45 = vpop.permute.xlu1 %1457 }
 0x1a0   : > { %8100 = vst [vmem:[#allocation130_spill] sm:$0xff] %v5127_v45  ;;  %v1477_v9 = vsel %vm1471_vm11, %v1450_v11, %v5127_v45  ;;  %v5132_v5 = vpop.permute.xlu0 %1455 }
 0x1a1   : > { %8101 = vst [vmem:[#allocation131_spill] sm:$0xff] %v5132_v5  ;;  %v1516_v40 = vmul.f32 %v4990_v43, %v1477_v9  ;;  %v1476_v29 = vsel %vm1471_vm11, %v1448_v6, %v5132_v5  ;;  %845 = vrot.lane.b32.xlu1 %v5009_v14, %s3548_s13 }
 0x1a2   : > { %v1512_v20 = vmul.f32 %v4990_v43, %v1476_v29  ;;  %843 = vrot.lane.b32.xlu0 %v5018_v41, %s3548_s13 }
 0x1a3   : > { %v5143_v19 = vpop.permute.xlu1 %1441 }
 0x1a4   : > { %8102 = vst [vmem:[#allocation132_spill] sm:$0xff] %v5143_v19  ;;  %v1481_v12 = vsel %vm1471_vm11, %v5143_v19, %v1450_v11  ;;  %v5148_v35 = vpop.permute.xlu0 %1439  ;;  %v2271_v9 = vpack.c.bf16 %v1516_v40, %v1512_v20  ;;  %v2267_v20 = vpack.c.bf16 %v4670_v30, %v4677_v3 }
 0x1a5   : > { %8103 = vst [vmem:[#allocation133_spill] sm:$0xff] %v5148_v35  ;;  %v1515_v45 = vmul.f32 %v5014_v62, %v1481_v12  ;;  %v1480_v5 = vsel %vm1471_vm11, %v5148_v35, %v1448_v6  ;;  %1717 = vrot.lane.b32.xlu1 %v4670_v30, %s3552_s18 }
 0x1a6   : > { %v1511_v43 = vmul.f32 %v5014_v62, %v1480_v5  ;;  %1715 = vrot.lane.b32.xlu0 %v4677_v3, %s3552_s18  ;;  %2550 = vmatprep.subr.bf16.mxu1 %v2271_v9  ;;  %v2266_v62 = vpack.c.bf16 %v4648_v16, %v4661_v37  ;;  %v2263_v5 = vpack.c.bf16 %v4585_v2, %v4597_v42 }
 0x1a7   : > { %v826_v11 = vpop.permute.xlu1 %825 }
 0x1a8   : > { %v824_v40 = vpop.permute.xlu0 %823  ;;  %v2270_v12 = vpack.c.bf16 %v1515_v45, %v1511_v43 }
 0x1a9   : > { %1725 = vrot.lane.b32.xlu1 %v5009_v14, %s3552_s18 }
 0x1aa   : > { %1723 = vrot.lane.b32.xlu0 %v5018_v41, %s3552_s18  ;;  %2551 = vmatpush2.bf16.msra.mxu1 %v2270_v12 }
 0x1ab   : > { %v5167_v6 = vpop.permute.xlu1 %833  ;;  %2552 = vmatprep.subr.bf16.mxu1 %v2267_v20 }
 0x1ac   : > { %8104 = vst [vmem:[#allocation134_spill] sm:$0xff] %v5167_v6  ;;  %v865_v45 = vsel %vm855_vm12, %v826_v11, %v5167_v6  ;;  %v5174_v29 = vpop.permute.xlu0 %831 }
 0x1ad   : > { %8105 = vst [vmem:[#allocation135_spill] sm:$0xff] %v5174_v29  ;;  %v900_v9 = vmul.f32 %v5056_v38, %v865_v45  ;;  %v5178_v43 = vmul.f32 %v5060_v32, %v865_v45  ;;  %v864_v12 = vsel %vm855_vm12, %v824_v40, %v5174_v29  ;;  %1709 = vrot.lane.b32.xlu1 %v4648_v16, %s3552_s18 }
 0x1ae   : > { %v896_v20 = vmul.f32 %v5056_v38, %v864_v12  ;;  %v5187_v35 = vmul.f32 %v5060_v32, %v864_v12  ;;  %1707 = vrot.lane.b32.xlu0 %v4661_v37, %s3552_s18  ;;  %2553 = vmatpush2.bf16.msra.mxu1 %v2266_v62  ;;  %v2262_v45 = vpack.c.bf16 %v4551_v34, %v4563_v48 }
 0x1af   : > { %8106 = vst [vmem:[#allocation136_spill] sm:$0xff] %v5178_v43  ;;  %v5191_v19 = vpop.permute.xlu1 %849  ;;  %2554 = vmatprep.subr.bf16.mxu1 %v2263_v5 }
 0x1b0   : > { %8107 = vst [vmem:[#allocation137_spill] sm:$0xff] %v5187_v35  ;;  %8108 = vst [vmem:[#allocation138_spill] sm:$0xff] %v5191_v19  ;;  %v869_v38 = vsel %vm855_vm12, %v5191_v19, %v826_v11  ;;  %v5200_v6 = vpop.permute.xlu0 %847  ;;  %v2207_v32 = vpack.c.bf16 %v900_v9, %v896_v20  ;;  %v3360_v11 = vld [vmem:[%s7718_s1 + $0x5] ss:$8 sm:$0xf] }
 0x1b1   : > { %8109 = vst [vmem:[#allocation139_spill] sm:$0xff] %v5200_v6  ;;  %v899_v12 = vmul.f32 %v5076_v24, %v869_v38  ;;  %v5204_v62 = vmul.f32 %v5089_v49, %v869_v38  ;;  %v868_v5 = vsel %vm855_vm12, %v5200_v6, %v824_v40  ;;  %841 = vrot.lane.b32.xlu1 %v5049_v25, %s3548_s13  ;;  %v3377_v40 = vld [vmem:[%s7718_s1 + $0x47] ss:$8 sm:$0xf] }
 0x1b2   : > { %v895_v29 = vmul.f32 %v5076_v24, %v868_v5  ;;  %v5213_v35 = vmul.f32 %v5089_v49, %v868_v5  ;;  %839 = vrot.lane.b32.xlu0 %v5063_v1, %s3548_s13  ;;  %2497 = vmatprep.subr.bf16.mxu0 %v2207_v32  ;;  %v794_v24 = vrot.slane %v3360_v11, %v3917_v58  ;;  %s3554_s13 = smov 120  }
 0x1b3   : > { %8110 = vst [vmem:[#allocation140_spill] sm:$0xff] %v5204_v62  ;;  %v742_v9 = vpop.permute.xlu1 %741  ;;  %2555 = vmatpush2.bf16.msra.mxu1 %v2262_v45  ;;  %v1992_v49 = vrot.slane %v3377_v40, %v3791_v22  ;;  %v2004_v43 = vrot.slane %v3377_v40, %v3971_v50  ;;  %v7863_v62 = vmov 0  }
 0x1b4   : > { %8111 = vst [vmem:[#allocation141_spill] sm:$0xff] %v5213_v35  ;;  %v740_v20 = vpop.permute.xlu0 %739  ;;  %v2206_v38 = vpack.c.bf16 %v899_v12, %v895_v29  ;;  %v790_v12 = vrot.slane %v3360_v11, %v3791_v22  ;;  %3435 = vset.pattern.permute.xlu1 %v7863_v62  ;;  %3434 = vset.pattern.permute.xlu0 %v7863_v62 }
 0x1b5   : > { %1713 = vrot.lane.b32.xlu1 %v4585_v2, %s3552_s18 }
 0x1b6   : > { %1711 = vrot.lane.b32.xlu0 %v4597_v42, %s3552_s18  ;;  %2498 = vmatpush2.bf16.msra.mxu0 %v2206_v38 }
 0x1b7   : > { %v5232_v5 = vpop.permute.xlu1 %749 }
 0x1b8   : > { %8112 = vst [vmem:[#allocation142_spill] sm:$0xff] %v5232_v5  ;;  %v779_v29 = vsel %vm767_vm13, %v742_v9, %v5232_v5  ;;  %v5237_v45 = vpop.permute.xlu0 %747 }
 0x1b9   : > { %8113 = vst [vmem:[#allocation143_spill] sm:$0xff] %v5237_v45  ;;  %v820_v6 = vmul.f32 %v794_v24, %v779_v29  ;;  %v5241_v19 = vmul.f32 %v1992_v49, %v779_v29  ;;  %v778_v32 = vsel %vm767_vm13, %v740_v20, %v5237_v45  ;;  %1721 = vrot.lane.b32.xlu1 %v5049_v25, %s3552_s18 }
 0x1ba   : > { %v816_v38 = vmul.f32 %v794_v24, %v778_v32  ;;  %v5248_v35 = vmul.f32 %v1992_v49, %v778_v32  ;;  %1719 = vrot.lane.b32.xlu0 %v5063_v1, %s3552_s18 }
 0x1bb   : > { %8114 = vst [vmem:[#allocation144_spill] sm:$0xff] %v5241_v19  ;;  %v5253_v11 = vpop.permute.xlu1 %765 }
 0x1bc   : > { %8115 = vst [vmem:[#allocation145_spill] sm:$0xff] %v5248_v35  ;;  %8116 = vst [vmem:[#allocation146_spill] sm:$0xff] %v5253_v11  ;;  %v783_v29 = vsel %vm767_vm13, %v5253_v11, %v742_v9  ;;  %v5261_v45 = vpop.permute.xlu0 %763  ;;  %v2203_v32 = vpack.c.bf16 %v820_v6, %v816_v38 }
 0x1bd   : > { %8117 = vst [vmem:[#allocation147_spill] sm:$0xff] %v5261_v45  ;;  %v819_v5 = vmul.f32 %v790_v12, %v783_v29  ;;  %v5263_v60 = vmul.f32 %v2004_v43, %v783_v29  ;;  %v782_v15 = vsel %vm767_vm13, %v5261_v45, %v740_v20  ;;  %1705 = vrot.lane.b32.xlu1 %v4551_v34, %s3552_s18 }
 0x1be   : > { %v815_v62 = vmul.f32 %v790_v12, %v782_v15  ;;  %v5270_v44 = vmul.f32 %v2004_v43, %v782_v15  ;;  %1703 = vrot.lane.b32.xlu0 %v4563_v48, %s3552_s18  ;;  %2499 = vmatprep.subr.bf16.mxu0 %v2203_v32 }
 0x1bf   : > { %8118 = vst [vmem:[#allocation148_spill] sm:$0xff] %v5263_v60  ;;  %v738_v9 = vpop.permute.xlu1 %737 }
 0x1c0   : > { %8119 = vst [vmem:[#allocation149_spill] sm:$0xff] %v5270_v44  ;;  %v736_v40 = vpop.permute.xlu0 %735  ;;  %v2202_v6 = vpack.c.bf16 %v819_v5, %v815_v62 }
 0x1c1   : > { %581 = vrot.lane.b32.xlu1 %v5009_v14, %s3539_s10 }
 0x1c2   : > { %579 = vrot.lane.b32.xlu0 %v5018_v41, %s3539_s10  ;;  %2500 = vmatpush2.bf16.msra.mxu0 %v2202_v6 }
 0x1c3   : > { %v5280_v20 = vpop.permute.xlu1 %745 }
 0x1c4   : > { %8120 = vst [vmem:[#allocation150_spill] sm:$0xff] %v5280_v20  ;;  %v777_v15 = vsel %vm767_vm13, %v738_v9, %v5280_v20  ;;  %v5285_v29 = vpop.permute.xlu0 %743 }
 0x1c5   : > { %8121 = vst [vmem:[#allocation151_spill] sm:$0xff] %v5285_v29  ;;  %v812_v32 = vmul.f32 %v794_v24, %v777_v15  ;;  %v5287_v62 = vmul.f32 %v1992_v49, %v777_v15  ;;  %v776_v5 = vsel %vm767_vm13, %v736_v40, %v5285_v29  ;;  %1629 = vrot.lane.b32.xlu1 %v4670_v30, %s3554_s13 }
 0x1c6   : > { %v808_v6 = vmul.f32 %v794_v24, %v776_v5  ;;  %v5294_v38 = vmul.f32 %v1992_v49, %v776_v5  ;;  %1627 = vrot.lane.b32.xlu0 %v4677_v3, %s3554_s13 }
 0x1c7   : > { %8122 = vst [vmem:[#allocation152_spill] sm:$0xff] %v5287_v62  ;;  %v5298_v44 = vpop.permute.xlu1 %761 }
 0x1c8   : > { %8123 = vst [vmem:[#allocation153_spill] sm:$0xff] %v5294_v38  ;;  %8124 = vst [vmem:[#allocation154_spill] sm:$0xff] %v5298_v44  ;;  %v781_v60 = vsel %vm767_vm13, %v5298_v44, %v738_v9  ;;  %v5305_v45 = vpop.permute.xlu0 %759  ;;  %v2199_v11 = vpack.c.bf16 %v812_v32, %v808_v6  ;;  %v3367_v9 = vld [vmem:[%s7718_s1 + $0x24] ss:$8 sm:$0xf] }
 0x1c9   : > { %8125 = vst [vmem:[#allocation155_spill] sm:$0xff] %v5305_v45  ;;  %v811_v35 = vmul.f32 %v790_v12, %v781_v60  ;;  %v5307_v30 = vmul.f32 %v2004_v43, %v781_v60  ;;  %v780_v24 = vsel %vm767_vm13, %v5305_v45, %v736_v40  ;;  %1637 = vrot.lane.b32.xlu1 %v5009_v14, %s3554_s13 }
 0x1ca   : > { %v807_v3 = vmul.f32 %v790_v12, %v780_v24  ;;  %v5314_v49 = vmul.f32 %v2004_v43, %v780_v24  ;;  %1635 = vrot.lane.b32.xlu0 %v5018_v41, %s3554_s13  ;;  %2501 = vmatprep.subr.bf16.mxu0 %v2199_v11  ;;  %v5327_v43 = vrot.slane %v3367_v9, %v3917_v58 }
 0x1cb   : > { %8126 = vst [vmem:[#allocation156_spill] sm:$0xff] %v5307_v30  ;;  %v1358_v60 = vpop.permute.xlu1 %1357 }
 0x1cc   : > { %8127 = vst [vmem:[#allocation157_spill] sm:$0xff] %v5314_v49  ;;  %v1356_v32 = vpop.permute.xlu0 %1355  ;;  %v2198_v5 = vpack.c.bf16 %v811_v35, %v807_v3 }
 0x1cd   : > { %1621 = vrot.lane.b32.xlu1 %v4648_v16, %s3554_s13 }
 0x1ce   : > { %1619 = vrot.lane.b32.xlu0 %v4661_v37, %s3554_s13  ;;  %2502 = vmatpush2.bf16.msra.mxu0 %v2198_v5  ;;  %v5345_v37 = vrot.slane %v3367_v9, %v3791_v22 }
 0x1cf   : > { %v5331_v12 = vpop.permute.xlu1 %1365 }
 0x1d0   : > { %8128 = vst [vmem:[#allocation158_spill] sm:$0xff] %v5331_v12  ;;  %v1395_v35 = vsel %vm1383_vm14, %v1358_v60, %v5331_v12  ;;  %v5336_v11 = vpop.permute.xlu0 %1363 }
 0x1d1   : > { %8129 = vst [vmem:[#allocation159_spill] sm:$0xff] %v5336_v11  ;;  %v1436_v6 = vmul.f32 %v5327_v43, %v1395_v35  ;;  %v1394_v16 = vsel %vm1383_vm14, %v1356_v32, %v5336_v11  ;;  %577 = vrot.lane.b32.xlu1 %v5049_v25, %s3539_s10 }
 0x1d2   : > { %v1432_v24 = vmul.f32 %v5327_v43, %v1394_v16  ;;  %575 = vrot.lane.b32.xlu0 %v5063_v1, %s3539_s10 }
 0x1d3   : > { %v5350_v3 = vpop.permute.xlu1 %1381 }
 0x1d4   : > { %8130 = vst [vmem:[#allocation160_spill] sm:$0xff] %v5350_v3  ;;  %v1399_v5 = vsel %vm1383_vm14, %v5350_v3, %v1358_v60  ;;  %v5355_v35 = vpop.permute.xlu0 %1379  ;;  %v2259_v40 = vpack.c.bf16 %v1436_v6, %v1432_v24  ;;  %v3359_v60 = vld [vmem:[%s7718_s1 + $0x4] ss:$8 sm:$0xf] }
 0x1d5   : > { %8131 = vst [vmem:[#allocation161_spill] sm:$0xff] %v5355_v35  ;;  %v1435_v15 = vmul.f32 %v5345_v37, %v1399_v5  ;;  %v1398_v9 = vsel %vm1383_vm14, %v5355_v35, %v1356_v32  ;;  %1625 = vrot.lane.b32.xlu1 %v4585_v2, %s3554_s13  ;;  %v5372_v6 = vld [vmem:[%s7718_s1 + $0x46] ss:$8 sm:$0xf] }
 0x1d6   : > { %v1431_v16 = vmul.f32 %v5345_v37, %v1398_v9  ;;  %1623 = vrot.lane.b32.xlu0 %v4597_v42, %s3554_s13  ;;  %2556 = vmatprep.subr.bf16.mxu1 %v2259_v40  ;;  %8132 = vst [vmem:[#allocation162_spill] sm:$0xff] %v5372_v6  ;;  %v5378_v42 = vrot.slane %v3359_v60, %v3917_v58 }
 0x1d7   : > { %v654_v24 = vpop.permute.xlu1 %653  ;;  %v5382_v2 = vrot.slane %v5372_v6, %v3791_v22  ;;  %v5407_v11 = vrot.slane %v5372_v6, %v3971_v50  ;;  %v3446_v6 = vld [vmem:[%s7719_s2 + $0x3c] ss:$28 sps:$4 sm:$0xff]  }
 0x1d8   : > { %v652_v32 = vpop.permute.xlu0 %651  ;;  %v2258_v5 = vpack.c.bf16 %v1435_v15, %v1431_v16  ;;  %v5394_v16 = vrot.slane %v3359_v60, %v3791_v22 }
 0x1d9   : > { %1633 = vrot.lane.b32.xlu1 %v5049_v25, %s3554_s13 }
 0x1da   : > { %1631 = vrot.lane.b32.xlu0 %v5063_v1, %s3554_s13  ;;  %2557 = vmatpush2.bf16.msra.mxu1 %v2258_v5 }
 0x1db   : > { %v5386_v40 = vpop.permute.xlu1 %661 }
 0x1dc   : > { %8133 = vst [vmem:[#allocation163_spill] sm:$0xff] %v5386_v40  ;;  %v691_v15 = vsel %vm679_vm15, %v654_v24, %v5386_v40  ;;  %v5391_v9 = vpop.permute.xlu0 %659 }
 0x1dd   : > { %8134 = vst [vmem:[#allocation164_spill] sm:$0xff] %v5391_v9  ;;  %v732_v49 = vmul.f32 %v5378_v42, %v691_v15  ;;  %v5398_v30 = vmul.f32 %v5382_v2, %v691_v15  ;;  %v690_v5 = vsel %vm679_vm15, %v652_v32, %v5391_v9  ;;  %1617 = vrot.lane.b32.xlu1 %v4551_v34, %s3554_s13 }
 0x1de   : > { %v728_v12 = vmul.f32 %v5378_v42, %v690_v5  ;;  %v5411_v60 = vmul.f32 %v5382_v2, %v690_v5  ;;  %1615 = vrot.lane.b32.xlu0 %v4563_v48, %s3554_s13 }
 0x1df   : > { %8135 = vst [vmem:[#allocation165_spill] sm:$0xff] %v5398_v30  ;;  %v5415_v15 = vpop.permute.xlu1 %677 }
 0x1e0   : > { %8136 = vst [vmem:[#allocation166_spill] sm:$0xff] %v5411_v60  ;;  %8137 = vst [vmem:[#allocation167_spill] sm:$0xff] %v5415_v15  ;;  %v695_v34 = vsel %vm679_vm15, %v5415_v15, %v654_v24  ;;  %v5422_v3 = vpop.permute.xlu0 %675  ;;  %v2195_v45 = vpack.c.bf16 %v732_v49, %v728_v12 }
 0x1e1   : > { %8138 = vst [vmem:[#allocation168_spill] sm:$0xff] %v5422_v3  ;;  %v731_v44 = vmul.f32 %v5394_v16, %v695_v34  ;;  %v5426_v5 = vmul.f32 %v5407_v11, %v695_v34  ;;  %v694_v48 = vsel %vm679_vm15, %v5422_v3, %v652_v32  ;;  %493 = vrot.lane.b32.xlu1 %v5009_v14, %s3541_s12 }
 0x1e2   : > { %v727_v35 = vmul.f32 %v5394_v16, %v694_v48  ;;  %v5435_v60 = vmul.f32 %v5407_v11, %v694_v48  ;;  %491 = vrot.lane.b32.xlu0 %v5018_v41, %s3541_s12  ;;  %2503 = vmatprep.subr.bf16.mxu0 %v2195_v45 }
 0x1e3   : > { %8139 = vst [vmem:[#allocation169_spill] sm:$0xff] %v5426_v5  ;;  %v1354_v49 = vpop.permute.xlu1 %1353 }
 0x1e4   : > { %8140 = vst [vmem:[#allocation170_spill] sm:$0xff] %v5435_v60  ;;  %v1352_v12 = vpop.permute.xlu0 %1351  ;;  %v2194_v24 = vpack.c.bf16 %v731_v44, %v727_v35 }
 0x1e5   : > { %757 = vrot.lane.b32.xlu1 %v5009_v14, %s3549_s21 }
 0x1e6   : > { %755 = vrot.lane.b32.xlu0 %v5018_v41, %s3549_s21  ;;  %2504 = vmatpush2.bf16.msra.mxu0 %v2194_v24 }
 0x1e7   : > { %v5445_v32 = vpop.permute.xlu1 %1361 }
 0x1e8   : > { %8141 = vst [vmem:[#allocation171_spill] sm:$0xff] %v5445_v32  ;;  %v1393_v48 = vsel %vm1383_vm14, %v1354_v49, %v5445_v32  ;;  %v5450_v45 = vpop.permute.xlu0 %1359 }
 0x1e9   : > { %8142 = vst [vmem:[#allocation172_spill] sm:$0xff] %v5450_v45  ;;  %v1428_v44 = vmul.f32 %v5327_v43, %v1393_v48  ;;  %v1392_v35 = vsel %vm1383_vm14, %v1352_v12, %v5450_v45  ;;  %489 = vrot.lane.b32.xlu1 %v5049_v25, %s3541_s12 }
 0x1ea   : > { %v1424_v34 = vmul.f32 %v5327_v43, %v1392_v35  ;;  %487 = vrot.lane.b32.xlu0 %v5063_v1, %s3541_s12 }
 0x1eb   : > { %v5461_v24 = vpop.permute.xlu1 %1377 }
 0x1ec   : > { %8143 = vst [vmem:[#allocation173_spill] sm:$0xff] %v5461_v24  ;;  %v1397_v60 = vsel %vm1383_vm14, %v5461_v24, %v1354_v49  ;;  %v5466_v5 = vpop.permute.xlu0 %1375  ;;  %v2255_v48 = vpack.c.bf16 %v1428_v44, %v1424_v34  ;;  %v5480_v49 = vld [vmem:[%s7718_s1 + $0x42] ss:$8 sm:$0xf] }
 0x1ed   : > { %8144 = vst [vmem:[#allocation174_spill] sm:$0xff] %v5466_v5  ;;  %v1427_v32 = vmul.f32 %v5345_v37, %v1397_v60  ;;  %v1396_v45 = vsel %vm1383_vm14, %v5466_v5, %v1352_v12  ;;  %753 = vrot.lane.b32.xlu1 %v5049_v25, %s3549_s21  ;;  %8145 = vst [vmem:[#allocation175_spill] sm:$0xff] %v5480_v49  ;;  %v1801_v60 = vrot.slane %v5480_v49, %v3917_v58 }
 0x1ee   : > { %v1423_v43 = vmul.f32 %v5345_v37, %v1396_v45  ;;  %751 = vrot.lane.b32.xlu0 %v5063_v1, %s3549_s21  ;;  %2558 = vmatprep.subr.bf16.mxu1 %v2255_v48  ;;  %v3436_v37 = vld [vmem:[%s7719_s2 + $0x8] ss:$28 sps:$4 sm:$0xff]  }
 0x1ef   : > { %v650_v34 = vpop.permute.xlu1 %649  ;;  %v3442_v45 = vld [vmem:[%s7719_s2 + $0x44] ss:$28 sps:$4 sm:$0xff]   ;;  %v5495_v35 = vmul.f32 %v1801_v60, %v3870_v46  ;;  %v5506_v5 = vmul.f32 %v1801_v60, %v3901_v54 }
 0x1f0   : > { %v648_v44 = vpop.permute.xlu0 %647  ;;  %v2254_v12 = vpack.c.bf16 %v1427_v32, %v1423_v43  ;;  %v5498_v32 = vmul.f32 %v1801_v60, %v3875_v47  ;;  %v5503_v43 = vmul.f32 %v1801_v60, %v3896_v53 }
 0x1f1   : > { %669 = vrot.lane.b32.xlu1 %v5009_v14, %s3551_s20 }
 0x1f2   : > { %667 = vrot.lane.b32.xlu0 %v5018_v41, %s3551_s20  ;;  %2559 = vmatpush2.bf16.msra.mxu1 %v2254_v12 }
 0x1f3   : > { %v5500_v48 = vpop.permute.xlu1 %657 }
 0x1f4   : > { %8146 = vst [vmem:[#allocation176_spill] sm:$0xff] %v5500_v48  ;;  %v689_v12 = vsel %vm679_vm15, %v650_v34, %v5500_v48  ;;  %v5511_v24 = vpop.permute.xlu0 %655 }
 0x1f5   : > { %8147 = vst [vmem:[#allocation177_spill] sm:$0xff] %v5511_v24  ;;  %v724_v46 = vmul.f32 %v5378_v42, %v689_v12  ;;  %v5515_v3 = vmul.f32 %v5382_v2, %v689_v12  ;;  %v688_v47 = vsel %vm679_vm15, %v648_v44, %v5511_v24  ;;  %665 = vrot.lane.b32.xlu1 %v5049_v25, %s3551_s20 }
 0x1f6   : > { %2561 = vmatmul.mubr.bf16.vlgmr.msra.gmra.mxu1 %v3436_v37  ;;  %v720_v53 = vmul.f32 %v5378_v42, %v688_v47  ;;  %v5524_v54 = vmul.f32 %v5382_v2, %v688_v47  ;;  %663 = vrot.lane.b32.xlu0 %v5063_v1, %s3551_s20 }
 0x1f7   : > { %8148 = vst [vmem:[#allocation178_spill] sm:$0xff] %v5515_v3  ;;  %2570 = vmatprep.mubr.bf16.mxu1 %v3442_v45  ;;  %v5528_v60 = vpop.permute.xlu1 %673  ;;  %v3476_v3 = vld [vmem:[%s7718_s1 + $0x43] ss:$8 sm:$0xf] }
 0x1f8   : > { %8149 = vst [vmem:[#allocation179_spill] sm:$0xff] %v5524_v54  ;;  %8150 = vst [vmem:[#allocation180_spill] sm:$0xff] %v5528_v60  ;;  %v693_v37 = vsel %vm679_vm15, %v5528_v60, %v650_v34  ;;  %v5537_v42 = vpop.permute.xlu0 %671  ;;  %v2191_v2 = vpack.c.bf16 %v724_v46, %v720_v53  ;;  %v3473_v34 = vld [vmem:[%s7718_s1 + $0x20] ss:$8 sm:$0xf]  ;;  %v5598_v30 = vrot.slane %v3476_v3, %v3917_v58 }
 0x1f9   : > { %8151 = vst [vmem:[#allocation181_spill] sm:$0xff] %v5537_v42  ;;  %v723_v45 = vmul.f32 %v5394_v16, %v693_v37  ;;  %v5543_v49 = vmul.f32 %v5407_v11, %v693_v37  ;;  %v692_v12 = vsel %vm679_vm15, %v5537_v42, %v648_v44  ;;  %1285 = vrot.lane.b32.xlu1 %v5009_v14, %s3538_s9  ;;  %v3474_v37 = vld [vmem:[%s7718_s1 + $0x62] ss:$8 sm:$0xf] }
 0x1fa   : > { %v5554_v46 = vrot.slane %v3473_v34, %v3828_v33  ;;  %v719_v53 = vmul.f32 %v5394_v16, %v692_v12  ;;  %v5558_v15 = vmul.f32 %v5407_v11, %v692_v12  ;;  %1283 = vrot.lane.b32.xlu0 %v5018_v41, %s3538_s9  ;;  %2505 = vmatprep.subr.bf16.mxu0 %v2191_v2  ;;  %v3475_v11 = vld [vmem:[%s7718_s1 + $0x1] ss:$8 sm:$0xf] }
 0x1fb   : > { %8152 = vst [vmem:[#allocation182_spill] sm:$0xff] %v5543_v49  ;;  %v5563_v44 = vrot.slane %v3473_v34, %v3971_v50  ;;  %v5569_v47 = vrot.slane %v3474_v37, %v3917_v58  ;;  %v5572_v42 = vrot.slane %v3474_v37, %v3828_v33  ;;  %v5574_v16 = vpop.permute.xlu1 %1021  ;;  %v5580_v12 = vrot.slane %v3475_v11, %v3828_v33  ;;  %v3444_v34 = vld [vmem:[%s7719_s2 + $0x40] ss:$28 sps:$4 sm:$0xff]  }
 0x1fc   : > { %8153 = vst [vmem:[#allocation183_spill] sm:$0xff] %v5558_v15  ;;  %8156 = vst [vmem:[#allocation186_spill] sm:$0xff] %v5574_v16  ;;  %v5583_v2 = vrot.slane %v3475_v11, %v3971_v50  ;;  %v1039_v37 = vsel %vm1031_vm8, %v4567_v10, %v5574_v16  ;;  %v5592_v60 = vpop.permute.xlu0 %1019  ;;  %v2190_v54 = vpack.c.bf16 %v723_v45, %v719_v53 }
 0x1fd   : > { %8154 = vst [vmem:[#allocation184_spill] sm:$0xff] %v5563_v44  ;;  %8155 = vst [vmem:[#allocation185_spill] sm:$0xff] %v5572_v42  ;;  %v5603_v38 = vmul.f32 %v5554_v46, %v1039_v37  ;;  %1281 = vrot.lane.b32.xlu1 %v5049_v25, %s3538_s9  ;;  %v5608_v10 = vrot.slane %v3476_v3, %v3828_v33  ;;  %v5612_v45 = vrot.slane %v4816_v7, %v3828_v33 }
 0x1fe   : > { %8157 = vst [vmem:[#allocation187_spill] sm:$0xff] %v5592_v60  ;;  %v5616_v53 = vrot.slane %v4816_v7, %v3971_v50  ;;  %v1038_v11 = vsel %vm1031_vm8, %v4572_v26, %v5592_v60  ;;  %1279 = vrot.lane.b32.xlu0 %v5063_v1, %s3538_s9  ;;  %2506 = vmatpush2.bf16.msra.mxu0 %v2190_v54  ;;  %v5635_v7 = vld [vmem:[%s7718_s1 + $0x41] ss:$8 sm:$0xf] }
 0x1ff   : > { %8158 = vst [vmem:[#allocation188_spill] sm:$0xff] %v5603_v38  ;;  %v5626_v3 = vrot.slane %v4821_v36, %v3917_v58  ;;  %v5630_v15 = vrot.slane %v4821_v36, %v3828_v33  ;;  %v5638_v49 = vmul.f32 %v5554_v46, %v1038_v11  ;;  %v406_v26 = vpop.permute.xlu1 %405  ;;  %v3439_v54 = vld [vmem:[%s7719_s2] ss:$28 sps:$4 sm:$0xff]   ;;  %v5645_v60 = vrot.slane %v5041_v23, %v3828_v33 }
 0x200   : > { %v5649_v36 = vrot.slane %v5041_v23, %v3971_v50  ;;  %v5653_v16 = vrot.slane %v5046_v31, %v3917_v58  ;;  %2571 = vmatmul.mubr.bf16.gmra.mxu1 %v3444_v34  ;;  %v2139_v62 = vmul.f32 %v5569_v47, %v1039_v37  ;;  %v2135_v24 = vmul.f32 %v5569_v47, %v1038_v11  ;;  %v404_v40 = vpop.permute.xlu0 %403 }
 0x201   : > { %8159 = vst [vmem:[#allocation189_spill] sm:$0xff] %v5638_v49  ;;  %v419_v48 = vsel %vm415_vm7, %v406_v26, %v4422_v56  ;;  %v423_v9 = vsel %vm415_vm7, %v4394_v52, %v406_v26  ;;  %v8160_v23 = vmov 0   ;;  %1197 = vrot.lane.b32.xlu1 %v5009_v14, %s3540_s11  ;;  %v5676_v56 = vrot.slane %v5046_v31, %v3828_v33 }
 0x202   : > { %2666 = vmatprep.mubr.bf16.mxu1 %v8160_v23  ;;  %v5670_v37 = vmul.f32 %v5580_v12, %v423_v9  ;;  %v5680_v52 = vrot.slane %v5635_v7, %v3917_v58  ;;  %v5683_v11 = vmul.f32 %v5583_v2, %v419_v48  ;;  %v5686_v26 = vmul.f32 %v5608_v10, %v419_v48 }
 0x203   : > { %v418_v34 = vsel %vm415_vm7, %v404_v40, %v4429_v28  ;;  %v422_v49 = vsel %vm415_vm7, %v4399_v51, %v404_v40  ;;  %1195 = vrot.lane.b32.xlu0 %v5018_v41, %s3540_s11  ;;  %v1866_v31 = vmul.f32 %v5598_v30, %v423_v9  ;;  %v1018_v29 = vpop.permute.xlu1 %1017  ;;  %2508 = vmatmul.mubr.bf16.vlgmr.msra.gmra.mxu0 %v3439_v54 }
 0x204   : > { %8161 = vst [vmem:[#allocation190_spill] sm:$0xff] %v5686_v26  ;;  %v5698_v38 = vmul.f32 %v5580_v12, %v422_v49  ;;  %v5701_v19 = vmul.f32 %v5583_v2, %v418_v34  ;;  %v5704_v48 = vmul.f32 %v5608_v10, %v418_v34  ;;  %v1862_v28 = vmul.f32 %v5598_v30, %v422_v49  ;;  %v1016_v9 = vpop.permute.xlu0 %1015  ;;  %v8185_v34 = vld [vmem:[#allocation111_spill] sm:$0xff] }
 0x205   : > { %v2371_v20 = vpack.c.bf16 %v2139_v62, %v2135_v24  ;;  %v1033_v51 = vsel %vm1031_vm8, %v1018_v29, %v4709_v55  ;;  %v1037_v40 = vsel %vm1031_vm8, %v4681_v27, %v1018_v29  ;;  %2517 = vmatprep.mubr.bf16.mxu0 %v3446_v6  ;;  %1193 = vrot.lane.b32.xlu1 %v5049_v25, %s3540_s11 }
 0x206   : > { %8162 = vst [vmem:[#allocation191_spill] sm:$0xff] %v5704_v48  ;;  %v5718_v54 = vmul.f32 %v5554_v46, %v1037_v40  ;;  %v5721_v62 = vmul.f32 %v5563_v44, %v1033_v51  ;;  %v2131_v27 = vmul.f32 %v5569_v47, %v1037_v40  ;;  %v5727_v55 = vmul.f32 %v5572_v42, %v1033_v51 }
 0x207   : > { %2638 = vmatprep.subr.bf16.mxu1 %v2371_v20  ;;  %v1032_v29 = vsel %vm1031_vm8, %v1016_v9, %v4716_v39  ;;  %v1036_v6 = vsel %vm1031_vm8, %v4686_v4, %v1016_v9  ;;  %v8166_v24 = vpack.c.bf16 %v4579_v18, %v4594_v13  ;;  %v402_v39 = vpop.permute.xlu1 %401  ;;  %1191 = vrot.lane.b32.xlu0 %v5063_v1, %s3540_s11 }
 0x208   : > { %8163 = vst [vmem:[#allocation192_spill] sm:$0xff] %v5718_v54  ;;  %8164 = vst [vmem:[#allocation193_spill] sm:$0xff] %v5721_v62  ;;  %v5739_v49 = vmul.f32 %v5554_v46, %v1036_v6  ;;  %v5742_v20 = vmul.f32 %v5563_v44, %v1032_v29  ;;  %v2127_v51 = vmul.f32 %v5569_v47, %v1036_v6  ;;  %v400_v46 = vpop.permute.xlu0 %399  ;;  %v3448_v47 = vld [vmem:[%s7719_s2 + $0x38] ss:$28 sps:$4 sm:$0xff]   ;;  %v8243_v54 = vld [vmem:[#allocation16_spill] sm:$0xff] }
 0x209   : > { %8165 = vst [vmem:[#allocation194_spill] sm:$0xff] %v5727_v55  ;;  %2639 = vmatpush1.bf16.msra.mxu1 %v8166_v24  ;;  %v5746_v40 = vmul.f32 %v5572_v42, %v1032_v29  ;;  %v2315_v4 = vpack.c.bf16 %v1866_v31, %v1862_v28  ;;  %v417_v13 = vsel %vm415_vm7, %v402_v39, %v4514_v17  ;;  %v8239_v42 = vld [vmem:[#allocation22_spill] sm:$0xff]  ;;  %v8286_v44 = vld [vmem:[#allocation164_spill] sm:$0xff] }
 0x20a   : > { %8167 = vst [vmem:[#allocation195_spill] sm:$0xff] %v5739_v49  ;;  %8168 = vst [vmem:[#allocation196_spill] sm:$0xff] %v5742_v20  ;;  %v421_v18 = vsel %vm415_vm7, %v4488_v59, %v402_v39  ;;  %v5769_v28 = vmul.f32 %v5583_v2, %v417_v13  ;;  %1109 = vrot.lane.b32.xlu1 %v5009_v14, %s3542_s15  ;;  %v5775_v6 = vmul.f32 %v5608_v10, %v417_v13  ;;  %v8249_v20 = vld [vmem:[#allocation33_spill] sm:$0xff] }
 0x20b   : > { %8169 = vst [vmem:[#allocation197_spill] sm:$0xff] %v5746_v40  ;;  %v5766_v17 = vmul.f32 %v5580_v12, %v421_v18  ;;  %2581 = vmatprep.subr.bf16.mxu0 %v2315_v4  ;;  %v1858_v59 = vmul.f32 %v5598_v30, %v421_v18  ;;  %v416_v24 = vsel %vm415_vm7, %v400_v46, %v4523_v8  ;;  %v934_v8 = vpop.permute.xlu1 %933 }
 0x20c   : > { %8170 = vst [vmem:[#allocation198_spill] sm:$0xff] %v5775_v6  ;;  %v420_v39 = vsel %vm415_vm7, %v4493_v63, %v400_v46  ;;  %v8171_v31 = vpack.c.bf16 %v4406_v0, %v4418_v61  ;;  %v5790_v4 = vmul.f32 %v5583_v2, %v416_v24  ;;  %v5794_v18 = vmul.f32 %v5608_v10, %v416_v24  ;;  %v8173_v61 = vld [vmem:[#allocation99_spill] sm:$0xff]  ;;  %v932_v2 = vpop.permute.xlu0 %931 }
 0x20d   : > { %v5787_v14 = vmul.f32 %v5580_v12, %v420_v39  ;;  %v1854_v13 = vmul.f32 %v5598_v30, %v420_v39  ;;  %1107 = vrot.lane.b32.xlu0 %v5018_v41, %s3542_s15  ;;  %v2367_v63 = vpack.c.bf16 %v2131_v27, %v2127_v51  ;;  %v947_v0 = vsel %vm943_vm10, %v934_v8, %v4866_v57  ;;  %v8175_v51 = vld [vmem:[#allocation103_spill] sm:$0xff] }
 0x20e   : > { %2582 = vmatpush1.bf16.msra.mxu0 %v8171_v31  ;;  %8172 = vst [vmem:[#allocation199_spill] sm:$0xff] %v5794_v18  ;;  %v951_v12 = vsel %vm943_vm10, %v8173_v61, %v934_v8  ;;  %v5812_v41 = vmul.f32 %v5616_v53, %v947_v0  ;;  %1105 = vrot.lane.b32.xlu1 %v5049_v25, %s3542_s15  ;;  %v8176_v31 = vld [vmem:[#allocation100_spill] sm:$0xff]  ;;  %v8177_v39 = vld [vmem:[#allocation87_spill] sm:$0xff]  ;;  %vm2468_vm7 = vcmask 785408  }
 0x20f   : > { %2518 = vmatmul.mubr.bf16.gmra.mxu0 %v3448_v47  ;;  %v5809_v46 = vmul.f32 %v5612_v45, %v951_v12  ;;  %2640 = vmatprep.subr.bf16.mxu1 %v2367_v63  ;;  %v2100_v57 = vmul.f32 %v5626_v3, %v951_v12  ;;  %v5818_v27 = vmul.f32 %v5630_v15, %v947_v0  ;;  %v8178_v8 = vld [vmem:[#allocation88_spill] sm:$0xff]  ;;  %v8186_v30 = vld [vmem:[#allocation75_spill] sm:$0xff] }
 0x210   : > { %v946_v47 = vsel %vm943_vm10, %v932_v2, %v8175_v51  ;;  %v950_v24 = vsel %vm943_vm10, %v8176_v31, %v932_v2  ;;  %v8179_v61 = vpack.c.bf16 %v8177_v39, %v8178_v8  ;;  %v930_v51 = vpop.permute.xlu1 %929  ;;  %v2311_v2 = vpack.c.bf16 %v1858_v59, %v1854_v13  ;;  %v8181_v31 = vld [vmem:[#allocation114_spill] sm:$0xff]  ;;  %v928_v29 = vpop.permute.xlu0 %927  ;;  %v5860_v13 = vld [vmem:[%s3611_s30 + $0x78] sm:$0xff] }
 0x211   : > { %8174 = vst [vmem:[#allocation99_spill] sm:$0xff] %v5818_v27  ;;  %v5830_v25 = vmul.f32 %v5612_v45, %v950_v24  ;;  %v5833_v63 = vmul.f32 %v5616_v53, %v946_v47  ;;  %v2096_v0 = vmul.f32 %v5626_v3, %v950_v24  ;;  %v5837_v12 = vmul.f32 %v5630_v15, %v946_v47  ;;  %v8182_v8 = vld [vmem:[#allocation110_spill] sm:$0xff]  ;;  %v8187_v24 = vld [vmem:[#allocation76_spill] sm:$0xff]  ;;  %v8266_v18 = vld [vmem:[#allocation143_spill] sm:$0xff] }
 0x212   : > { %2641 = vmatpush1.bf16.msra.mxu1 %v8179_v61  ;;  %1103 = vrot.lane.b32.xlu0 %v5063_v1, %s3542_s15  ;;  %v945_v39 = vsel %vm943_vm10, %v930_v51, %v8181_v31  ;;  %v949_v61 = vsel %vm943_vm10, %v8182_v8, %v930_v51  ;;  %v8184_v8 = vld [vmem:[#allocation115_spill] sm:$0xff]  ;;  %v948_v47 = vsel %vm943_vm10, %v8185_v34, %v928_v29 }
 0x213   : > { %8180 = vst [vmem:[#allocation103_spill] sm:$0xff] %v5837_v12  ;;  %v5854_v1 = vmul.f32 %v5612_v45, %v949_v61  ;;  %v5857_v59 = vmul.f32 %v5616_v53, %v945_v39  ;;  %1557 = vrot.lane.b32.xlu1 %v5860_v13, %s3545_s19  ;;  %2583 = vmatprep.subr.bf16.mxu0 %v2311_v2 }
 0x214   : > { %v2092_v51 = vmul.f32 %v5626_v3, %v949_v61  ;;  %v5866_v31 = vmul.f32 %v5630_v15, %v945_v39  ;;  %v944_v10 = vsel %vm943_vm10, %v928_v29, %v8184_v8  ;;  %v8188_v58 = vpack.c.bf16 %v8186_v30, %v8187_v24  ;;  %v846_v8 = vpop.permute.xlu1 %845  ;;  %v5891_v29 = vld [vmem:[%s3611_s30 + $0x58] sm:$0xff]  ;;  %v8192_v30 = vld [vmem:[#allocation122_spill] sm:$0xff] }
 0x215   : > { %v5878_v9 = vmul.f32 %v5612_v45, %v948_v47  ;;  %v5881_v2 = vmul.f32 %v5616_v53, %v944_v10  ;;  %v2088_v39 = vmul.f32 %v5626_v3, %v948_v47  ;;  %v5885_v61 = vmul.f32 %v5630_v15, %v944_v10  ;;  %v8191_v45 = vld [vmem:[#allocation126_spill] sm:$0xff]  ;;  %v844_v3 = vpop.permute.xlu0 %843 }
 0x216   : > { %8183 = vst [vmem:[#allocation100_spill] sm:$0xff] %v5866_v31  ;;  %2584 = vmatpush1.bf16.msra.mxu0 %v8188_v58  ;;  %v8190_v34 = vpack.c.bf16 %v5503_v43, %v5506_v5  ;;  %1555 = vrot.lane.b32.xlu0 %v5891_v29, %s3545_s19  ;;  %v2363_v58 = vpack.c.bf16 %v2100_v57, %v2096_v0  ;;  %v5912_v0 = vld [vmem:[%s3611_s30 + $0x38] sm:$0xff]  ;;  %v3451_v5 = vld [vmem:[%s7719_s2 + $0x14] ss:$28 sps:$4 sm:$0xff]   ;;  %vm1647_vm10 = vcmp.lt.s32.totalorder %v3788_v21, 120  ;;  %v8462_v21 = vld [vmem:[#allocation185_spill] sm:$0xff] }
 0x217   : > { %8189 = vst [vmem:[#allocation87_spill] sm:$0xff] %v5885_v61  ;;  %v859_v53 = vsel %vm855_vm12, %v846_v8, %v8191_v45  ;;  %v863_v15 = vsel %vm855_vm12, %v8192_v30, %v846_v8  ;;  %1553 = vrot.lane.b32.xlu1 %v5912_v0, %s3545_s19  ;;  %v8194_v8 = vld [vmem:[#allocation127_spill] sm:$0xff]  ;;  %v8196_v10 = vld [vmem:[#allocation6_spill] sm:$0xff]  ;;  %v8202_v27 = vpack.c.bf16 %v5495_v35, %v5498_v32 }
 0x218   : > { %2585 = vmatprep.subr.bf16.mxu0 %v8190_v34  ;;  %v5906_v43 = vmul.f32 %v5645_v60, %v863_v15  ;;  %v5909_v57 = vmul.f32 %v5649_v36, %v859_v53  ;;  %2642 = vmatprep.subr.bf16.mxu1 %v2363_v58  ;;  %v2061_v24 = vmul.f32 %v5653_v16, %v863_v15  ;;  %v8195_v45 = vld [vmem:[#allocation123_spill] sm:$0xff]  ;;  %v8199_v15 = vld [vmem:[#allocation101_spill] sm:$0xff]  ;;  %v8200_v31 = vld [vmem:[#allocation102_spill] sm:$0xff] }
 0x219   : > { %v5918_v47 = vmul.f32 %v5676_v56, %v859_v53  ;;  %v858_v34 = vsel %vm855_vm12, %v844_v3, %v8194_v8  ;;  %v862_v30 = vsel %vm855_vm12, %v8195_v45, %v844_v3  ;;  %v8197_v61 = vld [vmem:[#allocation7_spill] sm:$0xff]  ;;  %v8201_v53 = vpack.c.bf16 %v8199_v15, %v8200_v31  ;;  %v1718_v45 = vpop.permute.xlu1 %1717  ;;  %2613 = vmatprep.mubr.bf16.mxu0 %v3451_v5  ;;  %v8207_v15 = vld [vmem:[#allocation112_spill] sm:$0xff] }
 0x21a   : > { %v8198_v58 = vpack.c.bf16 %v8196_v10, %v8197_v61  ;;  %v5936_v12 = vmul.f32 %v5645_v60, %v862_v30  ;;  %v5939_v8 = vmul.f32 %v5649_v36, %v858_v34  ;;  %v2057_v3 = vmul.f32 %v5653_v16, %v862_v30  ;;  %v5949_v10 = vld [vmem:[%s3611_s30 + $0x18] sm:$0xff]  ;;  %v8208_v30 = vld [vmem:[#allocation113_spill] sm:$0xff] }
 0x21b   : > { %8193 = vst [vmem:[#allocation88_spill] sm:$0xff] %v5918_v47  ;;  %2643 = vmatpush1.bf16.msra.mxu1 %v8201_v53  ;;  %v5946_v61 = vmul.f32 %v5676_v56, %v858_v34  ;;  %1551 = vrot.lane.b32.xlu0 %v5949_v10, %s3545_s19  ;;  %v2359_v31 = vpack.c.bf16 %v2092_v51, %v2088_v39  ;;  %v8204_v39 = vld [vmem:[#allocation4_spill] sm:$0xff]  ;;  %v8205_v34 = vld [vmem:[#allocation5_spill] sm:$0xff] }
 0x21c   : > { %2586 = vmatpush1.bf16.msra.mxu0 %v8198_v58  ;;  %v1716_v58 = vpop.permute.xlu0 %1715  ;;  %1733 = vrot.lane.b32.xlu1 %v5860_v13, %s3552_s18  ;;  %v2355_v35 = vpack.c.bf16 %v2061_v24, %v2057_v3  ;;  %v8206_v53 = vpack.c.bf16 %v8204_v39, %v8205_v34  ;;  %v8209_v40 = vpack.c.bf16 %v8207_v15, %v8208_v30  ;;  %v8213_v34 = vld [vmem:[#allocation125_spill] sm:$0xff] }
 0x21d   : > { %2587 = vmatprep.subr.bf16.mxu0 %v8202_v27  ;;  %8203 = vst [vmem:[#allocation114_spill] sm:$0xff] %v5946_v61  ;;  %2644 = vmatprep.subr.bf16.mxu1 %v2359_v31  ;;  %v5972_v24 = vpop.permute.xlu1 %1725  ;;  %v5991_v30 = vrot.slane %v5635_v7, %v3791_v22 }
 0x21e   : > { %8210 = vst [vmem:[#allocation110_spill] sm:$0xff] %v5972_v24  ;;  %v1743_v3 = vsel %vm1735_vm0, %v1718_v45, %v5972_v24 }
 0x21f   : > { %2645 = vmatpush1.bf16.msra.mxu1 %v8209_v40  ;;  %1731 = vrot.lane.b32.xlu0 %v5891_v29, %s3552_s18  ;;  %v1788_v39 = vmul.f32 %v5680_v52, %v1743_v3 }
 0x220   : > { %2588 = vmatpush1.bf16.msra.mxu0 %v8206_v53  ;;  %2646 = vmatprep.subr.bf16.mxu1 %v2355_v35  ;;  %v5979_v31 = vpop.permute.xlu0 %1723  ;;  %v8212_v35 = vld [vmem:[#allocation124_spill] sm:$0xff] }
 0x221   : > { %8211 = vst [vmem:[#allocation115_spill] sm:$0xff] %v5979_v31  ;;  %v1742_v40 = vsel %vm1735_vm0, %v1716_v58, %v5979_v31  ;;  %1469 = vrot.lane.b32.xlu1 %v5860_v13, %s3547_s29  ;;  %v8214_v53 = vpack.c.bf16 %v8212_v35, %v8213_v34  ;;  %v5997_v51 = vpop.permute.xlu1 %1709 }
 0x222   : > { %v1784_v15 = vmul.f32 %v5680_v52, %v1742_v40  ;;  %8215 = vst [vmem:[#allocation111_spill] sm:$0xff] %v5997_v51  ;;  %v1747_v3 = vsel %vm1735_vm0, %v5997_v51, %v1718_v45  ;;  %v8217_v45 = vld [vmem:[#allocation138_spill] sm:$0xff] }
 0x223   : > { %2647 = vmatpush1.bf16.msra.mxu1 %v8214_v53  ;;  %1467 = vrot.lane.b32.xlu0 %v5891_v29, %s3547_s29  ;;  %v1787_v7 = vmul.f32 %v5991_v30, %v1747_v3 }
 0x224   : > { %v6004_v5 = vpop.permute.xlu0 %1707  ;;  %v2299_v27 = vpack.c.bf16 %v1788_v39, %v1784_v15  ;;  %v8218_v15 = vld [vmem:[#allocation134_spill] sm:$0xff] }
 0x225   : > { %8216 = vst [vmem:[#allocation75_spill] sm:$0xff] %v6004_v5  ;;  %v1746_v40 = vsel %vm1735_vm0, %v6004_v5, %v1716_v58  ;;  %1729 = vrot.lane.b32.xlu1 %v5912_v0, %s3552_s18  ;;  %v842_v34 = vpop.permute.xlu1 %841 }
 0x226   : > { %v1783_v35 = vmul.f32 %v5991_v30, %v1746_v40  ;;  %2589 = vmatprep.subr.bf16.mxu0 %v2299_v27  ;;  %v857_v39 = vsel %vm855_vm12, %v842_v34, %v8217_v45  ;;  %v861_v3 = vsel %vm855_vm12, %v8218_v15, %v842_v34  ;;  %v8223_v34 = vld [vmem:[#allocation135_spill] sm:$0xff] }
 0x227   : > { %1727 = vrot.lane.b32.xlu0 %v5949_v10, %s3552_s18  ;;  %v6022_v32 = vmul.f32 %v5645_v60, %v861_v3  ;;  %v6025_v40 = vmul.f32 %v5649_v36, %v857_v39  ;;  %v2053_v27 = vmul.f32 %v5653_v16, %v861_v3 }
 0x228   : > { %v2298_v53 = vpack.c.bf16 %v1787_v7, %v1783_v35  ;;  %v840_v58 = vpop.permute.xlu0 %839  ;;  %v6029_v7 = vmul.f32 %v5676_v56, %v857_v39  ;;  %v8222_v35 = vld [vmem:[#allocation139_spill] sm:$0xff] }
 0x229   : > { %8219 = vst [vmem:[#allocation76_spill] sm:$0xff] %v6022_v32  ;;  %8220 = vst [vmem:[#allocation126_spill] sm:$0xff] %v6025_v40  ;;  %1465 = vrot.lane.b32.xlu1 %v5912_v0, %s3547_s29  ;;  %v856_v45 = vsel %vm855_vm12, %v840_v58, %v8222_v35  ;;  %v860_v15 = vsel %vm855_vm12, %v8223_v34, %v840_v58  ;;  %v1714_v55 = vpop.permute.xlu1 %1713  ;;  %v8229_v34 = vld [vmem:[#allocation137_spill] sm:$0xff]  ;;  %v8293_v40 = vld [vmem:[#allocation8_spill] sm:$0xff] }
 0x22a   : > { %8221 = vst [vmem:[#allocation122_spill] sm:$0xff] %v6029_v7  ;;  %2590 = vmatpush1.bf16.msra.mxu0 %v2298_v53  ;;  %v6040_v61 = vmul.f32 %v5645_v60, %v860_v15  ;;  %v6043_v3 = vmul.f32 %v5649_v36, %v856_v45  ;;  %v2049_v39 = vmul.f32 %v5653_v16, %v860_v15  ;;  %v3445_v53 = vld [vmem:[%s7719_s2 + $0x18] ss:$28 sps:$4 sm:$0xff]   ;;  %v8235_v58 = vld [vmem:[#allocation25_spill] sm:$0xff] }
 0x22b   : > { %v6047_v47 = vmul.f32 %v5676_v56, %v856_v45  ;;  %1463 = vrot.lane.b32.xlu0 %v5949_v10, %s3547_s29  ;;  %v8228_v45 = vld [vmem:[#allocation136_spill] sm:$0xff]  ;;  %v6121_v60 = vld [vmem:[%s3611_s30 + $0x50] sm:$0xff] }
 0x22c   : > { %8224 = vst [vmem:[#allocation127_spill] sm:$0xff] %v6040_v61  ;;  %8225 = vst [vmem:[#allocation123_spill] sm:$0xff] %v6043_v3  ;;  %v1712_v35 = vpop.permute.xlu0 %1711  ;;  %v2351_v36 = vpack.c.bf16 %v2053_v27, %v2049_v39  ;;  %v8230_v15 = vpack.c.bf16 %v8228_v45, %v8229_v34  ;;  %v3485_v7 = vld [vmem:[%s3611_s30 + $0x30] sm:$0xff]  ;;  %v8292_v3 = vld [vmem:[#allocation89_spill] sm:$0xff] }
 0x22d   : > { %8226 = vst [vmem:[#allocation6_spill] sm:$0xff] %v6047_v47  ;;  %1645 = vrot.lane.b32.xlu1 %v5860_v13, %s3554_s13  ;;  %v6059_v56 = vpop.permute.xlu1 %1721  ;;  %8234 = vst [vmem:[#allocation5_spill] sm:$0xff] %v6121_v60  ;;  %v8236_v47 = vld [vmem:[#allocation21_spill] sm:$0xff] }
 0x22e   : > { %2648 = vmatprep.subr.bf16.mxu1 %v2351_v36  ;;  %8227 = vst [vmem:[#allocation7_spill] sm:$0xff] %v6059_v56  ;;  %v1741_v13 = vsel %vm1735_vm0, %v1714_v55, %v6059_v56 }
 0x22f   : > { %1643 = vrot.lane.b32.xlu0 %v5891_v29, %s3554_s13  ;;  %2649 = vmatpush1.bf16.msra.mxu1 %v8230_v15  ;;  %v1780_v39 = vmul.f32 %v5680_v52, %v1741_v13 }
 0x230   : > { %v6072_v27 = vpop.permute.xlu0 %1719 }
 0x231   : > { %8231 = vst [vmem:[#allocation101_spill] sm:$0xff] %v6072_v27  ;;  %v1740_v36 = vsel %vm1735_vm0, %v1712_v35, %v6072_v27  ;;  %1641 = vrot.lane.b32.xlu1 %v5912_v0, %s3554_s13  ;;  %v6081_v45 = vpop.permute.xlu1 %1705  ;;  %v3481_v0 = vld [vmem:[%s7718_s1 + $0x3] ss:$8 sm:$0xf] }
 0x232   : > { %v1776_v29 = vmul.f32 %v5680_v52, %v1740_v36  ;;  %8232 = vst [vmem:[#allocation102_spill] sm:$0xff] %v6081_v45  ;;  %3395 = vmatmul.mubr.msk.bf16.vlgmr.msra.gmra.mxu1 %vm2468_vm7, %v3445_v53  ;;  %v1745_v34 = vsel %vm1735_vm0, %v6081_v45, %v1714_v55  ;;  %v6095_v52 = vrot.slane %v3481_v0, %v3828_v33  ;;  %v3482_v55 = vld [vmem:[%s3611_s30 + $0x70] sm:$0xff]  ;;  %v3487_v27 = vld [vmem:[%s7719_s2 + $0x4] ss:$28 sps:$4 sm:$0xff]  }
 0x233   : > { %1639 = vrot.lane.b32.xlu0 %v5949_v10, %s3554_s13  ;;  %2676 = vmatprep.mubr.bf16.mxu1 %v8160_v23  ;;  %v1779_v53 = vmul.f32 %v5991_v30, %v1745_v34  ;;  %v6110_v36 = vld [vmem:[%s7718_s1 + $0x45] ss:$8 sm:$0xf] }
 0x234   : > { %v6089_v15 = vpop.permute.xlu0 %1703  ;;  %v2295_v13 = vpack.c.bf16 %v1780_v39, %v1776_v29  ;;  %v6105_v39 = vrot.slane %v3481_v0, %v3971_v50  ;;  %v6114_v29 = vrot.slane %v6110_v36, %v3828_v33  ;;  %v8238_v23 = vld [vmem:[#allocation26_spill] sm:$0xff] }
 0x235   : > { %8233 = vst [vmem:[#allocation4_spill] sm:$0xff] %v6089_v15  ;;  %v1744_v10 = vsel %vm1735_vm0, %v6089_v15, %v1712_v35  ;;  %1373 = vrot.lane.b32.xlu1 %v3482_v55, %s3550_s26  ;;  %v582_v35 = vpop.permute.xlu1 %581  ;;  %v3455_v55 = vld [vmem:[%s7719_s2 + $0x50] ss:$28 sps:$4 sm:$0xff]  }
 0x236   : > { %v1775_v34 = vmul.f32 %v5991_v30, %v1744_v10  ;;  %2591 = vmatprep.subr.bf16.mxu0 %v2295_v13  ;;  %v595_v16 = vsel %vm591_vm3, %v582_v35, %v8235_v58  ;;  %v6131_v30 = vsel %vm591_vm3, %v8236_v47, %v582_v35  ;;  %v6152_v35 = vld [vmem:[%s7718_s1 + $0x40] ss:$8 sm:$0xf] }
 0x237   : > { %1371 = vrot.lane.b32.xlu0 %v6121_v60, %s3550_s26  ;;  %v645_v10 = vmul.f32 %v6095_v52, %v6131_v30  ;;  %8240 = vst [vmem:[#allocation113_spill] sm:$0xff] %v6152_v35  ;;  %v2376_v15 = vld [vmem:[%s7720_s3 + $0x10] sm:$0xff] }
 0x238   : > { %v2294_v0 = vpack.c.bf16 %v1779_v53, %v1775_v34  ;;  %v580_v13 = vpop.permute.xlu0 %579  ;;  %v646_v53 = vmul.f32 %v6105_v39, %v595_v16  ;;  %v6137_v34 = vmul.f32 %v6114_v29, %v595_v16  ;;  %v2375_v16 = vld [vmem:[%s7720_s3 + $0x8] sm:$0xff] }
 0x239   : > { %1369 = vrot.lane.b32.xlu1 %v3485_v7, %s3550_s26  ;;  %v594_v58 = vsel %vm591_vm3, %v580_v13, %v8238_v23  ;;  %v6147_v47 = vsel %vm591_vm3, %v8239_v42, %v580_v13  ;;  %v1630_v42 = vpop.permute.xlu1 %1629 }
 0x23a   : > { %8237 = vst [vmem:[#allocation112_spill] sm:$0xff] %v6137_v34  ;;  %2592 = vmatpush1.bf16.msra.mxu0 %v2294_v0  ;;  %v641_v7 = vmul.f32 %v6095_v52, %v6147_v47  ;;  %v642_v23 = vmul.f32 %v6105_v39, %v594_v58  ;;  %v6161_v60 = vmul.f32 %v6114_v29, %v594_v58  ;;  %v6165_v0 = vld [vmem:[%s3611_s30 + $0x10] sm:$0xff] }
 0x23b   : > { %3396 = vmatmul.mubr.msk.bf16.gmra.mxu1 %vm2468_vm7, %v3455_v55  ;;  %8242 = vst [vmem:[#allocation125_spill] sm:$0xff] %v6165_v0  ;;  %1367 = vrot.lane.b32.xlu0 %v6165_v0, %s3550_s26  ;;  %v1674_v55 = vrot.slane %v6152_v35, %v8243_v54  ;;  %v2374_v0 = vld [vmem:[%s7720_s3] sm:$0xff]  ;;  %s7265_s26 = scalar_lea.vmem %s7724_s7, %s3405_s23 }
 0x23c   : > { %8241 = vst [vmem:[#allocation124_spill] sm:$0xff] %v6161_v60  ;;  %v1628_v13 = vpop.permute.xlu0 %1627  ;;  %2719 = vmatprep.mubr.bf16.mxu1 %v3487_v27  ;;  %v2188_v56 = vpack.c.bf16 %v645_v10, %v641_v7  ;;  %v2189_v49 = vpack.c.bf16 %v646_v53, %v642_v23  ;;  %v1670_v7 = vrot.slane %v6152_v35, %v3791_v22  ;;  %v8268_v35 = vld [vmem:[#allocation57_spill] sm:$0xff] }
 0x23d   : > { %2385 = vperm.xlu1 %3435, %v2375_v16   ;;  %v6183_v45 = vpop.permute.xlu1 %1637 }
 0x23e   : > { %2687 = vmatprep.subr.bf16.mxu1 %v2189_v49  ;;  %8244 = vst [vmem:[#allocation138_spill] sm:$0xff] %v6183_v45  ;;  %v1655_v27 = vsel %vm1647_vm10, %v1630_v42, %v6183_v45  ;;  %v2377_v49 = vld [vmem:[%s7720_s3 + $0x18] sm:$0xff] }
 0x23f   : > { %2688 = vmatpush1.bf16.msra.mxu1 %v2188_v56  ;;  %2380 = vperm.xlu0 %3434, %v2374_v0   ;;  %v1700_v53 = vmul.f32 %v1674_v55, %v1655_v27 }
 0x240   : > { %v6188_v10 = vpop.permute.xlu0 %1635 }
 0x241   : > { %8245 = vst [vmem:[#allocation134_spill] sm:$0xff] %v6188_v10  ;;  %v1654_v16 = vsel %vm1647_vm10, %v1628_v13, %v6188_v10  ;;  %2390 = vperm.xlu1 %3435, %v2376_v15   ;;  %v6198_v23 = vpop.permute.xlu1 %1621 }
 0x242   : > { %v1696_v56 = vmul.f32 %v1674_v55, %v1654_v16  ;;  %8246 = vst [vmem:[#allocation139_spill] sm:$0xff] %v6198_v23  ;;  %v1659_v0 = vsel %vm1647_vm10, %v6198_v23, %v1630_v42  ;;  %v8248_v16 = vld [vmem:[#allocation37_spill] sm:$0xff] }
 0x243   : > { %2395 = vperm.xlu0 %3434, %v2377_v49   ;;  %v1699_v60 = vmul.f32 %v1670_v7, %v1659_v0  ;;  %v8252_v0 = vld [vmem:[#allocation34_spill] sm:$0xff] }
 0x244   : > { %v6203_v27 = vpop.permute.xlu0 %1619  ;;  %v2291_v58 = vpack.c.bf16 %v1700_v53, %v1696_v56 }
 0x245   : > { %8247 = vst [vmem:[#allocation135_spill] sm:$0xff] %v6203_v27  ;;  %v1658_v22 = vsel %vm1647_vm10, %v6203_v27, %v1628_v13  ;;  %v578_v34 = vpop.permute.xlu1 %577 }
 0x246   : > { %v1695_v15 = vmul.f32 %v1670_v7, %v1658_v22  ;;  %2593 = vmatprep.subr.bf16.mxu0 %v2291_v58  ;;  %v593_v45 = vsel %vm591_vm3, %v578_v34, %v8248_v16  ;;  %v6214_v42 = vsel %vm591_vm3, %v8249_v20, %v578_v34  ;;  %v8251_v58 = vld [vmem:[#allocation38_spill] sm:$0xff] }
 0x247   : > { %v637_v49 = vmul.f32 %v6095_v52, %v6214_v42  ;;  %v638_v56 = vmul.f32 %v6105_v39, %v593_v45  ;;  %v6220_v13 = vmul.f32 %v6114_v29, %v593_v45 }
 0x248   : > { %v2290_v10 = vpack.c.bf16 %v1699_v60, %v1695_v15  ;;  %v576_v53 = vpop.permute.xlu0 %575 }
 0x249   : > { %8250 = vst [vmem:[#allocation136_spill] sm:$0xff] %v6220_v13  ;;  %v592_v60 = vsel %vm591_vm3, %v576_v53, %v8251_v58  ;;  %v6228_v22 = vsel %vm591_vm3, %v8252_v0, %v576_v53  ;;  %v1626_v45 = vpop.permute.xlu1 %1625  ;;  %v8259_v58 = vld [vmem:[#allocation45_spill] sm:$0xff] }
 0x24a   : > { %2594 = vmatpush1.bf16.msra.mxu0 %v2290_v10  ;;  %v633_v20 = vmul.f32 %v6095_v52, %v6228_v22  ;;  %v634_v34 = vmul.f32 %v6105_v39, %v592_v60  ;;  %v6234_v15 = vmul.f32 %v6114_v29, %v592_v60 }
 0x24c   : > { %8253 = vst [vmem:[#allocation137_spill] sm:$0xff] %v6234_v15  ;;  %v1624_v16 = vpop.permute.xlu0 %1623  ;;  %v2184_v27 = vpack.c.bf16 %v637_v49, %v633_v20  ;;  %v2185_v23 = vpack.c.bf16 %v638_v56, %v634_v34  ;;  %v6261_v20 = vld [vmem:[%s7718_s1 + $0x44] ss:$8 sm:$0xf] }
 0x24d   : > { %v6238_v62 = vpop.permute.xlu1 %1633 }
 0x24e   : > { %2689 = vmatprep.subr.bf16.mxu1 %v2185_v23  ;;  %8254 = vst [vmem:[#allocation25_spill] sm:$0xff] %v6238_v62  ;;  %v1653_v52 = vsel %vm1647_vm10, %v1626_v45, %v6238_v62 }
 0x24f   : > { %2690 = vmatpush1.bf16.msra.mxu1 %v2184_v27  ;;  %v1692_v39 = vmul.f32 %v1674_v55, %v1653_v52 }
 0x250   : > { %v6243_v10 = vpop.permute.xlu0 %1631 }
 0x251   : > { %8255 = vst [vmem:[#allocation21_spill] sm:$0xff] %v6243_v10  ;;  %v1652_v29 = vsel %vm1647_vm10, %v1624_v16, %v6243_v10  ;;  %v6248_v49 = vpop.permute.xlu1 %1617  ;;  %v8262_v10 = vld [vmem:[#allocation46_spill] sm:$0xff] }
 0x252   : > { %v1688_v53 = vmul.f32 %v1674_v55, %v1652_v29  ;;  %8256 = vst [vmem:[#allocation26_spill] sm:$0xff] %v6248_v49  ;;  %v1657_v23 = vsel %vm1647_vm10, %v6248_v49, %v1626_v45  ;;  %v1883_v55 = vrot.slane %v6261_v20, %v3828_v33  ;;  %v3489_v45 = vld [vmem:[%s7718_s1 + $0x2] ss:$8 sm:$0xf] }
 0x253   : > { %v1691_v60 = vmul.f32 %v1670_v7, %v1657_v23  ;;  %v534_v52 = vrot.slane %v3489_v45, %v3828_v33 }
 0x254   : > { %v6253_v56 = vpop.permute.xlu0 %1615  ;;  %v2287_v27 = vpack.c.bf16 %v1692_v39, %v1688_v53  ;;  %v8258_v53 = vld [vmem:[#allocation49_spill] sm:$0xff] }
 0x255   : > { %8257 = vst [vmem:[#allocation22_spill] sm:$0xff] %v6253_v56  ;;  %v1656_v0 = vsel %vm1647_vm10, %v6253_v56, %v1624_v16  ;;  %v494_v39 = vpop.permute.xlu1 %493  ;;  %v538_v16 = vrot.slane %v3489_v45, %v3971_v50 }
 0x256   : > { %v1687_v34 = vmul.f32 %v1670_v7, %v1656_v0  ;;  %2595 = vmatprep.subr.bf16.mxu0 %v2287_v27  ;;  %v507_v23 = vsel %vm503_vm5, %v494_v39, %v8258_v53  ;;  %v6276_v15 = vsel %vm503_vm5, %v8259_v58, %v494_v39  ;;  %v8261_v0 = vld [vmem:[#allocation50_spill] sm:$0xff] }
 0x257   : > { %v6278_v27 = vmul.f32 %v1883_v55, %v507_v23  ;;  %v6295_v58 = vld [vmem:[%s7718_s1 + $0x47] ss:$8 sm:$0xf]  ;;  %v558_v62 = vmul.f32 %v538_v16, %v507_v23 }
 0x258   : > { %v2286_v29 = vpack.c.bf16 %v1691_v60, %v1687_v34  ;;  %v492_v7 = vpop.permute.xlu0 %491  ;;  %v557_v34 = vmul.f32 %v534_v52, %v6276_v15  ;;  %8264 = vst [vmem:[#allocation33_spill] sm:$0xff] %v6295_v58  ;;  %v1996_v39 = vrot.slane %v6295_v58, %v8243_v54 }
 0x259   : > { %8260 = vst [vmem:[#allocation16_spill] sm:$0xff] %v6278_v27  ;;  %v506_v13 = vsel %vm503_vm5, %v492_v7, %v8261_v0  ;;  %v6286_v60 = vsel %vm503_vm5, %v8262_v10, %v492_v7  ;;  %v6299_v0 = vpop.permute.xlu1 %757  ;;  %v8271_v27 = vld [vmem:[#allocation58_spill] sm:$0xff] }
 0x25a   : > { %2596 = vmatpush1.bf16.msra.mxu0 %v2286_v29  ;;  %v553_v45 = vmul.f32 %v534_v52, %v6286_v60  ;;  %v6290_v53 = vmul.f32 %v1883_v55, %v506_v13  ;;  %v554_v10 = vmul.f32 %v538_v16, %v506_v13  ;;  %v8265_v29 = vld [vmem:[#allocation142_spill] sm:$0xff] }
 0x25b   : > { %v6305_v7 = vsel %vm767_vm13, %v8265_v29, %v6299_v0  ;;  %v8267_v29 = vld [vmem:[#allocation61_spill] sm:$0xff] }
 0x25c   : > { %8263 = vst [vmem:[#allocation37_spill] sm:$0xff] %v6290_v53  ;;  %v6307_v56 = vpop.permute.xlu0 %755  ;;  %v2180_v6 = vpack.c.bf16 %v557_v34, %v553_v45  ;;  %v2022_v13 = vmul.f32 %v1996_v39, %v6305_v7  ;;  %v2181_v51 = vpack.c.bf16 %v558_v62, %v554_v10  ;;  %v8270_v34 = vld [vmem:[#allocation62_spill] sm:$0xff] }
 0x25d   : > { %v6315_v58 = vsel %vm767_vm13, %v8266_v18, %v6307_v56  ;;  %v490_v23 = vpop.permute.xlu1 %489 }
 0x25e   : > { %v2018_v5 = vmul.f32 %v1996_v39, %v6315_v58  ;;  %v505_v31 = vsel %vm503_vm5, %v490_v23, %v8267_v29  ;;  %v6325_v49 = vsel %vm503_vm5, %v8268_v35, %v490_v23  ;;  %2691 = vmatprep.subr.bf16.mxu1 %v2181_v51 }
 0x25f   : > { %v6327_v18 = vmul.f32 %v1883_v55, %v505_v31  ;;  %2692 = vmatpush1.bf16.msra.mxu1 %v2180_v6  ;;  %v549_v10 = vmul.f32 %v534_v52, %v6325_v49  ;;  %v550_v51 = vmul.f32 %v538_v16, %v505_v31 }
 0x260   : > { %v488_v53 = vpop.permute.xlu0 %487  ;;  %v2347_v48 = vpack.c.bf16 %v2022_v13, %v2018_v5  ;;  %v8275_v5 = vld [vmem:[#allocation144_spill] sm:$0xff] }
 0x261   : > { %8269 = vst [vmem:[#allocation38_spill] sm:$0xff] %v6327_v18  ;;  %v504_v45 = vsel %vm503_vm5, %v488_v53, %v8270_v34  ;;  %v6335_v62 = vsel %vm503_vm5, %v8271_v27, %v488_v53  ;;  %v6341_v23 = vpop.permute.xlu1 %753  ;;  %v8273_v27 = vld [vmem:[#allocation150_spill] sm:$0xff] }
 0x262   : > { %v545_v29 = vmul.f32 %v534_v52, %v6335_v62  ;;  %v6339_v35 = vmul.f32 %v1883_v55, %v504_v45  ;;  %v546_v24 = vmul.f32 %v538_v16, %v504_v45  ;;  %v6351_v6 = vsel %vm767_vm13, %v8273_v27, %v6341_v23  ;;  %2597 = vmatprep.subr.bf16.mxu0 %v2347_v48  ;;  %v8274_v55 = vld [vmem:[#allocation151_spill] sm:$0xff]  ;;  %v8276_v16 = vld [vmem:[#allocation145_spill] sm:$0xff]  ;;  %v8278_v48 = vld [vmem:[#allocation162_spill] sm:$0xff] }
 0x263   : > { %v8277_v53 = vpack.c.bf16 %v8275_v5, %v8276_v16  ;;  %v2014_v45 = vmul.f32 %v1996_v39, %v6351_v6  ;;  %v8282_v16 = vld [vmem:[#allocation83_spill] sm:$0xff] }
 0x264   : > { %8272 = vst [vmem:[#allocation34_spill] sm:$0xff] %v6339_v35  ;;  %v6343_v26 = vpop.permute.xlu0 %751  ;;  %v2176_v31 = vpack.c.bf16 %v549_v10, %v545_v29  ;;  %v2177_v27 = vpack.c.bf16 %v550_v51, %v546_v24  ;;  %v1957_v35 = vrot.slane %v8278_v48, %v8243_v54  ;;  %v3491_v10 = vld [vmem:[%s7718_s1] ss:$8 sm:$0xf] }
 0x265   : > { %v6357_v52 = vsel %vm767_vm13, %v8274_v55, %v6343_v26  ;;  %2598 = vmatpush2.bf16.msra.mxu0 %v8277_v53  ;;  %v6362_v13 = vpop.permute.xlu1 %669  ;;  %v362_v29 = vrot.slane %v3491_v10, %v3971_v50  ;;  %v8280_v55 = vld [vmem:[#allocation163_spill] sm:$0xff]  ;;  %v8284_v51 = vld [vmem:[#allocation84_spill] sm:$0xff]  ;;  %v8285_v53 = vld [vmem:[#allocation13_spill] sm:$0xff] }
 0x266   : > { %v2010_v34 = vmul.f32 %v1996_v39, %v6357_v52  ;;  %v6378_v5 = vsel %vm679_vm15, %v8280_v55, %v6362_v13  ;;  %v8283_v39 = vld [vmem:[#allocation12_spill] sm:$0xff]  ;;  %v331_v48 = vsel %vm328_vm1, %v8285_v53, %v8284_v51  ;;  %2693 = vmatprep.subr.bf16.mxu1 %v2177_v27 }
 0x267   : > { %8281 = vst [vmem:[#allocation45_spill] sm:$0xff] %v6378_v5  ;;  %v332_v24 = vsel %vm328_vm1, %v8283_v39, %v8282_v16  ;;  %2694 = vmatpush1.bf16.msra.mxu1 %v2176_v31  ;;  %v1983_v61 = vmul.f32 %v1957_v35, %v6378_v5  ;;  %v8289_v16 = vpack.c.bf16 %v5683_v11, %v5701_v19  ;;  %v8290_v27 = vld [vmem:[#allocation176_spill] sm:$0xff]  ;;  %v8295_v19 = vld [vmem:[#allocation9_spill] sm:$0xff] }
 0x268   : > { %v6368_v18 = vpop.permute.xlu0 %667  ;;  %v2343_v39 = vpack.c.bf16 %v2014_v45, %v2010_v34  ;;  %v382_v31 = vmul.f32 %v362_v29, %v332_v24  ;;  %v378_v53 = vmul.f32 %v362_v29, %v331_v48  ;;  %v1918_v34 = vrot.slane %v6110_v36, %v8243_v54 }
 0x269   : > { %8279 = vst [vmem:[#allocation49_spill] sm:$0xff] %v6368_v18  ;;  %v6392_v10 = vsel %vm679_vm15, %v8286_v44, %v6368_v18  ;;  %v6394_v55 = vpop.permute.xlu1 %665  ;;  %2695 = vmatprep.subr.bf16.mxu1 %v8289_v16  ;;  %v8294_v18 = vld [vmem:[#allocation92_spill] sm:$0xff]  ;;  %v8296_v16 = vld [vmem:[#allocation177_spill] sm:$0xff] }
 0x26a   : > { %8287 = vst [vmem:[#allocation50_spill] sm:$0xff] %v6392_v10  ;;  %8288 = vst [vmem:[#allocation46_spill] sm:$0xff] %v6394_v55  ;;  %v1979_v32 = vmul.f32 %v1957_v35, %v6392_v10  ;;  %v6405_v51 = vsel %vm679_vm15, %v8290_v27, %v6394_v55  ;;  %v6413_v10 = vsel %vm328_vm1, %v8293_v40, %v8292_v3  ;;  %2599 = vmatprep.subr.bf16.mxu0 %v2343_v39  ;;  %v8298_v40 = vld [vmem:[#allocation152_spill] sm:$0xff]  ;;  %v8299_v3 = vld [vmem:[#allocation153_spill] sm:$0xff] }
 0x26b   : > { %8291 = vst [vmem:[#allocation142_spill] sm:$0xff] %v6405_v51  ;;  %v6419_v11 = vsel %vm328_vm1, %v8295_v19, %v8294_v18  ;;  %v1975_v45 = vmul.f32 %v1957_v35, %v6405_v51  ;;  %v8300_v55 = vpack.c.bf16 %v8298_v40, %v8299_v3  ;;  %v8301_v18 = vpack.c.bf16 %v5670_v37, %v5698_v38  ;;  %v8303_v3 = vld [vmem:[#allocation165_spill] sm:$0xff] }
 0x26c   : > { %v6407_v44 = vpop.permute.xlu0 %663  ;;  %v8302_v39 = vpack.c.bf16 %v5769_v28, %v5790_v4  ;;  %v2339_v51 = vpack.c.bf16 %v1983_v61, %v1979_v32  ;;  %v370_v40 = vmul.f32 %v362_v29, %v6419_v11  ;;  %v1940_v38 = vmul.f32 %v1918_v34, %v6147_v47  ;;  %v8307_v32 = vld [vmem:[#allocation175_spill] sm:$0xff] }
 0x26d   : > { %v6428_v27 = vsel %vm679_vm15, %v8296_v16, %v6407_v44  ;;  %2600 = vmatpush2.bf16.msra.mxu0 %v8300_v55  ;;  %2696 = vmatpush1.bf16.msra.mxu1 %v8301_v18  ;;  %v6437_v36 = vpop.permute.xlu1 %1285  ;;  %v374_v16 = vmul.f32 %v362_v29, %v6413_v10  ;;  %v1944_v55 = vmul.f32 %v1918_v34, %v6131_v30  ;;  %v8304_v18 = vld [vmem:[#allocation166_spill] sm:$0xff]  ;;  %vm2946_vm1 = vcmask 7168  }
 0x26e   : > { %8297 = vst [vmem:[#allocation143_spill] sm:$0xff] %v6428_v27  ;;  %v1971_v19 = vmul.f32 %v1957_v35, %v6428_v27  ;;  %2697 = vmatprep.subr.bf16.mxu1 %v8302_v39  ;;  %2601 = vmatprep.subr.bf16.mxu0 %v2339_v51  ;;  %v2165_v37 = vpack.c.bf16 %v382_v31, %v378_v53  ;;  %v8309_v53 = vld [vmem:[#allocation179_spill] sm:$0xff] }
 0x26f   : > { %v8305_v27 = vpack.c.bf16 %v8303_v3, %v8304_v18  ;;  %v8306_v28 = vpack.c.bf16 %v5766_v17, %v5787_v14  ;;  %v6460_v30 = vrot.slane %v8307_v32, %v3828_v33  ;;  %v2161_v47 = vpack.c.bf16 %v374_v16, %v370_v40  ;;  %v8308_v14 = vld [vmem:[#allocation178_spill] sm:$0xff]  ;;  %v8314_v32 = vld [vmem:[#allocation24_spill] sm:$0xff] }
 0x270   : > { %v6442_v5 = vpop.permute.xlu0 %1283  ;;  %v2335_v35 = vpack.c.bf16 %v1975_v45, %v1971_v19  ;;  %v1936_v29 = vmul.f32 %v1918_v34, %v6214_v42  ;;  %v1932_v51 = vmul.f32 %v1918_v34, %v6228_v22  ;;  %v1879_v31 = vrot.slane %v6261_v20, %v8243_v54  ;;  %v8312_v19 = vld [vmem:[#allocation15_spill] sm:$0xff] }
 0x271   : > { %2602 = vmatpush2.bf16.msra.mxu0 %v8305_v27  ;;  %2698 = vmatpush1.bf16.msra.mxu1 %v8306_v28  ;;  %v6454_v4 = vpop.permute.xlu1 %1281  ;;  %v2331_v17 = vpack.c.bf16 %v1944_v55, %v1940_v38  ;;  %v8310_v45 = vpack.c.bf16 %v8308_v14, %v8309_v53  ;;  %v8311_v27 = vld [vmem:[#allocation14_spill] sm:$0xff]  ;;  %v6481_v20 = vmul.f32 %v6460_v30, %v332_v24  ;;  %v8318_v14 = vld [vmem:[#allocation11_spill] sm:$0xff] }
 0x272   : > { %2699 = vmatprep.subr.bf16.mxu1 %v2165_v37  ;;  %2603 = vmatprep.subr.bf16.mxu0 %v2335_v35  ;;  %v8313_v39 = vpack.c.bf16 %v8311_v27, %v8312_v19  ;;  %v3492_v42 = vld [vmem:[%s7718_s1 + $0x5] ss:$8 sm:$0xf]  ;;  %v6484_v34 = vmul.f32 %v6460_v30, %v331_v48  ;;  %v3493_v40 = vld [vmem:[%s7718_s1 + $0x4] ss:$8 sm:$0xf]  ;;  %v1905_v38 = vmul.f32 %v1879_v31, %v6276_v15 }
 0x273   : > { %v798_v22 = vrot.slane %v3492_v42, %v3828_v33  ;;  %v802_v16 = vrot.slane %v3492_v42, %v3971_v50  ;;  %v6491_v55 = vrot.slane %v3493_v40, %v3828_v33  ;;  %v1901_v35 = vmul.f32 %v1879_v31, %v6286_v60  ;;  %v3494_v48 = vld [vmem:[%s7718_s1 + $0x23] ss:$8 sm:$0xf] }
 0x274   : > { %v6456_v61 = vpop.permute.xlu0 %1279  ;;  %v6496_v3 = vrot.slane %v3493_v40, %v3971_v50  ;;  %v2327_v24 = vpack.c.bf16 %v1936_v29, %v1932_v51  ;;  %v6502_v18 = vrot.slane %v3494_v48, %v3828_v33  ;;  %v1330_v28 = vrot.slane %v3494_v48, %v3971_v50  ;;  %v8317_v15 = vld [vmem:[#allocation10_spill] sm:$0xff]  ;;  %v8322_v48 = vld [vmem:[#allocation147_spill] sm:$0xff] }
 0x275   : > { %2604 = vmatpush2.bf16.msra.mxu0 %v8310_v45  ;;  %2700 = vmatpush1.bf16.msra.mxu1 %v8313_v39  ;;  %v6472_v37 = vpop.permute.xlu1 %1197  ;;  %v8319_v60 = vpack.c.bf16 %v8317_v15, %v8318_v14  ;;  %v3495_v29 = vld [vmem:[%s7718_s1 + $0x22] ss:$8 sm:$0xf]  ;;  %v6520_v45 = vmul.f32 %v798_v22, %v6305_v7  ;;  %v6523_v27 = vmul.f32 %v798_v22, %v6315_v58 }
 0x276   : > { %2605 = vmatprep.subr.bf16.mxu0 %v2331_v17  ;;  %2701 = vmatprep.subr.bf16.mxu1 %v2161_v47  ;;  %v8315_v47 = vld [vmem:[#allocation23_spill] sm:$0xff]  ;;  %v6515_v51 = vrot.slane %v3495_v29, %v3828_v33  ;;  %v6526_v19 = vrot.slane %v3495_v29, %v3971_v50  ;;  %v8320_v39 = vpack.c.bf16 %v5812_v41, %v5833_v63  ;;  %v8321_v42 = vld [vmem:[#allocation146_spill] sm:$0xff]  ;;  %v8325_v63 = vld [vmem:[#allocation80_spill] sm:$0xff] }
 0x277   : > { %v8316_v17 = vpack.c.bf16 %v8314_v32, %v8315_v47  ;;  %v6535_v40 = vsel %vm767_vm13, %v6299_v0, %v8321_v42  ;;  %v6541_v58 = vsel %vm767_vm13, %v6307_v56, %v8322_v48  ;;  %v1897_v7 = vmul.f32 %v1879_v31, %v6325_v49  ;;  %v8323_v32 = vld [vmem:[#allocation79_spill] sm:$0xff]  ;;  %v8324_v47 = vld [vmem:[#allocation186_spill] sm:$0xff] }
 0x278   : > { %v6478_v54 = vpop.permute.xlu0 %1195  ;;  %v6549_v41 = vsel %vm1031_vm8, %v8324_v47, %v8323_v32  ;;  %v2323_v15 = vpack.c.bf16 %v1905_v38, %v1901_v35  ;;  %v3496_v49 = vld [vmem:[%s7718_s1 + $0x21] ss:$8 sm:$0xf]  ;;  %v8332_v42 = vpack.c.bf16 %v5809_v46, %v5830_v25  ;;  %v6585_v47 = vmul.f32 %v802_v16, %v6535_v40 }
 0x279   : > { %2606 = vmatpush2.bf16.msra.mxu0 %v8316_v17  ;;  %2702 = vmatpush1.bf16.msra.mxu1 %v8319_v60  ;;  %v6517_v53 = vpop.permute.xlu1 %1193  ;;  %v8326_v17 = vld [vmem:[#allocation187_spill] sm:$0xff]  ;;  %v6563_v56 = vrot.slane %v3496_v49, %v3828_v33  ;;  %v8328_v60 = vld [vmem:[#allocation20_spill] sm:$0xff]  ;;  %v6580_v48 = vrot.slane %v3496_v49, %v3971_v50  ;;  %v8334_v46 = vld [vmem:[#allocation154_spill] sm:$0xff]  ;;  %v6602_v49 = vmul.f32 %v798_v22, %v6351_v6 }
 0x27a   : > { %2607 = vmatprep.subr.bf16.mxu0 %v2327_v24  ;;  %2703 = vmatprep.subr.bf16.mxu1 %v8320_v39  ;;  %v1893_v24 = vmul.f32 %v1879_v31, %v6335_v62  ;;  %v6555_v0 = vsel %vm1031_vm8, %v8326_v17, %v8325_v63  ;;  %v8327_v62 = vld [vmem:[#allocation19_spill] sm:$0xff]  ;;  %v1298_v29 = vsel %vm1295_vm2, %v6442_v5, %v8328_v60  ;;  %v8330_v35 = vld [vmem:[#allocation36_spill] sm:$0xff] }
 0x27b   : > { %v1299_v31 = vsel %vm1295_vm2, %v6437_v36, %v8327_v62  ;;  %v8329_v38 = vld [vmem:[#allocation35_spill] sm:$0xff]  ;;  %v6588_v63 = vmul.f32 %v802_v16, %v6541_v58  ;;  %v2204_v17 = vpack.c.bf16 %v6520_v45, %v6523_v27  ;;  %v8333_v62 = vpack.c.bf16 %v5857_v59, %v5881_v2  ;;  %v8375_v45 = vld [vmem:[#allocation65_spill] sm:$0xff] }
 0x27c   : > { %v6557_v14 = vpop.permute.xlu0 %1191  ;;  %v8331_v39 = vpack.c.bf16 %v8329_v38, %v8330_v35  ;;  %v6599_v25 = vsel %vm767_vm13, %v6341_v23, %v8334_v46  ;;  %v8335_v60 = vld [vmem:[#allocation155_spill] sm:$0xff]  ;;  %v8336_v35 = vld [vmem:[#allocation17_spill] sm:$0xff]  ;;  %v1350_v2 = vmul.f32 %v1330_v28, %v1299_v31  ;;  %v1346_v6 = vmul.f32 %v1330_v28, %v1298_v29  ;;  %v8341_v46 = vld [vmem:[#allocation48_spill] sm:$0xff] }
 0x27d   : > { %2704 = vmatpush2.bf16.msra.mxu1 %v8332_v42  ;;  %v6582_v32 = vpop.permute.xlu1 %1109  ;;  %v6608_v38 = vsel %vm767_vm13, %v6343_v26, %v8335_v60  ;;  %v1303_v59 = vsel %vm1295_vm2, %v8336_v35, %v6437_v36  ;;  %v8338_v26 = vld [vmem:[#allocation31_spill] sm:$0xff]  ;;  %v8344_v35 = vpack.c.bf16 %v5909_v57, %v5939_v8  ;;  %v8347_v8 = vld [vmem:[#allocation30_spill] sm:$0xff] }
 0x27e   : > { %2608 = vmatpush2.bf16.msra.mxu0 %v8331_v39  ;;  %2705 = vmatprep.subr.bf16.mxu1 %v8333_v62  ;;  %v8337_v39 = vld [vmem:[#allocation18_spill] sm:$0xff]  ;;  %v6621_v62 = vmul.f32 %v798_v22, %v6357_v52  ;;  %v8340_v31 = vld [vmem:[#allocation47_spill] sm:$0xff]  ;;  %v6640_v22 = vmul.f32 %v802_v16, %v6599_v25  ;;  %v6643_v29 = vmul.f32 %v802_v16, %v6608_v38  ;;  %v8346_v16 = vld [vmem:[#allocation29_spill] sm:$0xff] }
 0x27f   : > { %2609 = vmatprep.subr.bf16.mxu0 %v2323_v15  ;;  %v2319_v15 = vpack.c.bf16 %v1897_v7, %v1893_v24  ;;  %v1302_v23 = vsel %vm1295_vm2, %v8337_v39, %v6442_v5  ;;  %v1297_v7 = vsel %vm1295_vm2, %v6454_v4, %v8338_v26  ;;  %v8339_v24 = vld [vmem:[#allocation32_spill] sm:$0xff]  ;;  %v8342_v60 = vpack.c.bf16 %v8340_v31, %v8341_v46  ;;  %v8345_v26 = vld [vmem:[#allocation167_spill] sm:$0xff] }
 0x280   : > { %v6618_v42 = vpop.permute.xlu0 %1107  ;;  %v1296_v36 = vsel %vm1295_vm2, %v6456_v61, %v8339_v24  ;;  %v8343_v5 = vpack.c.bf16 %v5854_v1, %v5878_v9  ;;  %v2205_v39 = vpack.c.bf16 %v6585_v47, %v6588_v63  ;;  %v6654_v9 = vsel %vm679_vm15, %v6362_v13, %v8345_v26  ;;  %v6671_v13 = vld [vmem:[%s7719_s2 + $0x10] ss:$28 sps:$4 sm:$0xff]  }
 0x281   : > { %v6637_v52 = vpop.permute.xlu1 %1105  ;;  %v1349_v1 = vmul.f32 %v6502_v18, %v1303_v59  ;;  %v1345_v24 = vmul.f32 %v6502_v18, %v1302_v23  ;;  %v1342_v57 = vmul.f32 %v1330_v28, %v1297_v7  ;;  %v1300_v47 = vsel %vm1295_vm2, %v8347_v8, %v6456_v61  ;;  %v8348_v23 = vld [vmem:[#allocation43_spill] sm:$0xff]  ;;  %v8349_v7 = vld [vmem:[#allocation44_spill] sm:$0xff]  ;;  %v8356_v8 = vld [vmem:[#allocation49_spill] sm:$0xff] }
 0x282   : > { %2610 = vmatpush2.bf16.msra.mxu0 %v8342_v60  ;;  %2706 = vmatpush2.bf16.msra.mxu1 %v8343_v5  ;;  %v1338_v63 = vmul.f32 %v1330_v28, %v1296_v36  ;;  %v2253_v31 = vpack.c.bf16 %v1350_v2, %v1346_v6  ;;  %v1210_v61 = vsel %vm1207_vm4, %v6478_v54, %v8349_v7  ;;  %v8350_v28 = vld [vmem:[#allocation59_spill] sm:$0xff]  ;;  %v8351_v2 = vld [vmem:[#allocation60_spill] sm:$0xff]  ;;  %v8354_v5 = vld [vmem:[#allocation45_spill] sm:$0xff] }
 0x283   : > { %2611 = vmatprep.subr.bf16.mxu0 %v2319_v15  ;;  %2707 = vmatprep.subr.bf16.mxu1 %v8344_v35  ;;  %v1301_v15 = vsel %vm1295_vm2, %v8346_v16, %v6454_v4  ;;  %v1211_v4 = vsel %vm1207_vm4, %v6472_v37, %v8348_v23  ;;  %v8352_v6 = vpack.c.bf16 %v8350_v28, %v8351_v2  ;;  %v8355_v16 = vld [vmem:[#allocation168_spill] sm:$0xff]  ;;  %v8357_v7 = vld [vmem:[#allocation126_spill] sm:$0xff]  ;;  %v8369_v59 = vld [vmem:[#allocation181_spill] sm:$0xff] }
 0x284   : > { %v6666_v46 = vpop.permute.xlu0 %1103  ;;  %v8353_v36 = vpack.c.bf16 %v5906_v43, %v5936_v12  ;;  %v6693_v35 = vmul.f32 %v6491_v55, %v8354_v5  ;;  %v6697_v26 = vmul.f32 %v6496_v3, %v6654_v9  ;;  %v6703_v23 = vsel %vm679_vm15, %v8356_v8, %v8355_v16  ;;  %v8358_v12 = vld [vmem:[#allocation123_spill] sm:$0xff]  ;;  %v6717_v16 = vld [vmem:[%s7719_s2 + $0x4c] ss:$28 sps:$4 sm:$0xff]   ;;  %v8361_v8 = vld [vmem:[#allocation42_spill] sm:$0xff] }
 0x285   : > { %v6689_v60 = vpop.permute.xlu1 %1557  ;;  %v8359_v43 = vpack.c.bf16 %v8357_v7, %v8358_v12  ;;  %v2252_v28 = vpack.c.bf16 %v1349_v1, %v1345_v24  ;;  %v1341_v2 = vmul.f32 %v6502_v18, %v1301_v15  ;;  %v1214_v1 = vsel %vm1207_vm4, %v8361_v8, %v6478_v54  ;;  %v8363_v7 = vld [vmem:[#allocation56_spill] sm:$0xff] }
 0x286   : > { %2612 = vmatpush2.bf16.msra.mxu0 %v8352_v6  ;;  %2708 = vmatpush2.bf16.msra.mxu1 %v8353_v36  ;;  %v1337_v6 = vmul.f32 %v6502_v18, %v1300_v47  ;;  %v8360_v36 = vld [vmem:[#allocation41_spill] sm:$0xff]  ;;  %v1258_v24 = vmul.f32 %v6526_v19, %v1210_v61  ;;  %v2249_v18 = vpack.c.bf16 %v1342_v57, %v1338_v63  ;;  %v8362_v47 = vld [vmem:[#allocation55_spill] sm:$0xff]  ;;  %v8364_v12 = vld [vmem:[#allocation76_spill] sm:$0xff] }
 0x287   : > { %2740 = vmatprep.subr.bf16.mxu0 %v2253_v31  ;;  %2709 = vmatprep.subr.bf16.mxu1 %v8359_v43  ;;  %v1215_v5 = vsel %vm1207_vm4, %v8360_v36, %v6472_v37  ;;  %v1262_v31 = vmul.f32 %v6526_v19, %v1211_v4  ;;  %v730_v37 = vmul.f32 %v6496_v3, %v6703_v23  ;;  %v8365_v61 = vld [vmem:[#allocation127_spill] sm:$0xff]  ;;  %v8367_v63 = vld [vmem:[#allocation180_spill] sm:$0xff]  ;;  %v8368_v36 = vld [vmem:[#allocation46_spill] sm:$0xff] }
 0x288   : > { %v6726_v15 = vpop.permute.xlu0 %1555  ;;  %v1209_v4 = vsel %vm1207_vm4, %v6517_v53, %v8362_v47  ;;  %v1208_v54 = vsel %vm1207_vm4, %v6557_v14, %v8363_v7  ;;  %v8366_v43 = vpack.c.bf16 %v8364_v12, %v8365_v61  ;;  %v6747_v8 = vsel %vm679_vm15, %v8368_v36, %v8367_v63 }
 0x289   : > { %2614 = vmatmul.mubr.bf16.vlgmr.msra.gmra.mxu0 %v6671_v13  ;;  %v6741_v57 = vpop.permute.xlu1 %1553  ;;  %v6753_v47 = vsel %vm679_vm15, %v6407_v44, %v8369_v59  ;;  %v2201_v7 = vpack.c.bf16 %v6640_v22, %v6643_v29  ;;  %v1261_v12 = vmul.f32 %v6515_v51, %v1215_v5  ;;  %v1257_v61 = vmul.f32 %v6515_v51, %v1214_v1  ;;  %v8371_v59 = vld [vmem:[#allocation54_spill] sm:$0xff]  ;;  %v8373_v1 = vld [vmem:[#allocation67_spill] sm:$0xff] }
 0x28a   : > { %2710 = vmatpush2.bf16.msra.mxu1 %v8366_v43  ;;  %2741 = vmatpush1.bf16.msra.mxu0 %v2252_v28  ;;  %v2248_v28 = vpack.c.bf16 %v1341_v2, %v1337_v6  ;;  %v8370_v43 = vld [vmem:[#allocation53_spill] sm:$0xff]  ;;  %v1254_v44 = vmul.f32 %v6526_v19, %v1209_v4  ;;  %v1250_v22 = vmul.f32 %v6526_v19, %v1208_v54  ;;  %v8374_v4 = vld [vmem:[#allocation68_spill] sm:$0xff] }
 0x28b   : > { %2742 = vmatprep.subr.bf16.mxu0 %v2249_v18  ;;  %2711 = vmatprep.subr.bf16.mxu1 %v2205_v39  ;;  %v1213_v63 = vsel %vm1207_vm4, %v8370_v43, %v6517_v53  ;;  %v1212_v39 = vsel %vm1207_vm4, %v8371_v59, %v6557_v14  ;;  %v2245_v29 = vpack.c.bf16 %v1262_v31, %v1258_v24  ;;  %v6775_v6 = vld [vmem:[%s7719_s2 + $0x48] ss:$28 sps:$4 sm:$0xff]   ;;  %v8372_v53 = vld [vmem:[#allocation50_spill] sm:$0xff] }
 0x28c   : > { %2623 = vmatprep.mubr.bf16.mxu0 %v6717_v16  ;;  %v729_v5 = vmul.f32 %v6491_v55, %v8372_v53  ;;  %v1123_v18 = vsel %vm1119_vm6, %v6582_v32, %v8373_v1  ;;  %v1122_v19 = vsel %vm1119_vm6, %v6618_v42, %v8374_v4  ;;  %v726_v31 = vmul.f32 %v6496_v3, %v6747_v8  ;;  %v3497_v4 = vld [vmem:[%s7719_s2 + $0xc] ss:$28 sps:$4 sm:$0xff]  }
 0x28d   : > { %v6770_v2 = vpop.permute.xlu0 %1551  ;;  %v722_v24 = vmul.f32 %v6496_v3, %v6753_v47  ;;  %v2197_v54 = vpack.c.bf16 %v6697_v26, %v730_v37  ;;  %v2244_v36 = vpack.c.bf16 %v1261_v12, %v1257_v61  ;;  %v1253_v43 = vmul.f32 %v6515_v51, %v1213_v63  ;;  %v8377_v12 = vld [vmem:[#allocation73_spill] sm:$0xff]  ;;  %v8378_v61 = vld [vmem:[#allocation74_spill] sm:$0xff] }
 0x28e   : > { %2712 = vmatpush2.bf16.msra.mxu1 %v2204_v17  ;;  %2743 = vmatpush1.bf16.msra.mxu0 %v2248_v28  ;;  %v6790_v14 = vpop.permute.xlu1 %1733  ;;  %v1249_v59 = vmul.f32 %v6515_v51, %v1212_v39  ;;  %v1127_v27 = vsel %vm1119_vm6, %v8375_v45, %v6582_v32  ;;  %v1174_v17 = vmul.f32 %v6580_v48, %v1123_v18  ;;  %v8376_v28 = vld [vmem:[#allocation66_spill] sm:$0xff] }
 0x28f   : > { %2744 = vmatprep.subr.bf16.mxu0 %v2245_v29  ;;  %2713 = vmatprep.subr.bf16.mxu1 %v2201_v7  ;;  %v1126_v3 = vsel %vm1119_vm6, %v8376_v28, %v6618_v42  ;;  %v1170_v7 = vmul.f32 %v6580_v48, %v1122_v19  ;;  %v2241_v26 = vpack.c.bf16 %v1254_v44, %v1250_v22  ;;  %v8380_v44 = vld [vmem:[#allocation142_spill] sm:$0xff]  ;;  %v8381_v22 = vld [vmem:[#allocation143_spill] sm:$0xff]  ;;  %v8383_v19 = vld [vmem:[#allocation72_spill] sm:$0xff] }
 0x290   : > { %v2196_v51 = vpack.c.bf16 %v6693_v35, %v729_v5  ;;  %v1121_v32 = vsel %vm1119_vm6, %v6637_v52, %v8377_v12  ;;  %v1120_v63 = vsel %vm1119_vm6, %v6666_v46, %v8378_v61  ;;  %v8379_v42 = vpack.c.bf16 %v6602_v49, %v6621_v62  ;;  %v8382_v49 = vld [vmem:[#allocation71_spill] sm:$0xff] }
 0x291   : > { %2624 = vmatmul.mubr.bf16.gmra.mxu0 %v6775_v6  ;;  %v6810_v37 = vpop.permute.xlu0 %1731  ;;  %v725_v39 = vmul.f32 %v6491_v55, %v8380_v44  ;;  %v721_v35 = vmul.f32 %v6491_v55, %v8381_v22  ;;  %v2193_v53 = vpack.c.bf16 %v726_v31, %v722_v24  ;;  %v2240_v5 = vpack.c.bf16 %v1253_v43, %v1249_v59  ;;  %v8384_v59 = vld [vmem:[#allocation184_spill] sm:$0xff]  ;;  %v8385_v12 = vld [vmem:[#allocation95_spill] sm:$0xff]  ;;  %v8388_v22 = vld [vmem:[#allocation70_spill] sm:$0xff] }
 0x292   : > { %2714 = vmatpush2.bf16.msra.mxu1 %v8379_v42  ;;  %2745 = vmatpush1.bf16.msra.mxu0 %v2244_v36  ;;  %v1173_v1 = vmul.f32 %v6563_v56, %v1127_v27  ;;  %v1169_v18 = vmul.f32 %v6563_v56, %v1126_v3  ;;  %v1125_v62 = vsel %vm1119_vm6, %v8382_v49, %v6637_v52  ;;  %v3499_v42 = vld [vmem:[%s7718_s1 + $0x41] ss:$8 sm:$0xf] }
 0x293   : > { %2746 = vmatprep.subr.bf16.mxu0 %v2241_v26  ;;  %2715 = vmatprep.subr.bf16.mxu1 %v2197_v54  ;;  %v6828_v29 = vpop.permute.xlu1 %1469  ;;  %v1166_v55 = vmul.f32 %v6580_v48, %v1121_v32  ;;  %v1124_v31 = vsel %vm1119_vm6, %v8383_v19, %v6666_v46  ;;  %v1162_v24 = vmul.f32 %v6580_v48, %v1120_v63  ;;  %v8386_v32 = vld [vmem:[#allocation96_spill] sm:$0xff]  ;;  %v8391_v49 = vld [vmem:[#allocation98_spill] sm:$0xff] }
 0x294   : > { %2772 = vmatprep.mubr.bf16.mxu0 %v3497_v4  ;;  %v2237_v54 = vpack.c.bf16 %v1174_v17, %v1170_v7  ;;  %v6849_v52 = vmul.f32 %v6460_v30, %v6413_v10  ;;  %v6853_v43 = vmul.f32 %v6460_v30, %v6419_v11  ;;  %v1086_v45 = vmul.f32 %v8384_v59, %v6549_v41  ;;  %v3498_v30 = vld [vmem:[%s7718_s1 + $0x27] ss:$8 sm:$0xf] }
 0x295   : > { %v6845_v36 = vpop.permute.xlu0 %1467  ;;  %v1082_v46 = vmul.f32 %v8384_v59, %v6555_v0  ;;  %v2192_v48 = vpack.c.bf16 %v725_v39, %v721_v35  ;;  %v2236_v27 = vpack.c.bf16 %v1173_v1, %v1169_v18  ;;  %v1165_v17 = vmul.f32 %v6563_v56, %v1125_v62  ;;  %v8387_v39 = vld [vmem:[#allocation69_spill] sm:$0xff]  ;;  %v8394_v59 = vld [vmem:[#allocation108_spill] sm:$0xff] }
 0x296   : > { %2716 = vmatpush2.bf16.msra.mxu1 %v2196_v51  ;;  %2747 = vmatpush1.bf16.msra.mxu0 %v2240_v5  ;;  %v1161_v10 = vmul.f32 %v6563_v56, %v1124_v31  ;;  %v2308_v11 = vpack.c.bf16 %v6481_v20, %v6484_v34  ;;  %v1590_v28 = vrot.slane %v3498_v30, %v3828_v33  ;;  %v8390_v1 = vld [vmem:[#allocation97_spill] sm:$0xff]  ;;  %v8392_v31 = vld [vmem:[#allocation106_spill] sm:$0xff] }
 0x297   : > { %2748 = vmatprep.subr.bf16.mxu0 %v2237_v54  ;;  %2717 = vmatprep.subr.bf16.mxu1 %v2193_v53  ;;  %v6867_v3 = vpop.permute.xlu1 %1729  ;;  %v2233_v7 = vpack.c.bf16 %v1166_v55, %v1162_v24  ;;  %v2304_v51 = vpack.c.bf16 %v6849_v52, %v6853_v43  ;;  %v1563_v56 = vsel %vm1559_vm9, %v8385_v12, %v6689_v60  ;;  %v8393_v54 = vld [vmem:[#allocation107_spill] sm:$0xff]  ;;  %v8432_v20 = vld [vmem:[#allocation101_spill] sm:$0xff] }
 0x298   : > { %v1562_v61 = vsel %vm1559_vm9, %v8386_v32, %v6726_v15  ;;  %v1594_v63 = vrot.slane %v3498_v30, %v3971_v50  ;;  %v6886_v44 = vrot.slane %v3499_v42, %v3828_v33  ;;  %v8389_v35 = vpack.c.bf16 %v8387_v39, %v8388_v22  ;;  %v8400_v39 = vld [vmem:[#allocation78_spill] sm:$0xff] }
 0x299   : > { %v6869_v26 = vpop.permute.xlu0 %1727  ;;  %v2229_v53 = vpack.c.bf16 %v1086_v45, %v1082_v46  ;;  %v2232_v5 = vpack.c.bf16 %v1165_v17, %v1161_v10  ;;  %v1575_v18 = vsel %vm1559_vm9, %v6689_v60, %v8390_v1  ;;  %v1574_v62 = vsel %vm1559_vm9, %v6726_v15, %v8391_v49  ;;  %v3500_v15 = vld [vmem:[%s7719_s2] ss:$28 sps:$4 sm:$0xff]   ;;  %v8395_v17 = vld [vmem:[#allocation190_spill] sm:$0xff] }
 0x29a   : > { %2718 = vmatpush2.bf16.msra.mxu1 %v2192_v48  ;;  %2749 = vmatpush1.bf16.msra.mxu0 %v2236_v27  ;;  %v6900_v4 = vrot.slane %v3499_v42, %v3971_v50  ;;  %v6902_v55 = vmul.f32 %v1590_v28, %v1563_v56  ;;  %v6904_v19 = vmul.f32 %v1590_v28, %v1562_v61  ;;  %v3501_v46 = vld [vmem:[%s7718_s1 + $0x26] ss:$8 sm:$0xf] }
 0x29b   : > { %2750 = vmatprep.subr.bf16.mxu0 %v2233_v7  ;;  %2793 = vmatprep.subr.bf16.mxu1 %v8389_v35  ;;  %v1561_v24 = vsel %vm1559_vm9, %v8392_v31, %v6741_v57  ;;  %v1560_v60 = vsel %vm1559_vm9, %v8393_v54, %v6770_v2  ;;  %v1573_v45 = vsel %vm1559_vm9, %v6741_v57, %v8394_v59  ;;  %v8396_v10 = vld [vmem:[#allocation191_spill] sm:$0xff]  ;;  %v8398_v56 = vld [vmem:[#allocation109_spill] sm:$0xff]  ;;  %v6937_v32 = vpop.permute.xlu1 %1465  ;;  %v8402_v1 = vld [vmem:[#allocation110_spill] sm:$0xff] }
 0x29c   : > { %v6925_v48 = vrot.slane %v3501_v46, %v3828_v33  ;;  %v6928_v27 = vrot.slane %v3501_v46, %v3971_v50  ;;  %v8397_v30 = vpack.c.bf16 %v8395_v17, %v8396_v10  ;;  %v1614_v7 = vmul.f32 %v1594_v63, %v1575_v18  ;;  %v8399_v42 = vld [vmem:[#allocation77_spill] sm:$0xff]  ;;  %v8406_v46 = vld [vmem:[#allocation75_spill] sm:$0xff]  ;;  %v8410_v10 = vld [vmem:[#allocation198_spill] sm:$0xff] }
 0x29d   : > { %2720 = vmatmul.mubr.bf16.vlgmr.msra.gmra.mxu1 %v3500_v15  ;;  %v1610_v12 = vmul.f32 %v1594_v63, %v1574_v62  ;;  %v1572_v57 = vsel %vm1559_vm9, %v6770_v2, %v8398_v56  ;;  %v6939_v61 = vpop.permute.xlu0 %1463  ;;  %v8401_v22 = vpack.c.bf16 %v8399_v42, %v8400_v39  ;;  %v6944_v35 = vmul.f32 %v1590_v28, %v1561_v24  ;;  %v8403_v2 = vld [vmem:[#allocation113_spill] sm:$0xff]  ;;  %v8405_v15 = vld [vmem:[#allocation111_spill] sm:$0xff]  ;;  %v8415_v39 = vld [vmem:[#allocation196_spill] sm:$0xff] }
 0x29e   : > { %2751 = vmatpush1.bf16.msra.mxu0 %v2232_v5  ;;  %2794 = vmatpush1.bf16.msra.mxu1 %v8397_v30  ;;  %v6946_v5 = vmul.f32 %v1590_v28, %v1560_v60  ;;  %v1739_v18 = vsel %vm1735_vm0, %v8402_v1, %v6790_v14  ;;  %v6954_v49 = vrot.slane %v8403_v2, %v3828_v33  ;;  %v8404_v28 = vld [vmem:[#allocation115_spill] sm:$0xff]  ;;  %v8414_v42 = vld [vmem:[#allocation193_spill] sm:$0xff]  ;;  %v8418_v1 = vld [vmem:[#allocation86_spill] sm:$0xff] }
 0x29f   : > { %2752 = vmatprep.subr.bf16.mxu0 %v2229_v53  ;;  %2795 = vmatprep.subr.bf16.mxu1 %v8401_v22  ;;  %v3502_v53 = vld [vmem:[%s7719_s2 + $0x3c] ss:$28 sps:$4 sm:$0xff]   ;;  %v2284_v62 = vpack.c.bf16 %v6902_v55, %v6904_v19  ;;  %v1606_v31 = vmul.f32 %v1594_v63, %v1573_v45  ;;  %v1738_v24 = vsel %vm1735_vm0, %v8404_v28, %v6810_v37  ;;  %v8407_v19 = vld [vmem:[#allocation188_spill] sm:$0xff]  ;;  %v8408_v45 = vld [vmem:[#allocation189_spill] sm:$0xff] }
 0x2a0   : > { %2729 = vmatprep.mubr.bf16.mxu1 %v3502_v53  ;;  %v6967_v54 = vrot.slane %v8403_v2, %v3971_v50  ;;  %v1602_v60 = vmul.f32 %v1594_v63, %v1572_v57  ;;  %v1751_v59 = vsel %vm1735_vm0, %v6790_v14, %v8405_v15  ;;  %v1750_v55 = vsel %vm1735_vm0, %v6810_v37, %v8406_v46  ;;  %v8411_v30 = vld [vmem:[#allocation199_spill] sm:$0xff]  ;;  %v8413_v57 = vld [vmem:[#allocation118_spill] sm:$0xff]  ;;  %v8417_v37 = vld [vmem:[#allocation85_spill] sm:$0xff] }
 0x2a1   : > { %v8409_v17 = vpack.c.bf16 %v8407_v19, %v8408_v45  ;;  %v8412_v56 = vpack.c.bf16 %v8410_v10, %v8411_v30  ;;  %v1789_v63 = vmul.f32 %v6886_v44, %v1739_v18  ;;  %v1475_v14 = vsel %vm1471_vm11, %v8413_v57, %v6828_v29  ;;  %v8420_v18 = vld [vmem:[#allocation120_spill] sm:$0xff]  ;;  %v8421_v19 = vld [vmem:[#allocation121_spill] sm:$0xff]  ;;  %v3503_v30 = vld [vmem:[%s7719_s2 + $0x38] ss:$28 sps:$4 sm:$0xff]  }
 0x2a2   : > { %v8416_v22 = vpack.c.bf16 %v8414_v42, %v8415_v39  ;;  %v8419_v2 = vpack.c.bf16 %v8417_v37, %v8418_v1  ;;  %v2285_v53 = vpack.c.bf16 %v1614_v7, %v1610_v12  ;;  %v2280_v28 = vpack.c.bf16 %v6944_v35, %v6946_v5  ;;  %v8422_v7 = vld [vmem:[#allocation102_spill] sm:$0xff]  ;;  %v8423_v35 = vld [vmem:[#allocation4_spill] sm:$0xff]  ;;  %v8426_v42 = vld [vmem:[#allocation195_spill] sm:$0xff] }
 0x2a3   : > { %2753 = vmatpush1.bf16.msra.mxu0 %v8409_v17  ;;  %2796 = vmatpush1.bf16.msra.mxu1 %v8412_v56  ;;  %v1785_v15 = vmul.f32 %v6886_v44, %v1738_v24  ;;  %v1487_v46 = vsel %vm1471_vm11, %v6828_v29, %v8420_v18  ;;  %v1486_v45 = vsel %vm1471_vm11, %v6845_v36, %v8421_v19  ;;  %v1646_v29 = vpop.permute.xlu1 %1645  ;;  %v1644_v24 = vpop.permute.xlu0 %1643  ;;  %v8425_v57 = vld [vmem:[#allocation192_spill] sm:$0xff]  ;;  %v8430_v18 = vld [vmem:[#allocation94_spill] sm:$0xff] }
 0x2a4   : > { %2754 = vmatprep.subr.bf16.mxu0 %v8416_v22  ;;  %2797 = vmatprep.subr.bf16.mxu1 %v8419_v2  ;;  %v1790_v17 = vmul.f32 %v6900_v4, %v1751_v59  ;;  %v1786_v10 = vmul.f32 %v6900_v4, %v1750_v55  ;;  %v1749_v12 = vsel %vm1735_vm0, %v6867_v3, %v8422_v7  ;;  %v8424_v55 = vld [vmem:[#allocation119_spill] sm:$0xff] }
 0x2a5   : > { %v1748_v5 = vsel %vm1735_vm0, %v6869_v26, %v8423_v35  ;;  %2730 = vmatmul.mubr.bf16.gmra.mxu1 %v3503_v30  ;;  %v1525_v59 = vmul.f32 %v6925_v48, %v1475_v14  ;;  %v1474_v56 = vsel %vm1471_vm11, %v8424_v55, %v6845_v36  ;;  %v8427_v39 = vpack.c.bf16 %v8425_v57, %v8426_v42  ;;  %v8428_v14 = vld [vmem:[#allocation7_spill] sm:$0xff]  ;;  %v8429_v36 = vld [vmem:[#allocation93_spill] sm:$0xff]  ;;  %v8437_v55 = vld [vmem:[#allocation130_spill] sm:$0xff] }
 0x2a6   : > { %v2281_v22 = vpack.c.bf16 %v1606_v31, %v1602_v60  ;;  %v1526_v37 = vmul.f32 %v6928_v27, %v1487_v46  ;;  %v1522_v1 = vmul.f32 %v6928_v27, %v1486_v45  ;;  %v1737_v2 = vsel %vm1735_vm0, %v8428_v14, %v6867_v3  ;;  %v3504_v31 = vld [vmem:[%s7719_s2 + $0x14] ss:$28 sps:$4 sm:$0xff]   ;;  %v8433_v60 = vld [vmem:[#allocation132_spill] sm:$0xff]  ;;  %v8435_v46 = vld [vmem:[#allocation139_spill] sm:$0xff] }
 0x2a7   : > { %2755 = vmatpush1.bf16.msra.mxu0 %v8427_v39  ;;  %2798 = vmatpush1.bf16.msra.mxu1 %v2308_v11  ;;  %v8431_v19 = vpack.c.bf16 %v8429_v36, %v8430_v18  ;;  %v2300_v7 = vpack.c.bf16 %v1789_v63, %v1785_v15  ;;  %v1782_v35 = vmul.f32 %v6900_v4, %v1749_v12  ;;  %v8436_v12 = vld [vmem:[#allocation135_spill] sm:$0xff]  ;;  %v8440_v14 = vld [vmem:[#allocation134_spill] sm:$0xff] }
 0x2a8   : > { %2756 = vmatprep.subr.bf16.mxu0 %v2285_v53  ;;  %v1736_v34 = vsel %vm1735_vm0, %v8432_v20, %v6869_v26  ;;  %v1778_v11 = vmul.f32 %v6900_v4, %v1748_v5  ;;  %2825 = vmatprep.mubr.bf16.mxu1 %v3504_v31  ;;  %v1521_v3 = vmul.f32 %v6925_v48, %v1474_v56  ;;  %v8434_v53 = vld [vmem:[#allocation133_spill] sm:$0xff]  ;;  %v1640_v56 = vpop.permute.xlu0 %1639  ;;  %v8442_v36 = vld [vmem:[#allocation22_spill] sm:$0xff] }
 0x2a9   : > { %2799 = vmatprep.subr.bf16.mxu1 %v8431_v19  ;;  %v1485_v63 = vsel %vm1471_vm11, %v6937_v32, %v8433_v60  ;;  %v1484_v15 = vsel %vm1471_vm11, %v6939_v61, %v8434_v53  ;;  %v2301_v26 = vpack.c.bf16 %v1790_v17, %v1786_v10  ;;  %v1781_v4 = vmul.f32 %v6886_v44, %v1737_v2  ;;  %v1642_v10 = vpop.permute.xlu1 %1641  ;;  %v8441_v2 = vld [vmem:[#allocation26_spill] sm:$0xff] }
 0x2aa   : > { %v1663_v45 = vsel %vm1647_vm10, %v1646_v29, %v8435_v46  ;;  %v1662_v5 = vsel %vm1647_vm10, %v1644_v24, %v8436_v12  ;;  %v1777_v30 = vmul.f32 %v6886_v44, %v1736_v34  ;;  %v1473_v17 = vsel %vm1471_vm11, %v8437_v55, %v6937_v32  ;;  %v8439_v44 = vld [vmem:[#allocation138_spill] sm:$0xff] }
 0x2ab   : > { %2757 = vmatpush2.bf16.msra.mxu0 %v2284_v62  ;;  %2800 = vmatpush1.bf16.msra.mxu1 %v2304_v51  ;;  %v2277_v57 = vpack.c.bf16 %v1526_v37, %v1522_v1  ;;  %v1518_v42 = vmul.f32 %v6928_v27, %v1485_v63  ;;  %v8438_v62 = vld [vmem:[#allocation131_spill] sm:$0xff]  ;;  %v1514_v43 = vmul.f32 %v6928_v27, %v1484_v15  ;;  %v8445_v63 = vld [vmem:[#allocation33_spill] sm:$0xff] }
 0x2ac   : > { %2758 = vmatprep.subr.bf16.mxu0 %v2281_v22  ;;  %2801 = vmatprep.subr.bf16.mxu1 %v2301_v26  ;;  %v1472_v52 = vsel %vm1471_vm11, %v8438_v62, %v6939_v61  ;;  %v2297_v51 = vpack.c.bf16 %v1782_v35, %v1778_v11  ;;  %v1651_v39 = vsel %vm1647_vm10, %v8439_v44, %v1646_v29  ;;  %v8443_v35 = vld [vmem:[#allocation25_spill] sm:$0xff]  ;;  %v3505_v15 = vld [vmem:[%s3611_s30 + $0x78] sm:$0xff] }
 0x2ad   : > { %v1702_v32 = vmul.f32 %v6967_v54, %v1663_v45  ;;  %v1650_v22 = vsel %vm1647_vm10, %v8440_v14, %v1644_v24  ;;  %v1698_v37 = vmul.f32 %v6967_v54, %v1662_v5  ;;  %v2276_v1 = vpack.c.bf16 %v1525_v59, %v1521_v3  ;;  %v1374_v31 = vpop.permute.xlu1 %1373  ;;  %v1372_v3 = vpop.permute.xlu0 %1371  ;;  %v3506_v26 = vld [vmem:[%s3611_s30 + $0x58] sm:$0xff]  ;;  %v8448_v62 = vld [vmem:[#allocation5_spill] sm:$0xff] }
 0x2ae   : > { %v1661_v61 = vsel %vm1647_vm10, %v1642_v10, %v8441_v2  ;;  %v1660_v27 = vsel %vm1647_vm10, %v1640_v56, %v8442_v36  ;;  %v2296_v29 = vpack.c.bf16 %v1781_v4, %v1777_v30  ;;  %v1517_v18 = vmul.f32 %v6925_v48, %v1473_v17  ;;  %v3507_v5 = vld [vmem:[%s7718_s1 + $0x24] ss:$8 sm:$0xf] }
 0x2af   : > { %2759 = vmatpush2.bf16.msra.mxu0 %v2280_v28  ;;  %2802 = vmatpush1.bf16.msra.mxu1 %v2300_v7  ;;  %v1513_v19 = vmul.f32 %v6925_v48, %v1472_v52  ;;  %v1701_v24 = vmul.f32 %v6954_v49, %v1651_v39  ;;  %v1697_v59 = vmul.f32 %v6954_v49, %v1650_v22  ;;  %v8444_v7 = vld [vmem:[#allocation21_spill] sm:$0xff]  ;;  %v8446_v17 = vld [vmem:[#allocation160_spill] sm:$0xff] }
 0x2b0   : > { %2760 = vmatprep.subr.bf16.mxu0 %v2277_v57  ;;  %2803 = vmatprep.subr.bf16.mxu1 %v2297_v51  ;;  %v1649_v20 = vsel %vm1647_vm10, %v8443_v35, %v1642_v10  ;;  %v2273_v34 = vpack.c.bf16 %v1518_v42, %v1514_v43  ;;  %v1694_v28 = vmul.f32 %v6967_v54, %v1661_v61  ;;  %v3508_v42 = vld [vmem:[%s3611_s30 + $0x70] sm:$0xff]  ;;  %v3510_v51 = vld [vmem:[%s3611_s30 + $0x18] sm:$0xff] }
 0x2b1   : > { %v1648_v11 = vsel %vm1647_vm10, %v8444_v7, %v1640_v56  ;;  %v1690_v48 = vmul.f32 %v6967_v54, %v1660_v27  ;;  %v2293_v60 = vpack.c.bf16 %v1702_v32, %v1698_v37  ;;  %v2000_v53 = vrot.slane %v8445_v63, %v3828_v33  ;;  %v8447_v56 = vld [vmem:[#allocation161_spill] sm:$0xff]  ;;  %v1370_v52 = vpop.permute.xlu1 %1369  ;;  %v1368_v43 = vpop.permute.xlu0 %1367  ;;  %v8449_v37 = vld [vmem:[#allocation158_spill] sm:$0xff]  ;;  %v8450_v61 = vld [vmem:[#allocation159_spill] sm:$0xff] }
 0x2b2   : > { %v2269_v4 = vpack.c.bf16 %v3505_v15, %v3506_v26  ;;  %v2272_v46 = vpack.c.bf16 %v1517_v18, %v1513_v19  ;;  %v2292_v45 = vpack.c.bf16 %v1701_v24, %v1697_v59  ;;  %v1693_v12 = vmul.f32 %v6954_v49, %v1649_v20  ;;  %v3511_v19 = vld [vmem:[%s3611_s30 + $0x30] sm:$0xff]  ;;  %v8453_v24 = vld [vmem:[#allocation125_spill] sm:$0xff]  ;;  %v8454_v7 = vld [vmem:[#allocation148_spill] sm:$0xff] }
 0x2b3   : > { %2761 = vmatpush2.bf16.msra.mxu0 %v2276_v1  ;;  %2804 = vmatpush1.bf16.msra.mxu1 %v2296_v29  ;;  %v1689_v54 = vmul.f32 %v6954_v49, %v1648_v11  ;;  %v1418_v30 = vrot.slane %v3507_v5, %v3971_v50  ;;  %v2289_v55 = vpack.c.bf16 %v1694_v28, %v1690_v48  ;;  %v3509_v50 = vld [vmem:[%s3611_s30 + $0x38] sm:$0xff]  ;;  %v8451_v29 = vld [vmem:[#allocation173_spill] sm:$0xff] }
 0x2b4   : > { %2762 = vmatprep.subr.bf16.mxu0 %v2273_v34  ;;  %2805 = vmatprep.subr.bf16.mxu1 %v2293_v60  ;;  %v1387_v10 = vsel %vm1383_vm14, %v1374_v31, %v8446_v17  ;;  %v1386_v57 = vsel %vm1383_vm14, %v1372_v3, %v8447_v56  ;;  %v2268_v49 = vpack.c.bf16 %v3508_v42, %v8448_v62  ;;  %v3512_v34 = vld [vmem:[%s7718_s1 + $0x46] ss:$8 sm:$0xf] }
 0x2b5   : > { %v2265_v44 = vpack.c.bf16 %v3509_v50, %v3510_v51  ;;  %v2023_v39 = vmul.f32 %v2000_v53, %v6535_v40  ;;  %v2019_v32 = vmul.f32 %v2000_v53, %v6541_v58  ;;  %v2288_v14 = vpack.c.bf16 %v1693_v12, %v1689_v54  ;;  %v8452_v40 = vld [vmem:[#allocation174_spill] sm:$0xff]  ;;  %v8455_v11 = vld [vmem:[#allocation149_spill] sm:$0xff]  ;;  %v8457_v63 = vld [vmem:[#allocation171_spill] sm:$0xff] }
 0x2b6   : > { %v1414_v22 = vrot.slane %v3507_v5, %v3828_v33  ;;  %v1391_v1 = vsel %vm1383_vm14, %v8449_v37, %v1374_v31  ;;  %v1438_v2 = vmul.f32 %v1418_v30, %v1387_v10  ;;  %v1390_v36 = vsel %vm1383_vm14, %v8450_v61, %v1372_v3  ;;  %v8460_v12 = vld [vmem:[#allocation157_spill] sm:$0xff]  ;;  %v8464_v42 = vld [vmem:[#allocation170_spill] sm:$0xff]  ;;  %v8467_v51 = vld [vmem:[#allocation183_spill] sm:$0xff] }
 0x2b7   : > { %2763 = vmatpush2.bf16.msra.mxu0 %v2272_v46  ;;  %2806 = vmatpush1.bf16.msra.mxu1 %v2292_v45  ;;  %v1434_v27 = vmul.f32 %v1418_v30, %v1386_v57  ;;  %v1385_v18 = vsel %vm1383_vm14, %v1370_v52, %v8451_v29  ;;  %v1384_v58 = vsel %vm1383_vm14, %v1368_v43, %v8452_v40  ;;  %v8459_v45 = vld [vmem:[#allocation156_spill] sm:$0xff]  ;;  %v8466_v50 = vld [vmem:[#allocation182_spill] sm:$0xff] }
 0x2b8   : > { %2807 = vmatprep.subr.bf16.mxu1 %v2289_v55  ;;  %2764 = vmatprep.subr.bf16.mxu0 %v2269_v4  ;;  %v2264_v59 = vpack.c.bf16 %v3511_v19, %v8453_v24  ;;  %v2015_v35 = vmul.f32 %v2000_v53, %v6599_v25  ;;  %v2011_v20 = vmul.f32 %v2000_v53, %v6608_v38  ;;  %v8458_v38 = vld [vmem:[#allocation172_spill] sm:$0xff]  ;;  %v8481_v40 = vld [vmem:[#allocation194_spill] sm:$0xff]  ;;  %v8484_v24 = vld [vmem:[#allocation39_spill] sm:$0xff] }
 0x2b9   : > { %v1961_v28 = vrot.slane %v3512_v34, %v3828_v33  ;;  %v8456_v48 = vpack.c.bf16 %v8454_v7, %v8455_v11  ;;  %v2348_v31 = vpack.c.bf16 %v2023_v39, %v2019_v32  ;;  %v1437_v3 = vmul.f32 %v1414_v22, %v1391_v1  ;;  %v8470_v39 = vld [vmem:[#allocation82_spill] sm:$0xff]  ;;  %v8479_v29 = vld [vmem:[#allocation124_spill] sm:$0xff]  ;;  %v8488_v34 = vld [vmem:[#allocation105_spill] sm:$0xff] }
 0x2ba   : > { %v1433_v60 = vmul.f32 %v1414_v22, %v1390_v36  ;;  %v1389_v25 = vsel %vm1383_vm14, %v8457_v63, %v1370_v52  ;;  %v1430_v15 = vmul.f32 %v1418_v30, %v1385_v18  ;;  %v1388_v53 = vsel %vm1383_vm14, %v8458_v38, %v1368_v43  ;;  %v8475_v1 = vld [vmem:[#allocation90_spill] sm:$0xff]  ;;  %v3514_v36 = vld [vmem:[%s7719_s2 + $0x44] ss:$28 sps:$4 sm:$0xff]  }
 0x2bb   : > { %2765 = vmatpush2.bf16.msra.mxu0 %v2268_v49  ;;  %2808 = vmatpush1.bf16.msra.mxu1 %v2288_v14  ;;  %v1426_v26 = vmul.f32 %v1418_v30, %v1384_v58  ;;  %v2261_v4 = vpack.c.bf16 %v1438_v2, %v1434_v27  ;;  %v2344_v33 = vpack.c.bf16 %v2015_v35, %v2011_v20  ;;  %v8476_v2 = vld [vmem:[#allocation91_spill] sm:$0xff]  ;;  %v8478_v27 = vld [vmem:[#allocation112_spill] sm:$0xff]  ;;  %v8482_v58 = vld [vmem:[#allocation197_spill] sm:$0xff] }
 0x2bc   : > { %2809 = vmatprep.subr.bf16.mxu1 %v8456_v48  ;;  %2766 = vmatprep.subr.bf16.mxu0 %v2265_v44  ;;  %v1984_v46 = vmul.f32 %v1961_v28, %v6654_v9  ;;  %v8461_v54 = vpack.c.bf16 %v8459_v45, %v8460_v12  ;;  %v1980_v5 = vmul.f32 %v1961_v28, %v6703_v23  ;;  %v8463_v9 = vld [vmem:[#allocation169_spill] sm:$0xff]  ;;  %v8487_v20 = vld [vmem:[#allocation104_spill] sm:$0xff] }
 0x2bd   : > { %v2260_v55 = vpack.c.bf16 %v1437_v3, %v1433_v60  ;;  %v1429_v17 = vmul.f32 %v1414_v22, %v1389_v25  ;;  %v1425_v10 = vmul.f32 %v1414_v22, %v1388_v53  ;;  %v2257_v56 = vpack.c.bf16 %v1430_v15, %v1426_v26  ;;  %v3513_v22 = vld [vmem:[%s7719_s2 + $0x8] ss:$28 sps:$4 sm:$0xff]   ;;  %v3515_v7 = vld [vmem:[%s7719_s2 + $0x40] ss:$28 sps:$4 sm:$0xff]  }
 0x2be   : > { %v2140_v30 = vmul.f32 %v8462_v21, %v6549_v41  ;;  %v2136_v57 = vmul.f32 %v8462_v21, %v6555_v0  ;;  %v8465_v62 = vpack.c.bf16 %v8463_v9, %v8464_v42  ;;  %v2340_v49 = vpack.c.bf16 %v1984_v46, %v1980_v5  ;;  %v8469_v41 = vld [vmem:[#allocation81_spill] sm:$0xff]  ;;  %v8490_v11 = vld [vmem:[#allocation136_spill] sm:$0xff]  ;;  %v8493_v3 = vld [vmem:[#allocation99_spill] sm:$0xff] }
 0x2bf   : > { %2767 = vmatpush2.bf16.msra.mxu0 %v2264_v59  ;;  %2810 = vmatpush2.bf16.msra.mxu1 %v2348_v31  ;;  %v1976_v23 = vmul.f32 %v1961_v28, %v6747_v8  ;;  %v1972_v52 = vmul.f32 %v1961_v28, %v6753_v47  ;;  %v2256_v43 = vpack.c.bf16 %v1429_v17, %v1425_v10  ;;  %v8472_v8 = vld [vmem:[#allocation27_spill] sm:$0xff]  ;;  %v8473_v47 = vld [vmem:[#allocation28_spill] sm:$0xff]  ;;  %v8491_v48 = vld [vmem:[#allocation137_spill] sm:$0xff] }
 0x2c0   : > { %2768 = vmatprep.subr.bf16.mxu0 %v2261_v4  ;;  %2811 = vmatprep.subr.bf16.mxu1 %v8461_v54  ;;  %v8468_v44 = vpack.c.bf16 %v8466_v50, %v8467_v51  ;;  %v8471_v0 = vpack.c.bf16 %v8469_v41, %v8470_v39  ;;  %v2372_v32 = vpack.c.bf16 %v2140_v30, %v2136_v57  ;;  %v8485_v59 = vld [vmem:[#allocation40_spill] sm:$0xff]  ;;  %v8494_v60 = vld [vmem:[#allocation103_spill] sm:$0xff]  ;;  %v8500_v26 = vld [vmem:[#allocation117_spill] sm:$0xff] }
 0x2c1   : > { %v2336_v14 = vpack.c.bf16 %v1976_v23, %v1972_v52  ;;  %v8474_v37 = vpack.c.bf16 %v8472_v8, %v8473_v47  ;;  %v8477_v61 = vpack.c.bf16 %v8475_v1, %v8476_v2  ;;  %v8480_v18 = vpack.c.bf16 %v8478_v27, %v8479_v29  ;;  %v8496_v25 = vld [vmem:[#allocation51_spill] sm:$0xff]  ;;  %v8497_v15 = vld [vmem:[#allocation52_spill] sm:$0xff]  ;;  %v8504_v45 = vld [vmem:[#allocation37_spill] sm:$0xff] }
 0x2c2   : > { %v8483_v19 = vpack.c.bf16 %v8481_v40, %v8482_v58  ;;  %v8486_v35 = vpack.c.bf16 %v8484_v24, %v8485_v59  ;;  %v8489_v28 = vpack.c.bf16 %v8487_v20, %v8488_v34  ;;  %v8492_v31 = vpack.c.bf16 %v8490_v11, %v8491_v48  ;;  %v8499_v53 = vld [vmem:[#allocation116_spill] sm:$0xff]  ;;  %v8507_v5 = vld [vmem:[#allocation87_spill] sm:$0xff]  ;;  %v8513_v30 = vld [vmem:[#allocation129_spill] sm:$0xff]  ;;  %v7251_v40 = vpop.permute.xlu0 %2380  ;;  %v7253_v24 = vpop.permute.xlu1 %2385 }
 0x2c3   : > { %2769 = vmatpush2.bf16.msra.mxu0 %v2260_v55  ;;  %2812 = vmatpush2.bf16.msra.mxu1 %v2344_v33  ;;  %v8495_v63 = vpack.c.bf16 %v8493_v3, %v8494_v60  ;;  %v8498_v38 = vpack.c.bf16 %v8496_v25, %v8497_v15  ;;  %v8501_v4 = vpack.c.bf16 %v8499_v53, %v8500_v26  ;;  %v8502_v33 = vmov 0   ;;  %v8503_v46 = vld [vmem:[#allocation16_spill] sm:$0xff]  ;;  %v8509_v17 = vld [vmem:[#allocation63_spill] sm:$0xff]  ;;  %v8515_v9 = vld [vmem:[#allocation38_spill] sm:$0xff]  ;;  %v2509_v8 = vpop.f32.mrf.mxu0 }
 0x2c4   : > { %2770 = vmatprep.subr.bf16.mxu0 %v2257_v56  ;;  %2813 = vmatprep.subr.bf16.mxu1 %v8465_v62  ;;  %v8505_v12 = vpack.c.bf16 %v8503_v46, %v8504_v45  ;;  %v8506_v54 = vld [vmem:[#allocation100_spill] sm:$0xff]  ;;  %v8516_v42 = vld [vmem:[#allocation34_spill] sm:$0xff]  ;;  %v8522_v50 = vld [vmem:[#allocation141_spill] sm:$0xff]  ;;  %v2510_v59 = vadd.f32 %v2509_v8, %v7251_v40 }
 0x2c5   : > { %v8508_v55 = vpack.c.bf16 %v8506_v54, %v8507_v5  ;;  %v8510_v10 = vld [vmem:[#allocation64_spill] sm:$0xff]  ;;  %v8517_v62 = vpack.c.bf16 %v8515_v9, %v8516_v42  ;;  %v8519_v23 = vld [vmem:[#allocation114_spill] sm:$0xff] }
 0x2c6   : > { %v8511_v56 = vpack.c.bf16 %v8509_v17, %v8510_v10  ;;  %v8512_v21 = vld [vmem:[#allocation128_spill] sm:$0xff]  ;;  %v8525_v41 = vld [vmem:[#allocation6_spill] sm:$0xff]  ;;  %v7268_v26 = vpop.permute.xlu0 %2395 }
 0x2c7   : > { %2771 = vmatpush2.bf16.msra.mxu0 %v2256_v43  ;;  %2814 = vmatpush2.bf16.msra.mxu1 %v2340_v49  ;;  %v8514_v57 = vpack.c.bf16 %v8512_v21, %v8513_v30  ;;  %v8518_v49 = vld [vmem:[#allocation88_spill] sm:$0xff] }
 0x2c8   : > { %2815 = vmatprep.subr.bf16.mxu1 %v8468_v44  ;;  %2850 = vmatprep.subr.bf16.mxu0 %v8471_v0  ;;  %v8520_v52 = vpack.c.bf16 %v8518_v49, %v8519_v23  ;;  %v8521_v43 = vld [vmem:[#allocation140_spill] sm:$0xff]  ;;  %v8524_v44 = vld [vmem:[#allocation122_spill] sm:$0xff] }
 0x2c9   : > { %v8523_v51 = vpack.c.bf16 %v8521_v43, %v8522_v50  ;;  %v8526_v39 = vpack.c.bf16 %v8524_v44, %v8525_v41  ;;  %v3516_v0 = vld [vmem:[%s7719_s2 + $0x18] ss:$28 sps:$4 sm:$0xff]  }
 0x2ca   : > { %2773 = vmatmul.mubr.bf16.vlgmr.msra.gmra.mxu0 %v3513_v22 }
 0x2cb   : > { %2816 = vmatpush2.bf16.msra.mxu1 %v2336_v14  ;;  %2851 = vmatpush1.bf16.msra.mxu0 %v2372_v32  ;;  %v2562_v32 = vpop.f32.mrf.mxu1 }
 0x2cc   : > { %2817 = vmatprep.subr.bf16.mxu1 %v8474_v37  ;;  %2852 = vmatprep.subr.bf16.mxu0 %v8477_v61  ;;  %v2511_v37 = vpop.f32.mrf.mxu0  ;;  %v2563_v11 = vadd.f32 %v2562_v32, %v2510_v59 }
 0x2cd   : > { %2782 = vmatprep.mubr.bf16.mxu0 %v3514_v36  ;;  %v2564_v14 = vpop.f32.mrf.mxu1  ;;  %v2512_v20 = vadd.f32 %v2511_v37, %v7251_v40 }
 0x2ce   : > { %v2513_v2 = vpop.f32.mrf.mxu0 }
 0x2cf   : > { %2818 = vmatpush2.bf16.msra.mxu1 %v8480_v18  ;;  %2853 = vmatpush1.bf16.msra.mxu0 %v8483_v19  ;;  %v2566_v22 = vpop.f32.mrf.mxu1 }
 0x2d0   : > { %2819 = vmatprep.subr.bf16.mxu1 %v8486_v35  ;;  %2854 = vmatprep.subr.bf16.mxu0 %v8489_v28  ;;  %v2515_v36 = vpop.f32.mrf.mxu0  ;;  %v2514_v28 = vadd.f32 %v2513_v2, %v7253_v24 }
 0x2d1   : > { %v2516_v3 = vadd.f32 %v2515_v36, %v7253_v24 }
 0x2d2   : > { %2783 = vmatmul.mubr.bf16.gmra.mxu0 %v3515_v7  ;;  %v7258_v7 = vpop.permute.xlu1 %2390  ;;  %v2567_v53 = vadd.f32 %v2566_v22, %v2514_v28 }
 0x2d3   : > { %2820 = vmatpush2.bf16.msra.mxu1 %v8492_v31  ;;  %2855 = vmatpush1.bf16.msra.mxu0 %v8495_v63  ;;  %v2565_v63 = vadd.f32 %v2564_v14, %v2512_v20 }
 0x2d4   : > { %2821 = vmatprep.subr.bf16.mxu1 %v8498_v38  ;;  %2856 = vmatprep.subr.bf16.mxu0 %v8501_v4 }
 0x2d5   : > { %2878 = vmatprep.mubr.bf16.mxu0 %v8502_v33 }
 0x2d7   : > { %2822 = vmatpush2.bf16.msra.mxu1 %v8505_v12  ;;  %2857 = vmatpush1.bf16.msra.mxu0 %v8508_v55 }
 0x2d8   : > { %2823 = vmatprep.subr.bf16.mxu1 %v8511_v56  ;;  %2858 = vmatprep.subr.bf16.mxu0 %v8514_v57 }
 0x2db   : > { %2824 = vmatpush2.bf16.msra.mxu1 %v8517_v62  ;;  %2859 = vmatpush1.bf16.msra.mxu0 %v8520_v52 }
 0x2dc   : > { %2860 = vmatprep.subr.bf16.mxu0 %v8523_v51 }
 0x2de   : > { %2826 = vmatmul.mubr.bf16.vlgmr.msra.gmra.mxu1 %v6671_v13  ;;  %v3517_v13 = vld [vmem:[%s7719_s2 + $0x50] ss:$28 sps:$4 sm:$0xff]  }
 0x2df   : > { %2861 = vmatpush1.bf16.msra.mxu0 %v8526_v39  ;;  %2835 = vmatprep.mubr.bf16.mxu1 %v6717_v16  ;;  %v2568_v16 = vpop.f32.mrf.mxu1 }
 0x2e0   : > { %v2569_v12 = vadd.f32 %v2568_v16, %v2516_v3 }
 0x2e1   : > { %v2572_v47 = vpop.f32.mrf.mxu1 }
 0x2e2   : > { %3397 = vmatmul.mubr.msk.bf16.vlgmr.msra.gmra.mxu0 %vm2468_vm7, %v3516_v0 }
 0x2e3   : > { %2888 = vmatprep.mubr.bf16.mxu0 %v8502_v33  ;;  %v2574_v1 = vpop.f32.mrf.mxu1 }
 0x2e5   : > { %v2576_v61 = vpop.f32.mrf.mxu1 }
 0x2e6   : > { %2836 = vmatmul.mubr.bf16.gmra.mxu1 %v6775_v6  ;;  %v2519_v6 = vpop.f32.mrf.mxu0 }
 0x2e7   : > { %v2578_v27 = vpop.f32.mrf.mxu1  ;;  %v2520_v15 = vadd.f32 %v2519_v6, %v7258_v7 }
 0x2e8   : > { %v2521_v18 = vpop.f32.mrf.mxu0 }
 0x2e9   : > { %v2522_v45 = vadd.f32 %v2521_v18, %v7258_v7  ;;  %v2573_v56 = vadd.f32 %v2572_v47, %v2520_v15 }
 0x2ea   : > { %3398 = vmatmul.mubr.msk.bf16.gmra.mxu0 %vm2468_vm7, %v3517_v13  ;;  %v2523_v19 = vpop.f32.mrf.mxu0 }
 0x2eb   : > { %v2524_v55 = vadd.f32 %v2523_v19, %v7268_v26  ;;  %v2575_v49 = vadd.f32 %v2574_v1, %v2522_v45 }
 0x2ec   : > { %v2525_v34 = vpop.f32.mrf.mxu0 }
 0x2ed   : > { %v2526_v23 = vadd.f32 %v2525_v34, %v7268_v26  ;;  %v2577_v51 = vadd.f32 %v2576_v61, %v2524_v55 }
 0x2ef   : > { %v2579_v16 = vadd.f32 %v2578_v27, %v2526_v23 }
 0x2f2   : > { %v2668_v29 = vpop.f32.mrf.mxu1 }
 0x2f4   : > { %v2670_v58 = vpop.f32.mrf.mxu1 }
 0x2f6   : > { %v2672_v35 = vpop.f32.mrf.mxu1 }
 0x2f8   : > { %v2674_v48 = vpop.f32.mrf.mxu1 }
 0x2fb   : > { %v2678_v38 = vpop.f32.mrf.mxu1 }
 0x2fd   : > { %v2680_v21 = vpop.f32.mrf.mxu1 }
 0x2ff   : > { %v2682_v39 = vpop.f32.mrf.mxu1 }
 0x301   : > { %v2684_v61 = vpop.f32.mrf.mxu1 }
 0x349   : > { %v2615_v31 = vpop.f32.mrf.mxu0 }
 0x34a   : > { %v2616_v60 = vadd.f32 %v2615_v31, %v2563_v11 }
 0x34b   : > { %v2617_v25 = vpop.f32.mrf.mxu0 }
 0x34c   : > { %v2669_v4 = vadd.f32 %v2668_v29, %v2616_v60  ;;  %v2618_v33 = vadd.f32 %v2617_v25, %v2565_v63 }
 0x34d   : > { %v2619_v46 = vpop.f32.mrf.mxu0 }
 0x34e   : > { %2902 = vst [vmem:[%s7265_s26] sm:$0xff] %v2669_v4  ;;  %v2671_v54 = vadd.f32 %v2670_v58, %v2618_v33  ;;  %v2620_v5 = vadd.f32 %v2619_v46, %v2567_v53  ;;  %v2955_v17 = vmul.f32 %v2669_v4, %v2669_v4 }
 0x34f   : > { %v2621_v10 = vpop.f32.mrf.mxu0 }
 0x350   : > { %2903 = vst [vmem:[%s7265_s26 + $0x8] sm:$0xff] %v2671_v54  ;;  %v2956_v30 = vmul.f32 %v2671_v54, %v2671_v54  ;;  %v2673_v57 = vadd.f32 %v2672_v35, %v2620_v5  ;;  %v2622_v9 = vadd.f32 %v2621_v10, %v2569_v12  ;;  %v7274_v42 = vadd.f32 %v2671_v54, %v2669_v4 }
 0x351   : > { %v2625_v62 = vpop.f32.mrf.mxu0 }
 0x352   : > { %2906 = vst [vmem:[%s7265_s26 + $0x20] sm:$0xff] %v2673_v57  ;;  %v2675_v52 = vadd.f32 %v2674_v48, %v2622_v9  ;;  %v2626_v43 = vadd.f32 %v2625_v62, %v2573_v56  ;;  %v7278_v50 = vadd.f32 %v2956_v30, %v2955_v17  ;;  %v2959_v44 = vmul.f32 %v2673_v57, %v2673_v57 }
 0x353   : > { %v2627_v41 = vpop.f32.mrf.mxu0 }
 0x354   : > { %2907 = vst [vmem:[%s7265_s26 + $0x28] sm:$0xff] %v2675_v52  ;;  %v2960_v0 = vmul.f32 %v2675_v52, %v2675_v52  ;;  %v2679_v13 = vadd.f32 %v2678_v38, %v2626_v43  ;;  %v2628_v32 = vadd.f32 %v2627_v41, %v2575_v49  ;;  %v7281_v14 = vadd.f32 %v2675_v52, %v2673_v57 }
 0x355   : > { %v2629_v22 = vpop.f32.mrf.mxu0 }
 0x356   : > { %2910 = vst [vmem:[%s7265_s26 + $0x40] sm:$0xff] %v2679_v13  ;;  %v2681_v8 = vadd.f32 %v2680_v21, %v2628_v32  ;;  %v2630_v47 = vadd.f32 %v2629_v22, %v2577_v51  ;;  %v7284_v37 = vadd.f32 %v2960_v0, %v2959_v44  ;;  %v2963_v1 = vmul.f32 %v2679_v13, %v2679_v13 }
 0x357   : > { %v2631_v2 = vpop.f32.mrf.mxu0 }
 0x358   : > { %2911 = vst [vmem:[%s7265_s26 + $0x48] sm:$0xff] %v2681_v8  ;;  %v7287_v36 = vadd.f32 %v2681_v8, %v2679_v13  ;;  %v2964_v6 = vmul.f32 %v2681_v8, %v2681_v8  ;;  %v2683_v29 = vadd.f32 %v2682_v39, %v2630_v47  ;;  %v2632_v18 = vadd.f32 %v2631_v2, %v2579_v16 }
 0x35a   : > { %v7289_v58 = vadd.f32 %v2964_v6, %v2963_v1  ;;  %2914 = vst [vmem:[%s7265_s26 + $0x60] sm:$0xff] %v2683_v29  ;;  %v2685_v19 = vadd.f32 %v2684_v61, %v2632_v18  ;;  %v2967_v27 = vmul.f32 %v2683_v29, %v2683_v29 }
 0x35c   : > { %2915 = vst [vmem:[%s7265_s26 + $0x68] sm:$0xff] %v2685_v19  ;;  %v7293_v59 = vadd.f32 %v2685_v19, %v2683_v29  ;;  %v2968_v35 = vmul.f32 %v2685_v19, %v2685_v19 }
 0x35d   : > { %v2721_v34 = vpop.f32.mrf.mxu1 }
 0x35e   : > { %v7295_v20 = vadd.f32 %v2968_v35, %v2967_v27  ;;  %v2722_v45 = vadd.f32 %v2721_v34, %v7251_v40 }
 0x35f   : > { %v2723_v28 = vpop.f32.mrf.mxu1 }
 0x360   : > { %v2724_v54 = vadd.f32 %v2723_v28, %v7251_v40 }
 0x361   : > { %v2725_v11 = vpop.f32.mrf.mxu1 }
 0x362   : > { %v2726_v10 = vadd.f32 %v2725_v11, %v7253_v24 }
 0x363   : > { %v2727_v3 = vpop.f32.mrf.mxu1 }
 0x364   : > { %v2728_v30 = vadd.f32 %v2727_v3, %v7253_v24 }
 0x365   : > { %v2731_v63 = vpop.f32.mrf.mxu1 }
 0x366   : > { %v2732_v49 = vadd.f32 %v2731_v63, %v7258_v7 }
 0x367   : > { %v2733_v15 = vpop.f32.mrf.mxu1 }
 0x368   : > { %v2734_v40 = vadd.f32 %v2733_v15, %v7258_v7 }
 0x369   : > { %v2735_v53 = vpop.f32.mrf.mxu1 }
 0x36a   : > { %v2736_v24 = vadd.f32 %v2735_v53, %v7268_v26 }
 0x36b   : > { %v2737_v33 = vpop.f32.mrf.mxu1 }
 0x36c   : > { %v2738_v7 = vadd.f32 %v2737_v33, %v7268_v26 }
 0x38a   : > { %v2774_v48 = vpop.f32.mrf.mxu0 }
 0x38b   : > { %v2775_v5 = vadd.f32 %v2774_v48, %v2722_v45 }
 0x38c   : > { %v2776_v31 = vpop.f32.mrf.mxu0 }
 0x38d   : > { %v2777_v56 = vadd.f32 %v2776_v31, %v2724_v54 }
 0x38e   : > { %v2778_v60 = vpop.f32.mrf.mxu0 }
 0x38f   : > { %v2779_v62 = vadd.f32 %v2778_v60, %v2726_v10 }
 0x390   : > { %v2780_v25 = vpop.f32.mrf.mxu0 }
 0x391   : > { %v2781_v44 = vadd.f32 %v2780_v25, %v2728_v30 }
 0x392   : > { %v2784_v38 = vpop.f32.mrf.mxu0 }
 0x393   : > { %v2785_v22 = vadd.f32 %v2784_v38, %v2732_v49 }
 0x394   : > { %v2786_v4 = vpop.f32.mrf.mxu0 }
 0x395   : > { %v2787_v61 = vadd.f32 %v2786_v4, %v2734_v40  ;;  %v2920_v40 = vld [vmem:[#allocation2 + $0x10] sm:$0xff] }
 0x396   : > { %v2788_v46 = vpop.f32.mrf.mxu0 }
 0x397   : > { %v2789_v35 = vadd.f32 %v2788_v46, %v2736_v24 }
 0x398   : > { %v2790_v55 = vpop.f32.mrf.mxu0 }
 0x399   : > { %v2791_v31 = vadd.f32 %v2790_v55, %v2738_v7  ;;  %v2954_v7 = vld [vmem:[#allocation3 + $0x18] sm:$0xff] }
 0x39e   : > { %v2827_v12 = vpop.f32.mrf.mxu1 }
 0x39f   : > { %v2828_v21 = vadd.f32 %v2827_v12, %v2775_v5 }
 0x3a0   : > { %v2829_v17 = vpop.f32.mrf.mxu1 }
 0x3a1   : > { %v2830_v23 = vadd.f32 %v2829_v17, %v2777_v56 }
 0x3a2   : > { %v2831_v57 = vpop.f32.mrf.mxu1  ;;  %v2880_v9 = vpop.f32.mrf.mxu0 }
 0x3a3   : > { %v2881_v52 = vadd.f32 %v2880_v9, %v2828_v21  ;;  %v2832_v41 = vadd.f32 %v2831_v57, %v2779_v62  ;;  %v2918_v62 = vld [vmem:[#allocation2] sm:$0xff] }
 0x3a4   : > { %v2833_v43 = vpop.f32.mrf.mxu1  ;;  %v2882_v51 = vpop.f32.mrf.mxu0 }
 0x3a5   : > { %2904 = vst [vmem:[%s7265_s26 + $0x10] sm:$0xff] %v2881_v52  ;;  %v2923_v39 = vadd.f32 %v7274_v42, %v2881_v52  ;;  %v2883_v0 = vadd.f32 %v2882_v51, %v2830_v23  ;;  %v2834_v16 = vadd.f32 %v2833_v43, %v2781_v44  ;;  %v2957_v18 = vmul.f32 %v2881_v52, %v2881_v52  ;;  %v2919_v23 = vld [vmem:[#allocation2 + $0x8] sm:$0xff]  ;;  %v2951_v44 = vld [vmem:[#allocation3] sm:$0xff] }
 0x3a6   : > { %v2837_v13 = vpop.f32.mrf.mxu1  ;;  %v2884_v32 = vpop.f32.mrf.mxu0 }
 0x3a7   : > { %2905 = vst [vmem:[%s7265_s26 + $0x18] sm:$0xff] %v2883_v0  ;;  %v2885_v8 = vadd.f32 %v2884_v32, %v2832_v41  ;;  %v2924_v47 = vadd.f32 %v2923_v39, %v2883_v0  ;;  %v2838_v6 = vadd.f32 %v2837_v13, %v2785_v22  ;;  %v2958_v63 = vmul.f32 %v2883_v0, %v2883_v0  ;;  %v2953_v13 = vld [vmem:[#allocation3 + $0x10] sm:$0xff]  ;;  %v2952_v32 = vld [vmem:[#allocation3 + $0x8] sm:$0xff] }
 0x3a8   : > { %v2839_v1 = vpop.f32.mrf.mxu1  ;;  %v2886_v2 = vpop.f32.mrf.mxu0  ;;  %v2972_v38 = vadd.f32 %v7278_v50, %v2957_v18 }
 0x3a9   : > { %2908 = vst [vmem:[%s7265_s26 + $0x30] sm:$0xff] %v2885_v8  ;;  %v2928_v42 = vadd.f32 %v7281_v14, %v2885_v8  ;;  %v2887_v29 = vadd.f32 %v2886_v2, %v2834_v16  ;;  %2925 = vadd.xlane.f32.xlu1 %v2924_v47  ;;  %v2840_v34 = vadd.f32 %v2839_v1, %v2787_v61 }
 0x3aa   : > { %v2841_v19 = vpop.f32.mrf.mxu1  ;;  %v2890_v27 = vpop.f32.mrf.mxu0  ;;  %v2961_v25 = vmul.f32 %v2885_v8, %v2885_v8  ;;  %v2973_v5 = vadd.f32 %v2972_v38, %v2958_v63 }
 0x3ab   : > { %2909 = vst [vmem:[%s7265_s26 + $0x38] sm:$0xff] %v2887_v29  ;;  %v2891_v28 = vadd.f32 %v2890_v27, %v2838_v6  ;;  %v2929_v11 = vadd.f32 %v2928_v42, %v2887_v29  ;;  %v2842_v3 = vadd.f32 %v2841_v19, %v2789_v35 }
 0x3ac   : > { %v2843_v26 = vpop.f32.mrf.mxu1  ;;  %v2892_v48 = vpop.f32.mrf.mxu0  ;;  %v2977_v55 = vadd.f32 %v7284_v37, %v2961_v25 }
 0x3ad   : > { %2912 = vst [vmem:[%s7265_s26 + $0x50] sm:$0xff] %v2891_v28  ;;  %v2933_v60 = vadd.f32 %v7287_v36, %v2891_v28  ;;  %v2893_v14 = vadd.f32 %v2892_v48, %v2840_v34  ;;  %2930 = vadd.xlane.f32.xlu0 %v2929_v11  ;;  %v2965_v53 = vmul.f32 %v2891_v28, %v2891_v28 }
 0x3ae   : > { %v2894_v15 = vpop.f32.mrf.mxu0  ;;  %v2844_v4 = vadd.f32 %v2843_v26, %v2791_v31  ;;  %v2962_v36 = vmul.f32 %v2887_v29, %v2887_v29 }
 0x3af   : > { %2913 = vst [vmem:[%s7265_s26 + $0x58] sm:$0xff] %v2893_v14  ;;  %v2895_v33 = vadd.f32 %v2894_v15, %v2842_v3  ;;  %v2934_v46 = vadd.f32 %v2933_v60, %v2893_v14  ;;  %v2966_v17 = vmul.f32 %v2893_v14, %v2893_v14  ;;  %v2982_v56 = vadd.f32 %v7289_v58, %v2965_v53 }
 0x3b0   : > { %v2896_v45 = vpop.f32.mrf.mxu0  ;;  %v2978_v57 = vadd.f32 %v2977_v55, %v2962_v36 }
 0x3b1   : > { %2916 = vst [vmem:[%s7265_s26 + $0x70] sm:$0xff] %v2895_v33  ;;  %v2938_v12 = vadd.f32 %v7293_v59, %v2895_v33  ;;  %v2897_v54 = vadd.f32 %v2896_v45, %v2844_v4  ;;  %2935 = vadd.xlane.f32.xlu0 %v2934_v46  ;;  %v2969_v10 = vmul.f32 %v2895_v33, %v2895_v33 }
 0x3b2   : > { %v2983_v30 = vadd.f32 %v2982_v56, %v2966_v17 }
 0x3b3   : > { %2917 = vst [vmem:[%s7265_s26 + $0x78] sm:$0xff] %v2897_v54  ;;  %v2939_v50 = vadd.f32 %v2938_v12, %v2897_v54  ;;  %v2970_v21 = vmul.f32 %v2897_v54, %v2897_v54  ;;  %v2987_v9 = vadd.f32 %v7295_v20, %v2969_v10  ;;  %v2921_v20 = vld [vmem:[#allocation2 + $0x18] sm:$0xff] }
 0x3b5   : > { %2974 = vadd.xlane.f32.xlu0 %v2973_v5  ;;  %2940 = vadd.xlane.f32.xlu1 %v2939_v50  ;;  %v2988_v59 = vadd.f32 %v2987_v9, %v2970_v21 }
 0x3b9   : > { %2984 = vadd.xlane.f32.xlu0 %v2983_v30  ;;  %2979 = vadd.xlane.f32.xlu1 %v2978_v57 }
 0x3bd   : > { %2989 = vadd.xlane.f32.xlu1 %v2988_v59 }
 0x432   : > { %v2926_v37 = vpop.xlane.xlu1 %2925 }
 0x433   : > { %v2942_v49 = vadd.f32 %v2926_v37, %v2918_v62 }
 0x435   : > { %2947 = vst.msk [vmem:[#allocation2] sm:$0xff] %vm2946_vm1, %v2942_v49 }
 0x436   : > { %v2931_v52 = vpop.xlane.xlu0 %2930 }
 0x437   : > { %v2943_v58 = vadd.f32 %v2931_v52, %v2919_v23 }
 0x439   : > { %2948 = vst.msk [vmem:[#allocation2 + $0x8] sm:$0xff] %vm2946_vm1, %v2943_v58 }
 0x43a   : > { %v2936_v43 = vpop.xlane.xlu0 %2935 }
 0x43b   : > { %v2944_v51 = vadd.f32 %v2936_v43, %v2920_v40 }
 0x43d   : > { %2949 = vst.msk [vmem:[#allocation2 + $0x10] sm:$0xff] %vm2946_vm1, %v2944_v51 }
 0x43e   : > { %v2975_v41 = vpop.xlane.xlu0 %2974  ;;  %v2941_v39 = vpop.xlane.xlu1 %2940 }
 0x43f   : > { %v2991_v0 = vadd.f32 %v2975_v41, %v2951_v44  ;;  %v2945_v24 = vadd.f32 %v2941_v39, %v2921_v20 }
 0x441   : > { %2995 = vst.msk [vmem:[#allocation3] sm:$0xff] %vm2946_vm1, %v2991_v0  ;;  %2950 = vst.msk [vmem:[#allocation2 + $0x18] sm:$0xff] %vm2946_vm1, %v2945_v24 }
 0x442   : > { %v2985_v22 = vpop.xlane.xlu0 %2984  ;;  %v2980_v16 = vpop.xlane.xlu1 %2979 }
 0x443   : > { %v2993_v8 = vadd.f32 %v2985_v22, %v2953_v13  ;;  %v2992_v47 = vadd.f32 %v2980_v16, %v2952_v32 }
 0x445   : > { %2997 = vst.msk [vmem:[#allocation3 + $0x10] sm:$0xff] %vm2946_vm1, %v2993_v8  ;;  %2996 = vst.msk [vmem:[#allocation3 + $0x8] sm:$0xff] %vm2946_vm1, %v2992_v47  ;;  %3002 = sbr.rel (%p3401_p5) target bundleno = 1285 (0x505), region = 56 }
 0x446   : > { %v2990_v1 = vpop.xlane.xlu1 %2989 }
 0x447   : > { %v2994_v2 = vadd.f32 %v2990_v1, %v2954_v7 }
 0x449   : > { %2998 = vst.msk [vmem:[#allocation3 + $0x18] sm:$0xff] %vm2946_vm1, %v2994_v2 }
 0x44a   : > { %v3005_v61 = vld [vmem:[#allocation2 + $0x10] sm:$0xff]  ;;  %v3555_v42 = vmov 0   ;;  %v3003_v19 = vld [vmem:[#allocation2] sm:$0xff]  ;;  %v3006_v28 = vld [vmem:[#allocation2 + $0x18] sm:$0xff] }
 0x44b   : > { %3519 = vset.pattern.permute.xlu1 %v3555_v42  ;;  %3518 = vset.pattern.permute.xlu0 %v3555_v42  ;;  %v3009_v29 = vmul.f32 0.0009765625, %v3005_v61  ;;  %v3011_v27 = vld [vmem:[#allocation3] sm:$0xff]  ;;  %v3007_v35 = vmul.f32 0.0009765625, %v3003_v19  ;;  %v3010_v48 = vmul.f32 0.0009765625, %v3006_v28  ;;  %v3004_v3 = vld [vmem:[#allocation2 + $0x8] sm:$0xff]  ;;  %v3029_v5 = vld [vmem:[%s7721_s4 + $0x10] sm:$0xff] }
 0x44c   : > { %v3013_v6 = vld [vmem:[#allocation3 + $0x10] sm:$0xff]  ;;  %v3015_v34 = vmul.f32 0.0009765625, %v3011_v27  ;;  %v3012_v60 = vld [vmem:[#allocation3 + $0x8] sm:$0xff]  ;;  %v3008_v63 = vmul.f32 0.0009765625, %v3004_v3  ;;  %v3027_v55 = vld [vmem:[%s7721_s4] sm:$0xff] }
 0x44d   : > { %v3017_v18 = vmul.f32 0.0009765625, %v3013_v6  ;;  %v3021_v26 = vmul.f32 %v3009_v29, %v3009_v29  ;;  %v3019_v14 = vmul.f32 %v3007_v35, %v3007_v35  ;;  %v3016_v25 = vmul.f32 0.0009765625, %v3012_v60  ;;  %v3030_v10 = vld [vmem:[%s7721_s4 + $0x18] sm:$0xff]  ;;  %v3028_v21 = vld [vmem:[%s7721_s4 + $0x8] sm:$0xff]  ;;  %v3043_v23 = vld [vmem:[%s7722_s5] sm:$0xff] }
 0x44e   : > { %v3022_v38 = vmul.f32 %v3010_v48, %v3010_v48  ;;  %v3020_v4 = vmul.f32 %v3008_v63, %v3008_v63  ;;  %v3044_v49 = vld [vmem:[%s7722_s5 + $0x8] sm:$0xff]  ;;  %v3046_v44 = vld [vmem:[%s7722_s5 + $0x18] sm:$0xff]  ;;  %v3045_v20 = vld [vmem:[%s7722_s5 + $0x10] sm:$0xff] }
 0x44f   : > { %v3025_v15 = vsub.f32 %v3017_v18, %v3021_v26  ;;  %v3023_v53 = vsub.f32 %v3015_v34, %v3019_v14  ;;  %v3055_v0 = vld [vmem:[%s7724_s7] sm:$0xff]  ;;  %v3056_v24 = vld [vmem:[%s7724_s7 + $0x8] sm:$0xff]  ;;  %v3057_v13 = vld [vmem:[%s7724_s7 + $0x10] sm:$0xff] }
 0x450   : > { %v3014_v11 = vld [vmem:[#allocation3 + $0x18] sm:$0xff]  ;;  %v3024_v12 = vsub.f32 %v3016_v25, %v3020_v4  ;;  %v3063_v22 = vld [vmem:[%s7724_s7 + $0x40] sm:$0xff]  ;;  %v3064_v16 = vld [vmem:[%s7724_s7 + $0x48] sm:$0xff] }
 0x451   : > { %v3018_v31 = vmul.f32 0.0009765625, %v3014_v11  ;;  %v3033_v33 = vadd.f32 1e-05, %v3025_v15  ;;  %v3031_v45 = vadd.f32 1e-05, %v3023_v53  ;;  %v3058_v32 = vld [vmem:[%s7724_s7 + $0x18] sm:$0xff] }
 0x452   : > { %v3032_v36 = vadd.f32 1e-05, %v3024_v12  ;;  %v3065_v8 = vld [vmem:[%s7724_s7 + $0x50] sm:$0xff]  ;;  %v3066_v47 = vld [vmem:[%s7724_s7 + $0x58] sm:$0xff]  ;;  %v3071_v7 = vld [vmem:[%s7724_s7 + $0x80] sm:$0xff] }
 0x453   : > { %v3026_v46 = vsub.f32 %v3018_v31, %v3022_v38  ;;  %3520 = vrsqrt.f32 %v3033_v33  ;;  %v3072_v1 = vld [vmem:[%s7724_s7 + $0x88] sm:$0xff]  ;;  %v3073_v2 = vld [vmem:[%s7724_s7 + $0x90] sm:$0xff]  ;;  %v3074_v6 = vld [vmem:[%s7724_s7 + $0x98] sm:$0xff] }
 0x454   : > { %3522 = vrsqrt.f32 %v3031_v45  ;;  %v3067_v42 = vld [vmem:[%s7724_s7 + $0x60] sm:$0xff]  ;;  %v3060_v27 = vld [vmem:[%s7724_s7 + $0x28] sm:$0xff]  ;;  %v3081_v28 = vld [vmem:[%s7724_s7 + $0xd0] sm:$0xff] }
 0x455   : > { %v3034_v54 = vadd.f32 1e-05, %v3026_v46  ;;  %v3059_v19 = vld [vmem:[%s7724_s7 + $0x20] sm:$0xff]  ;;  %v3080_v34 = vld [vmem:[%s7724_s7 + $0xc8] sm:$0xff]  ;;  %v3082_v11 = vld [vmem:[%s7724_s7 + $0xd8] sm:$0xff] }
 0x456   : > { %v3068_v15 = vld [vmem:[%s7724_s7 + $0x68] sm:$0xff]  ;;  %v3069_v38 = vld [vmem:[%s7724_s7 + $0x70] sm:$0xff]  ;;  %v3070_v53 = vld [vmem:[%s7724_s7 + $0x78] sm:$0xff] }
 0x457   : > { %3524 = vrsqrt.f32 %v3034_v54  ;;  %v3062_v12 = vld [vmem:[%s7724_s7 + $0x38] sm:$0xff]  ;;  %v3075_v54 = vld [vmem:[%s7724_s7 + $0xa0] sm:$0xff] }
 0x458   : > { %3526 = vrsqrt.f32 %v3032_v36  ;;  %v3076_v36 = vld [vmem:[%s7724_s7 + $0xa8] sm:$0xff] }
 0x460   : > { %v3521_v17 = vpop.eup %3520 }
 0x461   : > { %v3523_v50 = vpop.eup %3522  ;;  %v3041_v56 = vmul.f32 %v3521_v17, %v3029_v5  ;;  %v3078_v17 = vld [vmem:[%s7724_s7 + $0xb8] sm:$0xff] }
 0x462   : > { %v3039_v57 = vmul.f32 %v3523_v50, %v3027_v55  ;;  %v3077_v55 = vld [vmem:[%s7724_s7 + $0xb0] sm:$0xff] }
 0x463   : > { %3099 = vperm.xlu1 %3519, %v3041_v56   ;;  %v3049_v40 = vmul.f32 %v3041_v56, %v3009_v29  ;;  %v3079_v29 = vld [vmem:[%s7724_s7 + $0xc0] sm:$0xff] }
 0x464   : > { %v3525_v30 = vpop.eup %3524  ;;  %3089 = vperm.xlu0 %3518, %v3039_v57   ;;  %v3047_v62 = vmul.f32 %v3039_v57, %v3007_v35  ;;  %v3061_v35 = vld [vmem:[%s7724_s7 + $0x30] sm:$0xff] }
 0x465   : > { %v3527_v9 = vpop.eup %3526  ;;  %v3042_v59 = vmul.f32 %v3525_v30, %v3030_v10  ;;  %v3053_v39 = vsub.f32 %v3045_v20, %v3049_v40  ;;  %v3083_v10 = vld [vmem:[%s7724_s7 + $0xe0] sm:$0xff] }
 0x466   : > { %v3040_v37 = vmul.f32 %v3527_v9, %v3028_v21  ;;  %v3051_v51 = vsub.f32 %v3043_v23, %v3047_v62  ;;  %v3084_v9 = vld [vmem:[%s7724_s7 + $0xe8] sm:$0xff]  ;;  %v3086_v62 = vld [vmem:[%s7724_s7 + $0xf8] sm:$0xff] }
 0x467   : > { %3104 = vperm.xlu1 %3519, %v3042_v59   ;;  %v3050_v58 = vmul.f32 %v3042_v59, %v3010_v48  ;;  %v3085_v59 = vld [vmem:[%s7724_s7 + $0xf0] sm:$0xff] }
 0x468   : > { %v3048_v52 = vmul.f32 %v3040_v37, %v3008_v63  ;;  %3094 = vperm.xlu0 %3518, %v3040_v37  }
 0x469   : > { %v3054_v41 = vsub.f32 %v3046_v44, %v3050_v58 }
 0x46a   : > { %v3052_v43 = vsub.f32 %v3044_v49, %v3048_v52 }
 0x46c   : > { %3146 = vperm.xlu1 %3519, %v3052_v43   ;;  %3141 = vperm.xlu0 %3518, %v3051_v51  }
 0x470   : > { %3156 = vperm.xlu1 %3519, %v3054_v41   ;;  %3151 = vperm.xlu0 %3518, %v3053_v39  }
 0x4de   : > { %v3100_v61 = vpop.permute.xlu1 %3099 }
 0x4df   : > { %v3090_v18 = vpop.permute.xlu0 %3089  ;;  %v7414_v26 = vmul.f32 %v3100_v61, %v3063_v22  ;;  %v7416_v48 = vmul.f32 %v3100_v61, %v3064_v16  ;;  %v7418_v31 = vmul.f32 %v3100_v61, %v3065_v8  ;;  %v7420_v3 = vmul.f32 %v3100_v61, %v3066_v47  ;;  %v3227_v16 = vld [vmem:[%s7723_s6 + $0x20] sm:$0xff]  ;;  %v3228_v8 = vld [vmem:[%s7723_s6 + $0x28] sm:$0xff]  ;;  %v3229_v47 = vld [vmem:[%s7723_s6 + $0x30] sm:$0xff] }
 0x4e0   : > { %v7422_v60 = vmul.f32 %v3090_v18, %v3055_v0  ;;  %v7424_v14 = vmul.f32 %v3090_v18, %v3056_v24  ;;  %v7426_v63 = vmul.f32 %v3090_v18, %v3057_v13  ;;  %v7428_v25 = vmul.f32 %v3090_v18, %v3058_v32 }
 0x4e1   : > { %v7439_v4 = vmul.f32 %v3090_v18, %v3071_v7  ;;  %v7441_v33 = vmul.f32 %v3090_v18, %v3072_v1  ;;  %v7443_v46 = vmul.f32 %v3090_v18, %v3073_v2  ;;  %v7445_v45 = vmul.f32 %v3090_v18, %v3074_v6  ;;  %v3230_v6 = vld [vmem:[%s7723_s6 + $0x38] sm:$0xff] }
 0x4e2   : > { %v3105_v5 = vpop.permute.xlu1 %3104  ;;  %v7465_v50 = vmul.f32 %v3100_v61, %v3079_v29  ;;  %v7467_v56 = vmul.f32 %v3100_v61, %v3080_v34  ;;  %v7469_v21 = vmul.f32 %v3100_v61, %v3081_v28  ;;  %v7471_v30 = vmul.f32 %v3100_v61, %v3082_v11  ;;  %v3244_v29 = vld [vmem:[%s7723_s6 + $0xa8] sm:$0xff]  ;;  %v3245_v34 = vld [vmem:[%s7723_s6 + $0xb0] sm:$0xff]  ;;  %v3246_v28 = vld [vmem:[%s7723_s6 + $0xb8] sm:$0xff] }
 0x4e3   : > { %v3095_v57 = vpop.permute.xlu0 %3094  ;;  %v7482_v37 = vmul.f32 %v3105_v5, %v3067_v42  ;;  %v7484_v49 = vmul.f32 %v3105_v5, %v3068_v15  ;;  %v7486_v23 = vmul.f32 %v3105_v5, %v3069_v38  ;;  %v7488_v52 = vmul.f32 %v3105_v5, %v3070_v53  ;;  %v3243_v42 = vld [vmem:[%s7723_s6 + $0xa0] sm:$0xff] }
 0x4e4   : > { %v3111_v58 = vmul.f32 %v3095_v57, %v3059_v19  ;;  %v3112_v40 = vmul.f32 %v3095_v57, %v3060_v27  ;;  %v3113_v43 = vmul.f32 %v3095_v57, %v3061_v35  ;;  %v3114_v51 = vmul.f32 %v3095_v57, %v3062_v12 }
 0x4e5   : > { %v3127_v44 = vmul.f32 %v3095_v57, %v3075_v54  ;;  %v3128_v20 = vmul.f32 %v3095_v57, %v3076_v36  ;;  %v3129_v41 = vmul.f32 %v3095_v57, %v3077_v55  ;;  %v3130_v39 = vmul.f32 %v3095_v57, %v3078_v17 }
 0x4e6   : > { %v7490_v24 = vmul.f32 %v3105_v5, %v3083_v10  ;;  %v7492_v13 = vmul.f32 %v3105_v5, %v3084_v9  ;;  %v7494_v32 = vmul.f32 %v3105_v5, %v3085_v59  ;;  %v7496_v22 = vmul.f32 %v3105_v5, %v3086_v62 }
 0x4e7   : > { %v3147_v0 = vpop.permute.xlu1 %3146  ;;  %v3142_v55 = vpop.permute.xlu0 %3141 }
 0x4e8   : > { %v3163_v7 = vadd.f32 %v3147_v0, %v3111_v58  ;;  %v3164_v1 = vadd.f32 %v3147_v0, %v3112_v40  ;;  %v3165_v2 = vadd.f32 %v3147_v0, %v3113_v43  ;;  %v3166_v61 = vadd.f32 %v3147_v0, %v3114_v51  ;;  %v3223_v43 = vld [vmem:[%s7723_s6] sm:$0xff]  ;;  %v3224_v51 = vld [vmem:[%s7723_s6 + $0x8] sm:$0xff] }
 0x4e9   : > { %v3179_v18 = vadd.f32 %v3147_v0, %v3127_v44  ;;  %v3180_v19 = vadd.f32 %v3147_v0, %v3128_v20  ;;  %v3181_v27 = vadd.f32 %v3147_v0, %v3129_v41  ;;  %v3182_v35 = vadd.f32 %v3147_v0, %v3130_v39  ;;  %v3225_v44 = vld [vmem:[%s7723_s6 + $0x10] sm:$0xff] }
 0x4ea   : > { %v3195_v11 = vmax.f32 %v3163_v7, 0.0  ;;  %v3196_v15 = vmax.f32 %v3164_v1, 0.0  ;;  %v3197_v38 = vmax.f32 %v3165_v2, 0.0  ;;  %v3198_v53 = vmax.f32 %v3166_v61, 0.0  ;;  %v3241_v7 = vld [vmem:[%s7723_s6 + $0x90] sm:$0xff]  ;;  %v3242_v1 = vld [vmem:[%s7723_s6 + $0x98] sm:$0xff] }
 0x4eb   : > { %v3211_v12 = vmax.f32 %v3179_v18, 0.0  ;;  %v3212_v54 = vmax.f32 %v3180_v19, 0.0  ;;  %v3213_v36 = vmax.f32 %v3181_v27, 0.0  ;;  %v3214_v5 = vmax.f32 %v3182_v35, 0.0  ;;  %v3157_v19 = vpop.permute.xlu1 %3156 }
 0x4ec   : > { %v3259_v17 = vadd.f32 %v3227_v16, %v3195_v11  ;;  %v3260_v10 = vadd.f32 %v3228_v8, %v3196_v15  ;;  %v3261_v57 = vadd.f32 %v3229_v47, %v3197_v38  ;;  %v3262_v9 = vadd.f32 %v3230_v6, %v3198_v53  ;;  %v3235_v38 = vld [vmem:[%s7723_s6 + $0x60] sm:$0xff]  ;;  %v3236_v53 = vld [vmem:[%s7723_s6 + $0x68] sm:$0xff] }
 0x4ed   : > { %v3275_v59 = vadd.f32 %v3243_v42, %v3211_v12  ;;  %v3276_v62 = vadd.f32 %v3244_v29, %v3212_v54  ;;  %v3277_v58 = vadd.f32 %v3245_v34, %v3213_v36  ;;  %v3278_v40 = vadd.f32 %v3246_v28, %v3214_v5  ;;  %v3237_v12 = vld [vmem:[%s7723_s6 + $0x70] sm:$0xff] }
 0x4ee   : > { %3291 = vst [vmem:[%s7724_s7 + $0x20] sm:$0xff] %v3259_v17  ;;  %3292 = vst [vmem:[%s7724_s7 + $0x28] sm:$0xff] %v3260_v10  ;;  %v3159_v20 = vadd.f32 %v3142_v55, %v7422_v60  ;;  %v3160_v41 = vadd.f32 %v3142_v55, %v7424_v14  ;;  %v3161_v39 = vadd.f32 %v3142_v55, %v7426_v63  ;;  %v3226_v60 = vld [vmem:[%s7723_s6 + $0x18] sm:$0xff]  ;;  %v3239_v14 = vld [vmem:[%s7723_s6 + $0x80] sm:$0xff] }
 0x4ef   : > { %3293 = vst [vmem:[%s7724_s7 + $0x30] sm:$0xff] %v3261_v57  ;;  %3294 = vst [vmem:[%s7724_s7 + $0x38] sm:$0xff] %v3262_v9  ;;  %v3162_v0 = vadd.f32 %v3142_v55, %v7428_v25  ;;  %v3240_v63 = vld [vmem:[%s7723_s6 + $0x88] sm:$0xff]  ;;  %v3175_v25 = vadd.f32 %v3142_v55, %v7439_v4  ;;  %v3176_v16 = vadd.f32 %v3142_v55, %v7441_v33  ;;  %v3253_v9 = vld [vmem:[%s7723_s6 + $0xf0] sm:$0xff] }
 0x4f0   : > { %3307 = vst [vmem:[%s7724_s7 + $0xa0] sm:$0xff] %v3275_v59  ;;  %3308 = vst [vmem:[%s7724_s7 + $0xa8] sm:$0xff] %v3276_v62  ;;  %v3177_v8 = vadd.f32 %v3142_v55, %v7443_v46  ;;  %v3178_v47 = vadd.f32 %v3142_v55, %v7445_v45  ;;  %v3191_v2 = vmax.f32 %v3159_v20, 0.0  ;;  %v3192_v61 = vmax.f32 %v3160_v41, 0.0  ;;  %v3254_v59 = vld [vmem:[%s7723_s6 + $0xf8] sm:$0xff]  ;;  %v3152_v20 = vpop.permute.xlu0 %3151 }
 0x4f1   : > { %3309 = vst [vmem:[%s7724_s7 + $0xb0] sm:$0xff] %v3277_v58  ;;  %3310 = vst [vmem:[%s7724_s7 + $0xb8] sm:$0xff] %v3278_v40  ;;  %v3193_v6 = vmax.f32 %v3161_v39, 0.0  ;;  %v3194_v42 = vmax.f32 %v3162_v0, 0.0  ;;  %v3207_v29 = vmax.f32 %v3175_v25, 0.0  ;;  %v3208_v4 = vmax.f32 %v3176_v16, 0.0 }
 0x4f2   : > { %v3209_v18 = vmax.f32 %v3177_v8, 0.0  ;;  %v3210_v33 = vmax.f32 %v3178_v47, 0.0  ;;  %v3255_v46 = vadd.f32 %v3223_v43, %v3191_v2  ;;  %v3256_v27 = vadd.f32 %v3224_v51, %v3192_v61  ;;  %v3231_v25 = vld [vmem:[%s7723_s6 + $0x40] sm:$0xff]  ;;  %v3232_v16 = vld [vmem:[%s7723_s6 + $0x48] sm:$0xff]  ;;  %v3233_v8 = vld [vmem:[%s7723_s6 + $0x50] sm:$0xff] }
 0x4f3   : > { %v3257_v45 = vadd.f32 %v3225_v44, %v3193_v6  ;;  %v3258_v35 = vadd.f32 %v3226_v60, %v3194_v42  ;;  %v3271_v34 = vadd.f32 %v3239_v14, %v3207_v29  ;;  %v3272_v28 = vadd.f32 %v3240_v63, %v3208_v4  ;;  %v3249_v29 = vld [vmem:[%s7723_s6 + $0xd0] sm:$0xff]  ;;  %v3250_v4 = vld [vmem:[%s7723_s6 + $0xd8] sm:$0xff] }
 0x4f4   : > { %v3273_v11 = vadd.f32 %v3241_v7, %v3209_v18  ;;  %v3274_v15 = vadd.f32 %v3242_v1, %v3210_v33  ;;  %3287 = vst [vmem:[%s7724_s7] sm:$0xff] %v3255_v46  ;;  %3288 = vst [vmem:[%s7724_s7 + $0x8] sm:$0xff] %v3256_v27  ;;  %v3171_v54 = vadd.f32 %v3157_v19, %v7482_v37  ;;  %v3238_v37 = vld [vmem:[%s7723_s6 + $0x78] sm:$0xff] }
 0x4f5   : > { %3289 = vst [vmem:[%s7724_s7 + $0x10] sm:$0xff] %v3257_v45  ;;  %3290 = vst [vmem:[%s7724_s7 + $0x18] sm:$0xff] %v3258_v35  ;;  %v3172_v36 = vadd.f32 %v3157_v19, %v7484_v49  ;;  %v3173_v5 = vadd.f32 %v3157_v19, %v7486_v23  ;;  %v3174_v55 = vadd.f32 %v3157_v19, %v7488_v52  ;;  %v3251_v49 = vld [vmem:[%s7723_s6 + $0xe0] sm:$0xff]  ;;  %v3252_v23 = vld [vmem:[%s7723_s6 + $0xe8] sm:$0xff] }
 0x4f6   : > { %3303 = vst [vmem:[%s7724_s7 + $0x80] sm:$0xff] %v3271_v34  ;;  %3304 = vst [vmem:[%s7724_s7 + $0x88] sm:$0xff] %v3272_v28  ;;  %v3187_v52 = vadd.f32 %v3157_v19, %v7490_v24  ;;  %v3188_v17 = vadd.f32 %v3157_v19, %v7492_v13  ;;  %v3189_v10 = vadd.f32 %v3157_v19, %v7494_v32  ;;  %v3203_v62 = vmax.f32 %v3171_v54, 0.0 }
 0x4f7   : > { %3305 = vst [vmem:[%s7724_s7 + $0x90] sm:$0xff] %v3273_v11  ;;  %3306 = vst [vmem:[%s7724_s7 + $0x98] sm:$0xff] %v3274_v15  ;;  %v3190_v57 = vadd.f32 %v3157_v19, %v7496_v22  ;;  %v3204_v58 = vmax.f32 %v3172_v36, 0.0  ;;  %v3205_v40 = vmax.f32 %v3173_v5, 0.0  ;;  %v3206_v43 = vmax.f32 %v3174_v55, 0.0 }
 0x4f8   : > { %v3219_v51 = vmax.f32 %v3187_v52, 0.0  ;;  %v3220_v24 = vmax.f32 %v3188_v17, 0.0  ;;  %v3221_v44 = vmax.f32 %v3189_v10, 0.0  ;;  %v3267_v32 = vadd.f32 %v3235_v38, %v3203_v62 }
 0x4f9   : > { %v3222_v13 = vmax.f32 %v3190_v57, 0.0  ;;  %v3268_v41 = vadd.f32 %v3236_v53, %v3204_v58  ;;  %v3269_v22 = vadd.f32 %v3237_v12, %v3205_v40  ;;  %v3270_v39 = vadd.f32 %v3238_v37, %v3206_v43 }
 0x4fa   : > { %v3283_v0 = vadd.f32 %v3251_v49, %v3219_v51  ;;  %v3284_v60 = vadd.f32 %v3252_v23, %v3220_v24  ;;  %v3285_v14 = vadd.f32 %v3253_v9, %v3221_v44  ;;  %3299 = vst [vmem:[%s7724_s7 + $0x60] sm:$0xff] %v3267_v32  ;;  %v3167_v47 = vadd.f32 %v3152_v20, %v7414_v26  ;;  %v3234_v26 = vld [vmem:[%s7723_s6 + $0x58] sm:$0xff] }
 0x4fb   : > { %v3286_v63 = vadd.f32 %v3254_v59, %v3222_v13  ;;  %3300 = vst [vmem:[%s7724_s7 + $0x68] sm:$0xff] %v3268_v41  ;;  %3301 = vst [vmem:[%s7724_s7 + $0x70] sm:$0xff] %v3269_v22  ;;  %v3168_v7 = vadd.f32 %v3152_v20, %v7416_v48  ;;  %v3169_v1 = vadd.f32 %v3152_v20, %v7418_v31  ;;  %v3247_v48 = vld [vmem:[%s7723_s6 + $0xc0] sm:$0xff]  ;;  %v3248_v31 = vld [vmem:[%s7723_s6 + $0xc8] sm:$0xff] }
 0x4fc   : > { %3302 = vst [vmem:[%s7724_s7 + $0x78] sm:$0xff] %v3270_v39  ;;  %v3170_v2 = vadd.f32 %v3152_v20, %v7420_v3  ;;  %3315 = vst [vmem:[%s7724_s7 + $0xe0] sm:$0xff] %v3283_v0  ;;  %v3183_v3 = vadd.f32 %v3152_v20, %v7465_v50  ;;  %v3184_v61 = vadd.f32 %v3152_v20, %v7467_v56  ;;  %v3199_v18 = vmax.f32 %v3167_v47, 0.0 }
 0x4fd   : > { %3316 = vst [vmem:[%s7724_s7 + $0xe8] sm:$0xff] %v3284_v60  ;;  %3317 = vst [vmem:[%s7724_s7 + $0xf0] sm:$0xff] %v3285_v14  ;;  %v3185_v6 = vadd.f32 %v3152_v20, %v7469_v21  ;;  %v3186_v42 = vadd.f32 %v3152_v20, %v7471_v30  ;;  %v3200_v33 = vmax.f32 %v3168_v7, 0.0  ;;  %v3201_v19 = vmax.f32 %v3169_v1, 0.0 }
 0x4fe   : > { %3318 = vst [vmem:[%s7724_s7 + $0xf8] sm:$0xff] %v3286_v63  ;;  %v3202_v46 = vmax.f32 %v3170_v2, 0.0  ;;  %v3215_v27 = vmax.f32 %v3183_v3, 0.0  ;;  %v3216_v50 = vmax.f32 %v3184_v61, 0.0  ;;  %v3263_v35 = vadd.f32 %v3231_v25, %v3199_v18 }
 0x4ff   : > { %v3217_v45 = vmax.f32 %v3185_v6, 0.0  ;;  %v3218_v56 = vmax.f32 %v3186_v42, 0.0  ;;  %v3264_v21 = vadd.f32 %v3232_v16, %v3200_v33  ;;  %v3265_v34 = vadd.f32 %v3233_v8, %v3201_v19 }
 0x500   : > { %v3266_v30 = vadd.f32 %v3234_v26, %v3202_v46  ;;  %v3279_v28 = vadd.f32 %v3247_v48, %v3215_v27  ;;  %v3280_v11 = vadd.f32 %v3248_v31, %v3216_v50  ;;  %3295 = vst [vmem:[%s7724_s7 + $0x40] sm:$0xff] %v3263_v35 }
 0x501   : > { %v3281_v15 = vadd.f32 %v3249_v29, %v3217_v45  ;;  %v3282_v38 = vadd.f32 %v3250_v4, %v3218_v56  ;;  %3296 = vst [vmem:[%s7724_s7 + $0x48] sm:$0xff] %v3264_v21  ;;  %3297 = vst [vmem:[%s7724_s7 + $0x50] sm:$0xff] %v3265_v34 }
 0x502   : > { %3298 = vst [vmem:[%s7724_s7 + $0x58] sm:$0xff] %v3266_v30  ;;  %3311 = vst [vmem:[%s7724_s7 + $0xc0] sm:$0xff] %v3279_v28 }
 0x503   : > { %3312 = vst [vmem:[%s7724_s7 + $0xc8] sm:$0xff] %v3280_v11  ;;  %3313 = vst [vmem:[%s7724_s7 + $0xd0] sm:$0xff] %v3281_v15 }
 0x504   : > { %3314 = vst [vmem:[%s7724_s7 + $0xd8] sm:$0xff] %v3282_v38 }
 0x505 PF: > { %s17_s24 = sadd.s32 1, %s3534_s24  }
 0x506   : > { %p14_p6 = scmp.ge.s32.totalorder %s17_s24, 4  }
 0x508   :  { %16 = sbr.rel (!%p14_p6) target bundleno = 1 (0x1), region = 108 }

</bundles_post_ra>
